<compile_context>
chip_gen: v7x
topology: tpu7x:2x2x1
jax: 0.10.0
libtpu: 0.0.40
codegen_flags: <defaults>
</compile_context>

<pallas_src>
import numpy as np
import jax
import jax.numpy as jnp
from jax.experimental import pallas as pl
from jax.experimental.pallas import tpu as pltpu

# ----------------------------------------------------------------------------
# Model geometry (LeNet on 28x28x1 input, as implied by fc1 = Linear(4*4*16, 120))
# ----------------------------------------------------------------------------
H0, W0, C0 = 28, 28, 1
K = 5
C1 = 6
H1, W1 = H0 - K + 1, W0 - K + 1        # 24, 24
HP1, WP1 = H1 // 2, W1 // 2            # 12, 12
C2 = 16
H2, W2 = HP1 - K + 1, WP1 - K + 1      # 8, 8
HP2, WP2 = H2 // 2, W2 // 2            # 4, 4
F1, F2, F3 = 120, 84, 10
F3_PAD = 128                           # lane-dense padded logits width
HP1_PAD = 16                           # pooled-1 rows per image, padded to mult. of 8

TB = 16  # images per grid step: >=16 fills the 256-tall MXU on v6e/v7x (use 8 on v5e)


# ----------------------------------------------------------------------------
# Pallas kernel: TB images per grid step, everything resident in VMEM.
# ----------------------------------------------------------------------------
def _dot(a, b):
    return jnp.dot(a, b, preferred_element_type=jnp.float32)


def _lenet_kernel(x_ref, m1_ref, b1_ref, rp1_ref, s1_ref,
                  m2_ref, b2_ref, g2e_ref, g2o_ref, s2_ref,
                  wf1_ref, bf1_ref, wf2_ref, bf2_ref, wf3_ref, bf3_ref,
                  out_ref):
    x = x_ref[...]                                               # (TB, 28, 28)

    # conv1 + bias + ReLU: 5 banded matmuls on the batch-stacked LHS.
    acc = None
    for kh in range(K):
        lhs = x[:, kh:kh + H1, :].reshape(TB * H1, W0)           # (TB*24, 28)
        term = _dot(lhs, m1_ref[kh])                             # (TB*24, 144)
        acc = term if acc is None else acc + term
    c1 = jnp.maximum(acc + b1_ref[...], 0.0)                     # (TB*24, 144)

    # pool1: rows via padded 0/1 compaction matmuls (24 -> 16 rows/image, rows
    # 0..11 valid, rest zero), then columns via per-image lane selectors.
    p1 = jnp.maximum(_dot(rp1_ref[0], c1), _dot(rp1_ref[1], c1))     # (TB*16, 144)
    q1 = jnp.maximum(_dot(p1, s1_ref[0]), _dot(p1, s1_ref[1]))       # (TB*16, 72)
    q1 = q1.reshape(TB, HP1_PAD, WP1 * C1)                           # (TB, 16, 72)

    # conv2 + bias + ReLU: 5 banded matmuls, again batch-stacked.
    acc = None
    for kh in range(K):
        lhs = q1[:, kh:kh + H2, :].reshape(TB * H2, WP1 * C1)        # (TB*8, 72)
        term = _dot(lhs, m2_ref[kh])                                 # (TB*8, 128)
        acc = term if acc is None else acc + term
    c2 = jnp.maximum(acc + b2_ref[...], 0.0)                         # (TB*8, 128)

    # pool2 columns.
    q2 = jnp.maximum(_dot(c2, s2_ref[0]), _dot(c2, s2_ref[1]))       # (TB*8, 64)

    # pool2 rows fused with fc1: for each pooled row h, gather the two source rows
    # per image with 0/1 selectors, max them, and contract with wf1[h].
    acc = None
    for h in range(HP2):
        ph = jnp.maximum(_dot(g2e_ref[h], q2), _dot(g2o_ref[h], q2))  # (TB, 64)
        term = _dot(ph, wf1_ref[h])                                   # (TB, 120)
        acc = term if acc is None else acc + term
    f = jnp.maximum(acc + bf1_ref[...], 0.0)                      # (TB, 120)
    f = jnp.maximum(_dot(f, wf2_ref[...]) + bf2_ref[...], 0.0)    # (TB, 84)
    out_ref[...] = _dot(f, wf3_ref[...]) + bf3_ref[...]           # (TB, 128) lane-dense


# ----------------------------------------------------------------------------
# Weight-only transforms (done once, outside the kernel)
# ----------------------------------------------------------------------------
def _band_matrices(w, w_in, w_out):
    """w: (kh, kw, cin, cout) -> (kh, w_in*cin, w_out*cout) banded conv matrices."""
    kh, kw, cin, cout = w.shape
    dk = np.arange(kw)[:, None, None]
    iw = np.arange(w_in)[None, :, None]
    ow = np.arange(w_out)[None, None, :]
    sel = jnp.asarray((iw == ow + dk).astype(np.float32))     # (kw, w_in, w_out)
    m = jnp.einsum("dio,kdcq->kicoq", sel, w)                 # (kh, w_in, cin, w_out, cout)
    return m.reshape(kh, w_in * cin, w_out * cout)


def _col_pool_selectors(w_in, c):
    """(2, w_in*c, w_out*c) 0/1 lane selectors for 2x/stride-2 max-pool columns."""
    w_out = w_in // 2
    col = np.zeros((2, w_in * c, w_out * c), np.float32)
    j = np.repeat(np.arange(w_out), c)
    cc = np.tile(np.arange(c), w_out)
    col[0, 2 * j * c + cc, j * c + cc] = 1.0
    col[1, (2 * j + 1) * c + cc, j * c + cc] = 1.0
    return jnp.asarray(col)


def _row_pool_selectors_padded(tb, h_in, h_out_pad):
    """(2, tb*h_out_pad, tb*h_in) even/odd row selectors with per-image padding."""
    h_out = h_in // 2
    sel = np.zeros((2, tb * h_out_pad, tb * h_in), np.float32)
    b = np.repeat(np.arange(tb), h_out)
    j = np.tile(np.arange(h_out), tb)
    for par in range(2):
        sel[par, b * h_out_pad + j, b * h_in + 2 * j + par] = 1.0
    return jnp.asarray(sel)


def _fc_gather_selectors(tb, h_in, h_out):
    """Even/odd per-pooled-row gather selectors, each (h_out, tb, tb*h_in)."""
    sel = np.zeros((2, h_out, tb, tb * h_in), np.float32)
    b = np.arange(tb)
    for par in range(2):
        for h in range(h_out):
            sel[par, h, b, b * h_in + 2 * h + par] = 1.0
    return jnp.asarray(sel[0]), jnp.asarray(sel[1])


def prepare_params(p, tb=TB):
    """PyTorch-layout params -> kernel-ready operands (weight-only transforms)."""
    w1 = jnp.transpose(p["conv1_w"].astype(jnp.float32), (2, 3, 1, 0))   # (kh,kw,cin,cout)
    w2 = jnp.transpose(p["conv2_w"].astype(jnp.float32), (2, 3, 1, 0))
    m1 = _band_matrices(w1, W0, W1)                       # (5, 28, 144)
    m2 = _band_matrices(w2, WP1, W2)                      # (5, 72, 128)
    b1 = jnp.tile(p["conv1_b"].astype(jnp.float32), W1).reshape(1, W1 * C1)
    b2 = jnp.tile(p["conv2_b"].astype(jnp.float32), W2).reshape(1, W2 * C2)
    s1 = _col_pool_selectors(W1, C1)                      # (2, 144, 72)
    s2 = _col_pool_selectors(W2, C2)                      # (2, 128, 64)
    rp1 = _row_pool_selectors_padded(tb, H1, HP1_PAD)     # (2, tb*16, tb*24)
    g2e, g2o = _fc_gather_selectors(tb, H2, HP2)          # each (4, tb, tb*8)
    # fc1: reorder PyTorch's (c, h, w) flatten to the kernel's (h, w*c) layout.
    wf1 = (p["fc1_w"].astype(jnp.float32)
           .reshape(F1, C2, HP2, WP2)
           .transpose(2, 3, 1, 0)
           .reshape(HP2, WP2 * C2, F1))                   # (4, 64, 120)
    # fc3: pad outputs 10 -> 128 so the kernel's final store is unmasked/lane-dense.
    wf3 = jnp.zeros((F2, F3_PAD), jnp.float32).at[:, :F3].set(
        p["fc3_w"].astype(jnp.float32).T)
    bf3 = jnp.zeros((1, F3_PAD), jnp.float32).at[:, :F3].set(
        p["fc3_b"].astype(jnp.float32))
    return dict(
        m1=m1, b1=b1, rp1=rp1, s1=s1, m2=m2, b2=b2, g2e=g2e, g2o=g2o, s2=s2,
        wf1=wf1, bf1=p["fc1_b"].astype(jnp.float32).reshape(1, F1),
        wf2=p["fc2_w"].astype(jnp.float32).T,
        bf2=p["fc2_b"].astype(jnp.float32).reshape(1, F2),
        wf3=wf3, bf3=bf3,
    )


# ----------------------------------------------------------------------------
# Forward pass
# ----------------------------------------------------------------------------
_WEIGHT_ORDER = ("m1", "b1", "rp1", "s1", "m2", "b2", "g2e", "g2o", "s2",
                 "wf1", "bf1", "wf2", "bf2", "wf3", "bf3")


@jax.jit
def net_forward(x_nchw, kparams):
    n = x_nchw.shape[0]
    n_pad = pl.cdiv(n, TB) * TB
    x = x_nchw.astype(jnp.float32).reshape(n, H0, W0)     # NCHW, C=1 -> (N, 28, 28)
    if n_pad != n:
        x = jnp.pad(x, ((0, n_pad - n), (0, 0), (0, 0)))
    weights = [kparams[k] for k in _WEIGHT_ORDER]

    def full_spec(a):
        return pl.BlockSpec(a.shape, lambda i, _nd=a.ndim: (0,) * _nd)

    out = pl.pallas_call(
        _lenet_kernel,
        out_shape=jax.ShapeDtypeStruct((n_pad, F3_PAD), jnp.float32),
        grid=(n_pad // TB,),
        in_specs=[pl.BlockSpec((TB, H0, W0), lambda i: (i, 0, 0))]
                 + [full_spec(w) for w in weights],
        out_specs=pl.BlockSpec((TB, F3_PAD), lambda i: (i, 0)),
        compiler_params=pltpu.CompilerParams(dimension_semantics=("parallel",)),
    )(x, *weights)
    return out[:n, :F3]


# ----------------------------------------------------------------------------
# Parameters (PyTorch-native layouts) and a pure-JAX reference for validation
# ----------------------------------------------------------------------------
def init_params(key):
    def uniform(k, shape, fan_in):
        bound = 1.0 / np.sqrt(fan_in)
        return jax.random.uniform(k, shape, jnp.float32, -bound, bound)

    ks = jax.random.split(key, 10)
    return {
        "conv1_w": uniform(ks[0], (C1, C0, K, K), C0 * K * K),
        "conv1_b": uniform(ks[1], (C1,), C0 * K * K),
        "conv2_w": uniform(ks[2], (C2, C1, K, K), C1 * K * K),
        "conv2_b": uniform(ks[3], (C2,), C1 * K * K),
        "fc1_w": uniform(ks[4], (F1, C2 * HP2 * WP2), C2 * HP2 * WP2),
        "fc1_b": uniform(ks[5], (F1,), C2 * HP2 * WP2),
        "fc2_w": uniform(ks[6], (F2, F1), F1),
        "fc2_b": uniform(ks[7], (F2,), F1),
        "fc3_w": uniform(ks[8], (F3, F2), F2),
        "fc3_b": uniform(ks[9], (F3,), F2),
    }


def net_reference(x_nchw, p):
    hi = jax.lax.Precision.HIGHEST
    x = x_nchw.astype(jnp.float32)
    y = jax.lax.conv_general_dilated(x, p["conv1_w"], (1, 1), "VALID",
                                     dimension_numbers=("NCHW", "OIHW", "NCHW"),
                                     precision=hi) + p["conv1_b"][None, :, None, None]
    y = jnp.maximum(y, 0.0)
    y = jax.lax.reduce_window(y, -jnp.inf, jax.lax.max, (1, 1, 2, 2), (1, 1, 2, 2), "VALID")
    y = jax.lax.conv_general_dilated(y, p["conv2_w"], (1, 1), "VALID",
                                     dimension_numbers=("NCHW", "OIHW", "NCHW"),
                                     precision=hi) + p["conv2_b"][None, :, None, None]
    y = jnp.maximum(y, 0.0)
    y = jax.lax.reduce_window(y, -jnp.inf, jax.lax.max, (1, 1, 2, 2), (1, 1, 2, 2), "VALID")
    y = y.reshape(y.shape[0], -1)                                    # NCHW flatten
    y = jnp.maximum(jnp.dot(y, p["fc1_w"].T, precision=hi) + p["fc1_b"], 0.0)
    y = jnp.maximum(jnp.dot(y, p["fc2_w"].T, precision=hi) + p["fc2_b"], 0.0)
    return jnp.dot(y, p["fc3_w"].T, precision=hi) + p["fc3_b"]


if __name__ == "__main__":
    key = jax.random.PRNGKey(0)
    kx, kp = jax.random.split(key)

    n = 34  # exercises batch tiling (grid of 3) and padding (34 -> 48 = 3*TB)
    x = jax.random.normal(kx, (n, 1, 28, 28), dtype=jnp.float32)
    params = init_params(kp)
    kparams = prepare_params(params)

    logits = net_forward(x, kparams)
    logits = jax.block_until_ready(logits)

    assert logits.shape == (n, F3), logits.shape
    assert logits.dtype == jnp.float32

    ref = net_reference(x, params)
    assert bool(jnp.all(jnp.isfinite(logits)))
    assert bool(jnp.allclose(logits, ref, atol=1e-2, rtol=1e-2)), (
        "mismatch vs reference: max abs err = "
        f"{float(jnp.max(jnp.abs(logits - ref)))}")

    print("KERNEL_OK")
</pallas_src>

<mosaic_0001>
module attributes {stable_mosaic.version = 11 : i64} {
  func.func @_lenet_kernel(%arg0: i32, %arg1: memref<16x28x28xf32, #tpu.memory_space<vmem>>, %arg2: memref<5x28x144xf32, #tpu.memory_space<vmem>>, %arg3: memref<1x144xf32, #tpu.memory_space<vmem>>, %arg4: memref<2x256x384xf32, #tpu.memory_space<vmem>>, %arg5: memref<2x144x72xf32, #tpu.memory_space<vmem>>, %arg6: memref<5x72x128xf32, #tpu.memory_space<vmem>>, %arg7: memref<1x128xf32, #tpu.memory_space<vmem>>, %arg8: memref<4x16x128xf32, #tpu.memory_space<vmem>>, %arg9: memref<4x16x128xf32, #tpu.memory_space<vmem>>, %arg10: memref<2x128x64xf32, #tpu.memory_space<vmem>>, %arg11: memref<4x64x120xf32, #tpu.memory_space<vmem>>, %arg12: memref<1x120xf32, #tpu.memory_space<vmem>>, %arg13: memref<120x84xf32, #tpu.memory_space<vmem>>, %arg14: memref<1x84xf32, #tpu.memory_space<vmem>>, %arg15: memref<84x128xf32, #tpu.memory_space<vmem>>, %arg16: memref<1x128xf32, #tpu.memory_space<vmem>>, %arg17: memref<16x128xf32, #tpu.memory_space<vmem>>) attributes {dimension_semantics = [#tpu.dimension_semantics<parallel>], iteration_bounds = array<i64: 3>, scalar_prefetch = 0 : i64, scratch_operands = 0 : i64, tpu.core_type = #tpu.core_type<tc>, window_params = [{transform_indices = @transform_0, window_bounds = array<i64: 16, 28, 28>}, {pipeline_mode = #tpu.pipeline_mode<synchronous>, transform_indices = @transform_1, window_bounds = array<i64: 5, 28, 144>}, {pipeline_mode = #tpu.pipeline_mode<synchronous>, transform_indices = @transform_2, window_bounds = array<i64: 1, 144>}, {pipeline_mode = #tpu.pipeline_mode<synchronous>, transform_indices = @transform_3, window_bounds = array<i64: 2, 256, 384>}, {pipeline_mode = #tpu.pipeline_mode<synchronous>, transform_indices = @transform_4, window_bounds = array<i64: 2, 144, 72>}, {pipeline_mode = #tpu.pipeline_mode<synchronous>, transform_indices = @transform_5, window_bounds = array<i64: 5, 72, 128>}, {pipeline_mode = #tpu.pipeline_mode<synchronous>, transform_indices = @transform_6, window_bounds = array<i64: 1, 128>}, {pipeline_mode = #tpu.pipeline_mode<synchronous>, transform_indices = @transform_7, window_bounds = array<i64: 4, 16, 128>}, {pipeline_mode = #tpu.pipeline_mode<synchronous>, transform_indices = @transform_8, window_bounds = array<i64: 4, 16, 128>}, {pipeline_mode = #tpu.pipeline_mode<synchronous>, transform_indices = @transform_9, window_bounds = array<i64: 2, 128, 64>}, {pipeline_mode = #tpu.pipeline_mode<synchronous>, transform_indices = @transform_10, window_bounds = array<i64: 4, 64, 120>}, {pipeline_mode = #tpu.pipeline_mode<synchronous>, transform_indices = @transform_11, window_bounds = array<i64: 1, 120>}, {pipeline_mode = #tpu.pipeline_mode<synchronous>, transform_indices = @transform_12, window_bounds = array<i64: 120, 84>}, {pipeline_mode = #tpu.pipeline_mode<synchronous>, transform_indices = @transform_13, window_bounds = array<i64: 1, 84>}, {pipeline_mode = #tpu.pipeline_mode<synchronous>, transform_indices = @transform_14, window_bounds = array<i64: 84, 128>}, {pipeline_mode = #tpu.pipeline_mode<synchronous>, transform_indices = @transform_15, window_bounds = array<i64: 1, 128>}, {transform_indices = @transform_16, window_bounds = array<i64: 16, 128>}]} {
    %c0 = arith.constant 0 : index
    %c0_0 = arith.constant 0 : index
    %c0_1 = arith.constant 0 : index
    %0 = vector.load %arg1[%c0, %c0_0, %c0_1] : memref<16x28x28xf32, #tpu.memory_space<vmem>>, vector<16x28x28xf32>
    %1 = vector.extract_strided_slice %0 {offsets = [0, 0, 0], sizes = [16, 24, 28], strides = [1, 1, 1]} : vector<16x28x28xf32> to vector<16x24x28xf32>
    %2 = vector.shape_cast %1 : vector<16x24x28xf32> to vector<384x28xf32>
    %c0_2 = arith.constant 0 : index
    %c0_3 = arith.constant 0 : index
    %c0_4 = arith.constant 0 : index
    %3 = vector.load %arg2[%c0_2, %c0_3, %c0_4] : memref<5x28x144xf32, #tpu.memory_space<vmem>>, vector<1x28x144xf32>
    %4 = vector.shape_cast %3 : vector<1x28x144xf32> to vector<28x144xf32>
    %cst = arith.constant dense<0.000000e+00> : vector<384x144xf32>
    %5 = tpu.matmul %2, %4, %cst {dimension_numbers = #tpu.dot_dimension_numbers<[1], [0], [0], [1], [0, 0, 1, 1], [], []>} : vector<384x28xf32>, vector<28x144xf32>, vector<384x144xf32> -> vector<384x144xf32>
    %6 = vector.extract_strided_slice %0 {offsets = [0, 1, 0], sizes = [16, 24, 28], strides = [1, 1, 1]} : vector<16x28x28xf32> to vector<16x24x28xf32>
    %7 = vector.shape_cast %6 : vector<16x24x28xf32> to vector<384x28xf32>
    %c1 = arith.constant 1 : index
    %c0_5 = arith.constant 0 : index
    %c0_6 = arith.constant 0 : index
    %8 = vector.load %arg2[%c1, %c0_5, %c0_6] : memref<5x28x144xf32, #tpu.memory_space<vmem>>, vector<1x28x144xf32>
    %9 = vector.shape_cast %8 : vector<1x28x144xf32> to vector<28x144xf32>
    %cst_7 = arith.constant dense<0.000000e+00> : vector<384x144xf32>
    %10 = tpu.matmul %7, %9, %cst_7 {dimension_numbers = #tpu.dot_dimension_numbers<[1], [0], [0], [1], [0, 0, 1, 1], [], []>} : vector<384x28xf32>, vector<28x144xf32>, vector<384x144xf32> -> vector<384x144xf32>
    %11 = arith.addf %5, %10 : vector<384x144xf32>
    %12 = vector.extract_strided_slice %0 {offsets = [0, 2, 0], sizes = [16, 24, 28], strides = [1, 1, 1]} : vector<16x28x28xf32> to vector<16x24x28xf32>
    %13 = vector.shape_cast %12 : vector<16x24x28xf32> to vector<384x28xf32>
    %c2 = arith.constant 2 : index
    %c0_8 = arith.constant 0 : index
    %c0_9 = arith.constant 0 : index
    %14 = vector.load %arg2[%c2, %c0_8, %c0_9] : memref<5x28x144xf32, #tpu.memory_space<vmem>>, vector<1x28x144xf32>
    %15 = vector.shape_cast %14 : vector<1x28x144xf32> to vector<28x144xf32>
    %cst_10 = arith.constant dense<0.000000e+00> : vector<384x144xf32>
    %16 = tpu.matmul %13, %15, %cst_10 {dimension_numbers = #tpu.dot_dimension_numbers<[1], [0], [0], [1], [0, 0, 1, 1], [], []>} : vector<384x28xf32>, vector<28x144xf32>, vector<384x144xf32> -> vector<384x144xf32>
    %17 = arith.addf %11, %16 : vector<384x144xf32>
    %18 = vector.extract_strided_slice %0 {offsets = [0, 3, 0], sizes = [16, 24, 28], strides = [1, 1, 1]} : vector<16x28x28xf32> to vector<16x24x28xf32>
    %19 = vector.shape_cast %18 : vector<16x24x28xf32> to vector<384x28xf32>
    %c3 = arith.constant 3 : index
    %c0_11 = arith.constant 0 : index
    %c0_12 = arith.constant 0 : index
    %20 = vector.load %arg2[%c3, %c0_11, %c0_12] : memref<5x28x144xf32, #tpu.memory_space<vmem>>, vector<1x28x144xf32>
    %21 = vector.shape_cast %20 : vector<1x28x144xf32> to vector<28x144xf32>
    %cst_13 = arith.constant dense<0.000000e+00> : vector<384x144xf32>
    %22 = tpu.matmul %19, %21, %cst_13 {dimension_numbers = #tpu.dot_dimension_numbers<[1], [0], [0], [1], [0, 0, 1, 1], [], []>} : vector<384x28xf32>, vector<28x144xf32>, vector<384x144xf32> -> vector<384x144xf32>
    %23 = arith.addf %17, %22 : vector<384x144xf32>
    %24 = vector.extract_strided_slice %0 {offsets = [0, 4, 0], sizes = [16, 24, 28], strides = [1, 1, 1]} : vector<16x28x28xf32> to vector<16x24x28xf32>
    %25 = vector.shape_cast %24 : vector<16x24x28xf32> to vector<384x28xf32>
    %c4 = arith.constant 4 : index
    %c0_14 = arith.constant 0 : index
    %c0_15 = arith.constant 0 : index
    %26 = vector.load %arg2[%c4, %c0_14, %c0_15] : memref<5x28x144xf32, #tpu.memory_space<vmem>>, vector<1x28x144xf32>
    %27 = vector.shape_cast %26 : vector<1x28x144xf32> to vector<28x144xf32>
    %cst_16 = arith.constant dense<0.000000e+00> : vector<384x144xf32>
    %28 = tpu.matmul %25, %27, %cst_16 {dimension_numbers = #tpu.dot_dimension_numbers<[1], [0], [0], [1], [0, 0, 1, 1], [], []>} : vector<384x28xf32>, vector<28x144xf32>, vector<384x144xf32> -> vector<384x144xf32>
    %29 = arith.addf %23, %28 : vector<384x144xf32>
    %c0_17 = arith.constant 0 : index
    %c0_18 = arith.constant 0 : index
    %30 = vector.load %arg3[%c0_17, %c0_18] : memref<1x144xf32, #tpu.memory_space<vmem>>, vector<1x144xf32>
    %31 = vector.broadcast %30 : vector<1x144xf32> to vector<384x144xf32>
    %32 = arith.addf %29, %31 : vector<384x144xf32>
    %cst_19 = arith.constant 0.000000e+00 : f32
    %33 = vector.broadcast %cst_19 : f32 to vector<384x144xf32>
    %34 = arith.maximumf %32, %33 : vector<384x144xf32>
    %c0_20 = arith.constant 0 : index
    %c0_21 = arith.constant 0 : index
    %c0_22 = arith.constant 0 : index
    %35 = vector.load %arg4[%c0_20, %c0_21, %c0_22] : memref<2x256x384xf32, #tpu.memory_space<vmem>>, vector<1x256x384xf32>
    %36 = vector.shape_cast %35 : vector<1x256x384xf32> to vector<256x384xf32>
    %cst_23 = arith.constant dense<0.000000e+00> : vector<256x144xf32>
    %37 = tpu.matmul %36, %34, %cst_23 {dimension_numbers = #tpu.dot_dimension_numbers<[1], [0], [0], [1], [0, 0, 1, 1], [], []>} : vector<256x384xf32>, vector<384x144xf32>, vector<256x144xf32> -> vector<256x144xf32>
    %c1_24 = arith.constant 1 : index
    %c0_25 = arith.constant 0 : index
    %c0_26 = arith.constant 0 : index
    %38 = vector.load %arg4[%c1_24, %c0_25, %c0_26] : memref<2x256x384xf32, #tpu.memory_space<vmem>>, vector<1x256x384xf32>
    %39 = vector.shape_cast %38 : vector<1x256x384xf32> to vector<256x384xf32>
    %cst_27 = arith.constant dense<0.000000e+00> : vector<256x144xf32>
    %40 = tpu.matmul %39, %34, %cst_27 {dimension_numbers = #tpu.dot_dimension_numbers<[1], [0], [0], [1], [0, 0, 1, 1], [], []>} : vector<256x384xf32>, vector<384x144xf32>, vector<256x144xf32> -> vector<256x144xf32>
    %41 = arith.maximumf %37, %40 : vector<256x144xf32>
    %c0_28 = arith.constant 0 : index
    %c0_29 = arith.constant 0 : index
    %c0_30 = arith.constant 0 : index
    %42 = vector.load %arg5[%c0_28, %c0_29, %c0_30] : memref<2x144x72xf32, #tpu.memory_space<vmem>>, vector<1x144x72xf32>
    %43 = vector.shape_cast %42 : vector<1x144x72xf32> to vector<144x72xf32>
    %cst_31 = arith.constant dense<0.000000e+00> : vector<256x72xf32>
    %44 = tpu.matmul %41, %43, %cst_31 {dimension_numbers = #tpu.dot_dimension_numbers<[1], [0], [0], [1], [0, 0, 1, 1], [], []>} : vector<256x144xf32>, vector<144x72xf32>, vector<256x72xf32> -> vector<256x72xf32>
    %c1_32 = arith.constant 1 : index
    %c0_33 = arith.constant 0 : index
    %c0_34 = arith.constant 0 : index
    %45 = vector.load %arg5[%c1_32, %c0_33, %c0_34] : memref<2x144x72xf32, #tpu.memory_space<vmem>>, vector<1x144x72xf32>
    %46 = vector.shape_cast %45 : vector<1x144x72xf32> to vector<144x72xf32>
    %cst_35 = arith.constant dense<0.000000e+00> : vector<256x72xf32>
    %47 = tpu.matmul %41, %46, %cst_35 {dimension_numbers = #tpu.dot_dimension_numbers<[1], [0], [0], [1], [0, 0, 1, 1], [], []>} : vector<256x144xf32>, vector<144x72xf32>, vector<256x72xf32> -> vector<256x72xf32>
    %48 = arith.maximumf %44, %47 : vector<256x72xf32>
    %49 = vector.shape_cast %48 : vector<256x72xf32> to vector<16x16x72xf32>
    %50 = vector.extract_strided_slice %49 {offsets = [0, 0, 0], sizes = [16, 8, 72], strides = [1, 1, 1]} : vector<16x16x72xf32> to vector<16x8x72xf32>
    %51 = vector.shape_cast %50 : vector<16x8x72xf32> to vector<128x72xf32>
    %c0_36 = arith.constant 0 : index
    %c0_37 = arith.constant 0 : index
    %c0_38 = arith.constant 0 : index
    %52 = vector.load %arg6[%c0_36, %c0_37, %c0_38] : memref<5x72x128xf32, #tpu.memory_space<vmem>>, vector<1x72x128xf32>
    %53 = vector.shape_cast %52 : vector<1x72x128xf32> to vector<72x128xf32>
    %cst_39 = arith.constant dense<0.000000e+00> : vector<128x128xf32>
    %54 = tpu.matmul %51, %53, %cst_39 {dimension_numbers = #tpu.dot_dimension_numbers<[1], [0], [0], [1], [0, 0, 1, 1], [], []>} : vector<128x72xf32>, vector<72x128xf32>, vector<128x128xf32> -> vector<128x128xf32>
    %55 = vector.extract_strided_slice %49 {offsets = [0, 1, 0], sizes = [16, 8, 72], strides = [1, 1, 1]} : vector<16x16x72xf32> to vector<16x8x72xf32>
    %56 = vector.shape_cast %55 : vector<16x8x72xf32> to vector<128x72xf32>
    %c1_40 = arith.constant 1 : index
    %c0_41 = arith.constant 0 : index
    %c0_42 = arith.constant 0 : index
    %57 = vector.load %arg6[%c1_40, %c0_41, %c0_42] : memref<5x72x128xf32, #tpu.memory_space<vmem>>, vector<1x72x128xf32>
    %58 = vector.shape_cast %57 : vector<1x72x128xf32> to vector<72x128xf32>
    %cst_43 = arith.constant dense<0.000000e+00> : vector<128x128xf32>
    %59 = tpu.matmul %56, %58, %cst_43 {dimension_numbers = #tpu.dot_dimension_numbers<[1], [0], [0], [1], [0, 0, 1, 1], [], []>} : vector<128x72xf32>, vector<72x128xf32>, vector<128x128xf32> -> vector<128x128xf32>
    %60 = arith.addf %54, %59 : vector<128x128xf32>
    %61 = vector.extract_strided_slice %49 {offsets = [0, 2, 0], sizes = [16, 8, 72], strides = [1, 1, 1]} : vector<16x16x72xf32> to vector<16x8x72xf32>
    %62 = vector.shape_cast %61 : vector<16x8x72xf32> to vector<128x72xf32>
    %c2_44 = arith.constant 2 : index
    %c0_45 = arith.constant 0 : index
    %c0_46 = arith.constant 0 : index
    %63 = vector.load %arg6[%c2_44, %c0_45, %c0_46] : memref<5x72x128xf32, #tpu.memory_space<vmem>>, vector<1x72x128xf32>
    %64 = vector.shape_cast %63 : vector<1x72x128xf32> to vector<72x128xf32>
    %cst_47 = arith.constant dense<0.000000e+00> : vector<128x128xf32>
    %65 = tpu.matmul %62, %64, %cst_47 {dimension_numbers = #tpu.dot_dimension_numbers<[1], [0], [0], [1], [0, 0, 1, 1], [], []>} : vector<128x72xf32>, vector<72x128xf32>, vector<128x128xf32> -> vector<128x128xf32>
    %66 = arith.addf %60, %65 : vector<128x128xf32>
    %67 = vector.extract_strided_slice %49 {offsets = [0, 3, 0], sizes = [16, 8, 72], strides = [1, 1, 1]} : vector<16x16x72xf32> to vector<16x8x72xf32>
    %68 = vector.shape_cast %67 : vector<16x8x72xf32> to vector<128x72xf32>
    %c3_48 = arith.constant 3 : index
    %c0_49 = arith.constant 0 : index
    %c0_50 = arith.constant 0 : index
    %69 = vector.load %arg6[%c3_48, %c0_49, %c0_50] : memref<5x72x128xf32, #tpu.memory_space<vmem>>, vector<1x72x128xf32>
    %70 = vector.shape_cast %69 : vector<1x72x128xf32> to vector<72x128xf32>
    %cst_51 = arith.constant dense<0.000000e+00> : vector<128x128xf32>
    %71 = tpu.matmul %68, %70, %cst_51 {dimension_numbers = #tpu.dot_dimension_numbers<[1], [0], [0], [1], [0, 0, 1, 1], [], []>} : vector<128x72xf32>, vector<72x128xf32>, vector<128x128xf32> -> vector<128x128xf32>
    %72 = arith.addf %66, %71 : vector<128x128xf32>
    %73 = vector.extract_strided_slice %49 {offsets = [0, 4, 0], sizes = [16, 8, 72], strides = [1, 1, 1]} : vector<16x16x72xf32> to vector<16x8x72xf32>
    %74 = vector.shape_cast %73 : vector<16x8x72xf32> to vector<128x72xf32>
    %c4_52 = arith.constant 4 : index
    %c0_53 = arith.constant 0 : index
    %c0_54 = arith.constant 0 : index
    %75 = vector.load %arg6[%c4_52, %c0_53, %c0_54] : memref<5x72x128xf32, #tpu.memory_space<vmem>>, vector<1x72x128xf32>
    %76 = vector.shape_cast %75 : vector<1x72x128xf32> to vector<72x128xf32>
    %cst_55 = arith.constant dense<0.000000e+00> : vector<128x128xf32>
    %77 = tpu.matmul %74, %76, %cst_55 {dimension_numbers = #tpu.dot_dimension_numbers<[1], [0], [0], [1], [0, 0, 1, 1], [], []>} : vector<128x72xf32>, vector<72x128xf32>, vector<128x128xf32> -> vector<128x128xf32>
    %78 = arith.addf %72, %77 : vector<128x128xf32>
    %c0_56 = arith.constant 0 : index
    %c0_57 = arith.constant 0 : index
    %79 = vector.load %arg7[%c0_56, %c0_57] : memref<1x128xf32, #tpu.memory_space<vmem>>, vector<1x128xf32>
    %80 = vector.broadcast %79 : vector<1x128xf32> to vector<128x128xf32>
    %81 = arith.addf %78, %80 : vector<128x128xf32>
    %cst_58 = arith.constant 0.000000e+00 : f32
    %82 = vector.broadcast %cst_58 : f32 to vector<128x128xf32>
    %83 = arith.maximumf %81, %82 : vector<128x128xf32>
    %c0_59 = arith.constant 0 : index
    %c0_60 = arith.constant 0 : index
    %c0_61 = arith.constant 0 : index
    %84 = vector.load %arg10[%c0_59, %c0_60, %c0_61] : memref<2x128x64xf32, #tpu.memory_space<vmem>>, vector<1x128x64xf32>
    %85 = vector.shape_cast %84 : vector<1x128x64xf32> to vector<128x64xf32>
    %cst_62 = arith.constant dense<0.000000e+00> : vector<128x64xf32>
    %86 = tpu.matmul %83, %85, %cst_62 {dimension_numbers = #tpu.dot_dimension_numbers<[1], [0], [0], [1], [0, 0, 1, 1], [], []>} : vector<128x128xf32>, vector<128x64xf32>, vector<128x64xf32> -> vector<128x64xf32>
    %c1_63 = arith.constant 1 : index
    %c0_64 = arith.constant 0 : index
    %c0_65 = arith.constant 0 : index
    %87 = vector.load %arg10[%c1_63, %c0_64, %c0_65] : memref<2x128x64xf32, #tpu.memory_space<vmem>>, vector<1x128x64xf32>
    %88 = vector.shape_cast %87 : vector<1x128x64xf32> to vector<128x64xf32>
    %cst_66 = arith.constant dense<0.000000e+00> : vector<128x64xf32>
    %89 = tpu.matmul %83, %88, %cst_66 {dimension_numbers = #tpu.dot_dimension_numbers<[1], [0], [0], [1], [0, 0, 1, 1], [], []>} : vector<128x128xf32>, vector<128x64xf32>, vector<128x64xf32> -> vector<128x64xf32>
    %90 = arith.maximumf %86, %89 : vector<128x64xf32>
    %c0_67 = arith.constant 0 : index
    %c0_68 = arith.constant 0 : index
    %c0_69 = arith.constant 0 : index
    %91 = vector.load %arg8[%c0_67, %c0_68, %c0_69] : memref<4x16x128xf32, #tpu.memory_space<vmem>>, vector<1x16x128xf32>
    %92 = vector.shape_cast %91 : vector<1x16x128xf32> to vector<16x128xf32>
    %cst_70 = arith.constant dense<0.000000e+00> : vector<16x64xf32>
    %93 = tpu.matmul %92, %90, %cst_70 {dimension_numbers = #tpu.dot_dimension_numbers<[1], [0], [0], [1], [0, 0, 1, 1], [], []>} : vector<16x128xf32>, vector<128x64xf32>, vector<16x64xf32> -> vector<16x64xf32>
    %c0_71 = arith.constant 0 : index
    %c0_72 = arith.constant 0 : index
    %c0_73 = arith.constant 0 : index
    %94 = vector.load %arg9[%c0_71, %c0_72, %c0_73] : memref<4x16x128xf32, #tpu.memory_space<vmem>>, vector<1x16x128xf32>
    %95 = vector.shape_cast %94 : vector<1x16x128xf32> to vector<16x128xf32>
    %cst_74 = arith.constant dense<0.000000e+00> : vector<16x64xf32>
    %96 = tpu.matmul %95, %90, %cst_74 {dimension_numbers = #tpu.dot_dimension_numbers<[1], [0], [0], [1], [0, 0, 1, 1], [], []>} : vector<16x128xf32>, vector<128x64xf32>, vector<16x64xf32> -> vector<16x64xf32>
    %97 = arith.maximumf %93, %96 : vector<16x64xf32>
    %c0_75 = arith.constant 0 : index
    %c0_76 = arith.constant 0 : index
    %c0_77 = arith.constant 0 : index
    %98 = vector.load %arg11[%c0_75, %c0_76, %c0_77] : memref<4x64x120xf32, #tpu.memory_space<vmem>>, vector<1x64x120xf32>
    %99 = vector.shape_cast %98 : vector<1x64x120xf32> to vector<64x120xf32>
    %cst_78 = arith.constant dense<0.000000e+00> : vector<16x120xf32>
    %100 = tpu.matmul %97, %99, %cst_78 {dimension_numbers = #tpu.dot_dimension_numbers<[1], [0], [0], [1], [0, 0, 1, 1], [], []>} : vector<16x64xf32>, vector<64x120xf32>, vector<16x120xf32> -> vector<16x120xf32>
    %c1_79 = arith.constant 1 : index
    %c0_80 = arith.constant 0 : index
    %c0_81 = arith.constant 0 : index
    %101 = vector.load %arg8[%c1_79, %c0_80, %c0_81] : memref<4x16x128xf32, #tpu.memory_space<vmem>>, vector<1x16x128xf32>
    %102 = vector.shape_cast %101 : vector<1x16x128xf32> to vector<16x128xf32>
    %cst_82 = arith.constant dense<0.000000e+00> : vector<16x64xf32>
    %103 = tpu.matmul %102, %90, %cst_82 {dimension_numbers = #tpu.dot_dimension_numbers<[1], [0], [0], [1], [0, 0, 1, 1], [], []>} : vector<16x128xf32>, vector<128x64xf32>, vector<16x64xf32> -> vector<16x64xf32>
    %c1_83 = arith.constant 1 : index
    %c0_84 = arith.constant 0 : index
    %c0_85 = arith.constant 0 : index
    %104 = vector.load %arg9[%c1_83, %c0_84, %c0_85] : memref<4x16x128xf32, #tpu.memory_space<vmem>>, vector<1x16x128xf32>
    %105 = vector.shape_cast %104 : vector<1x16x128xf32> to vector<16x128xf32>
    %cst_86 = arith.constant dense<0.000000e+00> : vector<16x64xf32>
    %106 = tpu.matmul %105, %90, %cst_86 {dimension_numbers = #tpu.dot_dimension_numbers<[1], [0], [0], [1], [0, 0, 1, 1], [], []>} : vector<16x128xf32>, vector<128x64xf32>, vector<16x64xf32> -> vector<16x64xf32>
    %107 = arith.maximumf %103, %106 : vector<16x64xf32>
    %c1_87 = arith.constant 1 : index
    %c0_88 = arith.constant 0 : index
    %c0_89 = arith.constant 0 : index
    %108 = vector.load %arg11[%c1_87, %c0_88, %c0_89] : memref<4x64x120xf32, #tpu.memory_space<vmem>>, vector<1x64x120xf32>
    %109 = vector.shape_cast %108 : vector<1x64x120xf32> to vector<64x120xf32>
    %cst_90 = arith.constant dense<0.000000e+00> : vector<16x120xf32>
    %110 = tpu.matmul %107, %109, %cst_90 {dimension_numbers = #tpu.dot_dimension_numbers<[1], [0], [0], [1], [0, 0, 1, 1], [], []>} : vector<16x64xf32>, vector<64x120xf32>, vector<16x120xf32> -> vector<16x120xf32>
    %111 = arith.addf %100, %110 : vector<16x120xf32>
    %c2_91 = arith.constant 2 : index
    %c0_92 = arith.constant 0 : index
    %c0_93 = arith.constant 0 : index
    %112 = vector.load %arg8[%c2_91, %c0_92, %c0_93] : memref<4x16x128xf32, #tpu.memory_space<vmem>>, vector<1x16x128xf32>
    %113 = vector.shape_cast %112 : vector<1x16x128xf32> to vector<16x128xf32>
    %cst_94 = arith.constant dense<0.000000e+00> : vector<16x64xf32>
    %114 = tpu.matmul %113, %90, %cst_94 {dimension_numbers = #tpu.dot_dimension_numbers<[1], [0], [0], [1], [0, 0, 1, 1], [], []>} : vector<16x128xf32>, vector<128x64xf32>, vector<16x64xf32> -> vector<16x64xf32>
    %c2_95 = arith.constant 2 : index
    %c0_96 = arith.constant 0 : index
    %c0_97 = arith.constant 0 : index
    %115 = vector.load %arg9[%c2_95, %c0_96, %c0_97] : memref<4x16x128xf32, #tpu.memory_space<vmem>>, vector<1x16x128xf32>
    %116 = vector.shape_cast %115 : vector<1x16x128xf32> to vector<16x128xf32>
    %cst_98 = arith.constant dense<0.000000e+00> : vector<16x64xf32>
    %117 = tpu.matmul %116, %90, %cst_98 {dimension_numbers = #tpu.dot_dimension_numbers<[1], [0], [0], [1], [0, 0, 1, 1], [], []>} : vector<16x128xf32>, vector<128x64xf32>, vector<16x64xf32> -> vector<16x64xf32>
    %118 = arith.maximumf %114, %117 : vector<16x64xf32>
    %c2_99 = arith.constant 2 : index
    %c0_100 = arith.constant 0 : index
    %c0_101 = arith.constant 0 : index
    %119 = vector.load %arg11[%c2_99, %c0_100, %c0_101] : memref<4x64x120xf32, #tpu.memory_space<vmem>>, vector<1x64x120xf32>
    %120 = vector.shape_cast %119 : vector<1x64x120xf32> to vector<64x120xf32>
    %cst_102 = arith.constant dense<0.000000e+00> : vector<16x120xf32>
    %121 = tpu.matmul %118, %120, %cst_102 {dimension_numbers = #tpu.dot_dimension_numbers<[1], [0], [0], [1], [0, 0, 1, 1], [], []>} : vector<16x64xf32>, vector<64x120xf32>, vector<16x120xf32> -> vector<16x120xf32>
    %122 = arith.addf %111, %121 : vector<16x120xf32>
    %c3_103 = arith.constant 3 : index
    %c0_104 = arith.constant 0 : index
    %c0_105 = arith.constant 0 : index
    %123 = vector.load %arg8[%c3_103, %c0_104, %c0_105] : memref<4x16x128xf32, #tpu.memory_space<vmem>>, vector<1x16x128xf32>
    %124 = vector.shape_cast %123 : vector<1x16x128xf32> to vector<16x128xf32>
    %cst_106 = arith.constant dense<0.000000e+00> : vector<16x64xf32>
    %125 = tpu.matmul %124, %90, %cst_106 {dimension_numbers = #tpu.dot_dimension_numbers<[1], [0], [0], [1], [0, 0, 1, 1], [], []>} : vector<16x128xf32>, vector<128x64xf32>, vector<16x64xf32> -> vector<16x64xf32>
    %c3_107 = arith.constant 3 : index
    %c0_108 = arith.constant 0 : index
    %c0_109 = arith.constant 0 : index
    %126 = vector.load %arg9[%c3_107, %c0_108, %c0_109] : memref<4x16x128xf32, #tpu.memory_space<vmem>>, vector<1x16x128xf32>
    %127 = vector.shape_cast %126 : vector<1x16x128xf32> to vector<16x128xf32>
    %cst_110 = arith.constant dense<0.000000e+00> : vector<16x64xf32>
    %128 = tpu.matmul %127, %90, %cst_110 {dimension_numbers = #tpu.dot_dimension_numbers<[1], [0], [0], [1], [0, 0, 1, 1], [], []>} : vector<16x128xf32>, vector<128x64xf32>, vector<16x64xf32> -> vector<16x64xf32>
    %129 = arith.maximumf %125, %128 : vector<16x64xf32>
    %c3_111 = arith.constant 3 : index
    %c0_112 = arith.constant 0 : index
    %c0_113 = arith.constant 0 : index
    %130 = vector.load %arg11[%c3_111, %c0_112, %c0_113] : memref<4x64x120xf32, #tpu.memory_space<vmem>>, vector<1x64x120xf32>
    %131 = vector.shape_cast %130 : vector<1x64x120xf32> to vector<64x120xf32>
    %cst_114 = arith.constant dense<0.000000e+00> : vector<16x120xf32>
    %132 = tpu.matmul %129, %131, %cst_114 {dimension_numbers = #tpu.dot_dimension_numbers<[1], [0], [0], [1], [0, 0, 1, 1], [], []>} : vector<16x64xf32>, vector<64x120xf32>, vector<16x120xf32> -> vector<16x120xf32>
    %133 = arith.addf %122, %132 : vector<16x120xf32>
    %c0_115 = arith.constant 0 : index
    %c0_116 = arith.constant 0 : index
    %134 = vector.load %arg12[%c0_115, %c0_116] : memref<1x120xf32, #tpu.memory_space<vmem>>, vector<1x120xf32>
    %135 = vector.broadcast %134 : vector<1x120xf32> to vector<16x120xf32>
    %136 = arith.addf %133, %135 : vector<16x120xf32>
    %cst_117 = arith.constant 0.000000e+00 : f32
    %137 = vector.broadcast %cst_117 : f32 to vector<16x120xf32>
    %138 = arith.maximumf %136, %137 : vector<16x120xf32>
    %c0_118 = arith.constant 0 : index
    %c0_119 = arith.constant 0 : index
    %139 = vector.load %arg13[%c0_118, %c0_119] : memref<120x84xf32, #tpu.memory_space<vmem>>, vector<120x84xf32>
    %cst_120 = arith.constant dense<0.000000e+00> : vector<16x84xf32>
    %140 = tpu.matmul %138, %139, %cst_120 {dimension_numbers = #tpu.dot_dimension_numbers<[1], [0], [0], [1], [0, 0, 1, 1], [], []>} : vector<16x120xf32>, vector<120x84xf32>, vector<16x84xf32> -> vector<16x84xf32>
    %c0_121 = arith.constant 0 : index
    %c0_122 = arith.constant 0 : index
    %141 = vector.load %arg14[%c0_121, %c0_122] : memref<1x84xf32, #tpu.memory_space<vmem>>, vector<1x84xf32>
    %142 = vector.broadcast %141 : vector<1x84xf32> to vector<16x84xf32>
    %143 = arith.addf %140, %142 : vector<16x84xf32>
    %cst_123 = arith.constant 0.000000e+00 : f32
    %144 = vector.broadcast %cst_123 : f32 to vector<16x84xf32>
    %145 = arith.maximumf %143, %144 : vector<16x84xf32>
    %c0_124 = arith.constant 0 : index
    %c0_125 = arith.constant 0 : index
    %146 = vector.load %arg15[%c0_124, %c0_125] : memref<84x128xf32, #tpu.memory_space<vmem>>, vector<84x128xf32>
    %cst_126 = arith.constant dense<0.000000e+00> : vector<16x128xf32>
    %147 = tpu.matmul %145, %146, %cst_126 {dimension_numbers = #tpu.dot_dimension_numbers<[1], [0], [0], [1], [0, 0, 1, 1], [], []>} : vector<16x84xf32>, vector<84x128xf32>, vector<16x128xf32> -> vector<16x128xf32>
    %c0_127 = arith.constant 0 : index
    %c0_128 = arith.constant 0 : index
    %148 = vector.load %arg16[%c0_127, %c0_128] : memref<1x128xf32, #tpu.memory_space<vmem>>, vector<1x128xf32>
    %149 = vector.broadcast %148 : vector<1x128xf32> to vector<16x128xf32>
    %150 = arith.addf %147, %149 : vector<16x128xf32>
    %c0_129 = arith.constant 0 : index
    %c0_130 = arith.constant 0 : index
    %151 = vector.load %arg17[%c0_129, %c0_130] : memref<16x128xf32, #tpu.memory_space<vmem>>, vector<16x128xf32>
    tpu.vector_store %arg17[%c0_129, %c0_130], %150 {strides = array<i32>} : memref<16x128xf32, #tpu.memory_space<vmem>>, vector<16x128xf32>,
    return
  }
  func.func @transform_0(%arg0: i32) -> (i32, i32, i32) {
    %c0_i32 = arith.constant 0 : i32
    %c0_i32_0 = arith.constant 0 : i32
    %c0_i32_1 = arith.constant 0 : i32
    return %arg0, %c0_i32, %c0_i32_0 : i32, i32, i32
  }
  func.func @transform_1(%arg0: i32) -> (i32, i32, i32) {
    %c0_i32 = arith.constant 0 : i32
    %c0_i32_0 = arith.constant 0 : i32
    %c0_i32_1 = arith.constant 0 : i32
    %c0_i32_2 = arith.constant 0 : i32
    return %c0_i32, %c0_i32_0, %c0_i32_1 : i32, i32, i32
  }
  func.func @transform_2(%arg0: i32) -> (i32, i32) {
    %c0_i32 = arith.constant 0 : i32
    %c0_i32_0 = arith.constant 0 : i32
    %c0_i32_1 = arith.constant 0 : i32
    return %c0_i32, %c0_i32_0 : i32, i32
  }
  func.func @transform_3(%arg0: i32) -> (i32, i32, i32) {
    %c0_i32 = arith.constant 0 : i32
    %c0_i32_0 = arith.constant 0 : i32
    %c0_i32_1 = arith.constant 0 : i32
    %c0_i32_2 = arith.constant 0 : i32
    return %c0_i32, %c0_i32_0, %c0_i32_1 : i32, i32, i32
  }
  func.func @transform_4(%arg0: i32) -> (i32, i32, i32) {
    %c0_i32 = arith.constant 0 : i32
    %c0_i32_0 = arith.constant 0 : i32
    %c0_i32_1 = arith.constant 0 : i32
    %c0_i32_2 = arith.constant 0 : i32
    return %c0_i32, %c0_i32_0, %c0_i32_1 : i32, i32, i32
  }
  func.func @transform_5(%arg0: i32) -> (i32, i32, i32) {
    %c0_i32 = arith.constant 0 : i32
    %c0_i32_0 = arith.constant 0 : i32
    %c0_i32_1 = arith.constant 0 : i32
    %c0_i32_2 = arith.constant 0 : i32
    return %c0_i32, %c0_i32_0, %c0_i32_1 : i32, i32, i32
  }
  func.func @transform_6(%arg0: i32) -> (i32, i32) {
    %c0_i32 = arith.constant 0 : i32
    %c0_i32_0 = arith.constant 0 : i32
    %c0_i32_1 = arith.constant 0 : i32
    return %c0_i32, %c0_i32_0 : i32, i32
  }
  func.func @transform_7(%arg0: i32) -> (i32, i32, i32) {
    %c0_i32 = arith.constant 0 : i32
    %c0_i32_0 = arith.constant 0 : i32
    %c0_i32_1 = arith.constant 0 : i32
    %c0_i32_2 = arith.constant 0 : i32
    return %c0_i32, %c0_i32_0, %c0_i32_1 : i32, i32, i32
  }
  func.func @transform_8(%arg0: i32) -> (i32, i32, i32) {
    %c0_i32 = arith.constant 0 : i32
    %c0_i32_0 = arith.constant 0 : i32
    %c0_i32_1 = arith.constant 0 : i32
    %c0_i32_2 = arith.constant 0 : i32
    return %c0_i32, %c0_i32_0, %c0_i32_1 : i32, i32, i32
  }
  func.func @transform_9(%arg0: i32) -> (i32, i32, i32) {
    %c0_i32 = arith.constant 0 : i32
    %c0_i32_0 = arith.constant 0 : i32
    %c0_i32_1 = arith.constant 0 : i32
    %c0_i32_2 = arith.constant 0 : i32
    return %c0_i32, %c0_i32_0, %c0_i32_1 : i32, i32, i32
  }
  func.func @transform_10(%arg0: i32) -> (i32, i32, i32) {
    %c0_i32 = arith.constant 0 : i32
    %c0_i32_0 = arith.constant 0 : i32
    %c0_i32_1 = arith.constant 0 : i32
    %c0_i32_2 = arith.constant 0 : i32
    return %c0_i32, %c0_i32_0, %c0_i32_1 : i32, i32, i32
  }
  func.func @transform_11(%arg0: i32) -> (i32, i32) {
    %c0_i32 = arith.constant 0 : i32
    %c0_i32_0 = arith.constant 0 : i32
    %c0_i32_1 = arith.constant 0 : i32
    return %c0_i32, %c0_i32_0 : i32, i32
  }
  func.func @transform_12(%arg0: i32) -> (i32, i32) {
    %c0_i32 = arith.constant 0 : i32
    %c0_i32_0 = arith.constant 0 : i32
    %c0_i32_1 = arith.constant 0 : i32
    return %c0_i32, %c0_i32_0 : i32, i32
  }
  func.func @transform_13(%arg0: i32) -> (i32, i32) {
    %c0_i32 = arith.constant 0 : i32
    %c0_i32_0 = arith.constant 0 : i32
    %c0_i32_1 = arith.constant 0 : i32
    return %c0_i32, %c0_i32_0 : i32, i32
  }
  func.func @transform_14(%arg0: i32) -> (i32, i32) {
    %c0_i32 = arith.constant 0 : i32
    %c0_i32_0 = arith.constant 0 : i32
    %c0_i32_1 = arith.constant 0 : i32
    return %c0_i32, %c0_i32_0 : i32, i32
  }
  func.func @transform_15(%arg0: i32) -> (i32, i32) {
    %c0_i32 = arith.constant 0 : i32
    %c0_i32_0 = arith.constant 0 : i32
    %c0_i32_1 = arith.constant 0 : i32
    return %c0_i32, %c0_i32_0 : i32, i32
  }
  func.func @transform_16(%arg0: i32) -> (i32, i32) {
    %c0_i32 = arith.constant 0 : i32
    %c0_i32_0 = arith.constant 0 : i32
    return %arg0, %c0_i32 : i32, i32
  }
}

</mosaic_0001>

<bundles_post_ra>
// kernel: net_forward.1
= control target key start
LH: loop header
LB: loop body
LE: loop exit
PB: predicated region body
PF: predicated region fallthrough
CT: control target
= control target key end

     0   :  { %s12036_s21 = smov 0   ;;  %s16241_s0 = inlined_call_operand.vmem [shape: f32[48,28,28], index: 0, kind: input, shape index: {}]   ;;  %s16242_s1 = inlined_call_operand.vmem [shape: f32[5,28,144], index: 1, kind: input, shape index: {}]   ;;  %s16243_s2 = inlined_call_operand.vmem [shape: f32[1,144], index: 2, kind: input, shape index: {}]   ;;  %s16244_s3 = inlined_call_operand.vmem [shape: f32[2,256,384], index: 3, kind: input, shape index: {}]   ;;  %s16245_s4 = inlined_call_operand.vmem [shape: f32[2,144,72], index: 4, kind: input, shape index: {}]   ;;  %s16246_s5 = inlined_call_operand.vmem [shape: f32[5,72,128], index: 5, kind: input, shape index: {}]   ;;  %s16247_s6 = inlined_call_operand.vmem [shape: f32[1,128], index: 6, kind: input, shape index: {}]   ;;  %s16248_s7 = inlined_call_operand.vmem [shape: f32[4,16,128], index: 7, kind: input, shape index: {}]   ;;  %s16249_s8 = inlined_call_operand.vmem [shape: f32[4,16,128], index: 8, kind: input, shape index: {}]   ;;  %s16250_s9 = inlined_call_operand.vmem [shape: f32[2,128,64], index: 9, kind: input, shape index: {}]   ;;  %s16251_s10 = inlined_call_operand.vmem [shape: f32[4,64,120], index: 10, kind: input, shape index: {}]   ;;  %s16252_s11 = inlined_call_operand.vmem [shape: f32[1,120], index: 11, kind: input, shape index: {}]   ;;  %s16253_s12 = inlined_call_operand.vmem [shape: f32[120,84], index: 12, kind: input, shape index: {}]   ;;  %s16254_s13 = inlined_call_operand.vmem [shape: f32[1,84], index: 13, kind: input, shape index: {}]   ;;  %s16255_s14 = inlined_call_operand.vmem [shape: f32[84,128], index: 14, kind: input, shape index: {}]   ;;  %s16256_s15 = inlined_call_operand.vmem [shape: f32[1,128], index: 15, kind: input, shape index: {}]   ;;  %s16257_s16 = inlined_call_operand.vmem [shape: f32[48,128], index: 16, kind: output, shape index: {}]  }
   0x1   :  { %16290 = sst [smem:[#allocation15_spill]] %s16241_s0 }
   0x2 LB: > { %s8678_s22 = sadd.s32 4294967295, %s11946_s21   ;;  %p8682_p0 = scmp.ge.s32.totalorder %s11946_s21, 1  ;;  %s11946_s21 = sphi %s12036_s21, %s26_s21  }
   0x3   : > { %p464_p1 = scmp.lt.s32.totalorder %s11946_s21, 4 }
   0x5   : > { %p465_p2 = pnand %p8682_p0, %p464_p1 }
   0x7   : > { %468 = sbr.rel (%p465_p2) target bundleno = 4190 (0x105e), region = 84 }
   0xe   : > { %v8689_v0 = vld [vmem:[%s16242_s1 + $0x48] sm:$0xff]  ;;  %v8691_v1 = vld [vmem:[%s16242_s1 + $0x58] sm:$0xff]  ;;  %v8688_v2 = vld [vmem:[%s16242_s1 + $0x40] sm:$0xff]  ;;  %vm883_vm0 = vcmask 1043456   ;;  %v11948_v7 = vmov 0.0   ;;  %s8683_s20 = sshll.u32 %s8678_s22, 4 }
   0xf   : > { %v10475_v3 = vpack.c.bf16 %v8691_v1, %v8689_v0  ;;  %v8690_v4 = vld [vmem:[%s16242_s1 + $0x50] sm:$0xff]  ;;  %v8693_v5 = vld [vmem:[%s16242_s1 + $0x68] sm:$0xff]  ;;  %v8695_v6 = vld [vmem:[%s16242_s1 + $0x78] sm:$0xf]  ;;  %954 = vmatprep.mubr.f32.mxu0 %v11948_v7  ;;  %vm11949_vm1 = vmmov 1   ;;  %p516_p3 = scmp.lt.s32.totalorder %s8683_s20, 47 }
  0x10   : > { %v10477_v8 = vpack.c.bf16 %v8690_v4, %v8688_v2  ;;  %v10479_v9 = vpack.c.bf16 %v8695_v6, %v8693_v5  ;;  %vm12066_vm2 = vmpackc.low %vm883_vm0, %vm11949_vm1  ;;  %v8692_v11 = vld [vmem:[%s16242_s1 + $0x60] sm:$0xff]  ;;  %v8694_v12 = vld [vmem:[%s16242_s1 + $0x70] sm:$0xf]  ;;  %s16293_s26 = sld [smem:[#allocation15_spill]]  ;;  %vm664_vm3 = vcmask 1046528   ;;  %vm786_vm4 = vcmask 228352  }
  0x11   : > { %10476 = vmatprep.subr.bf16.mxu0 %v10475_v3  ;;  %v593_v13 = vld [vmem:[%s16242_s1 + $0x8] sm:$0xff]  ;;  %v595_v14 = vld [vmem:[%s16242_s1 + $0x18] sm:$0xff]  ;;  %v10482_v15 = vpack.c.bf16 %v8694_v12, %v8692_v11  ;;  %s16376_s20 = smov (!%p516_p3, %s8683_s20), 47  ;;  %v592_v17 = vld [vmem:[%s16242_s1] sm:$0xff]  ;;  %vm1698_vm5 = vcmask 1045504   ;;  %vm2371_vm6 = vcmask 1044480  }
  0x12   : > { %10478 = vmatpush1.bf16.msra.mxu0 %v10477_v8  ;;  %v10485_v16 = vpack.c.bf16 %v595_v14, %v593_v13  ;;  %s9335_s0 = sshll.u32 %s16376_s20, 5  ;;  %v594_v18 = vld [vmem:[%s16242_s1 + $0x10] sm:$0xff]  ;;  %v597_v19 = vld [vmem:[%s16242_s1 + $0x28] sm:$0xff]  ;;  %v599_v20 = vld [vmem:[%s16242_s1 + $0x38] sm:$0xf]  ;;  %vm5223_vm7 = vcmask 130048  }
  0x13   : > { %10481 = vmatprep.subr.msk.bf16.mxu0 %vm12066_vm2, %v10479_v9  ;;  %v10487_v27 = vpack.c.bf16 %v594_v18, %v592_v17  ;;  %v10489_v29 = vpack.c.bf16 %v599_v20, %v597_v19  ;;  %v596_v30 = vld [vmem:[%s16242_s1 + $0x20] sm:$0xff]  ;;  %v598_v31 = vld [vmem:[%s16242_s1 + $0x30] sm:$0xf]  ;;  %vm5920_vm8 = vcmask 588800   ;;  %vm7737_vm9 = vcmask 523264   ;;  %s8686_s19 = sshll.u32 %s8678_s22, 1 }
  0x14   : > { %v10492_v35 = vpack.c.bf16 %v598_v31, %v596_v30  ;;  %vm8433_vm10 = vcmask 982016   ;;  %vm8535_vm11 = vcmask 687104   ;;  %p523_p4 = scmp.lt.s32.totalorder %s8686_s19, 5 }
  0x16   : > { %s12093_s27 = scalar_lea.vmem %s16293_s26, %s9335_s0  ;;  %10484 = vmatpush1.bf16.msk.msra.mxu0 %vm12066_vm2, %v10482_v15  ;;  %s16378_s19 = smov (!%p523_p4, %s8686_s19), 5 }
  0x17   : > { %v12104_v21 = vld [vmem:[%s12093_s27] sm:$0xff]  ;;  %v12107_v22 = vld [vmem:[%s12093_s27 + $0x8] sm:$0xff]  ;;  %v12110_v23 = vld [vmem:[%s12093_s27 + $0x10] sm:$0xff]  ;;  %10486 = vmatprep.subr.bf16.mxu0 %v10485_v16 }
  0x18   : > { %v665_v24 = vrot.slane %v12104_v21, 1  ;;  %v666_v25 = vrot.slane %v12107_v22, 1  ;;  %v668_v26 = vrot.slane %v12110_v23, 1  ;;  %v12116_v28 = vld [vmem:[%s12093_s27 + $0x18] sm:$0xf]  ;;  %v12130_v36 = vld [vmem:[%s12093_s27 + $0x20] sm:$0xff] }
  0x19   : > { %v670_v34 = vrot.slane %v12116_v28, 1  ;;  %v12133_v37 = vld [vmem:[%s12093_s27 + $0x28] sm:$0xff]  ;;  %v672_v39 = vrot.slane %v12130_v36, 1  ;;  %v12145_v41 = vld [vmem:[%s12093_s27 + $0x30] sm:$0xff]  ;;  %v12152_v44 = vld [vmem:[%s12093_s27 + $0x38] sm:$0xf] }
  0x1a   : > { %v667_v32 = vsel %vm664_vm3, %v665_v24, %v666_v25  ;;  %v669_v33 = vsel %vm664_vm3, %v666_v25, %v668_v26  ;;  %v673_v40 = vrot.slane %v12133_v37, 1  ;;  %v675_v43 = vrot.slane %v12145_v41, 1  ;;  %v12159_v47 = vld [vmem:[%s12093_s27 + $0x40] sm:$0xff]  ;;  %v12162_v48 = vld [vmem:[%s12093_s27 + $0x48] sm:$0xff]  ;;  %v12170_v52 = vld [vmem:[%s12093_s27 + $0x50] sm:$0xff] }
  0x1b   : > { %8698 = vmatmul.mubr.msk.f32.vlgmr.msra.gmra.mrb[0].mxu0 %vm786_vm4, %v667_v32  ;;  %v671_v38 = vsel %vm664_vm3, %v668_v26, %v670_v34  ;;  %v677_v46 = vrot.slane %v12152_v44, 1  ;;  %v679_v50 = vrot.slane %v12159_v47, 1  ;;  %v680_v51 = vrot.slane %v12162_v48, 1  ;;  %v12177_v55 = vld [vmem:[%s12093_s27 + $0x58] sm:$0xf]  ;;  %v12184_v58 = vld [vmem:[%s12093_s27 + $0x60] sm:$0xff] }
  0x1c   : > { %960 = vmatprep.mubr.f32.mxu0 %v11948_v7  ;;  %10488 = vmatpush1.bf16.msra.mxu0 %v10487_v27  ;;  %v674_v42 = vsel %vm664_vm3, %v672_v39, %v673_v40  ;;  %v676_v45 = vsel %vm664_vm3, %v673_v40, %v675_v43  ;;  %v682_v54 = vrot.slane %v12170_v52, 1  ;;  %v684_v57 = vrot.slane %v12177_v55, 1  ;;  %v12187_v59 = vld [vmem:[%s12093_s27 + $0x68] sm:$0xff]  ;;  %v12195_v63 = vld [vmem:[%s12093_s27 + $0x70] sm:$0xff]  ;;  %v12202_v2 = vld [vmem:[%s12093_s27 + $0x78] sm:$0xf] }
  0x1d   : > { %10491 = vmatprep.subr.msk.bf16.mxu0 %vm12066_vm2, %v10489_v29  ;;  %v678_v49 = vsel %vm664_vm3, %v675_v43, %v677_v46  ;;  %v681_v53 = vsel %vm664_vm3, %v679_v50, %v680_v51  ;;  %v686_v61 = vrot.slane %v12184_v58, 1  ;;  %v687_v62 = vrot.slane %v12187_v59, 1  ;;  %v12209_v5 = vld [vmem:[%s12093_s27 + $0x80] sm:$0xff]  ;;  %v12212_v6 = vld [vmem:[%s12093_s27 + $0x88] sm:$0xff]  ;;  %v12220_v12 = vld [vmem:[%s12093_s27 + $0x90] sm:$0xff] }
  0x1e   : > { %v683_v56 = vsel %vm664_vm3, %v680_v51, %v682_v54  ;;  %v685_v60 = vsel %vm664_vm3, %v682_v54, %v684_v57  ;;  %v689_v1 = vrot.slane %v12195_v63, 1  ;;  %v691_v4 = vrot.slane %v12202_v2, 1  ;;  %v12227_v15 = vld [vmem:[%s12093_s27 + $0x98] sm:$0xf]  ;;  %v12234_v18 = vld [vmem:[%s12093_s27 + $0xa0] sm:$0xff]  ;;  %v12237_v19 = vld [vmem:[%s12093_s27 + $0xa8] sm:$0xff] }
  0x1f   : > { %8699 = vmatmul.mubr.msk.f32.gmra.mrb[2].mxu0 %vm786_vm4, %v669_v33  ;;  %v688_v0 = vsel %vm664_vm3, %v686_v61, %v687_v62  ;;  %v693_v9 = vrot.slane %v12209_v5, 1  ;;  %v694_v11 = vrot.slane %v12212_v6, 1  ;;  %v696_v14 = vrot.slane %v12220_v12, 1  ;;  %16294 = vst [vmem:[#allocation2_spill] sm:$0xff] %v12227_v15  ;;  %v12245_v26 = vld [vmem:[%s12093_s27 + $0xb0] sm:$0xff]  ;;  %v12259_v33 = vld [vmem:[%s12093_s27 + $0xc0] sm:$0xff] }
  0x20   : > { %966 = vmatprep.mubr.f32.mxu0 %v11948_v7  ;;  %10494 = vmatpush1.bf16.msk.msra.mxu0 %vm12066_vm2, %v10492_v35  ;;  %v690_v3 = vsel %vm664_vm3, %v687_v62, %v689_v1  ;;  %v692_v8 = vsel %vm664_vm3, %v689_v1, %v691_v4  ;;  %v698_v17 = vrot.slane %v12227_v15, 1  ;;  %v700_v24 = vrot.slane %v12234_v18, 1  ;;  %v12252_v30 = vld [vmem:[%s12093_s27 + $0xb8] sm:$0xf]  ;;  %v12262_v34 = vld [vmem:[%s12093_s27 + $0xc8] sm:$0xff]  ;;  %v12270_v40 = vld [vmem:[%s12093_s27 + $0xd0] sm:$0xff] }
  0x21   : > { %v695_v13 = vsel %vm664_vm3, %v693_v9, %v694_v11  ;;  %v697_v16 = vsel %vm664_vm3, %v694_v11, %v696_v14  ;;  %v701_v25 = vrot.slane %v12237_v19, 1  ;;  %v703_v29 = vrot.slane %v12245_v26, 1  ;;  %16295 = vst [vmem:[#allocation3_spill] sm:$0xff] %v12252_v30  ;;  %v8799_v43 = vld [vmem:[%s16242_s1 + $0x98] sm:$0xff]  ;;  %v12290_v54 = vld [vmem:[%s12093_s27 + $0xe0] sm:$0xff]  ;;  %v12301_v62 = vld [vmem:[%s12093_s27 + $0xf0] sm:$0xff] }
  0x22   : > { %v699_v20 = vsel %vm664_vm3, %v696_v14, %v698_v17  ;;  %v705_v32 = vrot.slane %v12252_v30, 1  ;;  %v708_v39 = vrot.slane %v12262_v34, 1  ;;  %v710_v46 = vrot.slane %v12270_v40, 1  ;;  %v12283_v50 = vld [vmem:[%s12093_s27 + $0xd8] sm:$0xf]  ;;  %v12315_v9 = vld [vmem:[%s12093_s27 + $0x100] sm:$0xff] }
  0x23   : > { %8700 = vmatmul.mubr.msk.f32.gmra.mrb[4].mxu0 %vm786_vm4, %v671_v38  ;;  %v702_v27 = vsel %vm664_vm3, %v700_v24, %v701_v25  ;;  %v704_v31 = vsel %vm664_vm3, %v701_v25, %v703_v29  ;;  %v707_v38 = vrot.slane %v12259_v33, 1  ;;  %16296 = vst [vmem:[#allocation4_spill] sm:$0xff] %v12283_v50  ;;  %v717_v1 = vrot.slane %v12301_v62, 1  ;;  %v12318_v11 = vld [vmem:[%s12093_s27 + $0x108] sm:$0xff]  ;;  %v12326_v17 = vld [vmem:[%s12093_s27 + $0x110] sm:$0xff] }
  0x24   : > { %972 = vmatprep.mubr.f32.mxu0 %v11948_v7  ;;  %v706_v35 = vsel %vm664_vm3, %v703_v29, %v705_v32  ;;  %v711_v51 = vsel %vm664_vm3, %v708_v39, %v710_v46  ;;  %v721_v14 = vrot.slane %v12315_v9, 1  ;;  %v724_v24 = vrot.slane %v12326_v17, 1  ;;  %v12333_v25 = vld [vmem:[%s12093_s27 + $0x118] sm:$0xf]  ;;  %v12343_v32 = vld [vmem:[%s12093_s27 + $0x128] sm:$0xff] }
  0x25   : > { %16298 = vst [vmem:[#allocation6_spill] sm:$0xff] %v12333_v25  ;;  %v726_v29 = vrot.slane %v12333_v25, 1  ;;  %v12490_v25 = vld [vmem:[%s12093_s27 + $0x1e0] sm:$0xff]  ;;  %v12508_v30 = vld [vmem:[%s12093_s27 + $0x1f8] sm:$0xf] }
  0x26   : > { %16306 = vst [vmem:[#allocation14_spill] sm:$0xff] %v12508_v30  ;;  %v12991_v10 = vld [vmem:[%s12093_s27 + $0x38] sm:$0xf] }
  0x27   : > { %8701 = vmatmul.mubr.msk.f32.gmra.mrb[6].mxu0 %vm786_vm4, %v674_v42  ;;  %v8797_v42 = vld [vmem:[%s16242_s1 + $0x88] sm:$0xff] }
  0x28   : > { %978 = vmatprep.mubr.f32.mxu0 %v11948_v7 }
  0x2b   : > { %8702 = vmatmul.mubr.msk.f32.gmra.mrb[8].mxu0 %vm786_vm4, %v676_v45  ;;  %v709_v45 = vsel %vm664_vm3, %v707_v38, %v708_v39  ;;  %v729_v39 = vrot.slane %v12343_v32, 1 }
  0x2c   : > { %984 = vmatprep.mubr.f32.mxu0 %v11948_v7 }
  0x2f   : > { %8703 = vmatmul.mubr.msk.f32.gmra.mrb[10].mxu0 %vm786_vm4, %v678_v49  ;;  %v10495_v49 = vpack.c.bf16 %v8799_v43, %v8797_v42  ;;  %v12351_v42 = vld [vmem:[%s12093_s27 + $0x130] sm:$0xff] }
  0x30   : > { %990 = vmatprep.mubr.f32.mxu0 %v11948_v7 }
  0x31   : > { %10496 = vmatprep.subr.bf16.mxu0 %v10495_v49 }
  0x33   : > { %8704 = vmatmul.mubr.msk.f32.gmra.mrb[12].mxu0 %vm786_vm4, %v681_v53  ;;  %v712_v53 = vrot.slane %v12283_v50, 1  ;;  %v12501_v50 = vld [vmem:[%s12093_s27 + $0x1f0] sm:$0xff] }
  0x34   : > { %996 = vmatprep.mubr.f32.mxu0 %v11948_v7  ;;  %16305 = vst [vmem:[#allocation13_spill] sm:$0xff] %v12501_v50 }
  0x35   : > { %v713_v57 = vsel %vm664_vm3, %v710_v46, %v712_v53  ;;  %v12358_v46 = vld [vmem:[%s12093_s27 + $0x138] sm:$0xf]  ;;  %v12365_v53 = vld [vmem:[%s12093_s27 + $0x140] sm:$0xff] }
  0x36   : > { %16299 = vst [vmem:[#allocation7_spill] sm:$0xff] %v12358_v46 }
  0x37   : > { %8705 = vmatmul.mubr.msk.f32.gmra.mrb[14].mxu0 %vm786_vm4, %v683_v56  ;;  %v12293_v56 = vld [vmem:[%s12093_s27 + $0xe8] sm:$0xff] }
  0x38   : > { %1002 = vmatprep.mubr.f32.mxu0 %v11948_v7  ;;  %v715_v61 = vrot.slane %v12293_v56, 1 }
  0x3a   : > { %v718_v4 = vsel %vm664_vm3, %v715_v61, %v717_v1 }
  0x3b   : > { %8706 = vmatmul.mubr.msk.f32.gmra.mrb[16].mxu0 %vm786_vm4, %v685_v60  ;;  %v714_v60 = vrot.slane %v12290_v54, 1 }
  0x3c   : > { %1008 = vmatprep.mubr.f32.mxu0 %v11948_v7 }
  0x3f   : > { %8707 = vmatmul.mubr.msk.f32.gmra.mrb[18].mxu0 %vm786_vm4, %v688_v0  ;;  %v716_v0 = vsel %vm664_vm3, %v714_v60, %v715_v61  ;;  %v735_v61 = vrot.slane %v12365_v53, 1 }
  0x40   : > { %1014 = vmatprep.mubr.f32.mxu0 %v11948_v7 }
  0x43   : > { %8708 = vmatmul.mubr.msk.f32.gmra.mrb[20].mxu0 %vm786_vm4, %v690_v3  ;;  %v12308_v3 = vld [vmem:[%s12093_s27 + $0xf8] sm:$0xf] }
  0x44   : > { %1020 = vmatprep.mubr.f32.mxu0 %v11948_v7  ;;  %16297 = vst [vmem:[#allocation5_spill] sm:$0xff] %v12308_v3 }
  0x47   : > { %8709 = vmatmul.mubr.msk.f32.gmra.mrb[22].mxu0 %vm786_vm4, %v692_v8  ;;  %v719_v8 = vrot.slane %v12308_v3, 1  ;;  %v770_v3 = vrot.slane %v12490_v25, 1 }
  0x48   : > { %1026 = vmatprep.mubr.f32.mxu0 %v11948_v7 }
  0x4b   : > { %8710 = vmatmul.mubr.msk.f32.gmra.mrb[24].mxu0 %vm786_vm4, %v695_v13  ;;  %v720_v13 = vsel %vm664_vm3, %v717_v1, %v719_v8  ;;  %v12376_v1 = vld [vmem:[%s12093_s27 + $0x150] sm:$0xff] }
  0x4c   : > { %1032 = vmatprep.mubr.f32.mxu0 %v11948_v7  ;;  %v738_v8 = vrot.slane %v12376_v1, 1 }
  0x4f   : > { %8711 = vmatmul.mubr.msk.f32.gmra.mrb[26].mxu0 %vm786_vm4, %v697_v16  ;;  %v722_v16 = vrot.slane %v12318_v11, 1 }
  0x50   : > { %1038 = vmatprep.mubr.f32.mxu0 %v11948_v7 }
  0x53   : > { %8712 = vmatmul.mubr.msk.f32.gmra.mrb[28].mxu0 %vm786_vm4, %v699_v20  ;;  %v723_v20 = vsel %vm664_vm3, %v721_v14, %v722_v16 }
  0x54   : > { %1044 = vmatprep.mubr.f32.mxu0 %v11948_v7 }
  0x57   : > { %8713 = vmatmul.mubr.msk.f32.gmra.mrb[30].mxu0 %vm786_vm4, %v702_v27  ;;  %v725_v27 = vsel %vm664_vm3, %v722_v16, %v724_v24 }
  0x58   : > { %1050 = vmatprep.mubr.f32.mxu0 %v11948_v7 }
  0x5b   : > { %8714 = vmatmul.mubr.msk.f32.gmra.mrb[32].mxu0 %vm786_vm4, %v704_v31  ;;  %v12340_v31 = vld [vmem:[%s12093_s27 + $0x120] sm:$0xff] }
  0x5c   : > { %1056 = vmatprep.mubr.f32.mxu0 %v11948_v7  ;;  %v728_v38 = vrot.slane %v12340_v31, 1 }
  0x5e   : > { %v730_v43 = vsel %vm664_vm3, %v728_v38, %v729_v39  ;;  %v12401_v38 = vld [vmem:[%s12093_s27 + $0x170] sm:$0xff] }
  0x5f   : > { %8715 = vmatmul.mubr.msk.f32.gmra.mrb[34].mxu0 %vm786_vm4, %v706_v35  ;;  %v727_v35 = vsel %vm664_vm3, %v724_v24, %v726_v29  ;;  %v12393_v24 = vld [vmem:[%s12093_s27 + $0x168] sm:$0xff] }
  0x60   : > { %1062 = vmatprep.mubr.f32.mxu0 %v11948_v7 }
  0x63   : > { %8716 = vmatmul.mubr.msk.f32.gmra.mrb[36].mxu0 %vm786_vm4, %v709_v45  ;;  %v731_v45 = vrot.slane %v12351_v42, 1 }
  0x64   : > { %1068 = vmatprep.mubr.f32.mxu0 %v11948_v7 }
  0x65   : > { %v732_v49 = vsel %vm664_vm3, %v729_v39, %v731_v45 }
  0x67   : > { %8717 = vmatmul.mubr.msk.f32.gmra.mrb[38].mxu0 %vm786_vm4, %v711_v51  ;;  %v733_v51 = vrot.slane %v12358_v46, 1  ;;  %v12476_v46 = vld [vmem:[%s12093_s27 + $0x1d0] sm:$0xff] }
  0x68   : > { %1074 = vmatprep.mubr.f32.mxu0 %v11948_v7 }
  0x69   : > { %v734_v60 = vsel %vm664_vm3, %v731_v45, %v733_v51  ;;  %v12408_v45 = vld [vmem:[%s12093_s27 + $0x178] sm:$0xf] }
  0x6a   : > { %16301 = vst [vmem:[#allocation9_spill] sm:$0xff] %v12408_v45  ;;  %v747_v51 = vrot.slane %v12408_v45, 1  ;;  %v12465_v45 = vld [vmem:[%s12093_s27 + $0x1c0] sm:$0xff] }
  0x6b   : > { %8718 = vmatmul.mubr.msk.f32.gmra.mrb[40].mxu0 %vm786_vm4, %v713_v57  ;;  %v12368_v57 = vld [vmem:[%s12093_s27 + $0x148] sm:$0xff] }
  0x6c   : > { %1080 = vmatprep.mubr.f32.mxu0 %v11948_v7 }
  0x6f   : > { %8719 = vmatmul.mubr.msk.f32.gmra.mrb[42].mxu0 %vm786_vm4, %v716_v0  ;;  %v736_v0 = vrot.slane %v12368_v57, 1 }
  0x70   : > { %1086 = vmatprep.mubr.f32.mxu0 %v11948_v7 }
  0x71   : > { %v739_v14 = vsel %vm664_vm3, %v736_v0, %v738_v8 }
  0x73   : > { %8720 = vmatmul.mubr.msk.f32.gmra.mrb[44].mxu0 %vm786_vm4, %v718_v4  ;;  %v737_v4 = vsel %vm664_vm3, %v735_v61, %v736_v0  ;;  %v12418_v61 = vld [vmem:[%s12093_s27 + $0x188] sm:$0xff] }
  0x74   : > { %1092 = vmatprep.mubr.f32.mxu0 %v11948_v7 }
  0x77   : > { %8721 = vmatmul.mubr.msk.f32.gmra.mrb[46].mxu0 %vm786_vm4, %v720_v13  ;;  %v12383_v13 = vld [vmem:[%s12093_s27 + $0x158] sm:$0xf] }
  0x78   : > { %1098 = vmatprep.mubr.f32.mxu0 %v11948_v7  ;;  %16300 = vst [vmem:[#allocation8_spill] sm:$0xff] %v12383_v13  ;;  %v740_v16 = vrot.slane %v12383_v13, 1 }
  0x7b   : > { %8722 = vmatmul.mubr.msk.f32.gmra.mrb[48].mxu0 %vm786_vm4, %v723_v20  ;;  %v12390_v20 = vld [vmem:[%s12093_s27 + $0x160] sm:$0xff] }
  0x7c   : > { %1104 = vmatprep.mubr.f32.mxu0 %v11948_v7  ;;  %v742_v29 = vrot.slane %v12390_v20, 1 }
  0x7f   : > { %8723 = vmatmul.mubr.msk.f32.gmra.mrb[50].mxu0 %vm786_vm4, %v725_v27  ;;  %v741_v27 = vsel %vm664_vm3, %v738_v8, %v740_v16  ;;  %v750_v8 = vrot.slane %v12418_v61, 1 }
  0x80   : > { %1110 = vmatprep.mubr.f32.mxu0 %v11948_v7 }
  0x83   : > { %8724 = vmatmul.mubr.msk.f32.gmra.mrb[52].mxu0 %vm786_vm4, %v727_v35  ;;  %v743_v35 = vrot.slane %v12393_v24, 1 }
  0x84   : > { %1116 = vmatprep.mubr.f32.mxu0 %v11948_v7 }
  0x85   : > { %v744_v39 = vsel %vm664_vm3, %v742_v29, %v743_v35  ;;  %v12433_v29 = vld [vmem:[%s12093_s27 + $0x198] sm:$0xf] }
  0x86   : > { %16302 = vst [vmem:[#allocation10_spill] sm:$0xff] %v12433_v29 }
  0x87   : > { %8725 = vmatmul.mubr.msk.f32.gmra.mrb[54].mxu0 %vm786_vm4, %v730_v43  ;;  %v745_v43 = vrot.slane %v12401_v38, 1 }
  0x88   : > { %1122 = vmatprep.mubr.f32.mxu0 %v11948_v7 }
  0x89   : > { %v748_v0 = vsel %vm664_vm3, %v745_v43, %v747_v51 }
  0x8b   : > { %8726 = vmatmul.mubr.msk.f32.gmra.mrb[56].mxu0 %vm786_vm4, %v732_v49  ;;  %v746_v49 = vsel %vm664_vm3, %v743_v35, %v745_v43  ;;  %v12440_v43 = vld [vmem:[%s12093_s27 + $0x1a0] sm:$0xff] }
  0x8c   : > { %1128 = vmatprep.mubr.f32.mxu0 %v11948_v7 }
  0x8f   : > { %8727 = vmatmul.mubr.msk.f32.gmra.mrb[58].mxu0 %vm786_vm4, %v734_v60  ;;  %v12415_v60 = vld [vmem:[%s12093_s27 + $0x180] sm:$0xff] }
  0x90   : > { %1134 = vmatprep.mubr.f32.mxu0 %v11948_v7 }
  0x93   : > { %8728 = vmatmul.mubr.msk.f32.gmra.mrb[60].mxu0 %vm786_vm4, %v737_v4  ;;  %v749_v4 = vrot.slane %v12415_v60, 1 }
  0x94   : > { %1140 = vmatprep.mubr.f32.mxu0 %v11948_v7 }
  0x95   : > { %v751_v16 = vsel %vm664_vm3, %v749_v4, %v750_v8 }
  0x97   : > { %8729 = vmatmul.mubr.msk.f32.gmra.mrb[62].mxu0 %vm786_vm4, %v739_v14  ;;  %v12426_v14 = vld [vmem:[%s12093_s27 + $0x190] sm:$0xff] }
  0x98   : > { %1146 = vmatprep.mubr.f32.mxu0 %v11948_v7 }
  0x9b   : > { %8730 = vmatmul.mubr.msk.f32.gmra.mrb[64].mxu0 %vm786_vm4, %v741_v27  ;;  %v752_v27 = vrot.slane %v12426_v14, 1 }
  0x9c   : > { %1152 = vmatprep.mubr.f32.mxu0 %v11948_v7 }
  0x9d   : > { %v753_v35 = vsel %vm664_vm3, %v750_v8, %v752_v27 }
  0x9f   : > { %8731 = vmatmul.mubr.msk.f32.gmra.mrb[66].mxu0 %vm786_vm4, %v744_v39  ;;  %v754_v39 = vrot.slane %v12433_v29, 1  ;;  %v12458_v29 = vld [vmem:[%s12093_s27 + $0x1b8] sm:$0xf] }
  0xa0   : > { %1158 = vmatprep.mubr.f32.mxu0 %v11948_v7  ;;  %16303 = vst [vmem:[#allocation11_spill] sm:$0xff] %v12458_v29 }
  0xa1   : > { %v755_v51 = vsel %vm664_vm3, %v752_v27, %v754_v39  ;;  %v761_v39 = vrot.slane %v12458_v29, 1  ;;  %v12483_v29 = vld [vmem:[%s12093_s27 + $0x1d8] sm:$0xf] }
  0xa2   : > { %16304 = vst [vmem:[#allocation12_spill] sm:$0xff] %v12483_v29 }
  0xa3   : > { %8732 = vmatmul.mubr.msk.f32.gmra.mrb[68].mxu0 %vm786_vm4, %v746_v49  ;;  %v12443_v49 = vld [vmem:[%s12093_s27 + $0x1a8] sm:$0xff] }
  0xa4   : > { %1164 = vmatprep.mubr.f32.mxu0 %v11948_v7  ;;  %v757_v4 = vrot.slane %v12443_v49, 1 }
  0xa7   : > { %8733 = vmatmul.mubr.msk.f32.gmra.mrb[70].mxu0 %vm786_vm4, %v748_v0  ;;  %v756_v0 = vrot.slane %v12440_v43, 1 }
  0xa8   : > { %1170 = vmatprep.mubr.f32.mxu0 %v11948_v7 }
  0xa9   : > { %v758_v8 = vsel %vm664_vm3, %v756_v0, %v757_v4 }
  0xab   : > { %8734 = vmatmul.mubr.msk.f32.gmra.mrb[72].mxu0 %vm786_vm4, %v751_v16  ;;  %v12451_v16 = vld [vmem:[%s12093_s27 + $0x1b0] sm:$0xff] }
  0xac   : > { %1176 = vmatprep.mubr.f32.mxu0 %v11948_v7 }
  0xaf   : > { %8735 = vmatmul.mubr.msk.f32.gmra.mrb[74].mxu0 %vm786_vm4, %v753_v35  ;;  %v759_v35 = vrot.slane %v12451_v16, 1 }
  0xb0   : > { %1182 = vmatprep.mubr.f32.mxu0 %v11948_v7 }
  0xb1   : > { %v760_v27 = vsel %vm664_vm3, %v757_v4, %v759_v35  ;;  %v762_v0 = vsel %vm664_vm3, %v759_v35, %v761_v39  ;;  %v768_v39 = vrot.slane %v12483_v29, 1  ;;  %v773_v29 = vrot.slane %v12501_v50, 1 }
  0xb3   : > { %8736 = vmatmul.mubr.msk.f32.gmra.mrb[76].mxu0 %vm786_vm4, %v755_v51  ;;  %v12468_v51 = vld [vmem:[%s12093_s27 + $0x1c8] sm:$0xff] }
  0xb4   : > { %1188 = vmatprep.mubr.f32.mxu0 %v11948_v7  ;;  %v764_v13 = vrot.slane %v12468_v51, 1 }
  0xb7   : > { %8737 = vmatmul.mubr.msk.f32.gmra.mrb[78].mxu0 %vm786_vm4, %v758_v8  ;;  %v763_v8 = vrot.slane %v12465_v45, 1 }
  0xb8   : > { %1194 = vmatprep.mubr.f32.mxu0 %v11948_v7 }
  0xb9   : > { %v765_v4 = vsel %vm664_vm3, %v763_v8, %v764_v13 }
  0xbb   : > { %8738 = vmatmul.mubr.msk.f32.gmra.mrb[80].mxu0 %vm786_vm4, %v760_v27  ;;  %v766_v27 = vrot.slane %v12476_v46, 1 }
  0xbc   : > { %1200 = vmatprep.mubr.f32.mxu0 %v11948_v7 }
  0xbd   : > { %v767_v35 = vsel %vm664_vm3, %v764_v13, %v766_v27  ;;  %v769_v8 = vsel %vm664_vm3, %v766_v27, %v768_v39 }
  0xbf   : > { %8739 = vmatmul.mubr.msk.f32.gmra.mrb[82].mxu0 %vm786_vm4, %v762_v0  ;;  %v12493_v0 = vld [vmem:[%s12093_s27 + $0x1e8] sm:$0xff] }
  0xc0   : > { %1206 = vmatprep.mubr.f32.mxu0 %v11948_v7 }
  0xc3   : > { %8740 = vmatmul.mubr.msk.f32.gmra.mrb[84].mxu0 %vm786_vm4, %v765_v4  ;;  %v771_v4 = vrot.slane %v12493_v0, 1 }
  0xc4   : > { %1212 = vmatprep.mubr.f32.mxu0 %v11948_v7 }
  0xc5   : > { %v772_v13 = vsel %vm664_vm3, %v770_v3, %v771_v4  ;;  %v774_v27 = vsel %vm664_vm3, %v771_v4, %v773_v29  ;;  %v8796_v3 = vld [vmem:[%s16242_s1 + $0x80] sm:$0xff]  ;;  %v8801_v4 = vld [vmem:[%s16242_s1 + $0xa8] sm:$0xff] }
  0xc7   : > { %8741 = vmatmul.mubr.msk.f32.gmra.mrb[86].mxu0 %vm786_vm4, %v767_v35  ;;  %v775_v35 = vrot.slane %v12508_v30, 1  ;;  %v8802_v30 = vld [vmem:[%s16242_s1 + $0xb0] sm:$0xf] }
  0xc8   : > { %1218 = vmatprep.mubr.f32.mxu0 %v11948_v7 }
  0xc9   : > { %v776_v39 = vsel %vm664_vm3, %v773_v29, %v775_v35  ;;  %v8800_v35 = vld [vmem:[%s16242_s1 + $0xa0] sm:$0xff] }
  0xca   : > { %v10502_v15 = vpack.c.bf16 %v8802_v30, %v8800_v35  ;;  %v8857_v30 = vld [vmem:[%s16242_s1 + $0xd8] sm:$0xff] }
  0xcb   : > { %8742 = vmatmul.mubr.msk.f32.gmra.mrb[88].mxu0 %vm786_vm4, %v769_v8  ;;  %v8798_v8 = vld [vmem:[%s16242_s1 + $0x90] sm:$0xff] }
  0xcc   : > { %1224 = vmatprep.mubr.f32.mxu0 %v11948_v7  ;;  %v10497_v29 = vpack.c.bf16 %v8798_v8, %v8796_v3  ;;  %v1699_v3 = vrot.slane %v12104_v21, 2  ;;  %v1700_v8 = vrot.slane %v12107_v22, 2 }
  0xcf   : > { %8743 = vmatmul.mubr.msk.f32.gmra.mrb[90].mxu0 %vm786_vm4, %v772_v13  ;;  %v8803_v13 = vld [vmem:[%s16242_s1 + $0xb8] sm:$0xf] }
  0xd0   : > { %1230 = vmatprep.mubr.f32.mxu0 %v11948_v7 }
  0xd3   : > { %8744 = vmatmul.mubr.msk.f32.gmra.mrb[92].mxu0 %vm786_vm4, %v774_v27  ;;  %v10499_v27 = vpack.c.bf16 %v8803_v13, %v8801_v4  ;;  %v8854_v4 = vld [vmem:[%s16242_s1 + $0xc0] sm:$0xff]  ;;  %v8856_v13 = vld [vmem:[%s16242_s1 + $0xd0] sm:$0xff] }
  0xd4   : > { %1236 = vmatprep.mubr.f32.mxu0 %v11948_v7  ;;  %v10507_v35 = vpack.c.bf16 %v8856_v13, %v8854_v4  ;;  %v1706_v13 = vrot.slane %v12130_v36, 2 }
  0xd7   : > { %8745 = vmatmul.mubr.msk.f32.gmra.mrb[94].mxu0 %vm786_vm4, %v776_v39 }
  0xd8   : > { %1409 = vmatprep.mubr.f32.mxu0 %v11948_v7 }
  0xdb   : > { %8748 = vmatmul.mubr.msk.f32.vlgmr.msra.gmra.mrb[0].mxu0 %vm786_vm4, %v12104_v21  ;;  %v1701_v21 = vsel %vm1698_vm5, %v1699_v3, %v1700_v8  ;;  %v1704_v3 = vrot.slane %v12116_v28, 2 }
  0xdc   : > { %1415 = vmatprep.mubr.f32.mxu0 %v11948_v7  ;;  %10498 = vmatpush1.bf16.msra.mxu0 %v10497_v29  ;;  %v8859_v29 = vld [vmem:[%s16242_s1 + $0xe8] sm:$0xff] }
  0xdd   : > { %10501 = vmatprep.subr.msk.bf16.mxu0 %vm12066_vm2, %v10499_v27  ;;  %v8861_v27 = vld [vmem:[%s16242_s1 + $0xf8] sm:$0xf] }
  0xdf   : > { %8749 = vmatmul.mubr.msk.f32.gmra.mrb[2].mxu0 %vm786_vm4, %v12107_v22  ;;  %v1702_v22 = vrot.slane %v12110_v23, 2 }
  0xe0   : > { %1421 = vmatprep.mubr.f32.mxu0 %v11948_v7  ;;  %10504 = vmatpush1.bf16.msk.msra.mxu0 %vm12066_vm2, %v10502_v15  ;;  %v8855_v15 = vld [vmem:[%s16242_s1 + $0xc8] sm:$0xff] }
  0xe1   : > { %v10505_v39 = vpack.c.bf16 %v8857_v30, %v8855_v15  ;;  %v10509_v15 = vpack.c.bf16 %v8861_v27, %v8859_v29  ;;  %v8858_v30 = vld [vmem:[%s16242_s1 + $0xe0] sm:$0xff]  ;;  %v1705_v4 = vsel %vm1698_vm5, %v1702_v22, %v1704_v3  ;;  %v1707_v29 = vrot.slane %v12133_v37, 2 }
  0xe2   : > { %v1713_v27 = vrot.slane %v12159_v47, 2  ;;  %v1728_v3 = vrot.slane %v12212_v6, 2 }
  0xe3   : > { %8750 = vmatmul.mubr.msk.f32.gmra.mrb[4].mxu0 %vm786_vm4, %v12110_v23  ;;  %10506 = vmatprep.subr.bf16.mxu0 %v10505_v39  ;;  %v8860_v39 = vld [vmem:[%s16242_s1 + $0xf0] sm:$0xf]  ;;  %v1708_v28 = vsel %vm1698_vm5, %v1706_v13, %v1707_v29 }
  0xe4   : > { %1427 = vmatprep.mubr.f32.mxu0 %v11948_v7  ;;  %v10512_v23 = vpack.c.bf16 %v8860_v39, %v8858_v30  ;;  %v1723_v30 = vrot.slane %v12195_v63, 2  ;;  %v1725_v39 = vrot.slane %v12202_v2, 2 }
  0xe7   : > { %8751 = vmatmul.mubr.msk.f32.gmra.mrb[6].mxu0 %vm786_vm4, %v12130_v36  ;;  %v1711_v36 = vrot.slane %v12152_v44, 2 }
  0xe8   : > { %1433 = vmatprep.mubr.f32.mxu0 %v11948_v7 }
  0xeb   : > { %8752 = vmatmul.mubr.msk.f32.gmra.mrb[8].mxu0 %vm786_vm4, %v12133_v37 }
  0xec   : > { %1439 = vmatprep.mubr.f32.mxu0 %v11948_v7 }
  0xef   : > { %8753 = vmatmul.mubr.msk.f32.gmra.mrb[10].mxu0 %vm786_vm4, %v12145_v41 }
  0xf0   : > { %1445 = vmatprep.mubr.f32.mxu0 %v11948_v7 }
  0xf3   : > { %8754 = vmatmul.mubr.msk.f32.gmra.mrb[12].mxu0 %vm786_vm4, %v12159_v47 }
  0xf4   : > { %1451 = vmatprep.mubr.f32.mxu0 %v11948_v7 }
  0xf7   : > { %8755 = vmatmul.mubr.msk.f32.gmra.mrb[14].mxu0 %vm786_vm4, %v12162_v48 }
  0xf8   : > { %1457 = vmatprep.mubr.f32.mxu0 %v11948_v7 }
  0xfb   : > { %8756 = vmatmul.mubr.msk.f32.gmra.mrb[16].mxu0 %vm786_vm4, %v12170_v52 }
  0xfc   : > { %1463 = vmatprep.mubr.f32.mxu0 %v11948_v7 }
  0xff   : > { %8757 = vmatmul.mubr.msk.f32.gmra.mrb[18].mxu0 %vm786_vm4, %v12184_v58 }
 0x100   : > { %1469 = vmatprep.mubr.f32.mxu0 %v11948_v7 }
 0x103   : > { %8758 = vmatmul.mubr.msk.f32.gmra.mrb[20].mxu0 %vm786_vm4, %v12187_v59 }
 0x104   : > { %1475 = vmatprep.mubr.f32.mxu0 %v11948_v7 }
 0x107   : > { %8759 = vmatmul.mubr.msk.f32.gmra.mrb[22].mxu0 %vm786_vm4, %v12195_v63 }
 0x108   : > { %1481 = vmatprep.mubr.f32.mxu0 %v11948_v7 }
 0x10b   : > { %8760 = vmatmul.mubr.msk.f32.gmra.mrb[24].mxu0 %vm786_vm4, %v12209_v5 }
 0x10c   : > { %1487 = vmatprep.mubr.f32.mxu0 %v11948_v7 }
 0x10f   : > { %8761 = vmatmul.mubr.msk.f32.gmra.mrb[26].mxu0 %vm786_vm4, %v12212_v6  ;;  %v1734_v6 = vrot.slane %v12234_v18, 2 }
 0x110   : > { %1493 = vmatprep.mubr.f32.mxu0 %v11948_v7 }
 0x113   : > { %8762 = vmatmul.mubr.msk.f32.gmra.mrb[28].mxu0 %vm786_vm4, %v12220_v12 }
 0x114   : > { %1499 = vmatprep.mubr.f32.mxu0 %v11948_v7 }
 0x117   : > { %8763 = vmatmul.mubr.msk.f32.gmra.mrb[30].mxu0 %vm786_vm4, %v12234_v18 }
 0x118   : > { %1505 = vmatprep.mubr.f32.mxu0 %v11948_v7 }
 0x11b   : > { %8764 = vmatmul.mubr.msk.f32.gmra.mrb[32].mxu0 %vm786_vm4, %v12237_v19 }
 0x11c   : > { %1511 = vmatprep.mubr.f32.mxu0 %v11948_v7 }
 0x11f   : > { %8765 = vmatmul.mubr.msk.f32.gmra.mrb[34].mxu0 %vm786_vm4, %v12245_v26 }
 0x120   : > { %1517 = vmatprep.mubr.f32.mxu0 %v11948_v7 }
 0x123   : > { %8766 = vmatmul.mubr.msk.f32.gmra.mrb[36].mxu0 %vm786_vm4, %v12259_v33 }
 0x124   : > { %1523 = vmatprep.mubr.f32.mxu0 %v11948_v7 }
 0x127   : > { %8767 = vmatmul.mubr.msk.f32.gmra.mrb[38].mxu0 %vm786_vm4, %v12262_v34 }
 0x128   : > { %1529 = vmatprep.mubr.f32.mxu0 %v11948_v7 }
 0x12b   : > { %8768 = vmatmul.mubr.msk.f32.gmra.mrb[40].mxu0 %vm786_vm4, %v12270_v40 }
 0x12c   : > { %1535 = vmatprep.mubr.f32.mxu0 %v11948_v7 }
 0x12f   : > { %8769 = vmatmul.mubr.msk.f32.gmra.mrb[42].mxu0 %vm786_vm4, %v12290_v54 }
 0x130   : > { %1541 = vmatprep.mubr.f32.mxu0 %v11948_v7 }
 0x133   : > { %8770 = vmatmul.mubr.msk.f32.gmra.mrb[44].mxu0 %vm786_vm4, %v12293_v56 }
 0x134   : > { %1547 = vmatprep.mubr.f32.mxu0 %v11948_v7 }
 0x137   : > { %8771 = vmatmul.mubr.msk.f32.gmra.mrb[46].mxu0 %vm786_vm4, %v12301_v62 }
 0x138   : > { %1553 = vmatprep.mubr.f32.mxu0 %v11948_v7 }
 0x13b   : > { %8772 = vmatmul.mubr.msk.f32.gmra.mrb[48].mxu0 %vm786_vm4, %v12315_v9 }
 0x13c   : > { %1559 = vmatprep.mubr.f32.mxu0 %v11948_v7 }
 0x13f   : > { %8773 = vmatmul.mubr.msk.f32.gmra.mrb[50].mxu0 %vm786_vm4, %v12318_v11 }
 0x140   : > { %1565 = vmatprep.mubr.f32.mxu0 %v11948_v7 }
 0x143   : > { %8774 = vmatmul.mubr.msk.f32.gmra.mrb[52].mxu0 %vm786_vm4, %v12326_v17 }
 0x144   : > { %1571 = vmatprep.mubr.f32.mxu0 %v11948_v7 }
 0x147   : > { %8775 = vmatmul.mubr.msk.f32.gmra.mrb[54].mxu0 %vm786_vm4, %v12340_v31 }
 0x148   : > { %1577 = vmatprep.mubr.f32.mxu0 %v11948_v7 }
 0x14b   : > { %8776 = vmatmul.mubr.msk.f32.gmra.mrb[56].mxu0 %vm786_vm4, %v12343_v32 }
 0x14c   : > { %1583 = vmatprep.mubr.f32.mxu0 %v11948_v7 }
 0x14f   : > { %8777 = vmatmul.mubr.msk.f32.gmra.mrb[58].mxu0 %vm786_vm4, %v12351_v42 }
 0x150   : > { %1589 = vmatprep.mubr.f32.mxu0 %v11948_v7 }
 0x153   : > { %8778 = vmatmul.mubr.msk.f32.gmra.mrb[60].mxu0 %vm786_vm4, %v12365_v53 }
 0x154   : > { %1595 = vmatprep.mubr.f32.mxu0 %v11948_v7 }
 0x157   : > { %8779 = vmatmul.mubr.msk.f32.gmra.mrb[62].mxu0 %vm786_vm4, %v12368_v57 }
 0x158   : > { %1601 = vmatprep.mubr.f32.mxu0 %v11948_v7 }
 0x15b   : > { %8780 = vmatmul.mubr.msk.f32.gmra.mrb[64].mxu0 %vm786_vm4, %v12376_v1 }
 0x15c   : > { %1607 = vmatprep.mubr.f32.mxu0 %v11948_v7 }
 0x15f   : > { %8781 = vmatmul.mubr.msk.f32.gmra.mrb[66].mxu0 %vm786_vm4, %v12390_v20 }
 0x160   : > { %1613 = vmatprep.mubr.f32.mxu0 %v11948_v7 }
 0x163   : > { %8782 = vmatmul.mubr.msk.f32.gmra.mrb[68].mxu0 %vm786_vm4, %v12393_v24 }
 0x164   : > { %1619 = vmatprep.mubr.f32.mxu0 %v11948_v7 }
 0x167   : > { %8783 = vmatmul.mubr.msk.f32.gmra.mrb[70].mxu0 %vm786_vm4, %v12401_v38 }
 0x168   : > { %1625 = vmatprep.mubr.f32.mxu0 %v11948_v7 }
 0x16b   : > { %8784 = vmatmul.mubr.msk.f32.gmra.mrb[72].mxu0 %vm786_vm4, %v12415_v60 }
 0x16c   : > { %1631 = vmatprep.mubr.f32.mxu0 %v11948_v7 }
 0x16f   : > { %8785 = vmatmul.mubr.msk.f32.gmra.mrb[74].mxu0 %vm786_vm4, %v12418_v61 }
 0x170   : > { %1637 = vmatprep.mubr.f32.mxu0 %v11948_v7 }
 0x173   : > { %8786 = vmatmul.mubr.msk.f32.gmra.mrb[76].mxu0 %vm786_vm4, %v12426_v14 }
 0x174   : > { %1643 = vmatprep.mubr.f32.mxu0 %v11948_v7 }
 0x177   : > { %8787 = vmatmul.mubr.msk.f32.gmra.mrb[78].mxu0 %vm786_vm4, %v12440_v43 }
 0x178   : > { %1649 = vmatprep.mubr.f32.mxu0 %v11948_v7 }
 0x17b   : > { %8788 = vmatmul.mubr.msk.f32.gmra.mrb[80].mxu0 %vm786_vm4, %v12443_v49 }
 0x17c   : > { %1655 = vmatprep.mubr.f32.mxu0 %v11948_v7 }
 0x17f   : > { %8789 = vmatmul.mubr.msk.f32.gmra.mrb[82].mxu0 %vm786_vm4, %v12451_v16 }
 0x180   : > { %1661 = vmatprep.mubr.f32.mxu0 %v11948_v7 }
 0x183   : > { %8790 = vmatmul.mubr.msk.f32.gmra.mrb[84].mxu0 %vm786_vm4, %v12465_v45 }
 0x184   : > { %1667 = vmatprep.mubr.f32.mxu0 %v11948_v7 }
 0x187   : > { %8791 = vmatmul.mubr.msk.f32.gmra.mrb[86].mxu0 %vm786_vm4, %v12468_v51 }
 0x188   : > { %1673 = vmatprep.mubr.f32.mxu0 %v11948_v7 }
 0x18b   : > { %8792 = vmatmul.mubr.msk.f32.gmra.mrb[88].mxu0 %vm786_vm4, %v12476_v46 }
 0x18c   : > { %1679 = vmatprep.mubr.f32.mxu0 %v11948_v7 }
 0x18f   : > { %8793 = vmatmul.mubr.msk.f32.gmra.mrb[90].mxu0 %vm786_vm4, %v12490_v25 }
 0x190   : > { %1685 = vmatprep.mubr.f32.mxu0 %v11948_v7 }
 0x193   : > { %8794 = vmatmul.mubr.msk.f32.gmra.mrb[92].mxu0 %vm786_vm4, %v12493_v0 }
 0x194   : > { %1691 = vmatprep.mubr.f32.mxu0 %v11948_v7 }
 0x197   : > { %8795 = vmatmul.mubr.msk.f32.gmra.mrb[94].mxu0 %vm786_vm4, %v12501_v50  ;;  %v1703_v50 = vsel %vm1698_vm5, %v1700_v8, %v1702_v22  ;;  %v1709_v8 = vrot.slane %v12145_v41, 2  ;;  %v1716_v22 = vrot.slane %v12170_v52, 2 }
 0x198   : > { %1986 = vmatprep.mubr.f32.mxu0 %v11948_v7 }
 0x199   : > { %v1712_v37 = vsel %vm1698_vm5, %v1709_v8, %v1711_v36 }
 0x19b   : > { %8806 = vmatmul.mubr.msk.f32.vlgmr.msra.gmra.mrb[0].mxu0 %vm786_vm4, %v1701_v21  ;;  %v1714_v21 = vrot.slane %v12162_v48, 2  ;;  %v1720_v48 = vrot.slane %v12184_v58, 2  ;;  %v1726_v58 = vsel %vm1698_vm5, %v1723_v30, %v1725_v39  ;;  %v1756_v39 = vrot.slane %v12318_v11, 2 }
 0x19c   : > { %1992 = vmatprep.mubr.f32.mxu0 %v11948_v7  ;;  %10508 = vmatpush1.bf16.msra.mxu0 %v10507_v35  ;;  %v1718_v35 = vrot.slane %v12177_v55, 2  ;;  %v1762_v11 = vrot.slane %v12340_v31, 2 }
 0x19d   : > { %10511 = vmatprep.subr.msk.bf16.mxu0 %vm12066_vm2, %v10509_v15  ;;  %v1715_v41 = vsel %vm1698_vm5, %v1713_v27, %v1714_v21  ;;  %v1717_v44 = vsel %vm1698_vm5, %v1714_v21, %v1716_v22  ;;  %v1721_v15 = vrot.slane %v12187_v59, 2  ;;  %v1727_v59 = vrot.slane %v12209_v5, 2  ;;  %v8915_v27 = vld [vmem:[%s16242_s1 + $0x118] sm:$0xff] }
 0x19e   : > { %v1719_v47 = vsel %vm1698_vm5, %v1716_v22, %v1718_v35 }
 0x19f   : > { %8807 = vmatmul.mubr.msk.f32.gmra.mrb[2].mxu0 %vm786_vm4, %v1703_v50  ;;  %v1710_v50 = vsel %vm1698_vm5, %v1707_v29, %v1709_v8  ;;  %v1722_v52 = vsel %vm1698_vm5, %v1720_v48, %v1721_v15  ;;  %v1724_v55 = vsel %vm1698_vm5, %v1721_v15, %v1723_v30  ;;  %v1729_v63 = vsel %vm1698_vm5, %v1727_v59, %v1728_v3  ;;  %v16310_v30 = vld [vmem:[#allocation5_spill] sm:$0xff] }
 0x1a0   : > { %1998 = vmatprep.mubr.f32.mxu0 %v11948_v7  ;;  %10514 = vmatpush1.bf16.msk.msra.mxu0 %vm12066_vm2, %v10512_v23  ;;  %v1730_v23 = vrot.slane %v12220_v12, 2  ;;  %v1735_v29 = vrot.slane %v12237_v19, 2  ;;  %v1741_v19 = vrot.slane %v12259_v33, 2  ;;  %v1751_v15 = vrot.slane %v12301_v62, 2 }
 0x1a2   : > { %v1731_v2 = vsel %vm1698_vm5, %v1728_v3, %v1730_v23  ;;  %v1736_v12 = vsel %vm1698_vm5, %v1734_v6, %v1735_v29  ;;  %v16311_v3 = vld [vmem:[#allocation6_spill] sm:$0xff]  ;;  %v1770_v6 = vrot.slane %v12368_v57, 2  ;;  %v1776_v57 = vrot.slane %v12390_v20, 2 }
 0x1a3   : > { %8808 = vmatmul.mubr.msk.f32.gmra.mrb[4].mxu0 %vm786_vm4, %v1705_v4  ;;  %v16307_v4 = vld [vmem:[#allocation2_spill] sm:$0xff] }
 0x1a4   : > { %2004 = vmatprep.mubr.f32.mxu0 %v11948_v7  ;;  %v1732_v13 = vrot.slane %v16307_v4, 2 }
 0x1a6   : > { %v1733_v5 = vsel %vm1698_vm5, %v1730_v23, %v1732_v13  ;;  %v1763_v23 = vrot.slane %v12343_v32, 2  ;;  %v16312_v13 = vld [vmem:[#allocation7_spill] sm:$0xff]  ;;  %v1769_v32 = vrot.slane %v12365_v53, 2 }
 0x1a7   : > { %8809 = vmatmul.mubr.msk.f32.gmra.mrb[6].mxu0 %vm786_vm4, %v1708_v28  ;;  %v1737_v28 = vrot.slane %v12245_v26, 2  ;;  %v8913_v26 = vld [vmem:[%s16242_s1 + $0x108] sm:$0xff] }
 0x1a8   : > { %2010 = vmatprep.mubr.f32.mxu0 %v11948_v7  ;;  %v10515_v22 = vpack.c.bf16 %v8915_v27, %v8913_v26  ;;  %v1784_v26 = vrot.slane %v12418_v61, 2  ;;  %v1786_v27 = vrot.slane %v12426_v14, 2  ;;  %v1790_v61 = vrot.slane %v12440_v43, 2 }
 0x1a9   : > { %v1738_v8 = vsel %vm1698_vm5, %v1735_v29, %v1737_v28  ;;  %v1772_v29 = vrot.slane %v12376_v1, 2 }
 0x1aa   : > { %10516 = vmatprep.subr.bf16.mxu0 %v10515_v22 }
 0x1ab   : > { %8810 = vmatmul.mubr.msk.f32.gmra.mrb[8].mxu0 %vm786_vm4, %v1710_v50  ;;  %v16308_v50 = vld [vmem:[#allocation3_spill] sm:$0xff] }
 0x1ac   : > { %2016 = vmatprep.mubr.f32.mxu0 %v11948_v7  ;;  %v1739_v36 = vrot.slane %v16308_v50, 2  ;;  %v1777_v50 = vrot.slane %v12393_v24, 2  ;;  %v1783_v24 = vrot.slane %v12415_v60, 2 }
 0x1ae   : > { %v1740_v18 = vsel %vm1698_vm5, %v1737_v28, %v1739_v36  ;;  %v16313_v28 = vld [vmem:[#allocation8_spill] sm:$0xff]  ;;  %v1778_v1 = vsel %vm1698_vm5, %v1776_v57, %v1777_v50  ;;  %v1779_v36 = vrot.slane %v12401_v38, 2  ;;  %v1785_v38 = vsel %vm1698_vm5, %v1783_v24, %v1784_v26 }
 0x1af   : > { %8811 = vmatmul.mubr.msk.f32.gmra.mrb[10].mxu0 %vm786_vm4, %v1712_v37  ;;  %v1742_v37 = vrot.slane %v12262_v34, 2  ;;  %v16309_v34 = vld [vmem:[#allocation4_spill] sm:$0xff] }
 0x1b0   : > { %2022 = vmatprep.mubr.f32.mxu0 %v11948_v7 }
 0x1b1   : > { %v1743_v21 = vsel %vm1698_vm5, %v1741_v19, %v1742_v37  ;;  %v16314_v19 = vld [vmem:[#allocation9_spill] sm:$0xff] }
 0x1b3   : > { %8812 = vmatmul.mubr.msk.f32.gmra.mrb[12].mxu0 %vm786_vm4, %v1715_v41  ;;  %v1744_v41 = vrot.slane %v12270_v40, 2  ;;  %v1749_v40 = vrot.slane %v12293_v56, 2  ;;  %v1755_v56 = vrot.slane %v12315_v9, 2 }
 0x1b4   : > { %2028 = vmatprep.mubr.f32.mxu0 %v11948_v7 }
 0x1b5   : > { %v1745_v33 = vsel %vm1698_vm5, %v1742_v37, %v1744_v41  ;;  %v1757_v62 = vsel %vm1698_vm5, %v1755_v56, %v1756_v39  ;;  %v1781_v37 = vrot.slane %v16314_v19, 2 }
 0x1b7   : > { %8813 = vmatmul.mubr.msk.f32.gmra.mrb[14].mxu0 %vm786_vm4, %v1717_v44  ;;  %v1746_v44 = vrot.slane %v16309_v34, 2  ;;  %v1782_v20 = vsel %vm1698_vm5, %v1779_v36, %v1781_v37  ;;  %v1793_v34 = vrot.slane %v12451_v16, 2 }
 0x1b8   : > { %2034 = vmatprep.mubr.f32.mxu0 %v11948_v7 }
 0x1b9   : > { %v1747_v35 = vsel %vm1698_vm5, %v1744_v41, %v1746_v44  ;;  %v16315_v41 = vld [vmem:[#allocation10_spill] sm:$0xff] }
 0x1ba   : > { %v1788_v22 = vrot.slane %v16315_v41, 2 }
 0x1bb   : > { %8814 = vmatmul.mubr.msk.f32.gmra.mrb[16].mxu0 %vm786_vm4, %v1719_v47  ;;  %v1748_v47 = vrot.slane %v12290_v54, 2 }
 0x1bc   : > { %2040 = vmatprep.mubr.f32.mxu0 %v11948_v7  ;;  %v1789_v60 = vsel %vm1698_vm5, %v1786_v27, %v1788_v22  ;;  %v13009_v22 = vld [vmem:[%s12093_s27 + $0x50] sm:$0xff] }
 0x1bd   : > { %v1750_v48 = vsel %vm1698_vm5, %v1748_v47, %v1749_v40 }
 0x1bf   : > { %8815 = vmatmul.mubr.msk.f32.gmra.mrb[18].mxu0 %vm786_vm4, %v1722_v52  ;;  %v1752_v52 = vsel %vm1698_vm5, %v1749_v40, %v1751_v15  ;;  %v1798_v40 = vrot.slane %v12468_v51, 2  ;;  %v1804_v51 = vrot.slane %v12490_v25, 2 }
 0x1c0   : > { %2046 = vmatprep.mubr.f32.mxu0 %v11948_v7 }
 0x1c3   : > { %8816 = vmatmul.mubr.msk.f32.gmra.mrb[20].mxu0 %vm786_vm4, %v1724_v55  ;;  %v1753_v55 = vrot.slane %v16310_v30, 2 }
 0x1c4   : > { %2052 = vmatprep.mubr.f32.mxu0 %v11948_v7 }
 0x1c5   : > { %v1754_v54 = vsel %vm1698_vm5, %v1751_v15, %v1753_v55 }
 0x1c7   : > { %8817 = vmatmul.mubr.msk.f32.gmra.mrb[22].mxu0 %vm786_vm4, %v1726_v58  ;;  %v1758_v58 = vrot.slane %v12326_v17, 2  ;;  %v1764_v17 = vsel %vm1698_vm5, %v1762_v11, %v1763_v23  ;;  %v8914_v11 = vld [vmem:[%s16242_s1 + $0x110] sm:$0xff] }
 0x1c8   : > { %2058 = vmatprep.mubr.f32.mxu0 %v11948_v7 }
 0x1c9   : > { %v1759_v59 = vsel %vm1698_vm5, %v1756_v39, %v1758_v58 }
 0x1cb   : > { %8818 = vmatmul.mubr.msk.f32.gmra.mrb[24].mxu0 %vm786_vm4, %v1729_v63  ;;  %v1760_v63 = vrot.slane %v16311_v3, 2  ;;  %v12930_v3 = vld [vmem:[%s12093_s27 + $0x8] sm:$0xff] }
 0x1cc   : > { %2064 = vmatprep.mubr.f32.mxu0 %v11948_v7 }
 0x1cd   : > { %v1761_v9 = vsel %vm1698_vm5, %v1758_v58, %v1760_v63  ;;  %v2373_v63 = vrot.slane %v12930_v3, 3 }
 0x1cf   : > { %8819 = vmatmul.mubr.msk.f32.gmra.mrb[26].mxu0 %vm786_vm4, %v1731_v2  ;;  %v1765_v2 = vrot.slane %v12351_v42, 2  ;;  %v1771_v42 = vsel %vm1698_vm5, %v1769_v32, %v1770_v6  ;;  %v8916_v32 = vld [vmem:[%s16242_s1 + $0x120] sm:$0xff] }
 0x1d0   : > { %2070 = vmatprep.mubr.f32.mxu0 %v11948_v7 }
 0x1d1   : > { %v1766_v4 = vsel %vm1698_vm5, %v1763_v23, %v1765_v2  ;;  %v8917_v23 = vld [vmem:[%s16242_s1 + $0x128] sm:$0xff] }
 0x1d3   : > { %8820 = vmatmul.mubr.msk.f32.gmra.mrb[28].mxu0 %vm786_vm4, %v1733_v5  ;;  %v1767_v5 = vrot.slane %v16312_v13, 2 }
 0x1d4   : > { %2076 = vmatprep.mubr.f32.mxu0 %v11948_v7 }
 0x1d5   : > { %v1768_v31 = vsel %vm1698_vm5, %v1765_v2, %v1767_v5 }
 0x1d7   : > { %8821 = vmatmul.mubr.msk.f32.gmra.mrb[30].mxu0 %vm786_vm4, %v1736_v12  ;;  %v1773_v12 = vsel %vm1698_vm5, %v1770_v6, %v1772_v29  ;;  %v8918_v6 = vld [vmem:[%s16242_s1 + $0x130] sm:$0xf] }
 0x1d8   : > { %2082 = vmatprep.mubr.f32.mxu0 %v11948_v7 }
 0x1db   : > { %8822 = vmatmul.mubr.msk.f32.gmra.mrb[32].mxu0 %vm786_vm4, %v1738_v8  ;;  %v1774_v8 = vrot.slane %v16313_v28, 2  ;;  %v10522_v28 = vpack.c.bf16 %v8918_v6, %v8916_v32 }
 0x1dc   : > { %2088 = vmatprep.mubr.f32.mxu0 %v11948_v7 }
 0x1dd   : > { %v1775_v53 = vsel %vm1698_vm5, %v1772_v29, %v1774_v8  ;;  %v12962_v29 = vld [vmem:[%s12093_s27 + $0x18] sm:$0xf] }
 0x1df   : > { %8823 = vmatmul.mubr.msk.f32.gmra.mrb[34].mxu0 %vm786_vm4, %v1740_v18  ;;  %v1780_v18 = vsel %vm1698_vm5, %v1777_v50, %v1779_v36  ;;  %v12975_v50 = vld [vmem:[%s12093_s27 + $0x28] sm:$0xff] }
 0x1e0   : > { %2094 = vmatprep.mubr.f32.mxu0 %v11948_v7 }
 0x1e3   : > { %8824 = vmatmul.mubr.msk.f32.gmra.mrb[36].mxu0 %vm786_vm4, %v1743_v21  ;;  %v1787_v21 = vsel %vm1698_vm5, %v1784_v26, %v1786_v27  ;;  %v12998_v26 = vld [vmem:[%s12093_s27 + $0x40] sm:$0xff]  ;;  %v13002_v27 = vld [vmem:[%s12093_s27 + $0x48] sm:$0xff] }
 0x1e4   : > { %2100 = vmatprep.mubr.f32.mxu0 %v11948_v7 }
 0x1e7   : > { %8825 = vmatmul.mubr.msk.f32.gmra.mrb[38].mxu0 %vm786_vm4, %v1745_v33  ;;  %v1791_v33 = vrot.slane %v12443_v49, 2  ;;  %v1797_v49 = vrot.slane %v12465_v45, 2 }
 0x1e8   : > { %2106 = vmatprep.mubr.f32.mxu0 %v11948_v7 }
 0x1e9   : > { %v1792_v14 = vsel %vm1698_vm5, %v1790_v61, %v1791_v33  ;;  %v1794_v44 = vsel %vm1698_vm5, %v1791_v33, %v1793_v34  ;;  %v1799_v16 = vsel %vm1698_vm5, %v1797_v49, %v1798_v40  ;;  %v13016_v33 = vld [vmem:[%s12093_s27 + $0x58] sm:$0xf] }
 0x1eb   : > { %8826 = vmatmul.mubr.msk.f32.gmra.mrb[40].mxu0 %vm786_vm4, %v1747_v35  ;;  %v16316_v35 = vld [vmem:[#allocation11_spill] sm:$0xff] }
 0x1ec   : > { %2112 = vmatprep.mubr.f32.mxu0 %v11948_v7  ;;  %v1795_v47 = vrot.slane %v16316_v35, 2 }
 0x1ee   : > { %v1796_v43 = vsel %vm1698_vm5, %v1793_v34, %v1795_v47  ;;  %v13027_v47 = vld [vmem:[%s12093_s27 + $0x68] sm:$0xff] }
 0x1ef   : > { %8827 = vmatmul.mubr.msk.f32.gmra.mrb[42].mxu0 %vm786_vm4, %v1750_v48  ;;  %v1800_v48 = vrot.slane %v12476_v46, 2  ;;  %v1805_v46 = vrot.slane %v12493_v0, 2  ;;  %v12926_v0 = vld [vmem:[%s12093_s27] sm:$0xff] }
 0x1f0   : > { %2118 = vmatprep.mubr.f32.mxu0 %v11948_v7 }
 0x1f1   : > { %v1801_v15 = vsel %vm1698_vm5, %v1798_v40, %v1800_v48  ;;  %v1806_v55 = vsel %vm1698_vm5, %v1804_v51, %v1805_v46  ;;  %v13034_v40 = vld [vmem:[%s12093_s27 + $0x70] sm:$0xff] }
 0x1f3   : > { %8828 = vmatmul.mubr.msk.f32.gmra.mrb[44].mxu0 %vm786_vm4, %v1752_v52  ;;  %v16317_v52 = vld [vmem:[#allocation12_spill] sm:$0xff] }
 0x1f4   : > { %2124 = vmatprep.mubr.f32.mxu0 %v11948_v7  ;;  %v1802_v30 = vrot.slane %v16317_v52, 2 }
 0x1f6   : > { %v1803_v45 = vsel %vm1698_vm5, %v1800_v48, %v1802_v30 }
 0x1f7   : > { %8829 = vmatmul.mubr.msk.f32.gmra.mrb[46].mxu0 %vm786_vm4, %v1754_v54  ;;  %v16318_v54 = vld [vmem:[#allocation13_spill] sm:$0xff] }
 0x1f8   : > { %2130 = vmatprep.mubr.f32.mxu0 %v11948_v7  ;;  %v1807_v56 = vrot.slane %v16318_v54, 2 }
 0x1fa   : > { %v1808_v39 = vsel %vm1698_vm5, %v1805_v46, %v1807_v56  ;;  %v13052_v46 = vld [vmem:[%s12093_s27 + $0x88] sm:$0xff] }
 0x1fb   : > { %8830 = vmatmul.mubr.msk.f32.gmra.mrb[48].mxu0 %vm786_vm4, %v1757_v62  ;;  %v16319_v62 = vld [vmem:[#allocation14_spill] sm:$0xff] }
 0x1fc   : > { %2136 = vmatprep.mubr.f32.mxu0 %v11948_v7  ;;  %v1809_v58 = vrot.slane %v16319_v62, 2 }
 0x1fe   : > { %v1810_v25 = vsel %vm1698_vm5, %v1807_v56, %v1809_v58  ;;  %v13059_v56 = vld [vmem:[%s12093_s27 + $0x90] sm:$0xff]  ;;  %v13066_v58 = vld [vmem:[%s12093_s27 + $0x98] sm:$0xf] }
 0x1ff   : > { %8831 = vmatmul.mubr.msk.f32.gmra.mrb[50].mxu0 %vm786_vm4, %v1759_v59  ;;  %v2372_v59 = vrot.slane %v12926_v0, 3 }
 0x200   : > { %2142 = vmatprep.mubr.f32.mxu0 %v11948_v7 }
 0x201   : > { %v2374_v2 = vsel %vm2371_vm6, %v2372_v59, %v2373_v63 }
 0x203   : > { %8832 = vmatmul.mubr.msk.f32.gmra.mrb[52].mxu0 %vm786_vm4, %v1761_v9  ;;  %v8912_v9 = vld [vmem:[%s16242_s1 + $0x100] sm:$0xff] }
 0x204   : > { %2148 = vmatprep.mubr.f32.mxu0 %v11948_v7  ;;  %v10517_v5 = vpack.c.bf16 %v8914_v11, %v8912_v9  ;;  %v13077_v11 = vld [vmem:[%s12093_s27 + $0xa8] sm:$0xff] }
 0x207   : > { %8833 = vmatmul.mubr.msk.f32.gmra.mrb[54].mxu0 %vm786_vm4, %v1764_v17  ;;  %v8919_v17 = vld [vmem:[%s16242_s1 + $0x138] sm:$0xf] }
 0x208   : > { %2154 = vmatprep.mubr.f32.mxu0 %v11948_v7 }
 0x20b   : > { %8834 = vmatmul.mubr.msk.f32.gmra.mrb[56].mxu0 %vm786_vm4, %v1766_v4  ;;  %v12949_v4 = vld [vmem:[%s12093_s27 + $0x10] sm:$0xff] }
 0x20c   : > { %2160 = vmatprep.mubr.f32.mxu0 %v11948_v7  ;;  %v2375_v13 = vrot.slane %v12949_v4, 3 }
 0x20f   : > { %8835 = vmatmul.mubr.msk.f32.gmra.mrb[58].mxu0 %vm786_vm4, %v1768_v31  ;;  %v10519_v31 = vpack.c.bf16 %v8919_v17, %v8917_v23  ;;  %v2408_v23 = vrot.slane %v13077_v11, 3 }
 0x210   : > { %2166 = vmatprep.mubr.f32.mxu0 %v11948_v7 }
 0x213   : > { %8836 = vmatmul.mubr.msk.f32.gmra.mrb[60].mxu0 %vm786_vm4, %v1771_v42  ;;  %v2376_v42 = vsel %vm2371_vm6, %v2373_v63, %v2375_v13  ;;  %v13073_v63 = vld [vmem:[%s12093_s27 + $0xa0] sm:$0xff] }
 0x214   : > { %2172 = vmatprep.mubr.f32.mxu0 %v11948_v7  ;;  %v2407_v9 = vrot.slane %v13073_v63, 3 }
 0x216   : > { %v2409_v17 = vsel %vm2371_vm6, %v2407_v9, %v2408_v23 }
 0x217   : > { %8837 = vmatmul.mubr.msk.f32.gmra.mrb[62].mxu0 %vm786_vm4, %v1773_v12  ;;  %v2377_v12 = vrot.slane %v12962_v29, 3 }
 0x218   : > { %2178 = vmatprep.mubr.f32.mxu0 %v11948_v7 }
 0x219   : > { %v2378_v8 = vsel %vm2371_vm6, %v2375_v13, %v2377_v12 }
 0x21b   : > { %8838 = vmatmul.mubr.msk.f32.gmra.mrb[64].mxu0 %vm786_vm4, %v1775_v53  ;;  %v12971_v53 = vld [vmem:[%s12093_s27 + $0x20] sm:$0xff] }
 0x21c   : > { %2184 = vmatprep.mubr.f32.mxu0 %v11948_v7  ;;  %v2379_v57 = vrot.slane %v12971_v53, 3 }
 0x21f   : > { %8839 = vmatmul.mubr.msk.f32.gmra.mrb[66].mxu0 %vm786_vm4, %v1778_v1  ;;  %v2380_v1 = vrot.slane %v12975_v50, 3 }
 0x220   : > { %2190 = vmatprep.mubr.f32.mxu0 %v11948_v7 }
 0x221   : > { %v2381_v36 = vsel %vm2371_vm6, %v2379_v57, %v2380_v1 }
 0x223   : > { %8840 = vmatmul.mubr.msk.f32.gmra.mrb[68].mxu0 %vm786_vm4, %v1780_v18  ;;  %v12984_v18 = vld [vmem:[%s12093_s27 + $0x30] sm:$0xff] }
 0x224   : > { %2196 = vmatprep.mubr.f32.mxu0 %v11948_v7  ;;  %v2382_v19 = vrot.slane %v12984_v18, 3 }
 0x226   : > { %v2383_v37 = vsel %vm2371_vm6, %v2380_v1, %v2382_v19  ;;  %v13109_v1 = vld [vmem:[%s12093_s27 + $0xd0] sm:$0xff] }
 0x227   : > { %8841 = vmatmul.mubr.msk.f32.gmra.mrb[70].mxu0 %vm786_vm4, %v1782_v20  ;;  %v2384_v20 = vrot.slane %v12991_v10, 3 }
 0x228   : > { %2202 = vmatprep.mubr.f32.mxu0 %v11948_v7 }
 0x229   : > { %v2385_v24 = vsel %vm2371_vm6, %v2382_v19, %v2384_v20 }
 0x22b   : > { %8842 = vmatmul.mubr.msk.f32.gmra.mrb[72].mxu0 %vm786_vm4, %v1785_v38  ;;  %v2386_v38 = vrot.slane %v12998_v26, 3 }
 0x22c   : > { %2208 = vmatprep.mubr.f32.mxu0 %v11948_v7 }
 0x22f   : > { %8843 = vmatmul.mubr.msk.f32.gmra.mrb[74].mxu0 %vm786_vm4, %v1787_v21  ;;  %v2387_v21 = vrot.slane %v13002_v27, 3 }
 0x230   : > { %2214 = vmatprep.mubr.f32.mxu0 %v11948_v7 }
 0x231   : > { %v2388_v41 = vsel %vm2371_vm6, %v2386_v38, %v2387_v21  ;;  %v13123_v38 = vld [vmem:[%s12093_s27 + $0xe0] sm:$0xff] }
 0x233   : > { %8844 = vmatmul.mubr.msk.f32.gmra.mrb[76].mxu0 %vm786_vm4, %v1789_v60  ;;  %v2389_v60 = vrot.slane %v13009_v22, 3 }
 0x234   : > { %2220 = vmatprep.mubr.f32.mxu0 %v11948_v7 }
 0x235   : > { %v2390_v61 = vsel %vm2371_vm6, %v2387_v21, %v2389_v60  ;;  %v2421_v21 = vrot.slane %v13123_v38, 3 }
 0x237   : > { %8845 = vmatmul.mubr.msk.f32.gmra.mrb[78].mxu0 %vm786_vm4, %v1792_v14  ;;  %v2391_v14 = vrot.slane %v13016_v33, 3 }
 0x238   : > { %2226 = vmatprep.mubr.f32.mxu0 %v11948_v7 }
 0x239   : > { %v2392_v34 = vsel %vm2371_vm6, %v2389_v60, %v2391_v14  ;;  %v13134_v14 = vld [vmem:[%s12093_s27 + $0xf0] sm:$0xff] }
 0x23b   : > { %8846 = vmatmul.mubr.msk.f32.gmra.mrb[80].mxu0 %vm786_vm4, %v1794_v44  ;;  %v13023_v44 = vld [vmem:[%s12093_s27 + $0x60] sm:$0xff] }
 0x23c   : > { %2232 = vmatprep.mubr.f32.mxu0 %v11948_v7  ;;  %v2393_v35 = vrot.slane %v13023_v44, 3 }
 0x23f   : > { %8847 = vmatmul.mubr.msk.f32.gmra.mrb[82].mxu0 %vm786_vm4, %v1796_v43  ;;  %v2394_v43 = vrot.slane %v13027_v47, 3 }
 0x240   : > { %2238 = vmatprep.mubr.f32.mxu0 %v11948_v7 }
 0x241   : > { %v2395_v49 = vsel %vm2371_vm6, %v2393_v35, %v2394_v43 }
 0x243   : > { %8848 = vmatmul.mubr.msk.f32.gmra.mrb[84].mxu0 %vm786_vm4, %v1799_v16  ;;  %v2396_v16 = vrot.slane %v13034_v40, 3 }
 0x244   : > { %2244 = vmatprep.mubr.f32.mxu0 %v11948_v7 }
 0x245   : > { %v2397_v48 = vsel %vm2371_vm6, %v2394_v43, %v2396_v16  ;;  %v13141_v43 = vld [vmem:[%s12093_s27 + $0xf8] sm:$0xf] }
 0x247   : > { %8849 = vmatmul.mubr.msk.f32.gmra.mrb[86].mxu0 %vm786_vm4, %v1801_v15  ;;  %v13041_v15 = vld [vmem:[%s12093_s27 + $0x78] sm:$0xf] }
 0x248   : > { %2250 = vmatprep.mubr.f32.mxu0 %v11948_v7  ;;  %v2398_v52 = vrot.slane %v13041_v15, 3 }
 0x24a   : > { %v2399_v30 = vsel %vm2371_vm6, %v2396_v16, %v2398_v52 }
 0x24b   : > { %8850 = vmatmul.mubr.msk.f32.gmra.mrb[88].mxu0 %vm786_vm4, %v1803_v45  ;;  %v13048_v45 = vld [vmem:[%s12093_s27 + $0x80] sm:$0xff] }
 0x24c   : > { %2256 = vmatprep.mubr.f32.mxu0 %v11948_v7  ;;  %v2400_v51 = vrot.slane %v13048_v45, 3 }
 0x24f   : > { %8851 = vmatmul.mubr.msk.f32.gmra.mrb[90].mxu0 %vm786_vm4, %v1806_v55  ;;  %v2401_v55 = vrot.slane %v13052_v46, 3 }
 0x250   : > { %2262 = vmatprep.mubr.f32.mxu0 %v11948_v7 }
 0x251   : > { %v2402_v54 = vsel %vm2371_vm6, %v2400_v51, %v2401_v55 }
 0x253   : > { %8852 = vmatmul.mubr.msk.f32.gmra.mrb[92].mxu0 %vm786_vm4, %v1808_v39  ;;  %v2403_v39 = vrot.slane %v13059_v56, 3 }
 0x254   : > { %2268 = vmatprep.mubr.f32.mxu0 %v11948_v7 }
 0x255   : > { %v2404_v62 = vsel %vm2371_vm6, %v2401_v55, %v2403_v39 }
 0x257   : > { %8853 = vmatmul.mubr.msk.f32.gmra.mrb[94].mxu0 %vm786_vm4, %v1810_v25  ;;  %v2405_v25 = vrot.slane %v13066_v58, 3 }
 0x258   : > { %2659 = vmatprep.mubr.f32.mxu0 %v11948_v7 }
 0x259   : > { %v2406_v59 = vsel %vm2371_vm6, %v2403_v39, %v2405_v25  ;;  %v13166_v25 = vld [vmem:[%s12093_s27 + $0x118] sm:$0xf] }
 0x25b   : > { %8864 = vmatmul.mubr.msk.f32.vlgmr.msra.gmra.mrb[0].mxu0 %vm786_vm4, %v2374_v2  ;;  %v13084_v2 = vld [vmem:[%s12093_s27 + $0xb0] sm:$0xff] }
 0x25c   : > { %2665 = vmatprep.mubr.f32.mxu0 %v11948_v7  ;;  %10518 = vmatpush1.bf16.msra.mxu0 %v10517_v5  ;;  %v2410_v13 = vrot.slane %v13084_v2, 3 }
 0x25d   : > { %10521 = vmatprep.subr.msk.bf16.mxu0 %vm12066_vm2, %v10519_v31  ;;  %v13091_v31 = vld [vmem:[%s12093_s27 + $0xb8] sm:$0xf] }
 0x25e   : > { %v2411_v5 = vsel %vm2371_vm6, %v2408_v23, %v2410_v13  ;;  %v2412_v32 = vrot.slane %v13091_v31, 3  ;;  %v13173_v23 = vld [vmem:[%s12093_s27 + $0x120] sm:$0xff] }
 0x25f   : > { %8865 = vmatmul.mubr.msk.f32.gmra.mrb[2].mxu0 %vm786_vm4, %v2376_v42  ;;  %v13098_v42 = vld [vmem:[%s12093_s27 + $0xc0] sm:$0xff] }
 0x260   : > { %2671 = vmatprep.mubr.f32.mxu0 %v11948_v7  ;;  %10524 = vmatpush1.bf16.msk.msra.mxu0 %vm12066_vm2, %v10522_v28  ;;  %v2413_v6 = vsel %vm2371_vm6, %v2410_v13, %v2412_v32  ;;  %v2414_v12 = vrot.slane %v13098_v42, 3  ;;  %v13102_v28 = vld [vmem:[%s12093_s27 + $0xc8] sm:$0xff] }
 0x261   : > { %v13177_v13 = vld [vmem:[%s12093_s27 + $0x128] sm:$0xff] }
 0x263   : > { %8866 = vmatmul.mubr.msk.f32.gmra.mrb[4].mxu0 %vm786_vm4, %v2378_v8  ;;  %v2415_v8 = vrot.slane %v13102_v28, 3 }
 0x264   : > { %2677 = vmatprep.mubr.f32.mxu0 %v11948_v7 }
 0x265   : > { %v2416_v57 = vsel %vm2371_vm6, %v2414_v12, %v2415_v8 }
 0x267   : > { %8867 = vmatmul.mubr.msk.f32.gmra.mrb[6].mxu0 %vm786_vm4, %v2381_v36  ;;  %v2417_v36 = vrot.slane %v13109_v1, 3 }
 0x268   : > { %2683 = vmatprep.mubr.f32.mxu0 %v11948_v7 }
 0x269   : > { %v2418_v19 = vsel %vm2371_vm6, %v2415_v8, %v2417_v36 }
 0x26b   : > { %8868 = vmatmul.mubr.msk.f32.gmra.mrb[8].mxu0 %vm786_vm4, %v2383_v37  ;;  %v13116_v37 = vld [vmem:[%s12093_s27 + $0xd8] sm:$0xf] }
 0x26c   : > { %2689 = vmatprep.mubr.f32.mxu0 %v11948_v7  ;;  %v2419_v20 = vrot.slane %v13116_v37, 3 }
 0x26f   : > { %8869 = vmatmul.mubr.msk.f32.gmra.mrb[10].mxu0 %vm786_vm4, %v2385_v24  ;;  %v2420_v24 = vsel %vm2371_vm6, %v2417_v36, %v2419_v20  ;;  %v13198_v20 = vld [vmem:[%s12093_s27 + $0x140] sm:$0xff] }
 0x270   : > { %2695 = vmatprep.mubr.f32.mxu0 %v11948_v7 }
 0x273   : > { %8870 = vmatmul.mubr.msk.f32.gmra.mrb[12].mxu0 %vm786_vm4, %v2388_v41  ;;  %v13127_v41 = vld [vmem:[%s12093_s27 + $0xe8] sm:$0xff] }
 0x274   : > { %2701 = vmatprep.mubr.f32.mxu0 %v11948_v7  ;;  %v2422_v60 = vrot.slane %v13127_v41, 3 }
 0x277   : > { %8871 = vmatmul.mubr.msk.f32.gmra.mrb[14].mxu0 %vm786_vm4, %v2390_v61  ;;  %v2423_v61 = vsel %vm2371_vm6, %v2421_v21, %v2422_v60  ;;  %v13202_v21 = vld [vmem:[%s12093_s27 + $0x148] sm:$0xff] }
 0x278   : > { %2707 = vmatprep.mubr.f32.mxu0 %v11948_v7 }
 0x27b   : > { %8872 = vmatmul.mubr.msk.f32.gmra.mrb[16].mxu0 %vm786_vm4, %v2392_v34  ;;  %v2424_v34 = vrot.slane %v13134_v14, 3 }
 0x27c   : > { %2713 = vmatprep.mubr.f32.mxu0 %v11948_v7 }
 0x27d   : > { %v2425_v35 = vsel %vm2371_vm6, %v2422_v60, %v2424_v34  ;;  %v2443_v60 = vrot.slane %v13202_v21, 3 }
 0x27f   : > { %8873 = vmatmul.mubr.msk.f32.gmra.mrb[18].mxu0 %vm786_vm4, %v2395_v49  ;;  %v2426_v49 = vrot.slane %v13141_v43, 3 }
 0x280   : > { %2719 = vmatprep.mubr.f32.mxu0 %v11948_v7 }
 0x281   : > { %v2427_v16 = vsel %vm2371_vm6, %v2424_v34, %v2426_v49  ;;  %v13209_v34 = vld [vmem:[%s12093_s27 + $0x150] sm:$0xff] }
 0x283   : > { %8874 = vmatmul.mubr.msk.f32.gmra.mrb[20].mxu0 %vm786_vm4, %v2397_v48  ;;  %v13148_v48 = vld [vmem:[%s12093_s27 + $0x100] sm:$0xff] }
 0x284   : > { %2725 = vmatprep.mubr.f32.mxu0 %v11948_v7  ;;  %v2428_v52 = vrot.slane %v13148_v48, 3 }
 0x287   : > { %8875 = vmatmul.mubr.msk.f32.gmra.mrb[22].mxu0 %vm786_vm4, %v2399_v30  ;;  %v13152_v30 = vld [vmem:[%s12093_s27 + $0x108] sm:$0xff] }
 0x288   : > { %2731 = vmatprep.mubr.f32.mxu0 %v11948_v7  ;;  %v2429_v51 = vrot.slane %v13152_v30, 3 }
 0x28a   : > { %v2430_v55 = vsel %vm2371_vm6, %v2428_v52, %v2429_v51 }
 0x28b   : > { %8876 = vmatmul.mubr.msk.f32.gmra.mrb[24].mxu0 %vm786_vm4, %v2402_v54  ;;  %v13159_v54 = vld [vmem:[%s12093_s27 + $0x110] sm:$0xff] }
 0x28c   : > { %2737 = vmatprep.mubr.f32.mxu0 %v11948_v7  ;;  %v2431_v39 = vrot.slane %v13159_v54, 3 }
 0x28f   : > { %8877 = vmatmul.mubr.msk.f32.gmra.mrb[26].mxu0 %vm786_vm4, %v2404_v62  ;;  %v2432_v62 = vsel %vm2371_vm6, %v2429_v51, %v2431_v39 }
 0x290   : > { %2743 = vmatprep.mubr.f32.mxu0 %v11948_v7 }
 0x293   : > { %8878 = vmatmul.mubr.msk.f32.gmra.mrb[28].mxu0 %vm786_vm4, %v2406_v59  ;;  %v2433_v59 = vrot.slane %v13166_v25, 3 }
 0x294   : > { %2749 = vmatprep.mubr.f32.mxu0 %v11948_v7 }
 0x295   : > { %v2434_v9 = vsel %vm2371_vm6, %v2431_v39, %v2433_v59 }
 0x297   : > { %8879 = vmatmul.mubr.msk.f32.gmra.mrb[30].mxu0 %vm786_vm4, %v2409_v17  ;;  %v2435_v17 = vrot.slane %v13173_v23, 3 }
 0x298   : > { %2755 = vmatprep.mubr.f32.mxu0 %v11948_v7 }
 0x29b   : > { %8880 = vmatmul.mubr.msk.f32.gmra.mrb[32].mxu0 %vm786_vm4, %v2411_v5  ;;  %v2436_v5 = vrot.slane %v13177_v13, 3 }
 0x29c   : > { %2761 = vmatprep.mubr.f32.mxu0 %v11948_v7 }
 0x29d   : > { %v2437_v32 = vsel %vm2371_vm6, %v2435_v17, %v2436_v5  ;;  %v13234_v17 = vld [vmem:[%s12093_s27 + $0x170] sm:$0xff] }
 0x29f   : > { %8881 = vmatmul.mubr.msk.f32.gmra.mrb[34].mxu0 %vm786_vm4, %v2413_v6  ;;  %v13184_v6 = vld [vmem:[%s12093_s27 + $0x130] sm:$0xff] }
 0x2a0   : > { %2767 = vmatprep.mubr.f32.mxu0 %v11948_v7  ;;  %v2438_v12 = vrot.slane %v13184_v6, 3 }
 0x2a2   : > { %v2439_v8 = vsel %vm2371_vm6, %v2436_v5, %v2438_v12  ;;  %v2452_v5 = vrot.slane %v13234_v17, 3 }
 0x2a3   : > { %8882 = vmatmul.mubr.msk.f32.gmra.mrb[36].mxu0 %vm786_vm4, %v2416_v57  ;;  %v13191_v57 = vld [vmem:[%s12093_s27 + $0x138] sm:$0xf] }
 0x2a4   : > { %2773 = vmatprep.mubr.f32.mxu0 %v11948_v7  ;;  %v2440_v36 = vrot.slane %v13191_v57, 3 }
 0x2a7   : > { %8883 = vmatmul.mubr.msk.f32.gmra.mrb[38].mxu0 %vm786_vm4, %v2418_v19  ;;  %v2441_v19 = vsel %vm2371_vm6, %v2438_v12, %v2440_v36  ;;  %v13241_v12 = vld [vmem:[%s12093_s27 + $0x178] sm:$0xf] }
 0x2a8   : > { %2779 = vmatprep.mubr.f32.mxu0 %v11948_v7 }
 0x2ab   : > { %8884 = vmatmul.mubr.msk.f32.gmra.mrb[40].mxu0 %vm786_vm4, %v2420_v24  ;;  %v2442_v24 = vrot.slane %v13198_v20, 3 }
 0x2ac   : > { %2785 = vmatprep.mubr.f32.mxu0 %v11948_v7 }
 0x2af   : > { %8885 = vmatmul.mubr.msk.f32.gmra.mrb[42].mxu0 %vm786_vm4, %v2423_v61  ;;  %v2444_v61 = vsel %vm2371_vm6, %v2442_v24, %v2443_v60 }
 0x2b0   : > { %2791 = vmatprep.mubr.f32.mxu0 %v11948_v7 }
 0x2b3   : > { %8886 = vmatmul.mubr.msk.f32.gmra.mrb[44].mxu0 %vm786_vm4, %v2425_v35  ;;  %v2445_v35 = vrot.slane %v13209_v34, 3 }
 0x2b4   : > { %2797 = vmatprep.mubr.f32.mxu0 %v11948_v7 }
 0x2b5   : > { %v2446_v49 = vsel %vm2371_vm6, %v2443_v60, %v2445_v35  ;;  %v13252_v60 = vld [vmem:[%s12093_s27 + $0x188] sm:$0xff] }
 0x2b7   : > { %8887 = vmatmul.mubr.msk.f32.gmra.mrb[46].mxu0 %vm786_vm4, %v2427_v16  ;;  %v13216_v16 = vld [vmem:[%s12093_s27 + $0x158] sm:$0xf] }
 0x2b8   : > { %2803 = vmatprep.mubr.f32.mxu0 %v11948_v7  ;;  %v2447_v52 = vrot.slane %v13216_v16, 3 }
 0x2ba   : > { %v2448_v51 = vsel %vm2371_vm6, %v2445_v35, %v2447_v52 }
 0x2bb   : > { %8888 = vmatmul.mubr.msk.f32.gmra.mrb[48].mxu0 %vm786_vm4, %v2430_v55  ;;  %v13223_v55 = vld [vmem:[%s12093_s27 + $0x160] sm:$0xff] }
 0x2bc   : > { %2809 = vmatprep.mubr.f32.mxu0 %v11948_v7  ;;  %v2449_v39 = vrot.slane %v13223_v55, 3 }
 0x2bf   : > { %8889 = vmatmul.mubr.msk.f32.gmra.mrb[50].mxu0 %vm786_vm4, %v2432_v62  ;;  %v13227_v62 = vld [vmem:[%s12093_s27 + $0x168] sm:$0xff] }
 0x2c0   : > { %2815 = vmatprep.mubr.f32.mxu0 %v11948_v7  ;;  %v2450_v59 = vrot.slane %v13227_v62, 3 }
 0x2c3   : > { %8890 = vmatmul.mubr.msk.f32.gmra.mrb[52].mxu0 %vm786_vm4, %v2434_v9  ;;  %v2451_v9 = vsel %vm2371_vm6, %v2449_v39, %v2450_v59  ;;  %v13266_v39 = vld [vmem:[%s12093_s27 + $0x198] sm:$0xf] }
 0x2c4   : > { %2821 = vmatprep.mubr.f32.mxu0 %v11948_v7 }
 0x2c7   : > { %8891 = vmatmul.mubr.msk.f32.gmra.mrb[54].mxu0 %vm786_vm4, %v2437_v32  ;;  %v2453_v32 = vsel %vm2371_vm6, %v2450_v59, %v2452_v5  ;;  %v2461_v59 = vrot.slane %v13266_v39, 3 }
 0x2c8   : > { %2827 = vmatprep.mubr.f32.mxu0 %v11948_v7 }
 0x2cb   : > { %8892 = vmatmul.mubr.msk.f32.gmra.mrb[56].mxu0 %vm786_vm4, %v2439_v8  ;;  %v2454_v8 = vrot.slane %v13241_v12, 3 }
 0x2cc   : > { %2833 = vmatprep.mubr.f32.mxu0 %v11948_v7 }
 0x2cd   : > { %v2455_v36 = vsel %vm2371_vm6, %v2452_v5, %v2454_v8  ;;  %v13273_v5 = vld [vmem:[%s12093_s27 + $0x1a0] sm:$0xff]  ;;  %v13277_v8 = vld [vmem:[%s12093_s27 + $0x1a8] sm:$0xff] }
 0x2ce   : > { %16320 = vst [vmem:[#allocation2_spill] sm:$0xff] %v13277_v8 }
 0x2cf   : > { %8893 = vmatmul.mubr.msk.f32.gmra.mrb[58].mxu0 %vm786_vm4, %v2441_v19  ;;  %v13248_v19 = vld [vmem:[%s12093_s27 + $0x180] sm:$0xff] }
 0x2d0   : > { %2839 = vmatprep.mubr.f32.mxu0 %v11948_v7  ;;  %v2456_v24 = vrot.slane %v13248_v19, 3 }
 0x2d3   : > { %8894 = vmatmul.mubr.msk.f32.gmra.mrb[60].mxu0 %vm786_vm4, %v2444_v61  ;;  %v2457_v61 = vrot.slane %v13252_v60, 3 }
 0x2d4   : > { %2845 = vmatprep.mubr.f32.mxu0 %v11948_v7 }
 0x2d5   : > { %v2458_v35 = vsel %vm2371_vm6, %v2456_v24, %v2457_v61 }
 0x2d7   : > { %8895 = vmatmul.mubr.msk.f32.gmra.mrb[62].mxu0 %vm786_vm4, %v2446_v49  ;;  %v13259_v49 = vld [vmem:[%s12093_s27 + $0x190] sm:$0xff] }
 0x2d8   : > { %2851 = vmatprep.mubr.f32.mxu0 %v11948_v7  ;;  %v2459_v52 = vrot.slane %v13259_v49, 3 }
 0x2db   : > { %8896 = vmatmul.mubr.msk.f32.gmra.mrb[64].mxu0 %vm786_vm4, %v2448_v51  ;;  %v2460_v51 = vsel %vm2371_vm6, %v2457_v61, %v2459_v52  ;;  %v13284_v61 = vld [vmem:[%s12093_s27 + $0x1b0] sm:$0xff] }
 0x2dc   : > { %2857 = vmatprep.mubr.f32.mxu0 %v11948_v7  ;;  %16321 = vst [vmem:[#allocation3_spill] sm:$0xff] %v13284_v61 }
 0x2df   : > { %8897 = vmatmul.mubr.msk.f32.gmra.mrb[66].mxu0 %vm786_vm4, %v2451_v9  ;;  %v2462_v9 = vsel %vm2371_vm6, %v2459_v52, %v2461_v59 }
 0x2e0   : > { %2863 = vmatprep.mubr.f32.mxu0 %v11948_v7 }
 0x2e3   : > { %8898 = vmatmul.mubr.msk.f32.gmra.mrb[68].mxu0 %vm786_vm4, %v2453_v32  ;;  %v2463_v32 = vrot.slane %v13273_v5, 3 }
 0x2e4   : > { %2869 = vmatprep.mubr.f32.mxu0 %v11948_v7 }
 0x2e7   : > { %8899 = vmatmul.mubr.msk.f32.gmra.mrb[70].mxu0 %vm786_vm4, %v2455_v36  ;;  %v2464_v36 = vrot.slane %v13277_v8, 3 }
 0x2e8   : > { %2875 = vmatprep.mubr.f32.mxu0 %v11948_v7 }
 0x2e9   : > { %v2465_v24 = vsel %vm2371_vm6, %v2463_v32, %v2464_v36  ;;  %v13298_v32 = vld [vmem:[%s12093_s27 + $0x1c0] sm:$0xff] }
 0x2ea   : > { %16323 = vst [vmem:[#allocation5_spill] sm:$0xff] %v13298_v32 }
 0x2eb   : > { %8900 = vmatmul.mubr.msk.f32.gmra.mrb[72].mxu0 %vm786_vm4, %v2458_v35  ;;  %v2466_v35 = vrot.slane %v13284_v61, 3  ;;  %v2470_v61 = vrot.slane %v13298_v32, 3  ;;  %v13316_v32 = vld [vmem:[%s12093_s27 + $0x1d8] sm:$0xf] }
 0x2ec   : > { %2881 = vmatprep.mubr.f32.mxu0 %v11948_v7  ;;  %16326 = vst [vmem:[#allocation8_spill] sm:$0xff] %v13316_v32 }
 0x2ed   : > { %v2467_v52 = vsel %vm2371_vm6, %v2464_v36, %v2466_v35 }
 0x2ef   : > { %8901 = vmatmul.mubr.msk.f32.gmra.mrb[74].mxu0 %vm786_vm4, %v2460_v51  ;;  %v13291_v51 = vld [vmem:[%s12093_s27 + $0x1b8] sm:$0xf] }
 0x2f0   : > { %2887 = vmatprep.mubr.f32.mxu0 %v11948_v7  ;;  %16322 = vst [vmem:[#allocation4_spill] sm:$0xff] %v13291_v51  ;;  %v2468_v59 = vrot.slane %v13291_v51, 3  ;;  %v13309_v51 = vld [vmem:[%s12093_s27 + $0x1d0] sm:$0xff] }
 0x2f1   : > { %16325 = vst [vmem:[#allocation7_spill] sm:$0xff] %v13309_v51 }
 0x2f3   : > { %8902 = vmatmul.mubr.msk.f32.gmra.mrb[76].mxu0 %vm786_vm4, %v2462_v9  ;;  %v2469_v9 = vsel %vm2371_vm6, %v2466_v35, %v2468_v59  ;;  %v2473_v35 = vrot.slane %v13309_v51, 3 }
 0x2f4   : > { %2893 = vmatprep.mubr.f32.mxu0 %v11948_v7 }
 0x2f7   : > { %8903 = vmatmul.mubr.msk.f32.gmra.mrb[78].mxu0 %vm786_vm4, %v2465_v24  ;;  %v13302_v24 = vld [vmem:[%s12093_s27 + $0x1c8] sm:$0xff] }
 0x2f8   : > { %2899 = vmatprep.mubr.f32.mxu0 %v11948_v7  ;;  %16324 = vst [vmem:[#allocation6_spill] sm:$0xff] %v13302_v24  ;;  %v2471_v36 = vrot.slane %v13302_v24, 3  ;;  %v2475_v24 = vrot.slane %v13316_v32, 3  ;;  %v13334_v32 = vld [vmem:[%s12093_s27 + $0x1f0] sm:$0xff] }
 0x2f9   : > { %16328 = vst [vmem:[#allocation10_spill] sm:$0xff] %v13334_v32 }
 0x2fa   : > { %v2474_v59 = vsel %vm2371_vm6, %v2471_v36, %v2473_v35 }
 0x2fb   : > { %8904 = vmatmul.mubr.msk.f32.gmra.mrb[80].mxu0 %vm786_vm4, %v2467_v52  ;;  %v2472_v52 = vsel %vm2371_vm6, %v2470_v61, %v2471_v36  ;;  %v2476_v61 = vsel %vm2371_vm6, %v2473_v35, %v2475_v24  ;;  %v13341_v35 = vld [vmem:[%s12093_s27 + $0x1f8] sm:$0xf] }
 0x2fc   : > { %2905 = vmatprep.mubr.f32.mxu0 %v11948_v7 }
 0x2ff   : > { %8905 = vmatmul.mubr.msk.f32.gmra.mrb[82].mxu0 %vm786_vm4, %v2469_v9  ;;  %v13323_v9 = vld [vmem:[%s12093_s27 + $0x1e0] sm:$0xff] }
 0x300   : > { %2911 = vmatprep.mubr.f32.mxu0 %v11948_v7  ;;  %v2477_v51 = vrot.slane %v13323_v9, 3 }
 0x303   : > { %8906 = vmatmul.mubr.msk.f32.gmra.mrb[84].mxu0 %vm786_vm4, %v2472_v52  ;;  %v13327_v52 = vld [vmem:[%s12093_s27 + $0x1e8] sm:$0xff]  ;;  %s8687_s27 = sshll.u32 %s16378_s19, 3 }
 0x304   : > { %2917 = vmatprep.mubr.f32.mxu0 %v11948_v7  ;;  %16327 = vst [vmem:[#allocation9_spill] sm:$0xff] %v13327_v52  ;;  %v2478_v8 = vrot.slane %v13327_v52, 3  ;;  %v2482_v52 = vrot.slane %v13341_v35, 3  ;;  %s526_s28 = scalar_lea.vmem %s16257_s16, %s8687_s27 }
 0x306   : > { %v2479_v36 = vsel %vm2371_vm6, %v2477_v51, %v2478_v8 }
 0x307   : > { %8907 = vmatmul.mubr.msk.f32.gmra.mrb[86].mxu0 %vm786_vm4, %v2474_v59  ;;  %v2480_v59 = vrot.slane %v13334_v32, 3  ;;  %v3045_v32 = vrot.slane %v12930_v3, 4  ;;  %v3051_v3 = vrot.slane %v12971_v53, 4 }
 0x308   : > { %2923 = vmatprep.mubr.f32.mxu0 %v11948_v7 }
 0x309   : > { %v2481_v24 = vsel %vm2371_vm6, %v2478_v8, %v2480_v59  ;;  %v2483_v51 = vsel %vm2371_vm6, %v2480_v59, %v2482_v52  ;;  %v3049_v52 = vrot.slane %v12962_v29, 4  ;;  %v3052_v59 = vrot.slane %v12975_v50, 4 }
 0x30a   : > { %v3058_v50 = vrot.slane %v12998_v26, 4 }
 0x30b   : > { %8908 = vmatmul.mubr.msk.f32.gmra.mrb[88].mxu0 %vm786_vm4, %v2476_v61  ;;  %v3044_v61 = vrot.slane %v12926_v0, 4 }
 0x30c   : > { %2929 = vmatprep.mubr.f32.mxu0 %v11948_v7 }
 0x30d   : > { %v3046_v8 = vsel %vm883_vm0, %v3044_v61, %v3045_v32  ;;  %v3059_v61 = vrot.slane %v13002_v27, 4  ;;  %v3065_v27 = vrot.slane %v13023_v44, 4 }
 0x30f   : > { %8909 = vmatmul.mubr.msk.f32.gmra.mrb[90].mxu0 %vm786_vm4, %v2479_v36  ;;  %v3047_v36 = vrot.slane %v12949_v4, 4  ;;  %v3053_v4 = vsel %vm883_vm0, %v3051_v3, %v3052_v59  ;;  %v3073_v3 = vrot.slane %v13052_v46, 4  ;;  %v3079_v46 = vrot.slane %v13073_v63, 4 }
 0x310   : > { %2935 = vmatprep.mubr.f32.mxu0 %v11948_v7 }
 0x311   : > { %v3050_v0 = vsel %vm883_vm0, %v3047_v36, %v3049_v52  ;;  %v3068_v52 = vrot.slane %v13034_v40, 4 }
 0x313   : > { %8910 = vmatmul.mubr.msk.f32.gmra.mrb[92].mxu0 %vm786_vm4, %v2481_v24  ;;  %v3048_v24 = vsel %vm883_vm0, %v3045_v32, %v3047_v36  ;;  %v3054_v32 = vrot.slane %v12984_v18, 4  ;;  %v3060_v18 = vsel %vm883_vm0, %v3058_v50, %v3059_v61  ;;  %v3063_v36 = vrot.slane %v13016_v33, 4 }
 0x314   : > { %2941 = vmatprep.mubr.f32.mxu0 %v11948_v7  ;;  %v3089_v50 = vrot.slane %v13109_v1, 4 }
 0x315   : > { %v3055_v29 = vsel %vm883_vm0, %v3052_v59, %v3054_v32  ;;  %v3075_v59 = vrot.slane %v13059_v56, 4 }
 0x317   : > { %8911 = vmatmul.mubr.msk.f32.gmra.mrb[94].mxu0 %vm786_vm4, %v2483_v51  ;;  %v3056_v51 = vrot.slane %v12991_v10, 4 }
 0x318   : > { %3331 = vmatprep.mubr.f32.mxu0 %v11948_v7 }
 0x319   : > { %v3057_v53 = vsel %vm883_vm0, %v3054_v32, %v3056_v51  ;;  %v3080_v32 = vrot.slane %v13077_v11, 4  ;;  %v3084_v51 = vrot.slane %v13091_v31, 4  ;;  %v3086_v11 = vrot.slane %v13098_v42, 4 }
 0x31b   : > { %8922 = vmatmul.mubr.msk.f32.vlgmr.msra.gmra.mrb[0].mxu0 %vm786_vm4, %v3046_v8  ;;  %v3061_v8 = vrot.slane %v13009_v22, 4  ;;  %v3081_v56 = vsel %vm883_vm0, %v3079_v46, %v3080_v32 }
 0x31c   : > { %3337 = vmatprep.mubr.f32.mxu0 %v11948_v7 }
 0x31d   : > { %v3062_v10 = vsel %vm883_vm0, %v3059_v61, %v3061_v8  ;;  %v3064_v26 = vsel %vm883_vm0, %v3061_v8, %v3063_v36  ;;  %v3091_v61 = vrot.slane %v13116_v37, 4  ;;  %v3096_v8 = vrot.slane %v13134_v14, 4 }
 0x31e   : > { %v3101_v36 = vrot.slane %v13152_v30, 4  ;;  %v3107_v30 = vrot.slane %v13173_v23, 4 }
 0x31f   : > { %8923 = vmatmul.mubr.msk.f32.gmra.mrb[2].mxu0 %vm786_vm4, %v3048_v24  ;;  %v3066_v24 = vrot.slane %v13027_v47, 4  ;;  %v3072_v47 = vrot.slane %v13048_v45, 4  ;;  %v3092_v42 = vsel %vm883_vm0, %v3089_v50, %v3091_v61 }
 0x320   : > { %3343 = vmatprep.mubr.f32.mxu0 %v11948_v7 }
 0x321   : > { %v3067_v22 = vsel %vm883_vm0, %v3065_v27, %v3066_v24  ;;  %v3069_v33 = vsel %vm883_vm0, %v3066_v24, %v3068_v52  ;;  %v3074_v40 = vsel %vm883_vm0, %v3072_v47, %v3073_v3  ;;  %v3105_v27 = vrot.slane %v13166_v25, 4 }
 0x322   : > { %v3108_v24 = vrot.slane %v13177_v13, 4  ;;  %v3114_v13 = vrot.slane %v13198_v20, 4  ;;  %v3122_v47 = vrot.slane %v13227_v62, 4  ;;  %v3128_v62 = vrot.slane %v13248_v19, 4 }
 0x323   : > { %8924 = vmatmul.mubr.msk.f32.gmra.mrb[4].mxu0 %vm786_vm4, %v3050_v0  ;;  %v3070_v0 = vrot.slane %v13041_v15, 4  ;;  %v3076_v15 = vsel %vm883_vm0, %v3073_v3, %v3075_v59  ;;  %v3124_v3 = vrot.slane %v13234_v17, 4 }
 0x324   : > { %3349 = vmatprep.mubr.f32.mxu0 %v11948_v7 }
 0x325   : > { %v3071_v44 = vsel %vm883_vm0, %v3068_v52, %v3070_v0  ;;  %v3112_v52 = vrot.slane %v13191_v57, 4  ;;  %v3117_v0 = vrot.slane %v13209_v34, 4 }
 0x327   : > { %8925 = vmatmul.mubr.msk.f32.gmra.mrb[6].mxu0 %vm786_vm4, %v3053_v4  ;;  %v3077_v4 = vrot.slane %v13066_v58, 4 }
 0x328   : > { %3355 = vmatprep.mubr.f32.mxu0 %v11948_v7 }
 0x329   : > { %v3078_v45 = vsel %vm883_vm0, %v3075_v59, %v3077_v4  ;;  %v3129_v59 = vrot.slane %v13252_v60, 4  ;;  %v3133_v4 = vrot.slane %v13266_v39, 4  ;;  %v3135_v60 = vrot.slane %v13273_v5, 4 }
 0x32b   : > { %8926 = vmatmul.mubr.msk.f32.gmra.mrb[8].mxu0 %vm786_vm4, %v3055_v29  ;;  %v3082_v29 = vrot.slane %v13084_v2, 4  ;;  %v3130_v17 = vsel %vm883_vm0, %v3128_v62, %v3129_v59 }
 0x32c   : > { %3361 = vmatprep.mubr.f32.mxu0 %v11948_v7 }
 0x32d   : > { %v3083_v58 = vsel %vm883_vm0, %v3080_v32, %v3082_v29  ;;  %v3085_v63 = vsel %vm883_vm0, %v3082_v29, %v3084_v51  ;;  %v16330_v32 = vld [vmem:[#allocation3_spill] sm:$0xff]  ;;  %v16331_v29 = vld [vmem:[#allocation4_spill] sm:$0xff]  ;;  %v16332_v51 = vld [vmem:[#allocation5_spill] sm:$0xff] }
 0x32f   : > { %8927 = vmatmul.mubr.msk.f32.gmra.mrb[10].mxu0 %vm786_vm4, %v3057_v53  ;;  %v3087_v53 = vrot.slane %v13102_v28, 4  ;;  %v3093_v28 = vrot.slane %v13123_v38, 4 }
 0x330   : > { %3367 = vmatprep.mubr.f32.mxu0 %v11948_v7 }
 0x331   : > { %v3088_v2 = vsel %vm883_vm0, %v3086_v11, %v3087_v53  ;;  %v3090_v31 = vsel %vm883_vm0, %v3087_v53, %v3089_v50  ;;  %v16333_v11 = vld [vmem:[#allocation6_spill] sm:$0xff]  ;;  %v16334_v50 = vld [vmem:[#allocation7_spill] sm:$0xff] }
 0x332   : > { %v3143_v53 = vrot.slane %v16333_v11, 4 }
 0x333   : > { %8928 = vmatmul.mubr.msk.f32.gmra.mrb[12].mxu0 %vm786_vm4, %v3060_v18  ;;  %v3094_v18 = vrot.slane %v13127_v41, 4  ;;  %v3100_v41 = vrot.slane %v13148_v48, 4 }
 0x334   : > { %3373 = vmatprep.mubr.f32.mxu0 %v11948_v7 }
 0x335   : > { %v3095_v1 = vsel %vm883_vm0, %v3093_v28, %v3094_v18  ;;  %v3097_v37 = vsel %vm883_vm0, %v3094_v18, %v3096_v8  ;;  %v3102_v14 = vsel %vm883_vm0, %v3100_v41, %v3101_v36 }
 0x337   : > { %8929 = vmatmul.mubr.msk.f32.gmra.mrb[14].mxu0 %vm786_vm4, %v3062_v10  ;;  %v3098_v10 = vrot.slane %v13141_v43, 4 }
 0x338   : > { %3379 = vmatprep.mubr.f32.mxu0 %v11948_v7 }
 0x339   : > { %v3099_v38 = vsel %vm883_vm0, %v3096_v8, %v3098_v10  ;;  %v16336_v8 = vld [vmem:[#allocation9_spill] sm:$0xff] }
 0x33b   : > { %8930 = vmatmul.mubr.msk.f32.gmra.mrb[16].mxu0 %vm786_vm4, %v3064_v26  ;;  %v3103_v26 = vrot.slane %v13159_v54, 4  ;;  %v3109_v54 = vsel %vm883_vm0, %v3107_v30, %v3108_v24 }
 0x33c   : > { %3385 = vmatprep.mubr.f32.mxu0 %v11948_v7 }
 0x33d   : > { %v3104_v43 = vsel %vm883_vm0, %v3101_v36, %v3103_v26  ;;  %v3106_v48 = vsel %vm883_vm0, %v3103_v26, %v3105_v27  ;;  %v3718_v26 = vlaneseq }
 0x33f   : > { %8931 = vmatmul.mubr.msk.f32.gmra.mrb[18].mxu0 %vm786_vm4, %v3067_v22  ;;  %v3110_v22 = vrot.slane %v13184_v6, 4 }
 0x340   : > { %3391 = vmatprep.mubr.f32.mxu0 %v11948_v7 }
 0x341   : > { %v3111_v25 = vsel %vm883_vm0, %v3108_v24, %v3110_v22  ;;  %v3113_v23 = vsel %vm883_vm0, %v3110_v22, %v3112_v52 }
 0x343   : > { %8932 = vmatmul.mubr.msk.f32.gmra.mrb[20].mxu0 %vm786_vm4, %v3069_v33  ;;  %v3115_v33 = vrot.slane %v13202_v21, 4  ;;  %v3121_v21 = vrot.slane %v13223_v55, 4 }
 0x344   : > { %3397 = vmatprep.mubr.f32.mxu0 %v11948_v7 }
 0x345   : > { %v3116_v6 = vsel %vm883_vm0, %v3114_v13, %v3115_v33  ;;  %v3118_v57 = vsel %vm883_vm0, %v3115_v33, %v3117_v0  ;;  %v3123_v34 = vsel %vm883_vm0, %v3121_v21, %v3122_v47 }
 0x347   : > { %8933 = vmatmul.mubr.msk.f32.gmra.mrb[22].mxu0 %vm786_vm4, %v3071_v44  ;;  %v3119_v44 = vrot.slane %v13216_v16, 4  ;;  %v3125_v16 = vsel %vm883_vm0, %v3122_v47, %v3124_v3 }
 0x348   : > { %3403 = vmatprep.mubr.f32.mxu0 %v11948_v7 }
 0x349   : > { %v3120_v20 = vsel %vm883_vm0, %v3117_v0, %v3119_v44  ;;  %v3921_v0 = vld [vmem:[%s16244_s3 + $0x8] sm:$0xff] }
 0x34a   : > { %4080 = vmatprep.mubr.f32.mxu1 %v3921_v0 }
 0x34b   : > { %8934 = vmatmul.mubr.msk.f32.gmra.mrb[24].mxu0 %vm786_vm4, %v3074_v40  ;;  %v3126_v40 = vrot.slane %v13241_v12, 4 }
 0x34c   : > { %3409 = vmatprep.mubr.f32.mxu0 %v11948_v7 }
 0x34d   : > { %v3127_v55 = vsel %vm883_vm0, %v3124_v3, %v3126_v40 }
 0x34f   : > { %8935 = vmatmul.mubr.msk.f32.gmra.mrb[26].mxu0 %vm786_vm4, %v3076_v15  ;;  %v3131_v15 = vrot.slane %v13259_v49, 4 }
 0x350   : > { %3415 = vmatprep.mubr.f32.mxu0 %v11948_v7 }
 0x351   : > { %v3132_v12 = vsel %vm883_vm0, %v3129_v59, %v3131_v15  ;;  %v3134_v19 = vsel %vm883_vm0, %v3131_v15, %v3133_v4 }
 0x353   : > { %8936 = vmatmul.mubr.msk.f32.gmra.mrb[28].mxu0 %vm786_vm4, %v3078_v45  ;;  %v16329_v45 = vld [vmem:[#allocation2_spill] sm:$0xff] }
 0x354   : > { %3421 = vmatprep.mubr.f32.mxu0 %v11948_v7  ;;  %v3136_v46 = vrot.slane %v16329_v45, 4 }
 0x356   : > { %v3137_v49 = vsel %vm883_vm0, %v3135_v60, %v3136_v46 }
 0x357   : > { %8937 = vmatmul.mubr.msk.f32.gmra.mrb[30].mxu0 %vm786_vm4, %v3081_v56  ;;  %v3138_v56 = vrot.slane %v16330_v32, 4 }
 0x358   : > { %3427 = vmatprep.mubr.f32.mxu0 %v11948_v7 }
 0x359   : > { %v3139_v39 = vsel %vm883_vm0, %v3136_v46, %v3138_v56 }
 0x35b   : > { %8938 = vmatmul.mubr.msk.f32.gmra.mrb[32].mxu0 %vm786_vm4, %v3083_v58  ;;  %v3140_v58 = vrot.slane %v16331_v29, 4 }
 0x35c   : > { %3433 = vmatprep.mubr.f32.mxu0 %v11948_v7 }
 0x35d   : > { %v3141_v5 = vsel %vm883_vm0, %v3138_v56, %v3140_v58 }
 0x35f   : > { %8939 = vmatmul.mubr.msk.f32.gmra.mrb[34].mxu0 %vm786_vm4, %v3085_v63  ;;  %v3142_v63 = vrot.slane %v16332_v51, 4 }
 0x360   : > { %3439 = vmatprep.mubr.f32.mxu0 %v11948_v7 }
 0x363   : > { %8940 = vmatmul.mubr.msk.f32.gmra.mrb[36].mxu0 %vm786_vm4, %v3088_v2  ;;  %v3144_v2 = vsel %vm883_vm0, %v3142_v63, %v3143_v53 }
 0x364   : > { %3445 = vmatprep.mubr.f32.mxu0 %v11948_v7 }
 0x367   : > { %8941 = vmatmul.mubr.msk.f32.gmra.mrb[38].mxu0 %vm786_vm4, %v3090_v31  ;;  %v3145_v31 = vrot.slane %v16334_v50, 4 }
 0x368   : > { %3451 = vmatprep.mubr.f32.mxu0 %v11948_v7 }
 0x369   : > { %v3146_v61 = vsel %vm883_vm0, %v3143_v53, %v3145_v31 }
 0x36b   : > { %8942 = vmatmul.mubr.msk.f32.gmra.mrb[40].mxu0 %vm786_vm4, %v3092_v42  ;;  %v16335_v42 = vld [vmem:[#allocation8_spill] sm:$0xff] }
 0x36c   : > { %3457 = vmatprep.mubr.f32.mxu0 %v11948_v7  ;;  %v3147_v28 = vrot.slane %v16335_v42, 4 }
 0x36e   : > { %v3148_v18 = vsel %vm883_vm0, %v3145_v31, %v3147_v28 }
 0x36f   : > { %8943 = vmatmul.mubr.msk.f32.gmra.mrb[42].mxu0 %vm786_vm4, %v3095_v1  ;;  %v3149_v1 = vrot.slane %v13323_v9, 4 }
 0x370   : > { %3463 = vmatprep.mubr.f32.mxu0 %v11948_v7 }
 0x373   : > { %8944 = vmatmul.mubr.msk.f32.gmra.mrb[44].mxu0 %vm786_vm4, %v3097_v37  ;;  %v3150_v37 = vrot.slane %v16336_v8, 4 }
 0x374   : > { %3469 = vmatprep.mubr.f32.mxu0 %v11948_v7 }
 0x375   : > { %v3151_v10 = vsel %vm883_vm0, %v3149_v1, %v3150_v37 }
 0x377   : > { %8945 = vmatmul.mubr.msk.f32.gmra.mrb[46].mxu0 %vm786_vm4, %v3099_v38  ;;  %v16337_v38 = vld [vmem:[#allocation10_spill] sm:$0xff] }
 0x378   : > { %3475 = vmatprep.mubr.f32.mxu0 %v11948_v7  ;;  %v3152_v41 = vrot.slane %v16337_v38, 4 }
 0x37a   : > { %v3153_v36 = vsel %vm883_vm0, %v3150_v37, %v3152_v41 }
 0x37b   : > { %8946 = vmatmul.mubr.msk.f32.gmra.mrb[48].mxu0 %vm786_vm4, %v3102_v14  ;;  %v3154_v14 = vrot.slane %v13341_v35, 4 }
 0x37c   : > { %3481 = vmatprep.mubr.f32.mxu0 %v11948_v7 }
 0x37d   : > { %v3155_v9 = vsel %vm883_vm0, %v3152_v41, %v3154_v14 }
 0x37f   : > { %8947 = vmatmul.mubr.msk.f32.gmra.mrb[50].mxu0 %vm786_vm4, %v3104_v43  ;;  %v3719_v43 = vshrl.u32 %v3718_v26, 7 }
 0x380   : > { %3487 = vmatprep.mubr.f32.mxu0 %v11948_v7 }
 0x381   : > { %v3720_v27 = vsub.s32 0, %v3719_v43  ;;  %v3724_v30 = vsub.s32 1, %v3719_v43 }
 0x383   : > { %8948 = vmatmul.mubr.msk.f32.gmra.mrb[52].mxu0 %vm786_vm4, %v3106_v48  ;;  %v3716_v48 = vld [vmem:[%s16243_s2] sm:$0x3] }
 0x384   : > { %3493 = vmatprep.mubr.f32.mxu0 %v11948_v7  ;;  %v13559_v24 = vrot.slane %v3716_v48, %v3720_v27  ;;  %v13561_v35 = vrot.slane %v3716_v48, %v3724_v30 }
 0x387   : > { %8949 = vmatmul.mubr.msk.f32.gmra.mrb[54].mxu0 %vm786_vm4, %v3109_v54 }
 0x388   : > { %3499 = vmatprep.mubr.f32.mxu0 %v11948_v7 }
 0x38b   : > { %8950 = vmatmul.mubr.msk.f32.gmra.mrb[56].mxu0 %vm786_vm4, %v3111_v25 }
 0x38c   : > { %3505 = vmatprep.mubr.f32.mxu0 %v11948_v7 }
 0x38f   : > { %8951 = vmatmul.mubr.msk.f32.gmra.mrb[58].mxu0 %vm786_vm4, %v3113_v23 }
 0x390   : > { %3511 = vmatprep.mubr.f32.mxu0 %v11948_v7 }
 0x393   : > { %8952 = vmatmul.mubr.msk.f32.gmra.mrb[60].mxu0 %vm786_vm4, %v3116_v6 }
 0x394   : > { %3517 = vmatprep.mubr.f32.mxu0 %v11948_v7 }
 0x397   : > { %8953 = vmatmul.mubr.msk.f32.gmra.mrb[62].mxu0 %vm786_vm4, %v3118_v57 }
 0x398   : > { %3523 = vmatprep.mubr.f32.mxu0 %v11948_v7 }
 0x39b   : > { %8954 = vmatmul.mubr.msk.f32.gmra.mrb[64].mxu0 %vm786_vm4, %v3120_v20 }
 0x39c   : > { %3529 = vmatprep.mubr.f32.mxu0 %v11948_v7 }
 0x39f   : > { %8955 = vmatmul.mubr.msk.f32.gmra.mrb[66].mxu0 %vm786_vm4, %v3123_v34 }
 0x3a0   : > { %3535 = vmatprep.mubr.f32.mxu0 %v11948_v7 }
 0x3a3   : > { %8956 = vmatmul.mubr.msk.f32.gmra.mrb[68].mxu0 %vm786_vm4, %v3125_v16 }
 0x3a4   : > { %3541 = vmatprep.mubr.f32.mxu0 %v11948_v7 }
 0x3a7   : > { %8957 = vmatmul.mubr.msk.f32.gmra.mrb[70].mxu0 %vm786_vm4, %v3127_v55 }
 0x3a8   : > { %3547 = vmatprep.mubr.f32.mxu0 %v11948_v7 }
 0x3ab   : > { %8958 = vmatmul.mubr.msk.f32.gmra.mrb[72].mxu0 %vm786_vm4, %v3130_v17 }
 0x3ac   : > { %3553 = vmatprep.mubr.f32.mxu0 %v11948_v7 }
 0x3af   : > { %8959 = vmatmul.mubr.msk.f32.gmra.mrb[74].mxu0 %vm786_vm4, %v3132_v12 }
 0x3b0   : > { %3559 = vmatprep.mubr.f32.mxu0 %v11948_v7 }
 0x3b3   : > { %8960 = vmatmul.mubr.msk.f32.gmra.mrb[76].mxu0 %vm786_vm4, %v3134_v19 }
 0x3b4   : > { %3565 = vmatprep.mubr.f32.mxu0 %v11948_v7 }
 0x3b7   : > { %8961 = vmatmul.mubr.msk.f32.gmra.mrb[78].mxu0 %vm786_vm4, %v3137_v49 }
 0x3b8   : > { %3571 = vmatprep.mubr.f32.mxu0 %v11948_v7 }
 0x3bb   : > { %8962 = vmatmul.mubr.msk.f32.gmra.mrb[80].mxu0 %vm786_vm4, %v3139_v39 }
 0x3bc   : > { %3577 = vmatprep.mubr.f32.mxu0 %v11948_v7 }
 0x3bf   : > { %8963 = vmatmul.mubr.msk.f32.gmra.mrb[82].mxu0 %vm786_vm4, %v3141_v5 }
 0x3c0   : > { %3583 = vmatprep.mubr.f32.mxu0 %v11948_v7 }
 0x3c3   : > { %8964 = vmatmul.mubr.msk.f32.gmra.mrb[84].mxu0 %vm786_vm4, %v3144_v2 }
 0x3c4   : > { %3589 = vmatprep.mubr.f32.mxu0 %v11948_v7 }
 0x3c7   : > { %8965 = vmatmul.mubr.msk.f32.gmra.mrb[86].mxu0 %vm786_vm4, %v3146_v61 }
 0x3c8   : > { %3595 = vmatprep.mubr.f32.mxu0 %v11948_v7 }
 0x3cb   : > { %8966 = vmatmul.mubr.msk.f32.gmra.mrb[88].mxu0 %vm786_vm4, %v3148_v18 }
 0x3cc   : > { %3601 = vmatprep.mubr.f32.mxu0 %v11948_v7 }
 0x3cf   : > { %8967 = vmatmul.mubr.msk.f32.gmra.mrb[90].mxu0 %vm786_vm4, %v3151_v10 }
 0x3d0   : > { %3607 = vmatprep.mubr.f32.mxu0 %v11948_v7 }
 0x3d3   : > { %8968 = vmatmul.mubr.msk.f32.gmra.mrb[92].mxu0 %vm786_vm4, %v3153_v36 }
 0x3d4   : > { %3613 = vmatprep.mubr.f32.mxu0 %v11948_v7 }
 0x3d7   : > { %8969 = vmatmul.mubr.msk.f32.gmra.mrb[94].mxu0 %vm786_vm4, %v3155_v9 }
 0x3ee   : > { %v3333_v54 = vpop.f32.mrb[0].mxu0 }
 0x3ef   : > { %v3335_v22 = vpop.f32.mrb[1].mxu0  ;;  %v3728_v25 = vadd.f32 %v13559_v24, %v3333_v54 }
 0x3f0   : > { %v3729_v52 = vadd.f32 %v13561_v35, %v3335_v22 }
 0x3f1   : > { %v3824_v57 = vmax.f32 %v3728_v25, 0.0 }
 0x3f2   : > { %v3339_v23 = vpop.f32.mrb[2].mxu0  ;;  %v3825_v20 = vmax.f32 %v3729_v52, 0.0 }
 0x3f3   : > { %v3730_v13 = vadd.f32 %v13559_v24, %v3339_v23  ;;  %v3341_v33 = vpop.f32.mrb[3].mxu0 }
 0x3f4   : > { %v3731_v6 = vadd.f32 %v13561_v35, %v3341_v33 }
 0x3f5   : > { %v3826_v44 = vmax.f32 %v3730_v13, 0.0 }
 0x3f6   : > { %v3827_v21 = vmax.f32 %v3731_v6, 0.0  ;;  %v3345_v47 = vpop.f32.mrb[4].mxu0 }
 0x3f7   : > { %v3347_v34 = vpop.f32.mrb[5].mxu0  ;;  %v13570_v3 = vpack.c.bf16 %v3826_v44, %v3824_v57  ;;  %v3732_v40 = vadd.f32 %v13559_v24, %v3345_v47 }
 0x3f8   : > { %v13572_v16 = vpack.c.bf16 %v3827_v21, %v3825_v20  ;;  %v3733_v55 = vadd.f32 %v13561_v35, %v3347_v34 }
 0x3f9   : > { %v3828_v12 = vmax.f32 %v3732_v40, 0.0 }
 0x3fa   : > { %v3351_v62 = vpop.f32.mrb[6].mxu0  ;;  %10526 = vmatprep.subr.bf16.mxu1 %v13572_v16  ;;  %v3829_v19 = vmax.f32 %v3733_v55, 0.0 }
 0x3fb   : > { %v3734_v59 = vadd.f32 %v13559_v24, %v3351_v62  ;;  %v3353_v17 = vpop.f32.mrb[7].mxu0  ;;  %10528 = vmatpush1.bf16.msra.mxu1 %v13570_v3 }
 0x3fc   : > { %v3735_v15 = vadd.f32 %v13561_v35, %v3353_v17 }
 0x3fd   : > { %v3830_v4 = vmax.f32 %v3734_v59, 0.0 }
 0x3fe   : > { %v3831_v60 = vmax.f32 %v3735_v15, 0.0  ;;  %v3357_v45 = vpop.f32.mrb[8].mxu0 }
 0x3ff   : > { %v13580_v46 = vpack.c.bf16 %v3830_v4, %v3828_v12  ;;  %v3359_v49 = vpop.f32.mrb[9].mxu0  ;;  %v3736_v56 = vadd.f32 %v13559_v24, %v3357_v45 }
 0x400   : > { %v13582_v32 = vpack.c.bf16 %v3831_v60, %v3829_v19  ;;  %v3737_v39 = vadd.f32 %v13561_v35, %v3359_v49 }
 0x401   : > { %v3832_v63 = vmax.f32 %v3736_v56, 0.0 }
 0x402   : > { %v3363_v29 = vpop.f32.mrb[10].mxu0  ;;  %10530 = vmatprep.subr.bf16.mxu1 %v13582_v32  ;;  %v3833_v53 = vmax.f32 %v3737_v39, 0.0 }
 0x403   : > { %v3738_v58 = vadd.f32 %v13559_v24, %v3363_v29  ;;  %v3365_v5 = vpop.f32.mrb[11].mxu0  ;;  %10532 = vmatpush1.bf16.msra.mxu1 %v13580_v46 }
 0x404   : > { %v3739_v51 = vadd.f32 %v13561_v35, %v3365_v5 }
 0x405   : > { %v3834_v11 = vmax.f32 %v3738_v58, 0.0 }
 0x406   : > { %v3835_v2 = vmax.f32 %v3739_v51, 0.0  ;;  %v3369_v50 = vpop.f32.mrb[12].mxu0 }
 0x407   : > { %v13590_v31 = vpack.c.bf16 %v3834_v11, %v3832_v63  ;;  %v3371_v61 = vpop.f32.mrb[13].mxu0  ;;  %v3740_v28 = vadd.f32 %v13559_v24, %v3369_v50 }
 0x408   : > { %v13592_v42 = vpack.c.bf16 %v3835_v2, %v3833_v53  ;;  %v3741_v18 = vadd.f32 %v13561_v35, %v3371_v61 }
 0x409   : > { %v3836_v38 = vmax.f32 %v3740_v28, 0.0 }
 0x40a   : > { %v3375_v1 = vpop.f32.mrb[14].mxu0  ;;  %10534 = vmatprep.subr.bf16.mxu1 %v13592_v42  ;;  %v3837_v36 = vmax.f32 %v3741_v18, 0.0 }
 0x40b   : > { %v3742_v8 = vadd.f32 %v13559_v24, %v3375_v1  ;;  %v3377_v37 = vpop.f32.mrb[15].mxu0  ;;  %10536 = vmatpush1.bf16.msra.mxu1 %v13590_v31 }
 0x40c   : > { %v3743_v10 = vadd.f32 %v13561_v35, %v3377_v37 }
 0x40d   : > { %v3838_v41 = vmax.f32 %v3742_v8, 0.0 }
 0x40e   : > { %v3839_v14 = vmax.f32 %v3743_v10, 0.0  ;;  %v3381_v9 = vpop.f32.mrb[16].mxu0 }
 0x40f   : > { %v13600_v26 = vpack.c.bf16 %v3838_v41, %v3836_v38  ;;  %v3383_v43 = vpop.f32.mrb[17].mxu0  ;;  %v3744_v48 = vadd.f32 %v13559_v24, %v3381_v9 }
 0x410   : > { %v13602_v27 = vpack.c.bf16 %v3839_v14, %v3837_v36  ;;  %v3745_v30 = vadd.f32 %v13561_v35, %v3383_v43 }
 0x411   : > { %v3840_v23 = vmax.f32 %v3744_v48, 0.0 }
 0x412   : > { %v3387_v54 = vpop.f32.mrb[18].mxu0  ;;  %10538 = vmatprep.subr.bf16.mxu1 %v13602_v27  ;;  %v3841_v33 = vmax.f32 %v3745_v30, 0.0 }
 0x413   : > { %v3746_v22 = vadd.f32 %v13559_v24, %v3387_v54  ;;  %v3389_v25 = vpop.f32.mrb[19].mxu0  ;;  %10540 = vmatpush1.bf16.msra.mxu1 %v13600_v26 }
 0x414   : > { %v3747_v52 = vadd.f32 %v13561_v35, %v3389_v25 }
 0x415   : > { %v3842_v13 = vmax.f32 %v3746_v22, 0.0 }
 0x416   : > { %v3843_v6 = vmax.f32 %v3747_v52, 0.0  ;;  %v3393_v0 = vpop.f32.mrb[20].mxu0 }
 0x417   : > { %v13610_v57 = vpack.c.bf16 %v3842_v13, %v3840_v23  ;;  %v3395_v44 = vpop.f32.mrb[21].mxu0  ;;  %v3748_v21 = vadd.f32 %v13559_v24, %v3393_v0 }
 0x418   : > { %v13612_v20 = vpack.c.bf16 %v3843_v6, %v3841_v33  ;;  %v3749_v47 = vadd.f32 %v13561_v35, %v3395_v44 }
 0x419   : > { %v3844_v59 = vmax.f32 %v3748_v21, 0.0 }
 0x41a   : > { %v3399_v34 = vpop.f32.mrb[22].mxu0  ;;  %10542 = vmatprep.subr.bf16.mxu1 %v13612_v20  ;;  %v3845_v15 = vmax.f32 %v3749_v47, 0.0 }
 0x41b   : > { %v3750_v40 = vadd.f32 %v13559_v24, %v3399_v34  ;;  %v3401_v55 = vpop.f32.mrb[23].mxu0  ;;  %10544 = vmatpush1.bf16.msra.mxu1 %v13610_v57 }
 0x41c   : > { %v3751_v62 = vadd.f32 %v13561_v35, %v3401_v55 }
 0x41d   : > { %v3846_v17 = vmax.f32 %v3750_v40, 0.0 }
 0x41e   : > { %v3847_v12 = vmax.f32 %v3751_v62, 0.0  ;;  %v3405_v4 = vpop.f32.mrb[24].mxu0 }
 0x41f   : > { %v13620_v19 = vpack.c.bf16 %v3846_v17, %v3844_v59  ;;  %v3407_v60 = vpop.f32.mrb[25].mxu0  ;;  %v3752_v49 = vadd.f32 %v13559_v24, %v3405_v4 }
 0x420   : > { %v13622_v45 = vpack.c.bf16 %v3847_v12, %v3845_v15  ;;  %v3753_v56 = vadd.f32 %v13561_v35, %v3407_v60 }
 0x421   : > { %v3848_v51 = vmax.f32 %v3752_v49, 0.0 }
 0x422   : > { %v3411_v39 = vpop.f32.mrb[26].mxu0  ;;  %10546 = vmatprep.subr.bf16.mxu1 %v13622_v45  ;;  %v3849_v11 = vmax.f32 %v3753_v56, 0.0 }
 0x423   : > { %v3754_v29 = vadd.f32 %v13559_v24, %v3411_v39  ;;  %v3413_v58 = vpop.f32.mrb[27].mxu0  ;;  %10548 = vmatpush1.bf16.msra.mxu1 %v13620_v19 }
 0x424   : > { %v3755_v5 = vadd.f32 %v13561_v35, %v3413_v58 }
 0x425   : > { %v3850_v63 = vmax.f32 %v3754_v29, 0.0 }
 0x426   : > { %v3851_v53 = vmax.f32 %v3755_v5, 0.0  ;;  %v3417_v2 = vpop.f32.mrb[28].mxu0 }
 0x427   : > { %v13630_v50 = vpack.c.bf16 %v3850_v63, %v3848_v51  ;;  %v3419_v61 = vpop.f32.mrb[29].mxu0  ;;  %v3756_v18 = vadd.f32 %v13559_v24, %v3417_v2 }
 0x428   : > { %v13632_v28 = vpack.c.bf16 %v3851_v53, %v3849_v11  ;;  %v3757_v1 = vadd.f32 %v13561_v35, %v3419_v61 }
 0x429   : > { %v3852_v41 = vmax.f32 %v3756_v18, 0.0 }
 0x42a   : > { %v3423_v8 = vpop.f32.mrb[30].mxu0  ;;  %10550 = vmatprep.subr.bf16.mxu1 %v13632_v28  ;;  %v3853_v14 = vmax.f32 %v3757_v1, 0.0 }
 0x42b   : > { %v3758_v37 = vadd.f32 %v13559_v24, %v3423_v8  ;;  %v3425_v10 = vpop.f32.mrb[31].mxu0  ;;  %10552 = vmatpush1.bf16.msra.mxu1 %v13630_v50 }
 0x42c   : > { %v3759_v38 = vadd.f32 %v13561_v35, %v3425_v10 }
 0x42d   : > { %v3854_v36 = vmax.f32 %v3758_v37, 0.0 }
 0x42e   : > { %v3855_v9 = vmax.f32 %v3759_v38, 0.0  ;;  %v3429_v43 = vpop.f32.mrb[32].mxu0 }
 0x42f   : > { %v13640_v48 = vpack.c.bf16 %v3854_v36, %v3852_v41  ;;  %v3431_v30 = vpop.f32.mrb[33].mxu0  ;;  %v3760_v22 = vadd.f32 %v13559_v24, %v3429_v43 }
 0x430   : > { %v13642_v54 = vpack.c.bf16 %v3855_v9, %v3853_v14  ;;  %v3761_v25 = vadd.f32 %v13561_v35, %v3431_v30 }
 0x431   : > { %v3856_v6 = vmax.f32 %v3760_v22, 0.0 }
 0x432   : > { %v3435_v52 = vpop.f32.mrb[34].mxu0  ;;  %10554 = vmatprep.subr.bf16.mxu1 %v13642_v54  ;;  %v3857_v44 = vmax.f32 %v3761_v25, 0.0 }
 0x433   : > { %v3762_v23 = vadd.f32 %v13559_v24, %v3435_v52  ;;  %v3437_v13 = vpop.f32.mrb[35].mxu0  ;;  %10556 = vmatpush1.bf16.msra.mxu1 %v13640_v48 }
 0x434   : > { %v3763_v33 = vadd.f32 %v13561_v35, %v3437_v13 }
 0x435   : > { %v3858_v0 = vmax.f32 %v3762_v23, 0.0 }
 0x436   : > { %v3859_v21 = vmax.f32 %v3763_v33, 0.0  ;;  %v3441_v47 = vpop.f32.mrb[36].mxu0 }
 0x437   : > { %v13650_v34 = vpack.c.bf16 %v3858_v0, %v3856_v6  ;;  %v3443_v40 = vpop.f32.mrb[37].mxu0  ;;  %v3764_v62 = vadd.f32 %v13559_v24, %v3441_v47 }
 0x438   : > { %v13652_v55 = vpack.c.bf16 %v3859_v21, %v3857_v44  ;;  %v3765_v59 = vadd.f32 %v13561_v35, %v3443_v40 }
 0x439   : > { %v3860_v60 = vmax.f32 %v3764_v62, 0.0 }
 0x43a   : > { %v3447_v17 = vpop.f32.mrb[38].mxu0  ;;  %10558 = vmatprep.subr.bf16.mxu1 %v13652_v55  ;;  %v3861_v56 = vmax.f32 %v3765_v59, 0.0 }
 0x43b   : > { %v3766_v15 = vadd.f32 %v13559_v24, %v3447_v17  ;;  %v3449_v12 = vpop.f32.mrb[39].mxu0  ;;  %10560 = vmatpush1.bf16.msra.mxu1 %v13650_v34 }
 0x43c   : > { %v3767_v4 = vadd.f32 %v13561_v35, %v3449_v12 }
 0x43d   : > { %v3862_v49 = vmax.f32 %v3766_v15, 0.0 }
 0x43e   : > { %v3863_v39 = vmax.f32 %v3767_v4, 0.0  ;;  %v3453_v29 = vpop.f32.mrb[40].mxu0 }
 0x43f   : > { %v13660_v58 = vpack.c.bf16 %v3862_v49, %v3860_v60  ;;  %v3455_v5 = vpop.f32.mrb[41].mxu0  ;;  %v3768_v63 = vadd.f32 %v13559_v24, %v3453_v29 }
 0x440   : > { %v13662_v51 = vpack.c.bf16 %v3863_v39, %v3861_v56  ;;  %v3769_v11 = vadd.f32 %v13561_v35, %v3455_v5 }
 0x441   : > { %v3864_v1 = vmax.f32 %v3768_v63, 0.0 }
 0x442   : > { %v3459_v53 = vpop.f32.mrb[42].mxu0  ;;  %10562 = vmatprep.subr.bf16.mxu1 %v13662_v51  ;;  %v3865_v37 = vmax.f32 %v3769_v11, 0.0 }
 0x443   : > { %v3770_v2 = vadd.f32 %v13559_v24, %v3459_v53  ;;  %v3461_v61 = vpop.f32.mrb[43].mxu0  ;;  %10564 = vmatpush1.bf16.msra.mxu1 %v13660_v58 }
 0x444   : > { %v3771_v18 = vadd.f32 %v13561_v35, %v3461_v61 }
 0x445   : > { %v3866_v8 = vmax.f32 %v3770_v2, 0.0 }
 0x446   : > { %v3867_v10 = vmax.f32 %v3771_v18, 0.0  ;;  %v3465_v38 = vpop.f32.mrb[44].mxu0 }
 0x447   : > { %v13670_v41 = vpack.c.bf16 %v3866_v8, %v3864_v1  ;;  %v3467_v36 = vpop.f32.mrb[45].mxu0  ;;  %v3772_v9 = vadd.f32 %v13559_v24, %v3465_v38 }
 0x448   : > { %v13672_v14 = vpack.c.bf16 %v3867_v10, %v3865_v37  ;;  %v3773_v43 = vadd.f32 %v13561_v35, %v3467_v36 }
 0x449   : > { %v3868_v23 = vmax.f32 %v3772_v9, 0.0 }
 0x44a   : > { %v3471_v30 = vpop.f32.mrb[46].mxu0  ;;  %10566 = vmatprep.subr.bf16.mxu1 %v13672_v14  ;;  %v3869_v33 = vmax.f32 %v3773_v43, 0.0 }
 0x44b   : > { %v3774_v22 = vadd.f32 %v13559_v24, %v3471_v30  ;;  %v3473_v25 = vpop.f32.mrb[47].mxu0  ;;  %10568 = vmatpush1.bf16.msra.mxu1 %v13670_v41 }
 0x44c   : > { %v3775_v52 = vadd.f32 %v13561_v35, %v3473_v25 }
 0x44d   : > { %v3870_v13 = vmax.f32 %v3774_v22, 0.0 }
 0x44e   : > { %v3871_v6 = vmax.f32 %v3775_v52, 0.0  ;;  %v3477_v0 = vpop.f32.mrb[48].mxu0 }
 0x44f   : > { %v13680_v44 = vpack.c.bf16 %v3870_v13, %v3868_v23  ;;  %v3479_v21 = vpop.f32.mrb[49].mxu0  ;;  %v3776_v40 = vadd.f32 %v13559_v24, %v3477_v0 }
 0x450   : > { %v13682_v47 = vpack.c.bf16 %v3871_v6, %v3869_v33  ;;  %v3777_v62 = vadd.f32 %v13561_v35, %v3479_v21 }
 0x451   : > { %v3872_v4 = vmax.f32 %v3776_v40, 0.0 }
 0x452   : > { %v3483_v59 = vpop.f32.mrb[50].mxu0  ;;  %10570 = vmatprep.subr.bf16.mxu1 %v13682_v47  ;;  %v3873_v49 = vmax.f32 %v3777_v62, 0.0 }
 0x453   : > { %v3778_v17 = vadd.f32 %v13559_v24, %v3483_v59  ;;  %v3485_v15 = vpop.f32.mrb[51].mxu0  ;;  %10572 = vmatpush1.bf16.msra.mxu1 %v13680_v44 }
 0x454   : > { %v3779_v12 = vadd.f32 %v13561_v35, %v3485_v15 }
 0x455   : > { %v3874_v60 = vmax.f32 %v3778_v17, 0.0 }
 0x456   : > { %v3875_v56 = vmax.f32 %v3779_v12, 0.0  ;;  %v3489_v39 = vpop.f32.mrb[52].mxu0 }
 0x457   : > { %v13690_v29 = vpack.c.bf16 %v3874_v60, %v3872_v4  ;;  %v3491_v5 = vpop.f32.mrb[53].mxu0  ;;  %v3780_v11 = vadd.f32 %v13559_v24, %v3489_v39 }
 0x458   : > { %v13692_v63 = vpack.c.bf16 %v3875_v56, %v3873_v49  ;;  %v3781_v53 = vadd.f32 %v13561_v35, %v3491_v5 }
 0x459   : > { %v3876_v8 = vmax.f32 %v3780_v11, 0.0 }
 0x45a   : > { %v3495_v2 = vpop.f32.mrb[54].mxu0  ;;  %10574 = vmatprep.subr.bf16.mxu1 %v13692_v63  ;;  %v3877_v10 = vmax.f32 %v3781_v53, 0.0 }
 0x45b   : > { %v3782_v61 = vadd.f32 %v13559_v24, %v3495_v2  ;;  %v3497_v18 = vpop.f32.mrb[55].mxu0  ;;  %10576 = vmatpush1.bf16.msra.mxu1 %v13690_v29 }
 0x45c   : > { %v3783_v1 = vadd.f32 %v13561_v35, %v3497_v18 }
 0x45d   : > { %v3878_v37 = vmax.f32 %v3782_v61, 0.0 }
 0x45e   : > { %v3879_v38 = vmax.f32 %v3783_v1, 0.0  ;;  %v3501_v36 = vpop.f32.mrb[56].mxu0 }
 0x45f   : > { %v13700_v9 = vpack.c.bf16 %v3878_v37, %v3876_v8  ;;  %v3503_v43 = vpop.f32.mrb[57].mxu0  ;;  %v3784_v22 = vadd.f32 %v13559_v24, %v3501_v36 }
 0x460   : > { %v13702_v30 = vpack.c.bf16 %v3879_v38, %v3877_v10  ;;  %v3785_v25 = vadd.f32 %v13561_v35, %v3503_v43 }
 0x461   : > { %v3880_v6 = vmax.f32 %v3784_v22, 0.0  ;;  %v3920_v22 = vld [vmem:[%s16244_s3] sm:$0xff] }
 0x462   : > { %v3507_v52 = vpop.f32.mrb[58].mxu0  ;;  %10578 = vmatprep.subr.bf16.mxu1 %v13702_v30  ;;  %v3881_v21 = vmax.f32 %v3785_v25, 0.0 }
 0x463   : > { %v3786_v23 = vadd.f32 %v13559_v24, %v3507_v52  ;;  %v3509_v13 = vpop.f32.mrb[59].mxu0  ;;  %10580 = vmatpush1.bf16.msra.mxu1 %v13700_v9  ;;  %v3924_v52 = vld [vmem:[%s16244_s3 + $0x20] sm:$0xff] }
 0x464   : > { %v3787_v33 = vadd.f32 %v13561_v35, %v3509_v13 }
 0x465   : > { %v3882_v0 = vmax.f32 %v3786_v23, 0.0 }
 0x466   : > { %v3883_v40 = vmax.f32 %v3787_v33, 0.0  ;;  %v3513_v62 = vpop.f32.mrb[60].mxu0 }
 0x467   : > { %v13710_v59 = vpack.c.bf16 %v3882_v0, %v3880_v6  ;;  %v3515_v17 = vpop.f32.mrb[61].mxu0  ;;  %v3788_v12 = vadd.f32 %v13559_v24, %v3513_v62  ;;  %v3923_v62 = vld [vmem:[%s16244_s3 + $0x18] sm:$0xff] }
 0x468   : > { %v13712_v15 = vpack.c.bf16 %v3883_v40, %v3881_v21  ;;  %v3789_v4 = vadd.f32 %v13561_v35, %v3515_v17 }
 0x469   : > { %v3884_v5 = vmax.f32 %v3788_v12, 0.0  ;;  %v3927_v12 = vld [vmem:[%s16244_s3 + $0x38] sm:$0xff] }
 0x46a   : > { %v3519_v60 = vpop.f32.mrb[62].mxu0  ;;  %10582 = vmatprep.subr.bf16.mxu1 %v13712_v15  ;;  %v3885_v53 = vmax.f32 %v3789_v4, 0.0 }
 0x46b   : > { %v3790_v49 = vadd.f32 %v13559_v24, %v3519_v60  ;;  %v3521_v56 = vpop.f32.mrb[63].mxu0  ;;  %10584 = vmatpush1.bf16.msra.mxu1 %v13710_v59 }
 0x46c   : > { %v3791_v39 = vadd.f32 %v13561_v35, %v3521_v56 }
 0x46d   : > { %v3886_v11 = vmax.f32 %v3790_v49, 0.0 }
 0x46e   : > { %v3887_v2 = vmax.f32 %v3791_v39, 0.0  ;;  %v3525_v61 = vpop.f32.mrb[64].mxu0 }
 0x46f   : > { %v13720_v18 = vpack.c.bf16 %v3886_v11, %v3884_v5  ;;  %v3527_v1 = vpop.f32.mrb[65].mxu0  ;;  %v3792_v37 = vadd.f32 %v13559_v24, %v3525_v61  ;;  %v3926_v5 = vld [vmem:[%s16244_s3 + $0x30] sm:$0xff] }
 0x470   : > { %v13722_v8 = vpack.c.bf16 %v3887_v2, %v3885_v53  ;;  %v3793_v10 = vadd.f32 %v13561_v35, %v3527_v1  ;;  %v3930_v53 = vld [vmem:[%s16244_s3 + $0x50] sm:$0xff] }
 0x471   : > { %v3888_v23 = vmax.f32 %v3792_v37, 0.0 }
 0x472   : > { %v3531_v38 = vpop.f32.mrb[66].mxu0  ;;  %10586 = vmatprep.subr.bf16.mxu1 %v13722_v8  ;;  %v3889_v33 = vmax.f32 %v3793_v10, 0.0 }
 0x473   : > { %v3794_v36 = vadd.f32 %v13559_v24, %v3531_v38  ;;  %v3533_v43 = vpop.f32.mrb[67].mxu0  ;;  %10588 = vmatpush1.bf16.msra.mxu1 %v13720_v18 }
 0x474   : > { %v3795_v25 = vadd.f32 %v13561_v35, %v3533_v43  ;;  %v3929_v43 = vld [vmem:[%s16244_s3 + $0x48] sm:$0xff] }
 0x475   : > { %v3890_v13 = vmax.f32 %v3794_v36, 0.0 }
 0x476   : > { %v3891_v6 = vmax.f32 %v3795_v25, 0.0  ;;  %v3537_v0 = vpop.f32.mrb[68].mxu0  ;;  %4081 = vmatmul.mubr.f32.vlgmr.msra.gmra.mrb[0].mxu1 %v3920_v22  ;;  %v3933_v25 = vld [vmem:[%s16244_s3 + $0x68] sm:$0xff] }
 0x477   : > { %v13736_v21 = vpack.c.bf16 %v3890_v13, %v3888_v23  ;;  %v3539_v40 = vpop.f32.mrb[69].mxu0  ;;  %4086 = vmatprep.mubr.f32.mxu1 %v3924_v52  ;;  %v3796_v4 = vadd.f32 %v13559_v24, %v3537_v0  ;;  %v3932_v0 = vld [vmem:[%s16244_s3 + $0x60] sm:$0xff] }
 0x478   : > { %v13741_v17 = vpack.c.bf16 %v3891_v6, %v3889_v33  ;;  %v3797_v60 = vadd.f32 %v13561_v35, %v3539_v40 }
 0x479   : > { %v3892_v2 = vmax.f32 %v3796_v4, 0.0 }
 0x47a   : > { %v3543_v49 = vpop.f32.mrb[70].mxu0  ;;  %4087 = vmatmul.mubr.f32.gmra.mrb[2].mxu1 %v3923_v62  ;;  %10590 = vmatprep.subr.bf16.mxu1 %v13741_v17  ;;  %v3893_v1 = vmax.f32 %v3797_v60, 0.0  ;;  %v3936_v62 = vld [vmem:[%s16244_s3 + $0x80] sm:$0xff] }
 0x47b   : > { %v3798_v56 = vadd.f32 %v13559_v24, %v3543_v49  ;;  %v3545_v39 = vpop.f32.mrb[71].mxu0  ;;  %10592 = vmatpush1.bf16.msra.mxu1 %v13736_v21  ;;  %4092 = vmatprep.mubr.f32.mxu1 %v3927_v12 }
 0x47c   : > { %v3799_v11 = vadd.f32 %v13561_v35, %v3545_v39 }
 0x47d   : > { %v3894_v61 = vmax.f32 %v3798_v56, 0.0 }
 0x47e   : > { %v3895_v37 = vmax.f32 %v3799_v11, 0.0  ;;  %v3549_v10 = vpop.f32.mrb[72].mxu0  ;;  %4093 = vmatmul.mubr.f32.gmra.mrb[4].mxu1 %v3926_v5  ;;  %v3935_v11 = vld [vmem:[%s16244_s3 + $0x78] sm:$0xff] }
 0x47f   : > { %v13758_v38 = vpack.c.bf16 %v3894_v61, %v3892_v2  ;;  %v3551_v36 = vpop.f32.mrb[73].mxu0  ;;  %4098 = vmatprep.mubr.f32.mxu1 %v3930_v53  ;;  %v3800_v52 = vadd.f32 %v13559_v24, %v3549_v10  ;;  %v3939_v2 = vld [vmem:[%s16244_s3 + $0x98] sm:$0xff] }
 0x480   : > { %v13763_v22 = vpack.c.bf16 %v3895_v37, %v3893_v1  ;;  %v3801_v23 = vadd.f32 %v13561_v35, %v3551_v36 }
 0x481   : > { %v3896_v12 = vmax.f32 %v3800_v52, 0.0  ;;  %v3942_v52 = vld [vmem:[%s16244_s3 + $0xb0] sm:$0xff] }
 0x482   : > { %v3555_v13 = vpop.f32.mrb[74].mxu0  ;;  %4099 = vmatmul.mubr.f32.gmra.mrb[6].mxu1 %v3929_v43  ;;  %10594 = vmatprep.subr.bf16.mxu1 %v13763_v22  ;;  %v3897_v60 = vmax.f32 %v3801_v23, 0.0  ;;  %v3938_v43 = vld [vmem:[%s16244_s3 + $0x90] sm:$0xff] }
 0x483   : > { %v3802_v33 = vadd.f32 %v13559_v24, %v3555_v13  ;;  %v3557_v6 = vpop.f32.mrb[75].mxu0  ;;  %10596 = vmatpush1.bf16.msra.mxu1 %v13758_v38  ;;  %4104 = vmatprep.mubr.f32.mxu1 %v3933_v25 }
 0x484   : > { %v3803_v40 = vadd.f32 %v13561_v35, %v3557_v6 }
 0x485   : > { %v3898_v4 = vmax.f32 %v3802_v33, 0.0 }
 0x486   : > { %v3899_v49 = vmax.f32 %v3803_v40, 0.0  ;;  %v3561_v56 = vpop.f32.mrb[76].mxu0  ;;  %4105 = vmatmul.mubr.f32.gmra.mrb[8].mxu1 %v3932_v0 }
 0x487   : > { %v13780_v39 = vpack.c.bf16 %v3898_v4, %v3896_v12  ;;  %v3563_v5 = vpop.f32.mrb[77].mxu0  ;;  %4110 = vmatprep.mubr.f32.mxu1 %v3936_v62  ;;  %v3804_v61 = vadd.f32 %v13559_v24, %v3561_v56  ;;  %v3941_v12 = vld [vmem:[%s16244_s3 + $0xa8] sm:$0xff] }
 0x488   : > { %v13785_v53 = vpack.c.bf16 %v3899_v49, %v3897_v60  ;;  %v3805_v1 = vadd.f32 %v13561_v35, %v3563_v5  ;;  %v3945_v60 = vld [vmem:[%s16244_s3 + $0xc8] sm:$0xff] }
 0x489   : > { %v3900_v23 = vmax.f32 %v3804_v61, 0.0  ;;  %v3944_v61 = vld [vmem:[%s16244_s3 + $0xc0] sm:$0xff] }
 0x48a   : > { %v3567_v37 = vpop.f32.mrb[78].mxu0  ;;  %4111 = vmatmul.mubr.f32.gmra.mrb[10].mxu1 %v3935_v11  ;;  %10598 = vmatprep.subr.bf16.mxu1 %v13785_v53  ;;  %v3901_v33 = vmax.f32 %v3805_v1, 0.0 }
 0x48b   : > { %v3806_v10 = vadd.f32 %v13559_v24, %v3567_v37  ;;  %v3569_v36 = vpop.f32.mrb[79].mxu0  ;;  %10600 = vmatpush1.bf16.msra.mxu1 %v13780_v39  ;;  %4116 = vmatprep.mubr.f32.mxu1 %v3939_v2  ;;  %v3948_v37 = vld [vmem:[%s16244_s3 + $0xe0] sm:$0xff] }
 0x48c   : > { %v3807_v25 = vadd.f32 %v13561_v35, %v3569_v36 }
 0x48d   : > { %v3902_v13 = vmax.f32 %v3806_v10, 0.0 }
 0x48e   : > { %v3903_v6 = vmax.f32 %v3807_v25, 0.0  ;;  %v3573_v0 = vpop.f32.mrb[80].mxu0  ;;  %4117 = vmatmul.mubr.f32.gmra.mrb[12].mxu1 %v3938_v43 }
 0x48f   : > { %v13802_v40 = vpack.c.bf16 %v3902_v13, %v3900_v23  ;;  %v3575_v62 = vpop.f32.mrb[81].mxu0  ;;  %4122 = vmatprep.mubr.f32.mxu1 %v3942_v52  ;;  %v3808_v49 = vadd.f32 %v13559_v24, %v3573_v0  ;;  %v3951_v0 = vld [vmem:[%s16244_s3 + $0xf8] sm:$0xff] }
 0x490   : > { %v13807_v4 = vpack.c.bf16 %v3903_v6, %v3901_v33  ;;  %v3809_v56 = vadd.f32 %v13561_v35, %v3575_v62  ;;  %v3947_v33 = vld [vmem:[%s16244_s3 + $0xd8] sm:$0xff] }
 0x491   : > { %v3904_v10 = vmax.f32 %v3808_v49, 0.0 }
 0x492   : > { %v3579_v5 = vpop.f32.mrb[82].mxu0  ;;  %4123 = vmatmul.mubr.f32.gmra.mrb[14].mxu1 %v3941_v12  ;;  %10602 = vmatprep.subr.bf16.mxu1 %v13807_v4  ;;  %v3905_v43 = vmax.f32 %v3809_v56, 0.0 }
 0x493   : > { %v3810_v11 = vadd.f32 %v13559_v24, %v3579_v5  ;;  %v3581_v2 = vpop.f32.mrb[83].mxu0  ;;  %10604 = vmatpush1.bf16.msra.mxu1 %v13802_v40  ;;  %4128 = vmatprep.mubr.f32.mxu1 %v3945_v60  ;;  %v3950_v5 = vld [vmem:[%s16244_s3 + $0xf0] sm:$0xff] }
 0x494   : > { %v3811_v1 = vadd.f32 %v13561_v35, %v3581_v2  ;;  %v3954_v2 = vld [vmem:[%s16244_s3 + $0x110] sm:$0xff] }
 0x495   : > { %v3906_v36 = vmax.f32 %v3810_v11, 0.0 }
 0x496   : > { %v3907_v25 = vmax.f32 %v3811_v1, 0.0  ;;  %v3585_v52 = vpop.f32.mrb[84].mxu0  ;;  %4129 = vmatmul.mubr.f32.gmra.mrb[16].mxu1 %v3944_v61 }
 0x497   : > { %v13824_v23 = vpack.c.bf16 %v3906_v36, %v3904_v10  ;;  %v3587_v13 = vpop.f32.mrb[85].mxu0  ;;  %4134 = vmatprep.mubr.f32.mxu1 %v3948_v37  ;;  %v3812_v62 = vadd.f32 %v13559_v24, %v3585_v52  ;;  %v3953_v52 = vld [vmem:[%s16244_s3 + $0x108] sm:$0xff] }
 0x498   : > { %v13829_v6 = vpack.c.bf16 %v3907_v25, %v3905_v43  ;;  %v3813_v12 = vadd.f32 %v13561_v35, %v3587_v13 }
 0x499   : > { %v3908_v61 = vmax.f32 %v3812_v62, 0.0 }
 0x49a   : > { %v3591_v60 = vpop.f32.mrb[86].mxu0  ;;  %4135 = vmatmul.mubr.f32.gmra.mrb[18].mxu1 %v3947_v33  ;;  %10606 = vmatprep.subr.bf16.mxu1 %v13829_v6  ;;  %v3909_v37 = vmax.f32 %v3813_v12, 0.0  ;;  %v3957_v33 = vld [vmem:[%s16244_s3 + $0x128] sm:$0xff] }
 0x49b   : > { %v3814_v49 = vadd.f32 %v13559_v24, %v3591_v60  ;;  %v3593_v56 = vpop.f32.mrb[87].mxu0  ;;  %10608 = vmatpush1.bf16.msra.mxu1 %v13824_v23  ;;  %4140 = vmatprep.mubr.f32.mxu1 %v3951_v0 }
 0x49c   : > { %v3815_v11 = vadd.f32 %v13561_v35, %v3593_v56  ;;  %v3956_v56 = vld [vmem:[%s16244_s3 + $0x120] sm:$0xff] }
 0x49d   : > { %v3910_v1 = vmax.f32 %v3814_v49, 0.0 }
 0x49e   : > { %v3911_v10 = vmax.f32 %v3815_v11, 0.0  ;;  %v3597_v36 = vpop.f32.mrb[88].mxu0  ;;  %4141 = vmatmul.mubr.f32.gmra.mrb[20].mxu1 %v3950_v5  ;;  %v3960_v11 = vld [vmem:[%s16244_s3 + $0x140] sm:$0xff] }
 0x49f   : > { %v13846_v43 = vpack.c.bf16 %v3910_v1, %v3908_v61  ;;  %v3599_v25 = vpop.f32.mrb[89].mxu0  ;;  %4146 = vmatprep.mubr.f32.mxu1 %v3954_v2  ;;  %v3816_v0 = vadd.f32 %v13559_v24, %v3597_v36 }
 0x4a0   : > { %v13851_v13 = vpack.c.bf16 %v3911_v10, %v3909_v37  ;;  %v3817_v62 = vadd.f32 %v13561_v35, %v3599_v25 }
 0x4a1   : > { %v3912_v2 = vmax.f32 %v3816_v0, 0.0 }
 0x4a2   : > { %v3603_v12 = vpop.f32.mrb[90].mxu0  ;;  %4147 = vmatmul.mubr.f32.gmra.mrb[22].mxu1 %v3953_v52  ;;  %10610 = vmatprep.subr.bf16.mxu1 %v13851_v13  ;;  %v3913_v1 = vmax.f32 %v3817_v62, 0.0  ;;  %v3959_v52 = vld [vmem:[%s16244_s3 + $0x138] sm:$0xff] }
 0x4a3   : > { %v3818_v60 = vadd.f32 %v13559_v24, %v3603_v12  ;;  %v3605_v49 = vpop.f32.mrb[91].mxu0  ;;  %10612 = vmatpush1.bf16.msra.mxu1 %v13846_v43  ;;  %4152 = vmatprep.mubr.f32.mxu1 %v3957_v33  ;;  %v3963_v12 = vld [vmem:[%s16244_s3 + $0x158] sm:$0xff] }
 0x4a4   : > { %v3819_v5 = vadd.f32 %v13561_v35, %v3605_v49 }
 0x4a5   : > { %v3914_v61 = vmax.f32 %v3818_v60, 0.0 }
 0x4a6   : > { %v3915_v37 = vmax.f32 %v3819_v5, 0.0  ;;  %v3609_v10 = vpop.f32.mrb[92].mxu0  ;;  %4153 = vmatmul.mubr.f32.gmra.mrb[24].mxu1 %v3956_v56  ;;  %v3962_v5 = vld [vmem:[%s16244_s3 + $0x150] sm:$0xff] }
 0x4a7   : > { %v13868_v36 = vpack.c.bf16 %v3914_v61, %v3912_v2  ;;  %v3611_v25 = vpop.f32.mrb[93].mxu0  ;;  %4158 = vmatprep.mubr.f32.mxu1 %v3960_v11  ;;  %v3820_v0 = vadd.f32 %v13559_v24, %v3609_v10  ;;  %v3966_v2 = vld [vmem:[%s16244_s3 + $0x170] sm:$0xff] }
 0x4a8   : > { %v13873_v33 = vpack.c.bf16 %v3915_v37, %v3913_v1  ;;  %v3821_v62 = vadd.f32 %v13561_v35, %v3611_v25  ;;  %v3965_v25 = vld [vmem:[%s16244_s3 + $0x168] sm:$0xff] }
 0x4a9   : > { %v3916_v61 = vmax.f32 %v3820_v0, 0.0  ;;  %v3972_v0 = vld [vmem:[%s16244_s3 + $0x1a0] sm:$0xff] }
 0x4aa   : > { %v3615_v60 = vpop.f32.mrb[94].mxu0  ;;  %4159 = vmatmul.mubr.f32.gmra.mrb[26].mxu1 %v3959_v52  ;;  %10614 = vmatprep.subr.bf16.mxu1 %v13873_v33  ;;  %v3917_v37 = vmax.f32 %v3821_v62, 0.0  ;;  %v3971_v62 = vld [vmem:[%s16244_s3 + $0x198] sm:$0xff] }
 0x4ab   : > { %v3822_v49 = vadd.f32 %v13559_v24, %v3615_v60  ;;  %v3617_v56 = vpop.f32.mrb[95].mxu0  ;;  %10616 = vmatpush1.bf16.msra.mxu1 %v13868_v36  ;;  %4164 = vmatprep.mubr.f32.mxu1 %v3963_v12  ;;  %v3968_v12 = vld [vmem:[%s16244_s3 + $0x180] sm:$0xff]  ;;  %v3975_v60 = vld [vmem:[%s16244_s3 + $0x1b8] sm:$0xff] }
 0x4ac   : > { %v3823_v11 = vadd.f32 %v13561_v35, %v3617_v56  ;;  %v3969_v35 = vld [vmem:[%s16244_s3 + $0x188] sm:$0xff] }
 0x4ad   : > { %v3918_v1 = vmax.f32 %v3822_v49, 0.0  ;;  %v3978_v49 = vld [vmem:[%s16244_s3 + $0x1d0] sm:$0xff]  ;;  %v3977_v56 = vld [vmem:[%s16244_s3 + $0x1c8] sm:$0xff] }
 0x4ae   : > { %v3919_v10 = vmax.f32 %v3823_v11, 0.0  ;;  %4165 = vmatmul.mubr.f32.gmra.mrb[28].mxu1 %v3962_v5  ;;  %v3981_v5 = vld [vmem:[%s16244_s3 + $0x1e8] sm:$0xff]  ;;  %v3980_v11 = vld [vmem:[%s16244_s3 + $0x1e0] sm:$0xff] }
 0x4af   : > { %v13890_v24 = vpack.c.bf16 %v3918_v1, %v3916_v61  ;;  %4170 = vmatprep.mubr.f32.mxu1 %v3966_v2  ;;  %v3984_v2 = vld [vmem:[%s16244_s3 + $0x200] sm:$0xff]  ;;  %v3983_v61 = vld [vmem:[%s16244_s3 + $0x1f8] sm:$0xff] }
 0x4b0   : > { %v13895_v52 = vpack.c.bf16 %v3919_v10, %v3917_v37  ;;  %v3987_v1 = vld [vmem:[%s16244_s3 + $0x218] sm:$0xff]  ;;  %v3986_v37 = vld [vmem:[%s16244_s3 + $0x210] sm:$0xff] }
 0x4b1   : > { %v3990_v10 = vld [vmem:[%s16244_s3 + $0x230] sm:$0xff] }
 0x4b2   : > { %4171 = vmatmul.mubr.f32.gmra.mrb[30].mxu1 %v3965_v25  ;;  %10618 = vmatprep.subr.bf16.mxu1 %v13895_v52  ;;  %v3989_v25 = vld [vmem:[%s16244_s3 + $0x228] sm:$0xff] }
 0x4b3   : > { %10620 = vmatpush1.bf16.msra.mxu1 %v13890_v24  ;;  %4176 = vmatprep.mubr.f32.mxu1 %v3969_v35  ;;  %v3993_v35 = vld [vmem:[%s16244_s3 + $0x248] sm:$0xff] }
 0x4b4   : > { %10622 = vmatprep.subr.bf16.mxu1 %v13572_v16  ;;  %v3974_v16 = vld [vmem:[%s16244_s3 + $0x1b0] sm:$0xff] }
 0x4b6   : > { %4177 = vmatmul.mubr.f32.gmra.mrb[32].mxu1 %v3968_v12  ;;  %v3992_v12 = vld [vmem:[%s16244_s3 + $0x240] sm:$0xff] }
 0x4b7   : > { %4182 = vmatprep.mubr.f32.mxu1 %v3972_v0  ;;  %v3996_v0 = vld [vmem:[%s16244_s3 + $0x260] sm:$0xff] }
 0x4ba   : > { %4183 = vmatmul.mubr.f32.gmra.mrb[34].mxu1 %v3971_v62  ;;  %v3995_v62 = vld [vmem:[%s16244_s3 + $0x258] sm:$0xff] }
 0x4bb   : > { %4188 = vmatprep.mubr.f32.mxu1 %v3975_v60  ;;  %v3999_v60 = vld [vmem:[%s16244_s3 + $0x278] sm:$0xff] }
 0x4be   : > { %4189 = vmatmul.mubr.f32.gmra.mrb[36].mxu1 %v3974_v16  ;;  %v3998_v16 = vld [vmem:[%s16244_s3 + $0x270] sm:$0xff] }
 0x4bf   : > { %4194 = vmatprep.mubr.f32.mxu1 %v3978_v49  ;;  %v4002_v49 = vld [vmem:[%s16244_s3 + $0x290] sm:$0xff] }
 0x4c2   : > { %4195 = vmatmul.mubr.f32.gmra.mrb[38].mxu1 %v3977_v56  ;;  %v4001_v56 = vld [vmem:[%s16244_s3 + $0x288] sm:$0xff] }
 0x4c3   : > { %4200 = vmatprep.mubr.f32.mxu1 %v3981_v5  ;;  %v4005_v5 = vld [vmem:[%s16244_s3 + $0x2a8] sm:$0xff] }
 0x4c6   : > { %4201 = vmatmul.mubr.f32.gmra.mrb[40].mxu1 %v3980_v11  ;;  %v4004_v11 = vld [vmem:[%s16244_s3 + $0x2a0] sm:$0xff] }
 0x4c7   : > { %4206 = vmatprep.mubr.f32.mxu1 %v3984_v2  ;;  %v4008_v2 = vld [vmem:[%s16244_s3 + $0x2c0] sm:$0xff] }
 0x4ca   : > { %4207 = vmatmul.mubr.f32.gmra.mrb[42].mxu1 %v3983_v61  ;;  %v4007_v61 = vld [vmem:[%s16244_s3 + $0x2b8] sm:$0xff] }
 0x4cb   : > { %4212 = vmatprep.mubr.f32.mxu1 %v3987_v1  ;;  %v4011_v1 = vld [vmem:[%s16244_s3 + $0x2d8] sm:$0xff] }
 0x4ce   : > { %4213 = vmatmul.mubr.f32.gmra.mrb[44].mxu1 %v3986_v37  ;;  %v4010_v37 = vld [vmem:[%s16244_s3 + $0x2d0] sm:$0xff] }
 0x4cf   : > { %4218 = vmatprep.mubr.f32.mxu1 %v3990_v10  ;;  %v4014_v10 = vld [vmem:[%s16244_s3 + $0x2f0] sm:$0xff] }
 0x4d2   : > { %4219 = vmatmul.mubr.f32.gmra.mrb[46].mxu1 %v3989_v25  ;;  %v4013_v25 = vld [vmem:[%s16244_s3 + $0x2e8] sm:$0xff] }
 0x4d3   : > { %4224 = vmatprep.mubr.f32.mxu1 %v3993_v35  ;;  %v3922_v35 = vld [vmem:[%s16244_s3 + $0x10] sm:$0xff] }
 0x4d6   : > { %4225 = vmatmul.mubr.f32.gmra.mrb[48].mxu1 %v3992_v12  ;;  %v3925_v12 = vld [vmem:[%s16244_s3 + $0x28] sm:$0xff] }
 0x4d7   : > { %4230 = vmatprep.mubr.f32.mxu1 %v3996_v0  ;;  %v3928_v0 = vld [vmem:[%s16244_s3 + $0x40] sm:$0xff] }
 0x4da   : > { %4231 = vmatmul.mubr.f32.gmra.mrb[50].mxu1 %v3995_v62  ;;  %v8973_v62 = vld [vmem:[%s16244_s3 + $0x318] sm:$0xff] }
 0x4db   : > { %4236 = vmatprep.mubr.f32.mxu1 %v3999_v60  ;;  %v8977_v60 = vld [vmem:[%s16244_s3 + $0x338] sm:$0xff] }
 0x4de   : > { %4237 = vmatmul.mubr.f32.gmra.mrb[52].mxu1 %v3998_v16  ;;  %v8976_v16 = vld [vmem:[%s16244_s3 + $0x330] sm:$0xff] }
 0x4df   : > { %4242 = vmatprep.mubr.f32.mxu1 %v4002_v49  ;;  %v9001_v49 = vld [vmem:[%s16244_s3 + $0x3f8] sm:$0xff] }
 0x4e2   : > { %4243 = vmatmul.mubr.f32.gmra.mrb[54].mxu1 %v4001_v56  ;;  %v9004_v56 = vld [vmem:[%s16244_s3 + $0x410] sm:$0xff] }
 0x4e3   : > { %4248 = vmatprep.mubr.f32.mxu1 %v4005_v5  ;;  %v9003_v5 = vld [vmem:[%s16244_s3 + $0x408] sm:$0xff] }
 0x4e6   : > { %4249 = vmatmul.mubr.f32.gmra.mrb[56].mxu1 %v4004_v11  ;;  %v9007_v11 = vld [vmem:[%s16244_s3 + $0x428] sm:$0xff] }
 0x4e7   : > { %4254 = vmatprep.mubr.f32.mxu1 %v4008_v2  ;;  %v9006_v2 = vld [vmem:[%s16244_s3 + $0x420] sm:$0xff] }
 0x4ea   : > { %4255 = vmatmul.mubr.f32.gmra.mrb[58].mxu1 %v4007_v61  ;;  %v9010_v61 = vld [vmem:[%s16244_s3 + $0x440] sm:$0xff] }
 0x4eb   : > { %4260 = vmatprep.mubr.f32.mxu1 %v4011_v1  ;;  %v9009_v1 = vld [vmem:[%s16244_s3 + $0x438] sm:$0xff] }
 0x4ee   : > { %4261 = vmatmul.mubr.f32.gmra.mrb[60].mxu1 %v4010_v37  ;;  %v9013_v37 = vld [vmem:[%s16244_s3 + $0x458] sm:$0xff] }
 0x4ef   : > { %4266 = vmatprep.mubr.f32.mxu1 %v4014_v10  ;;  %v9012_v10 = vld [vmem:[%s16244_s3 + $0x450] sm:$0xff] }
 0x4f2   : > { %4267 = vmatmul.mubr.f32.gmra.mrb[62].mxu1 %v4013_v25  ;;  %v9016_v25 = vld [vmem:[%s16244_s3 + $0x470] sm:$0xff] }
 0x4f3   : > { %4337 = vmatprep.mubr.f32.mxu1 %v11948_v7 }
 0x4f6   : > { %4338 = vmatmul.mubr.f32.vlgmr.msra.gmra.mrb[0].mxu1 %v3922_v35  ;;  %v9015_v35 = vld [vmem:[%s16244_s3 + $0x468] sm:$0xff] }
 0x4f7   : > { %10624 = vmatpush1.bf16.msra.mxu1 %v13570_v3  ;;  %4343 = vmatprep.mubr.f32.mxu1 %v11948_v7  ;;  %v3931_v3 = vld [vmem:[%s16244_s3 + $0x58] sm:$0xff] }
 0x4f8   : > { %10626 = vmatprep.subr.bf16.mxu1 %v13582_v32  ;;  %v3937_v32 = vld [vmem:[%s16244_s3 + $0x88] sm:$0xff] }
 0x4fa   : > { %4344 = vmatmul.mubr.f32.gmra.mrb[2].mxu1 %v3925_v12  ;;  %v9019_v12 = vld [vmem:[%s16244_s3 + $0x488] sm:$0xff] }
 0x4fb   : > { %10628 = vmatpush1.bf16.msra.mxu1 %v13580_v46  ;;  %4349 = vmatprep.mubr.f32.mxu1 %v11948_v7  ;;  %v3934_v46 = vld [vmem:[%s16244_s3 + $0x70] sm:$0xff] }
 0x4fc   : > { %10630 = vmatprep.subr.bf16.mxu1 %v13592_v42  ;;  %v3943_v42 = vld [vmem:[%s16244_s3 + $0xb8] sm:$0xff] }
 0x4fe   : > { %4350 = vmatmul.mubr.f32.gmra.mrb[4].mxu1 %v3928_v0  ;;  %v9018_v0 = vld [vmem:[%s16244_s3 + $0x480] sm:$0xff] }
 0x4ff   : > { %10632 = vmatpush1.bf16.msra.mxu1 %v13590_v31  ;;  %4355 = vmatprep.mubr.f32.mxu1 %v11948_v7  ;;  %v3940_v31 = vld [vmem:[%s16244_s3 + $0xa0] sm:$0xff] }
 0x500   : > { %10634 = vmatprep.subr.bf16.mxu1 %v13602_v27  ;;  %v3949_v27 = vld [vmem:[%s16244_s3 + $0xe8] sm:$0xff] }
 0x502   : > { %4356 = vmatmul.mubr.f32.gmra.mrb[6].mxu1 %v3931_v3  ;;  %v9022_v3 = vld [vmem:[%s16244_s3 + $0x4a0] sm:$0xff] }
 0x503   : > { %10636 = vmatpush1.bf16.msra.mxu1 %v13600_v26  ;;  %4361 = vmatprep.mubr.f32.mxu1 %v11948_v7  ;;  %v3946_v26 = vld [vmem:[%s16244_s3 + $0xd0] sm:$0xff] }
 0x504   : > { %10638 = vmatprep.subr.bf16.mxu1 %v13612_v20  ;;  %v3955_v20 = vld [vmem:[%s16244_s3 + $0x118] sm:$0xff] }
 0x506   : > { %4362 = vmatmul.mubr.f32.gmra.mrb[8].mxu1 %v3934_v46  ;;  %v9021_v46 = vld [vmem:[%s16244_s3 + $0x498] sm:$0xff] }
 0x507   : > { %10640 = vmatpush1.bf16.msra.mxu1 %v13610_v57  ;;  %4367 = vmatprep.mubr.f32.mxu1 %v11948_v7  ;;  %v3952_v57 = vld [vmem:[%s16244_s3 + $0x100] sm:$0xff] }
 0x508   : > { %10642 = vmatprep.subr.bf16.mxu1 %v13622_v45  ;;  %v3961_v45 = vld [vmem:[%s16244_s3 + $0x148] sm:$0xff] }
 0x50a   : > { %4368 = vmatmul.mubr.f32.gmra.mrb[10].mxu1 %v3937_v32  ;;  %v9025_v32 = vld [vmem:[%s16244_s3 + $0x4b8] sm:$0xff] }
 0x50b   : > { %10644 = vmatpush1.bf16.msra.mxu1 %v13620_v19  ;;  %4373 = vmatprep.mubr.f32.mxu1 %v11948_v7  ;;  %v3958_v19 = vld [vmem:[%s16244_s3 + $0x130] sm:$0xff] }
 0x50c   : > { %10646 = vmatprep.subr.bf16.mxu1 %v13632_v28  ;;  %v3967_v28 = vld [vmem:[%s16244_s3 + $0x178] sm:$0xff] }
 0x50e   : > { %4374 = vmatmul.mubr.f32.gmra.mrb[12].mxu1 %v3940_v31  ;;  %v9024_v31 = vld [vmem:[%s16244_s3 + $0x4b0] sm:$0xff] }
 0x50f   : > { %10648 = vmatpush1.bf16.msra.mxu1 %v13630_v50  ;;  %4379 = vmatprep.mubr.f32.mxu1 %v11948_v7  ;;  %v3964_v50 = vld [vmem:[%s16244_s3 + $0x160] sm:$0xff] }
 0x510   : > { %10650 = vmatprep.subr.bf16.mxu1 %v13642_v54  ;;  %v3973_v54 = vld [vmem:[%s16244_s3 + $0x1a8] sm:$0xff] }
 0x512   : > { %4380 = vmatmul.mubr.f32.gmra.mrb[14].mxu1 %v3943_v42  ;;  %v9028_v42 = vld [vmem:[%s16244_s3 + $0x4d0] sm:$0xff] }
 0x513   : > { %10652 = vmatpush1.bf16.msra.mxu1 %v13640_v48  ;;  %4385 = vmatprep.mubr.f32.mxu1 %v11948_v7  ;;  %v3970_v48 = vld [vmem:[%s16244_s3 + $0x190] sm:$0xff] }
 0x514   : > { %10654 = vmatprep.subr.bf16.mxu1 %v13652_v55  ;;  %v3979_v55 = vld [vmem:[%s16244_s3 + $0x1d8] sm:$0xff] }
 0x516   : > { %4386 = vmatmul.mubr.f32.gmra.mrb[16].mxu1 %v3946_v26  ;;  %v9027_v26 = vld [vmem:[%s16244_s3 + $0x4c8] sm:$0xff] }
 0x517   : > { %10656 = vmatpush1.bf16.msra.mxu1 %v13650_v34  ;;  %4391 = vmatprep.mubr.f32.mxu1 %v11948_v7  ;;  %v3976_v34 = vld [vmem:[%s16244_s3 + $0x1c0] sm:$0xff] }
 0x518   : > { %10658 = vmatprep.subr.bf16.mxu1 %v13662_v51  ;;  %v3985_v51 = vld [vmem:[%s16244_s3 + $0x208] sm:$0xff] }
 0x51a   : > { %4392 = vmatmul.mubr.f32.gmra.mrb[18].mxu1 %v3949_v27  ;;  %v9031_v27 = vld [vmem:[%s16244_s3 + $0x4e8] sm:$0xff] }
 0x51b   : > { %10660 = vmatpush1.bf16.msra.mxu1 %v13660_v58  ;;  %4397 = vmatprep.mubr.f32.mxu1 %v11948_v7  ;;  %v3982_v58 = vld [vmem:[%s16244_s3 + $0x1f0] sm:$0xff] }
 0x51c   : > { %10662 = vmatprep.subr.bf16.mxu1 %v13672_v14  ;;  %v3991_v14 = vld [vmem:[%s16244_s3 + $0x238] sm:$0xff] }
 0x51e   : > { %4398 = vmatmul.mubr.f32.gmra.mrb[20].mxu1 %v3952_v57  ;;  %v9030_v57 = vld [vmem:[%s16244_s3 + $0x4e0] sm:$0xff] }
 0x51f   : > { %10664 = vmatpush1.bf16.msra.mxu1 %v13670_v41  ;;  %4403 = vmatprep.mubr.f32.mxu1 %v11948_v7  ;;  %v3988_v41 = vld [vmem:[%s16244_s3 + $0x220] sm:$0xff] }
 0x520   : > { %10666 = vmatprep.subr.bf16.mxu1 %v13682_v47  ;;  %v3997_v47 = vld [vmem:[%s16244_s3 + $0x268] sm:$0xff] }
 0x522   : > { %4404 = vmatmul.mubr.f32.gmra.mrb[22].mxu1 %v3955_v20  ;;  %v9034_v20 = vld [vmem:[%s16244_s3 + $0x500] sm:$0xff] }
 0x523   : > { %10668 = vmatpush1.bf16.msra.mxu1 %v13680_v44  ;;  %4409 = vmatprep.mubr.f32.mxu1 %v11948_v7  ;;  %v3994_v44 = vld [vmem:[%s16244_s3 + $0x250] sm:$0xff] }
 0x524   : > { %10670 = vmatprep.subr.bf16.mxu1 %v13692_v63  ;;  %v4003_v63 = vld [vmem:[%s16244_s3 + $0x298] sm:$0xff] }
 0x526   : > { %4410 = vmatmul.mubr.f32.gmra.mrb[24].mxu1 %v3958_v19  ;;  %v9033_v19 = vld [vmem:[%s16244_s3 + $0x4f8] sm:$0xff] }
 0x527   : > { %10672 = vmatpush1.bf16.msra.mxu1 %v13690_v29  ;;  %4415 = vmatprep.mubr.f32.mxu1 %v11948_v7  ;;  %v4000_v29 = vld [vmem:[%s16244_s3 + $0x280] sm:$0xff] }
 0x528   : > { %10674 = vmatprep.subr.bf16.mxu1 %v13702_v30  ;;  %v4009_v30 = vld [vmem:[%s16244_s3 + $0x2c8] sm:$0xff] }
 0x52a   : > { %4416 = vmatmul.mubr.f32.gmra.mrb[26].mxu1 %v3961_v45  ;;  %v9037_v45 = vld [vmem:[%s16244_s3 + $0x518] sm:$0xff] }
 0x52b   : > { %10676 = vmatpush1.bf16.msra.mxu1 %v13700_v9  ;;  %4421 = vmatprep.mubr.f32.mxu1 %v11948_v7  ;;  %v4006_v9 = vld [vmem:[%s16244_s3 + $0x2b0] sm:$0xff] }
 0x52c   : > { %10678 = vmatprep.subr.bf16.mxu1 %v13712_v15  ;;  %v4015_v15 = vld [vmem:[%s16244_s3 + $0x2f8] sm:$0xff] }
 0x52e   : > { %4422 = vmatmul.mubr.f32.gmra.mrb[28].mxu1 %v3964_v50 }
 0x52f   : > { %10680 = vmatpush1.bf16.msra.mxu1 %v13710_v59  ;;  %4427 = vmatprep.mubr.f32.mxu1 %v11948_v7  ;;  %v4012_v59 = vld [vmem:[%s16244_s3 + $0x2e0] sm:$0xff] }
 0x530   : > { %10682 = vmatprep.subr.bf16.mxu1 %v13722_v8  ;;  %v8970_v8 = vld [vmem:[%s16244_s3 + $0x300] sm:$0xff] }
 0x532   : > { %4428 = vmatmul.mubr.f32.gmra.mrb[30].mxu1 %v3967_v28 }
 0x533   : > { %10684 = vmatpush1.bf16.msra.mxu1 %v13720_v18  ;;  %4433 = vmatprep.mubr.f32.mxu1 %v11948_v7  ;;  %v8971_v18 = vld [vmem:[%s16244_s3 + $0x308] sm:$0xff] }
 0x534   : > { %10686 = vmatprep.subr.bf16.mxu1 %v13741_v17  ;;  %v8974_v17 = vld [vmem:[%s16244_s3 + $0x320] sm:$0xff] }
 0x536   : > { %4434 = vmatmul.mubr.f32.gmra.mrb[32].mxu1 %v3970_v48  ;;  %v9036_v48 = vld [vmem:[%s16244_s3 + $0x510] sm:$0xff] }
 0x537   : > { %4439 = vmatprep.mubr.f32.mxu1 %v11948_v7 }
 0x53a   : > { %4440 = vmatmul.mubr.f32.gmra.mrb[34].mxu1 %v3973_v54  ;;  %v9040_v54 = vld [vmem:[%s16244_s3 + $0x530] sm:$0xff] }
 0x53b   : > { %4445 = vmatprep.mubr.f32.mxu1 %v11948_v7 }
 0x53e   : > { %4446 = vmatmul.mubr.f32.gmra.mrb[36].mxu1 %v3976_v34 }
 0x53f   : > { %4451 = vmatprep.mubr.f32.mxu1 %v11948_v7 }
 0x542   : > { %4452 = vmatmul.mubr.f32.gmra.mrb[38].mxu1 %v3979_v55 }
 0x543   : > { %4457 = vmatprep.mubr.f32.mxu1 %v11948_v7 }
 0x546   : > { %4458 = vmatmul.mubr.f32.gmra.mrb[40].mxu1 %v3982_v58  ;;  %v9039_v58 = vld [vmem:[%s16244_s3 + $0x528] sm:$0xff] }
 0x547   : > { %4463 = vmatprep.mubr.f32.mxu1 %v11948_v7 }
 0x54a   : > { %4464 = vmatmul.mubr.f32.gmra.mrb[42].mxu1 %v3985_v51  ;;  %v9043_v51 = vld [vmem:[%s16244_s3 + $0x548] sm:$0xff] }
 0x54b   : > { %4469 = vmatprep.mubr.f32.mxu1 %v11948_v7 }
 0x54e   : > { %4470 = vmatmul.mubr.f32.gmra.mrb[44].mxu1 %v3988_v41 }
 0x54f   : > { %4475 = vmatprep.mubr.f32.mxu1 %v11948_v7 }
 0x552   : > { %4476 = vmatmul.mubr.f32.gmra.mrb[46].mxu1 %v3991_v14 }
 0x553   : > { %4481 = vmatprep.mubr.f32.mxu1 %v11948_v7 }
 0x556   : > { %4482 = vmatmul.mubr.f32.gmra.mrb[48].mxu1 %v3994_v44  ;;  %v9042_v44 = vld [vmem:[%s16244_s3 + $0x540] sm:$0xff] }
 0x557   : > { %4487 = vmatprep.mubr.f32.mxu1 %v11948_v7 }
 0x55a   : > { %4488 = vmatmul.mubr.f32.gmra.mrb[50].mxu1 %v3997_v47  ;;  %v16280_v47 = vmov 0.0|0.0  }
 0x55b   : > { %4493 = vmatprep.mubr.f32.mxu1 %v11948_v7 }
 0x55e   : > { %4494 = vmatmul.mubr.f32.gmra.mrb[52].mxu1 %v4000_v29  ;;  %v9046_v29 = vld [vmem:[%s16244_s3 + $0x560] sm:$0xff] }
 0x55f   : > { %4499 = vmatprep.mubr.f32.mxu1 %v11948_v7 }
 0x562   : > { %4500 = vmatmul.mubr.f32.gmra.mrb[54].mxu1 %v4003_v63 }
 0x563   : > { %4505 = vmatprep.mubr.f32.mxu1 %v11948_v7 }
 0x566   : > { %4506 = vmatmul.mubr.f32.gmra.mrb[56].mxu1 %v4006_v9 }
 0x567   : > { %4511 = vmatprep.mubr.f32.mxu1 %v11948_v7 }
 0x56a   : > { %4512 = vmatmul.mubr.f32.gmra.mrb[58].mxu1 %v4009_v30  ;;  %v9045_v30 = vld [vmem:[%s16244_s3 + $0x558] sm:$0xff] }
 0x56b   : > { %4517 = vmatprep.mubr.f32.mxu1 %v11948_v7 }
 0x56e   : > { %4518 = vmatmul.mubr.f32.gmra.mrb[60].mxu1 %v4012_v59  ;;  %v9049_v59 = vld [vmem:[%s16244_s3 + $0x578] sm:$0xff] }
 0x56f   : > { %4523 = vmatprep.mubr.f32.mxu1 %v11948_v7 }
 0x572   : > { %4524 = vmatmul.mubr.f32.gmra.mrb[62].mxu1 %v4015_v15 }
 0x573   : > { %4691 = vmatprep.mubr.f32.mxu1 %v8971_v18 }
 0x576   : > { %4692 = vmatmul.mubr.f32.vlgmr.msra.gmra.mrb[64].mxu1 %v8970_v8  ;;  %v9048_v8 = vld [vmem:[%s16244_s3 + $0x570] sm:$0xff] }
 0x577   : > { %10688 = vmatpush1.bf16.msra.mxu1 %v13736_v21  ;;  %4697 = vmatprep.mubr.f32.mxu1 %v8974_v17  ;;  %v8980_v21 = vld [vmem:[%s16244_s3 + $0x350] sm:$0xff] }
 0x578   : > { %10690 = vmatprep.subr.bf16.mxu1 %v13763_v22  ;;  %v8979_v22 = vld [vmem:[%s16244_s3 + $0x348] sm:$0xff]  ;;  %v9052_v17 = vld [vmem:[%s16244_s3 + $0x590] sm:$0xff] }
 0x57a   : > { %4698 = vmatmul.mubr.f32.gmra.mrb[66].mxu1 %v8973_v62 }
 0x57b   : > { %10692 = vmatpush1.bf16.msra.mxu1 %v13758_v38  ;;  %4703 = vmatprep.mubr.f32.mxu1 %v8977_v60  ;;  %v8983_v38 = vld [vmem:[%s16244_s3 + $0x368] sm:$0xff] }
 0x57c   : > { %10694 = vmatprep.subr.bf16.mxu1 %v13785_v53  ;;  %v8982_v53 = vld [vmem:[%s16244_s3 + $0x360] sm:$0xff] }
 0x57e   : > { %4704 = vmatmul.mubr.f32.gmra.mrb[68].mxu1 %v8976_v16  ;;  %v9051_v16 = vld [vmem:[%s16244_s3 + $0x588] sm:$0xff] }
 0x57f   : > { %10696 = vmatpush1.bf16.msra.mxu1 %v13780_v39  ;;  %4709 = vmatprep.mubr.f32.mxu1 %v8980_v21  ;;  %v8986_v39 = vld [vmem:[%s16244_s3 + $0x380] sm:$0xff]  ;;  %v9055_v21 = vld [vmem:[%s16244_s3 + $0x5a8] sm:$0xff] }
 0x580   : > { %10698 = vmatprep.subr.bf16.mxu1 %v13807_v4  ;;  %v8985_v4 = vld [vmem:[%s16244_s3 + $0x378] sm:$0xff] }
 0x582   : > { %4710 = vmatmul.mubr.f32.gmra.mrb[70].mxu1 %v8979_v22 }
 0x583   : > { %10700 = vmatpush1.bf16.msra.mxu1 %v13802_v40  ;;  %4715 = vmatprep.mubr.f32.mxu1 %v8983_v38  ;;  %v8989_v40 = vld [vmem:[%s16244_s3 + $0x398] sm:$0xff] }
 0x584   : > { %10702 = vmatprep.subr.bf16.mxu1 %v13829_v6  ;;  %v8988_v6 = vld [vmem:[%s16244_s3 + $0x390] sm:$0xff] }
 0x586   : > { %4716 = vmatmul.mubr.f32.gmra.mrb[72].mxu1 %v8982_v53  ;;  %v9054_v53 = vld [vmem:[%s16244_s3 + $0x5a0] sm:$0xff] }
 0x587   : > { %10704 = vmatpush1.bf16.msra.mxu1 %v13824_v23  ;;  %4721 = vmatprep.mubr.f32.mxu1 %v8986_v39  ;;  %v8992_v23 = vld [vmem:[%s16244_s3 + $0x3b0] sm:$0xff]  ;;  %v9058_v39 = vld [vmem:[%s16244_s3 + $0x5c0] sm:$0xff] }
 0x588   : > { %10706 = vmatprep.subr.bf16.mxu1 %v13851_v13  ;;  %v8991_v13 = vld [vmem:[%s16244_s3 + $0x3a8] sm:$0xff] }
 0x58a   : > { %4722 = vmatmul.mubr.f32.gmra.mrb[74].mxu1 %v8985_v4 }
 0x58b   : > { %10708 = vmatpush1.bf16.msra.mxu1 %v13846_v43  ;;  %4727 = vmatprep.mubr.f32.mxu1 %v8989_v40  ;;  %v8995_v43 = vld [vmem:[%s16244_s3 + $0x3c8] sm:$0xff] }
 0x58c   : > { %10710 = vmatprep.subr.bf16.mxu1 %v13873_v33  ;;  %v8994_v33 = vld [vmem:[%s16244_s3 + $0x3c0] sm:$0xff] }
 0x58e   : > { %4728 = vmatmul.mubr.f32.gmra.mrb[76].mxu1 %v8988_v6  ;;  %v9057_v6 = vld [vmem:[%s16244_s3 + $0x5b8] sm:$0xff] }
 0x58f   : > { %10712 = vmatpush1.bf16.msra.mxu1 %v13868_v36  ;;  %4733 = vmatprep.mubr.f32.mxu1 %v8992_v23  ;;  %v8998_v36 = vld [vmem:[%s16244_s3 + $0x3e0] sm:$0xff]  ;;  %v9061_v23 = vld [vmem:[%s16244_s3 + $0x5d8] sm:$0xff] }
 0x590   : > { %10714 = vmatprep.subr.bf16.mxu1 %v13895_v52  ;;  %v8997_v52 = vld [vmem:[%s16244_s3 + $0x3d8] sm:$0xff] }
 0x592   : > { %4734 = vmatmul.mubr.f32.gmra.mrb[78].mxu1 %v8991_v13 }
 0x593   : > { %10716 = vmatpush1.bf16.msra.mxu1 %v13890_v24  ;;  %4739 = vmatprep.mubr.f32.mxu1 %v8995_v43  ;;  %v9000_v24 = vld [vmem:[%s16244_s3 + $0x3f0] sm:$0xff] }
 0x594   : > { %10717 = vmatprep.subr.bf16.mxu1 %v16280_v47 }
 0x596   : > { %4740 = vmatmul.mubr.f32.gmra.mrb[80].mxu1 %v8994_v33  ;;  %v9060_v33 = vld [vmem:[%s16244_s3 + $0x5d0] sm:$0xff] }
 0x597   : > { %4745 = vmatprep.mubr.f32.mxu1 %v8998_v36  ;;  %v9064_v36 = vld [vmem:[%s16244_s3 + $0x5f0] sm:$0xff] }
 0x59a   : > { %4746 = vmatmul.mubr.f32.gmra.mrb[82].mxu1 %v8997_v52 }
 0x59b   : > { %4751 = vmatprep.mubr.f32.mxu1 %v9001_v49 }
 0x59e   : > { %4752 = vmatmul.mubr.f32.gmra.mrb[84].mxu1 %v9000_v24  ;;  %v9063_v24 = vld [vmem:[%s16244_s3 + $0x5e8] sm:$0xff] }
 0x59f   : > { %4757 = vmatprep.mubr.f32.mxu1 %v9004_v56  ;;  %v5205_v56 = vld [vmem:[%s16245_s4] sm:$0xff] }
 0x5a2   : > { %4758 = vmatmul.mubr.f32.gmra.mrb[86].mxu1 %v9003_v5  ;;  %v5206_v5 = vld [vmem:[%s16245_s4 + $0x8] sm:$0xff] }
 0x5a3   : > { %4763 = vmatprep.mubr.f32.mxu1 %v9007_v11 }
 0x5a6   : > { %4764 = vmatmul.mubr.f32.gmra.mrb[88].mxu1 %v9006_v2 }
 0x5a7   : > { %4769 = vmatprep.mubr.f32.mxu1 %v9010_v61  ;;  %v8972_v61 = vld [vmem:[%s16244_s3 + $0x310] sm:$0xff] }
 0x5aa   : > { %4770 = vmatmul.mubr.f32.gmra.mrb[90].mxu1 %v9009_v1  ;;  %v10718_v1 = vpack.c.bf16 %v5206_v5, %v5205_v56  ;;  %v5219_v56 = vld [vmem:[%s16245_s4 + $0x70] sm:$0xff]  ;;  %v5220_v5 = vld [vmem:[%s16245_s4 + $0x78] sm:$0xff] }
 0x5ab   : > { %4775 = vmatprep.mubr.f32.mxu1 %v9013_v37  ;;  %v5207_v37 = vld [vmem:[%s16245_s4 + $0x10] sm:$0xff] }
 0x5ae   : > { %4776 = vmatmul.mubr.f32.gmra.mrb[92].mxu1 %v9012_v10  ;;  %v5208_v10 = vld [vmem:[%s16245_s4 + $0x18] sm:$0xff] }
 0x5af   : > { %4781 = vmatprep.mubr.f32.mxu1 %v9016_v25 }
 0x5b2   : > { %4782 = vmatmul.mubr.f32.gmra.mrb[94].mxu1 %v9015_v35 }
 0x5b3   : > { %4787 = vmatprep.mubr.f32.mxu1 %v9019_v12  ;;  %v8975_v12 = vld [vmem:[%s16244_s3 + $0x328] sm:$0xff] }
 0x5b6   : > { %4788 = vmatmul.mubr.f32.gmra.mrb[96].mxu1 %v9018_v0  ;;  %v10721_v0 = vpack.c.bf16 %v5208_v10, %v5207_v37  ;;  %v8993_v37 = vld [vmem:[%s16244_s3 + $0x3b8] sm:$0xff]  ;;  %v10739_v10 = vpack.c.bf16 %v5220_v5, %v5219_v56  ;;  %v9014_v5 = vld [vmem:[%s16244_s3 + $0x460] sm:$0xff] }
 0x5b7   : > { %4793 = vmatprep.mubr.f32.mxu1 %v9022_v3  ;;  %v5209_v3 = vld [vmem:[%s16245_s4 + $0x20] sm:$0xff] }
 0x5ba   : > { %4794 = vmatmul.mubr.f32.gmra.mrb[98].mxu1 %v9021_v46  ;;  %v5210_v46 = vld [vmem:[%s16245_s4 + $0x28] sm:$0xff] }
 0x5bb   : > { %4799 = vmatprep.mubr.f32.mxu1 %v9025_v32 }
 0x5be   : > { %4800 = vmatmul.mubr.f32.gmra.mrb[100].mxu1 %v9024_v31 }
 0x5bf   : > { %4805 = vmatprep.mubr.f32.mxu1 %v9028_v42  ;;  %v8978_v42 = vld [vmem:[%s16244_s3 + $0x340] sm:$0xff] }
 0x5c2   : > { %4806 = vmatmul.mubr.f32.gmra.mrb[102].mxu1 %v9027_v26  ;;  %v10724_v26 = vpack.c.bf16 %v5210_v46, %v5209_v3 }
 0x5c3   : > { %4811 = vmatprep.mubr.f32.mxu1 %v9031_v27  ;;  %v5211_v27 = vld [vmem:[%s16245_s4 + $0x30] sm:$0xff] }
 0x5c6   : > { %4812 = vmatmul.mubr.f32.gmra.mrb[104].mxu1 %v9030_v57  ;;  %v5212_v57 = vld [vmem:[%s16245_s4 + $0x38] sm:$0xff] }
 0x5c7   : > { %4817 = vmatprep.mubr.f32.mxu1 %v9034_v20 }
 0x5c9   : > { %v14306_v50 = vpop.f32.mrb[0].mxu1 }
 0x5ca   : > { %v14308_v28 = vpop.f32.mrb[1].mxu1  ;;  %4818 = vmatmul.mubr.f32.gmra.mrb[106].mxu1 %v9033_v19 }
 0x5cb   : > { %4823 = vmatprep.mubr.f32.mxu1 %v9037_v45  ;;  %v8981_v45 = vld [vmem:[%s16244_s3 + $0x358] sm:$0xff] }
 0x5cd   : > { %v14316_v34 = vpop.f32.mrb[2].mxu1 }
 0x5ce   : > { %v14318_v55 = vpop.f32.mrb[3].mxu1  ;;  %4824 = vmatmul.mubr.f32.gmra.mrb[108].mxu1 %v9036_v48  ;;  %v10727_v48 = vpack.c.bf16 %v5212_v57, %v5211_v27 }
 0x5cf   : > { %4829 = vmatprep.mubr.f32.mxu1 %v9040_v54  ;;  %v5213_v54 = vld [vmem:[%s16245_s4 + $0x40] sm:$0xff] }
 0x5d1   : > { %v14326_v41 = vpop.f32.mrb[4].mxu1 }
 0x5d2   : > { %v14328_v14 = vpop.f32.mrb[5].mxu1  ;;  %4830 = vmatmul.mubr.f32.gmra.mrb[110].mxu1 %v9039_v58  ;;  %v5214_v58 = vld [vmem:[%s16245_s4 + $0x48] sm:$0xff] }
 0x5d3   : > { %4835 = vmatprep.mubr.f32.mxu1 %v9043_v51 }
 0x5d5   : > { %v14337_v63 = vpop.f32.mrb[6].mxu1 }
 0x5d6   : > { %v14339_v9 = vpop.f32.mrb[7].mxu1  ;;  %4836 = vmatmul.mubr.f32.gmra.mrb[112].mxu1 %v9042_v44 }
 0x5d7   : > { %4841 = vmatprep.mubr.f32.mxu1 %v9046_v29  ;;  %v8984_v29 = vld [vmem:[%s16244_s3 + $0x370] sm:$0xff] }
 0x5d9   : > { %v14347_v15 = vpop.f32.mrb[8].mxu1 }
 0x5da   : > { %v14349_v18 = vpop.f32.mrb[9].mxu1  ;;  %4842 = vmatmul.mubr.f32.gmra.mrb[114].mxu1 %v9045_v30  ;;  %v10730_v30 = vpack.c.bf16 %v5214_v58, %v5213_v54  ;;  %v9002_v58 = vld [vmem:[%s16244_s3 + $0x400] sm:$0xff] }
 0x5db   : > { %4847 = vmatprep.mubr.f32.mxu1 %v9049_v59  ;;  %v5215_v59 = vld [vmem:[%s16245_s4 + $0x50] sm:$0xff] }
 0x5dd   : > { %v14357_v62 = vpop.f32.mrb[10].mxu1 }
 0x5de   : > { %v14359_v60 = vpop.f32.mrb[11].mxu1  ;;  %4848 = vmatmul.mubr.f32.gmra.mrb[116].mxu1 %v9048_v8  ;;  %v5216_v8 = vld [vmem:[%s16245_s4 + $0x58] sm:$0xff] }
 0x5df   : > { %4853 = vmatprep.mubr.f32.mxu1 %v9052_v17 }
 0x5e1   : > { %v14367_v22 = vpop.f32.mrb[12].mxu1 }
 0x5e2   : > { %v14369_v38 = vpop.f32.mrb[13].mxu1  ;;  %4854 = vmatmul.mubr.f32.gmra.mrb[118].mxu1 %v9051_v16 }
 0x5e3   : > { %4859 = vmatprep.mubr.f32.mxu1 %v9055_v21  ;;  %v8987_v21 = vld [vmem:[%s16244_s3 + $0x388] sm:$0xff] }
 0x5e5   : > { %v14377_v4 = vpop.f32.mrb[14].mxu1 }
 0x5e6   : > { %v14379_v40 = vpop.f32.mrb[15].mxu1  ;;  %4860 = vmatmul.mubr.f32.gmra.mrb[120].mxu1 %v9054_v53  ;;  %v10733_v53 = vpack.c.bf16 %v5216_v8, %v5215_v59  ;;  %v9005_v59 = vld [vmem:[%s16244_s3 + $0x418] sm:$0xff] }
 0x5e7   : > { %4865 = vmatprep.mubr.f32.mxu1 %v9058_v39  ;;  %v5217_v39 = vld [vmem:[%s16245_s4 + $0x60] sm:$0xff] }
 0x5e9   : > { %v14387_v13 = vpop.f32.mrb[16].mxu1 }
 0x5ea   : > { %v14389_v43 = vpop.f32.mrb[17].mxu1  ;;  %4866 = vmatmul.mubr.f32.gmra.mrb[122].mxu1 %v9057_v6  ;;  %v5218_v6 = vld [vmem:[%s16245_s4 + $0x68] sm:$0xff] }
 0x5eb   : > { %4871 = vmatprep.mubr.f32.mxu1 %v9061_v23 }
 0x5ed   : > { %v14397_v52 = vpop.f32.mrb[18].mxu1 }
 0x5ee   : > { %v14399_v49 = vpop.f32.mrb[19].mxu1  ;;  %4872 = vmatmul.mubr.f32.gmra.mrb[124].mxu1 %v9060_v33 }
 0x5ef   : > { %4877 = vmatprep.mubr.f32.mxu1 %v9064_v36  ;;  %v8990_v36 = vld [vmem:[%s16244_s3 + $0x3a0] sm:$0xff] }
 0x5f1   : > { %v14410_v11 = vpop.f32.mrb[20].mxu1 }
 0x5f2   : > { %v14412_v2 = vpop.f32.mrb[21].mxu1  ;;  %4878 = vmatmul.mubr.f32.gmra.mrb[126].mxu1 %v9063_v24  ;;  %v10736_v24 = vpack.c.bf16 %v5218_v6, %v5217_v39 }
 0x5f3   : > { %4948 = vmatprep.mubr.f32.mxu1 %v11948_v7 }
 0x5f5   : > { %v14424_v25 = vpop.f32.mrb[22].mxu1 }
 0x5f6   : > { %v14426_v35 = vpop.f32.mrb[23].mxu1  ;;  %4949 = vmatmul.mubr.f32.vlgmr.msra.gmra.mrb[64].mxu1 %v8972_v61 }
 0x5f7   : > { %4954 = vmatprep.mubr.f32.mxu1 %v11948_v7  ;;  %10719 = vmatpush1.bf16.msra.mxu1 %v10718_v1 }
 0x5f8   : > { %10720 = vmatprep.subr.bf16.mxu1 %v16280_v47 }
 0x5f9   : > { %v14439_v32 = vpop.f32.mrb[24].mxu1 }
 0x5fa   : > { %v14441_v31 = vpop.f32.mrb[25].mxu1  ;;  %4955 = vmatmul.mubr.f32.gmra.mrb[66].mxu1 %v8975_v12  ;;  %v5221_v12 = vld [vmem:[%s16245_s4 + $0x80] sm:$0xff] }
 0x5fb   : > { %4960 = vmatprep.mubr.f32.mxu1 %v11948_v7  ;;  %10722 = vmatpush1.bf16.msra.mxu1 %v10721_v0  ;;  %v5222_v0 = vld [vmem:[%s16245_s4 + $0x88] sm:$0xff] }
 0x5fc   : > { %10723 = vmatprep.subr.bf16.mxu1 %v16280_v47 }
 0x5fd   : > { %v14454_v20 = vpop.f32.mrb[26].mxu1 }
 0x5fe   : > { %v14456_v19 = vpop.f32.mrb[27].mxu1  ;;  %4961 = vmatmul.mubr.f32.gmra.mrb[68].mxu1 %v8978_v42  ;;  %v8996_v42 = vld [vmem:[%s16244_s3 + $0x3d0] sm:$0xff] }
 0x5ff   : > { %4966 = vmatprep.mubr.f32.mxu1 %v11948_v7  ;;  %10725 = vmatpush1.bf16.msra.mxu1 %v10724_v26  ;;  %v10742_v26 = vpack.c.bf16 %v5222_v0, %v5221_v12  ;;  %v9017_v12 = vld [vmem:[%s16244_s3 + $0x478] sm:$0xff] }
 0x600   : > { %10726 = vmatprep.subr.bf16.mxu1 %v16280_v47 }
 0x601   : > { %v14469_v51 = vpop.f32.mrb[28].mxu1 }
 0x602   : > { %v14471_v44 = vpop.f32.mrb[29].mxu1  ;;  %4967 = vmatmul.mubr.f32.gmra.mrb[70].mxu1 %v8981_v45  ;;  %v8999_v45 = vld [vmem:[%s16244_s3 + $0x3e8] sm:$0xff] }
 0x603   : > { %4972 = vmatprep.mubr.f32.mxu1 %v11948_v7  ;;  %10728 = vmatpush1.bf16.msra.mxu1 %v10727_v48 }
 0x604   : > { %10729 = vmatprep.subr.bf16.mxu1 %v16280_v47 }
 0x605   : > { %v14484_v17 = vpop.f32.mrb[30].mxu1 }
 0x606   : > { %v14486_v16 = vpop.f32.mrb[31].mxu1  ;;  %4973 = vmatmul.mubr.f32.gmra.mrb[72].mxu1 %v8984_v29 }
 0x607   : > { %4978 = vmatprep.mubr.f32.mxu1 %v11948_v7  ;;  %10731 = vmatpush1.bf16.msra.mxu1 %v10730_v30 }
 0x608   : > { %10732 = vmatprep.subr.bf16.mxu1 %v16280_v47 }
 0x609   : > { %v14499_v23 = vpop.f32.mrb[32].mxu1 }
 0x60a   : > { %v14501_v33 = vpop.f32.mrb[33].mxu1  ;;  %4979 = vmatmul.mubr.f32.gmra.mrb[74].mxu1 %v8987_v21 }
 0x60b   : > { %4984 = vmatprep.mubr.f32.mxu1 %v11948_v7  ;;  %10734 = vmatpush1.bf16.msra.mxu1 %v10733_v53  ;;  %v9008_v53 = vld [vmem:[%s16244_s3 + $0x430] sm:$0xff] }
 0x60c   : > { %10735 = vmatprep.subr.bf16.mxu1 %v16280_v47 }
 0x60d   : > { %v14514_v61 = vpop.f32.mrb[34].mxu1 }
 0x60e   : > { %v14516_v1 = vpop.f32.mrb[35].mxu1  ;;  %4985 = vmatmul.mubr.f32.gmra.mrb[76].mxu1 %v8990_v36  ;;  %v9011_v36 = vld [vmem:[%s16244_s3 + $0x448] sm:$0xff] }
 0x60f   : > { %4990 = vmatprep.mubr.f32.mxu1 %v11948_v7  ;;  %10737 = vmatpush1.bf16.msra.mxu1 %v10736_v24 }
 0x610   : > { %10738 = vmatprep.subr.bf16.mxu1 %v16280_v47 }
 0x611   : > { %v14529_v3 = vpop.f32.mrb[36].mxu1 }
 0x612   : > { %v14531_v46 = vpop.f32.mrb[37].mxu1  ;;  %4991 = vmatmul.mubr.f32.gmra.mrb[78].mxu1 %v8993_v37 }
 0x613   : > { %4996 = vmatprep.mubr.f32.mxu1 %v11948_v7  ;;  %10740 = vmatpush1.bf16.msra.mxu1 %v10739_v10 }
 0x614   : > { %10741 = vmatprep.subr.bf16.mxu1 %v16280_v47 }
 0x615   : > { %v14538_v27 = vpop.f32.mrb[38].mxu1 }
 0x616   : > { %v14540_v57 = vpop.f32.mrb[39].mxu1  ;;  %4997 = vmatmul.mubr.f32.gmra.mrb[80].mxu1 %v8996_v42 }
 0x617   : > { %5002 = vmatprep.mubr.f32.mxu1 %v11948_v7  ;;  %10743 = vmatpush1.bf16.msra.mxu1 %v10742_v26  ;;  %v9020_v26 = vld [vmem:[%s16244_s3 + $0x490] sm:$0xff] }
 0x618   : > { %10744 = vmatprep.subr.bf16.mxu1 %v16280_v47  ;;  %v9029_v47 = vld [vmem:[%s16244_s3 + $0x4d8] sm:$0xff] }
 0x619   : > { %v14547_v48 = vpop.f32.mrb[40].mxu1 }
 0x61a   : > { %v14549_v54 = vpop.f32.mrb[41].mxu1  ;;  %5003 = vmatmul.mubr.f32.gmra.mrb[82].mxu1 %v8999_v45 }
 0x61b   : > { %5008 = vmatprep.mubr.f32.mxu1 %v11948_v7 }
 0x61d   : > { %v14555_v29 = vpop.f32.mrb[42].mxu1 }
 0x61e   : > { %v14557_v30 = vpop.f32.mrb[43].mxu1  ;;  %5009 = vmatmul.mubr.f32.gmra.mrb[84].mxu1 %v9002_v58 }
 0x61f   : > { %5014 = vmatprep.mubr.f32.mxu1 %v11948_v7 }
 0x621   : > { %v14563_v8 = vpop.f32.mrb[44].mxu1 }
 0x622   : > { %v14565_v21 = vpop.f32.mrb[45].mxu1  ;;  %5015 = vmatmul.mubr.f32.gmra.mrb[86].mxu1 %v9005_v59  ;;  %v9023_v59 = vld [vmem:[%s16244_s3 + $0x4a8] sm:$0xff] }
 0x623   : > { %5020 = vmatprep.mubr.f32.mxu1 %v11948_v7 }
 0x625   : > { %v14571_v39 = vpop.f32.mrb[46].mxu1 }
 0x626   : > { %v14573_v6 = vpop.f32.mrb[47].mxu1  ;;  %5021 = vmatmul.mubr.f32.gmra.mrb[88].mxu1 %v9008_v53 }
 0x627   : > { %5026 = vmatprep.mubr.f32.mxu1 %v11948_v7 }
 0x629   : > { %v14579_v24 = vpop.f32.mrb[48].mxu1 }
 0x62a   : > { %v14581_v56 = vpop.f32.mrb[49].mxu1  ;;  %5027 = vmatmul.mubr.f32.gmra.mrb[90].mxu1 %v9011_v36 }
 0x62b   : > { %5032 = vmatprep.mubr.f32.mxu1 %v11948_v7 }
 0x62d   : > { %v14587_v37 = vpop.f32.mrb[50].mxu1 }
 0x62e   : > { %v14589_v10 = vpop.f32.mrb[51].mxu1  ;;  %5033 = vmatmul.mubr.f32.gmra.mrb[92].mxu1 %v9014_v5  ;;  %v9026_v5 = vld [vmem:[%s16244_s3 + $0x4c0] sm:$0xff] }
 0x62f   : > { %5038 = vmatprep.mubr.f32.mxu1 %v11948_v7 }
 0x631   : > { %v14595_v0 = vpop.f32.mrb[52].mxu1 }
 0x632   : > { %v14597_v42 = vpop.f32.mrb[53].mxu1  ;;  %5039 = vmatmul.mubr.f32.gmra.mrb[94].mxu1 %v9017_v12 }
 0x633   : > { %5044 = vmatprep.mubr.f32.mxu1 %v11948_v7 }
 0x635   : > { %v14603_v45 = vpop.f32.mrb[54].mxu1 }
 0x636   : > { %16338 = vst [vmem:[#allocation11_spill] sm:$0xff] %v14603_v45  ;;  %v14605_v58 = vpop.f32.mrb[55].mxu1  ;;  %5045 = vmatmul.mubr.f32.gmra.mrb[96].mxu1 %v9020_v26 }
 0x637   : > { %16339 = vst [vmem:[#allocation12_spill] sm:$0xff] %v14605_v58  ;;  %5050 = vmatprep.mubr.f32.mxu1 %v11948_v7  ;;  %v9101_v58 = vld [vmem:[%s16245_s4 + $0xa8] sm:$0xff] }
 0x639   : > { %v14611_v53 = vpop.f32.mrb[56].mxu1 }
 0x63a   : > { %16340 = vst [vmem:[#allocation13_spill] sm:$0xff] %v14611_v53  ;;  %v14613_v36 = vpop.f32.mrb[57].mxu1  ;;  %5051 = vmatmul.mubr.f32.gmra.mrb[98].mxu1 %v9023_v59 }
 0x63b   : > { %16341 = vst [vmem:[#allocation14_spill] sm:$0xff] %v14613_v36  ;;  %5056 = vmatprep.mubr.f32.mxu1 %v11948_v7 }
 0x63d   : > { %v14619_v12 = vpop.f32.mrb[58].mxu1 }
 0x63e   : > { %16342 = vst [vmem:[#allocation2_spill] sm:$0xff] %v14619_v12  ;;  %v14621_v26 = vpop.f32.mrb[59].mxu1  ;;  %5057 = vmatmul.mubr.f32.gmra.mrb[100].mxu1 %v9026_v5  ;;  %v9032_v12 = vld [vmem:[%s16244_s3 + $0x4f0] sm:$0xff] }
 0x63f   : > { %16343 = vst [vmem:[#allocation3_spill] sm:$0xff] %v14621_v26  ;;  %5062 = vmatprep.mubr.f32.mxu1 %v11948_v7 }
 0x641   : > { %v14627_v53 = vpop.f32.mrb[60].mxu1 }
 0x642   : > { %16344 = vst [vmem:[#allocation4_spill] sm:$0xff] %v14627_v53  ;;  %v14629_v59 = vpop.f32.mrb[61].mxu1  ;;  %5063 = vmatmul.mubr.f32.gmra.mrb[102].mxu1 %v9029_v47  ;;  %v9035_v53 = vld [vmem:[%s16244_s3 + $0x508] sm:$0xff]  ;;  %v9038_v47 = vld [vmem:[%s16244_s3 + $0x520] sm:$0xff] }
 0x643   : > { %16345 = vst [vmem:[#allocation5_spill] sm:$0xff] %v14629_v59  ;;  %5068 = vmatprep.mubr.f32.mxu1 %v11948_v7 }
 0x645   : > { %v14635_v36 = vpop.f32.mrb[62].mxu1 }
 0x646   : > { %16346 = vst [vmem:[#allocation6_spill] sm:$0xff] %v14635_v36  ;;  %v14637_v5 = vpop.f32.mrb[63].mxu1  ;;  %5069 = vmatmul.mubr.f32.gmra.mrb[104].mxu1 %v9032_v12  ;;  %v9041_v12 = vld [vmem:[%s16244_s3 + $0x538] sm:$0xff] }
 0x647   : > { %16347 = vst [vmem:[#allocation7_spill] sm:$0xff] %v14637_v5  ;;  %5074 = vmatprep.mubr.f32.mxu1 %v11948_v7  ;;  %v9098_v5 = vld [vmem:[%s16245_s4 + $0x90] sm:$0xff] }
 0x64a   : > { %5075 = vmatmul.mubr.f32.gmra.mrb[106].mxu1 %v9035_v53  ;;  %v9044_v53 = vld [vmem:[%s16244_s3 + $0x550] sm:$0xff] }
 0x64b   : > { %5080 = vmatprep.mubr.f32.mxu1 %v11948_v7 }
 0x64e   : > { %5081 = vmatmul.mubr.f32.gmra.mrb[108].mxu1 %v9038_v47  ;;  %v9047_v47 = vld [vmem:[%s16244_s3 + $0x568] sm:$0xff] }
 0x64f   : > { %5086 = vmatprep.mubr.f32.mxu1 %v11948_v7 }
 0x652   : > { %5087 = vmatmul.mubr.f32.gmra.mrb[110].mxu1 %v9041_v12  ;;  %v9050_v12 = vld [vmem:[%s16244_s3 + $0x580] sm:$0xff] }
 0x653   : > { %5092 = vmatprep.mubr.f32.mxu1 %v11948_v7 }
 0x656   : > { %5093 = vmatmul.mubr.f32.gmra.mrb[112].mxu1 %v9044_v53  ;;  %v9053_v53 = vld [vmem:[%s16244_s3 + $0x598] sm:$0xff] }
 0x657   : > { %5098 = vmatprep.mubr.f32.mxu1 %v11948_v7 }
 0x65a   : > { %5099 = vmatmul.mubr.f32.gmra.mrb[114].mxu1 %v9047_v47  ;;  %v9056_v47 = vld [vmem:[%s16244_s3 + $0x5b0] sm:$0xff] }
 0x65b   : > { %5104 = vmatprep.mubr.f32.mxu1 %v11948_v7 }
 0x65e   : > { %5105 = vmatmul.mubr.f32.gmra.mrb[116].mxu1 %v9050_v12  ;;  %v9059_v12 = vld [vmem:[%s16244_s3 + $0x5c8] sm:$0xff] }
 0x65f   : > { %5110 = vmatprep.mubr.f32.mxu1 %v11948_v7 }
 0x662   : > { %5111 = vmatmul.mubr.f32.gmra.mrb[118].mxu1 %v9053_v53  ;;  %v9062_v53 = vld [vmem:[%s16244_s3 + $0x5e0] sm:$0xff] }
 0x663   : > { %5116 = vmatprep.mubr.f32.mxu1 %v11948_v7 }
 0x666   : > { %5117 = vmatmul.mubr.f32.gmra.mrb[120].mxu1 %v9056_v47  ;;  %v9065_v47 = vld [vmem:[%s16244_s3 + $0x5f8] sm:$0xff] }
 0x667   : > { %5122 = vmatprep.mubr.f32.mxu1 %v11948_v7 }
 0x66a   : > { %5123 = vmatmul.mubr.f32.gmra.mrb[122].mxu1 %v9059_v12  ;;  %v9099_v12 = vld [vmem:[%s16245_s4 + $0x98] sm:$0xff] }
 0x66b   : > { %5128 = vmatprep.mubr.f32.mxu1 %v11948_v7  ;;  %v10745_v26 = vpack.c.bf16 %v9099_v12, %v9098_v5  ;;  %v16349_v12 = vmov 0.0|0.0  }
 0x66e   : > { %5129 = vmatmul.mubr.f32.gmra.mrb[124].mxu1 %v9062_v53 }
 0x66f   : > { %5134 = vmatprep.mubr.f32.mxu1 %v11948_v7 }
 0x672   : > { %5135 = vmatmul.mubr.f32.gmra.mrb[126].mxu1 %v9065_v47  ;;  %v9100_v47 = vld [vmem:[%s16245_s4 + $0xa0] sm:$0xff] }
 0x673   : > { %v10748_v5 = vpack.c.bf16 %v9101_v58, %v9100_v47  ;;  %v9104_v47 = vld [vmem:[%s16245_s4 + $0xc0] sm:$0xff] }
 0x6c9   : > { %v4950_v36 = vpop.f32.mrb[64].mxu1 }
 0x6ca   : > { %v14690_v59 = vmax.f32 %v14306_v50, %v4950_v36  ;;  %v4952_v53 = vpop.f32.mrb[65].mxu1 }
 0x6cb   : > { %v14693_v7 = vmax.f32 %v14308_v28, %v4952_v53  ;;  %v9102_v53 = vld [vmem:[%s16245_s4 + $0xb0] sm:$0xff] }
 0x6cd   : > { %16348 = vst [vmem:[#allocation8_spill] sm:$0xff] %v14693_v7  ;;  %v4956_v45 = vpop.f32.mrb[66].mxu1  ;;  %9066 = vmatprep.mubr.msk.f32.mxu1 %vm5223_vm7, %v14693_v7  ;;  %v9103_v7 = vld [vmem:[%s16245_s4 + $0xb8] sm:$0xff] }
 0x6ce   : > { %v14704_v50 = vmax.f32 %v14316_v34, %v4956_v45  ;;  %v4958_v36 = vpop.f32.mrb[67].mxu1  ;;  %5385 = vmatmul.mubr.f32.vlgmr.msra.gmra.mrb[128].mxu1 %v14690_v59 }
 0x6cf   : > { %v14708_v28 = vmax.f32 %v14318_v55, %v4958_v36  ;;  %10746 = vmatpush1.bf16.msra.mxu1 %v10745_v26  ;;  %v10751_v26 = vpack.c.bf16 %v9103_v7, %v9102_v53  ;;  %v9105_v36 = vld [vmem:[%s16245_s4 + $0xc8] sm:$0xff]  ;;  %v9106_v53 = vld [vmem:[%s16245_s4 + $0xd0] sm:$0xff] }
 0x6d0   : > { %10747 = vmatprep.subr.bf16.mxu1 %v16349_v12 }
 0x6d1   : > { %v4962_v34 = vpop.f32.mrb[68].mxu1  ;;  %9067 = vmatprep.mubr.msk.f32.mxu1 %vm5223_vm7, %v14708_v28 }
 0x6d2   : > { %v14720_v45 = vmax.f32 %v14326_v41, %v4962_v34  ;;  %v4964_v55 = vpop.f32.mrb[69].mxu1  ;;  %5390 = vmatmul.mubr.f32.gmra.mrb[130].mxu1 %v14704_v50 }
 0x6d3   : > { %v14724_v58 = vmax.f32 %v14328_v14, %v4964_v55  ;;  %10749 = vmatpush1.bf16.msra.mxu1 %v10748_v5  ;;  %v10754_v5 = vpack.c.bf16 %v9105_v36, %v9104_v47  ;;  %v9107_v55 = vld [vmem:[%s16245_s4 + $0xd8] sm:$0xff]  ;;  %v9108_v36 = vld [vmem:[%s16245_s4 + $0xe0] sm:$0xff] }
 0x6d4   : > { %10750 = vmatprep.subr.bf16.mxu1 %v16349_v12  ;;  %v10757_v47 = vpack.c.bf16 %v9107_v55, %v9106_v53  ;;  %v9110_v55 = vld [vmem:[%s16245_s4 + $0xf0] sm:$0xff] }
 0x6d5   : > { %v4968_v41 = vpop.f32.mrb[70].mxu1  ;;  %9068 = vmatprep.mubr.msk.f32.mxu1 %vm5223_vm7, %v14724_v58 }
 0x6d6   : > { %v14736_v34 = vmax.f32 %v14337_v63, %v4968_v41  ;;  %v4970_v14 = vpop.f32.mrb[71].mxu1  ;;  %5395 = vmatmul.mubr.f32.gmra.mrb[132].mxu1 %v14720_v45 }
 0x6d7   : > { %v14740_v7 = vmax.f32 %v14339_v9, %v4970_v14  ;;  %10752 = vmatpush1.bf16.msra.mxu1 %v10751_v26  ;;  %v9109_v14 = vld [vmem:[%s16245_s4 + $0xe8] sm:$0xff] }
 0x6d8   : > { %10753 = vmatprep.subr.bf16.mxu1 %v16349_v12  ;;  %v10760_v53 = vpack.c.bf16 %v9109_v14, %v9108_v36  ;;  %v9112_v14 = vld [vmem:[%s16245_s4 + $0x100] sm:$0xff] }
 0x6d9   : > { %v4974_v63 = vpop.f32.mrb[72].mxu1  ;;  %9069 = vmatprep.mubr.msk.f32.mxu1 %vm5223_vm7, %v14740_v7 }
 0x6da   : > { %v14752_v41 = vmax.f32 %v14347_v15, %v4974_v63  ;;  %v4976_v9 = vpop.f32.mrb[73].mxu1  ;;  %5400 = vmatmul.mubr.f32.gmra.mrb[134].mxu1 %v14736_v34 }
 0x6db   : > { %v14756_v26 = vmax.f32 %v14349_v18, %v4976_v9  ;;  %10755 = vmatpush1.bf16.msra.mxu1 %v10754_v5  ;;  %v9111_v9 = vld [vmem:[%s16245_s4 + $0xf8] sm:$0xff] }
 0x6dc   : > { %10756 = vmatprep.subr.bf16.mxu1 %v16349_v12  ;;  %v10763_v36 = vpack.c.bf16 %v9111_v9, %v9110_v55  ;;  %v9114_v9 = vld [vmem:[%s16245_s4 + $0x110] sm:$0xff] }
 0x6dd   : > { %v4980_v15 = vpop.f32.mrb[74].mxu1  ;;  %9070 = vmatprep.mubr.msk.f32.mxu1 %vm5223_vm7, %v14756_v26 }
 0x6de   : > { %v14768_v63 = vmax.f32 %v14357_v62, %v4980_v15  ;;  %v4982_v18 = vpop.f32.mrb[75].mxu1  ;;  %5405 = vmatmul.mubr.f32.gmra.mrb[136].mxu1 %v14752_v41 }
 0x6df   : > { %v14772_v5 = vmax.f32 %v14359_v60, %v4982_v18  ;;  %10758 = vmatpush1.bf16.msra.mxu1 %v10757_v47  ;;  %v9113_v18 = vld [vmem:[%s16245_s4 + $0x108] sm:$0xff] }
 0x6e0   : > { %10759 = vmatprep.subr.bf16.mxu1 %v16349_v12  ;;  %v10766_v55 = vpack.c.bf16 %v9113_v18, %v9112_v14 }
 0x6e1   : > { %v4986_v62 = vpop.f32.mrb[76].mxu1  ;;  %9071 = vmatprep.mubr.msk.f32.mxu1 %vm5223_vm7, %v14772_v5 }
 0x6e2   : > { %v14784_v15 = vmax.f32 %v14367_v22, %v4986_v62  ;;  %v4988_v60 = vpop.f32.mrb[77].mxu1  ;;  %5410 = vmatmul.mubr.f32.gmra.mrb[138].mxu1 %v14768_v63 }
 0x6e3   : > { %v14788_v47 = vmax.f32 %v14369_v38, %v4988_v60  ;;  %10761 = vmatpush1.bf16.msra.mxu1 %v10760_v53  ;;  %v9115_v60 = vld [vmem:[%s16245_s4 + $0x118] sm:$0xff] }
 0x6e4   : > { %10762 = vmatprep.subr.bf16.mxu1 %v16349_v12  ;;  %v10769_v14 = vpack.c.bf16 %v9115_v60, %v9114_v9 }
 0x6e5   : > { %v4992_v22 = vpop.f32.mrb[78].mxu1  ;;  %9072 = vmatprep.mubr.msk.f32.mxu1 %vm5223_vm7, %v14788_v47 }
 0x6e6   : > { %v14800_v62 = vmax.f32 %v14377_v4, %v4992_v22  ;;  %v4994_v38 = vpop.f32.mrb[79].mxu1  ;;  %5415 = vmatmul.mubr.f32.gmra.mrb[140].mxu1 %v14784_v15 }
 0x6e7   : > { %v14804_v53 = vmax.f32 %v14379_v40, %v4994_v38  ;;  %10764 = vmatpush1.bf16.msra.mxu1 %v10763_v36 }
 0x6e8   : > { %10765 = vmatprep.subr.bf16.mxu1 %v16349_v12 }
 0x6e9   : > { %16350 = vst [vmem:[#allocation9_spill] sm:$0xff] %v14804_v53  ;;  %v4998_v4 = vpop.f32.mrb[80].mxu1  ;;  %9073 = vmatprep.mubr.msk.f32.mxu1 %vm5223_vm7, %v14804_v53 }
 0x6ea   : > { %v14816_v22 = vmax.f32 %v14387_v13, %v4998_v4  ;;  %v5000_v40 = vpop.f32.mrb[81].mxu1  ;;  %5420 = vmatmul.mubr.f32.gmra.mrb[142].mxu1 %v14800_v62 }
 0x6eb   : > { %v14820_v36 = vmax.f32 %v14389_v43, %v5000_v40  ;;  %10767 = vmatpush1.bf16.msra.mxu1 %v10766_v55 }
 0x6ec   : > { %10768 = vmatprep.subr.bf16.mxu1 %v16349_v12 }
 0x6ed   : > { %v5004_v18 = vpop.f32.mrb[82].mxu1  ;;  %9074 = vmatprep.mubr.msk.f32.mxu1 %vm5223_vm7, %v14820_v36 }
 0x6ee   : > { %v14826_v38 = vmax.f32 %v14397_v52, %v5004_v18  ;;  %v5006_v53 = vpop.f32.mrb[83].mxu1  ;;  %5425 = vmatmul.mubr.f32.gmra.mrb[144].mxu1 %v14816_v22 }
 0x6ef   : > { %v14830_v13 = vmax.f32 %v14399_v49, %v5006_v53  ;;  %10770 = vmatpush1.bf16.msra.mxu1 %v10769_v14 }
 0x6f1   : > { %v5010_v43 = vpop.f32.mrb[84].mxu1  ;;  %9075 = vmatprep.mubr.msk.f32.mxu1 %vm5223_vm7, %v14830_v13 }
 0x6f2   : > { %v14835_v12 = vmax.f32 %v14410_v11, %v5010_v43  ;;  %v5012_v55 = vpop.f32.mrb[85].mxu1  ;;  %5430 = vmatmul.mubr.f32.gmra.mrb[146].mxu1 %v14826_v38 }
 0x6f3   : > { %v14839_v52 = vmax.f32 %v14412_v2, %v5012_v55 }
 0x6f5   : > { %v5016_v9 = vpop.f32.mrb[86].mxu1  ;;  %9076 = vmatprep.mubr.msk.f32.mxu1 %vm5223_vm7, %v14839_v52 }
 0x6f6   : > { %v14844_v49 = vmax.f32 %v14424_v25, %v5016_v9  ;;  %v5018_v53 = vpop.f32.mrb[87].mxu1  ;;  %5435 = vmatmul.mubr.f32.gmra.mrb[148].mxu1 %v14835_v12 }
 0x6f7   : > { %v14848_v60 = vmax.f32 %v14426_v35, %v5018_v53 }
 0x6f9   : > { %v5022_v11 = vpop.f32.mrb[88].mxu1  ;;  %9077 = vmatprep.mubr.msk.f32.mxu1 %vm5223_vm7, %v14848_v60 }
 0x6fa   : > { %v14853_v2 = vmax.f32 %v14439_v32, %v5022_v11  ;;  %v5024_v4 = vpop.f32.mrb[89].mxu1  ;;  %5440 = vmatmul.mubr.f32.gmra.mrb[150].mxu1 %v14844_v49 }
 0x6fb   : > { %v14857_v40 = vmax.f32 %v14441_v31, %v5024_v4 }
 0x6fd   : > { %v5028_v25 = vpop.f32.mrb[90].mxu1  ;;  %9078 = vmatprep.mubr.msk.f32.mxu1 %vm5223_vm7, %v14857_v40 }
 0x6fe   : > { %v14862_v35 = vmax.f32 %v14454_v20, %v5028_v25  ;;  %v5030_v14 = vpop.f32.mrb[91].mxu1  ;;  %5445 = vmatmul.mubr.f32.gmra.mrb[152].mxu1 %v14853_v2 }
 0x6ff   : > { %v14866_v18 = vmax.f32 %v14456_v19, %v5030_v14 }
 0x701   : > { %v5034_v32 = vpop.f32.mrb[92].mxu1  ;;  %9079 = vmatprep.mubr.msk.f32.mxu1 %vm5223_vm7, %v14866_v18 }
 0x702   : > { %v14871_v31 = vmax.f32 %v14469_v51, %v5034_v32  ;;  %v5036_v43 = vpop.f32.mrb[93].mxu1  ;;  %5450 = vmatmul.mubr.f32.gmra.mrb[154].mxu1 %v14862_v35 }
 0x703   : > { %v14875_v55 = vmax.f32 %v14471_v44, %v5036_v43 }
 0x705   : > { %v5040_v20 = vpop.f32.mrb[94].mxu1  ;;  %9080 = vmatprep.mubr.msk.f32.mxu1 %vm5223_vm7, %v14875_v55 }
 0x706   : > { %v14880_v19 = vmax.f32 %v14484_v17, %v5040_v20  ;;  %v5042_v9 = vpop.f32.mrb[95].mxu1  ;;  %5455 = vmatmul.mubr.f32.gmra.mrb[156].mxu1 %v14871_v31 }
 0x707   : > { %v14884_v53 = vmax.f32 %v14486_v16, %v5042_v9 }
 0x709   : > { %v5046_v51 = vpop.f32.mrb[96].mxu1  ;;  %9081 = vmatprep.mubr.msk.f32.mxu1 %vm5223_vm7, %v14884_v53 }
 0x70a   : > { %v14889_v44 = vmax.f32 %v14499_v23, %v5046_v51  ;;  %v5048_v11 = vpop.f32.mrb[97].mxu1  ;;  %5460 = vmatmul.mubr.f32.gmra.mrb[158].mxu1 %v14880_v19 }
 0x70b   : > { %v14893_v4 = vmax.f32 %v14501_v33, %v5048_v11 }
 0x70d   : > { %v5052_v17 = vpop.f32.mrb[98].mxu1  ;;  %9082 = vmatprep.mubr.msk.f32.mxu1 %vm5223_vm7, %v14893_v4 }
 0x70e   : > { %v14898_v16 = vmax.f32 %v14514_v61, %v5052_v17  ;;  %v5054_v25 = vpop.f32.mrb[99].mxu1  ;;  %5465 = vmatmul.mubr.f32.gmra.mrb[160].mxu1 %v14889_v44 }
 0x70f   : > { %v14902_v14 = vmax.f32 %v14516_v1, %v5054_v25 }
 0x711   : > { %v5058_v23 = vpop.f32.mrb[100].mxu1  ;;  %9083 = vmatprep.mubr.msk.f32.mxu1 %vm5223_vm7, %v14902_v14 }
 0x712   : > { %v14907_v33 = vmax.f32 %v14529_v3, %v5058_v23  ;;  %v5060_v32 = vpop.f32.mrb[101].mxu1  ;;  %5470 = vmatmul.mubr.f32.gmra.mrb[162].mxu1 %v14898_v16 }
 0x713   : > { %v14911_v43 = vmax.f32 %v14531_v46, %v5060_v32 }
 0x715   : > { %v5064_v61 = vpop.f32.mrb[102].mxu1  ;;  %9084 = vmatprep.mubr.msk.f32.mxu1 %vm5223_vm7, %v14911_v43 }
 0x716   : > { %v14916_v1 = vmax.f32 %v14538_v27, %v5064_v61  ;;  %v5066_v20 = vpop.f32.mrb[103].mxu1  ;;  %5475 = vmatmul.mubr.f32.gmra.mrb[164].mxu1 %v14907_v33 }
 0x717   : > { %v14920_v9 = vmax.f32 %v14540_v57, %v5066_v20 }
 0x719   : > { %v5070_v3 = vpop.f32.mrb[104].mxu1  ;;  %9085 = vmatprep.mubr.msk.f32.mxu1 %vm5223_vm7, %v14920_v9 }
 0x71a   : > { %v14925_v46 = vmax.f32 %v14547_v48, %v5070_v3  ;;  %v5072_v51 = vpop.f32.mrb[105].mxu1  ;;  %5480 = vmatmul.mubr.f32.gmra.mrb[166].mxu1 %v14916_v1 }
 0x71b   : > { %v14929_v11 = vmax.f32 %v14549_v54, %v5072_v51 }
 0x71d   : > { %v5076_v27 = vpop.f32.mrb[106].mxu1  ;;  %9086 = vmatprep.mubr.msk.f32.mxu1 %vm5223_vm7, %v14929_v11 }
 0x71e   : > { %v14934_v57 = vmax.f32 %v14555_v29, %v5076_v27  ;;  %v5078_v17 = vpop.f32.mrb[107].mxu1  ;;  %5485 = vmatmul.mubr.f32.gmra.mrb[168].mxu1 %v14925_v46 }
 0x71f   : > { %v14938_v25 = vmax.f32 %v14557_v30, %v5078_v17 }
 0x721   : > { %v5082_v48 = vpop.f32.mrb[108].mxu1  ;;  %9087 = vmatprep.mubr.msk.f32.mxu1 %vm5223_vm7, %v14938_v25 }
 0x722   : > { %v14943_v54 = vmax.f32 %v14563_v8, %v5082_v48  ;;  %v5084_v23 = vpop.f32.mrb[109].mxu1  ;;  %5490 = vmatmul.mubr.f32.gmra.mrb[170].mxu1 %v14934_v57 }
 0x723   : > { %v14947_v32 = vmax.f32 %v14565_v21, %v5084_v23 }
 0x725   : > { %v5088_v29 = vpop.f32.mrb[110].mxu1  ;;  %9088 = vmatprep.mubr.msk.f32.mxu1 %vm5223_vm7, %v14947_v32 }
 0x726   : > { %v14952_v30 = vmax.f32 %v14571_v39, %v5088_v29  ;;  %v5090_v61 = vpop.f32.mrb[111].mxu1  ;;  %5495 = vmatmul.mubr.f32.gmra.mrb[172].mxu1 %v14943_v54  ;;  %v16352_v29 = vld [vmem:[#allocation11_spill] sm:$0xff] }
 0x727   : > { %v14956_v20 = vmax.f32 %v14573_v6, %v5090_v61 }
 0x729   : > { %v5094_v8 = vpop.f32.mrb[112].mxu1  ;;  %9089 = vmatprep.mubr.msk.f32.mxu1 %vm5223_vm7, %v14956_v20 }
 0x72a   : > { %v14961_v21 = vmax.f32 %v14579_v24, %v5094_v8  ;;  %v5096_v3 = vpop.f32.mrb[113].mxu1  ;;  %5500 = vmatmul.mubr.f32.gmra.mrb[174].mxu1 %v14952_v30  ;;  %v16354_v8 = vld [vmem:[#allocation12_spill] sm:$0xff] }
 0x72b   : > { %v14965_v51 = vmax.f32 %v14581_v56, %v5096_v3 }
 0x72d   : > { %v5100_v39 = vpop.f32.mrb[114].mxu1  ;;  %9090 = vmatprep.mubr.msk.f32.mxu1 %vm5223_vm7, %v14965_v51 }
 0x72e   : > { %v14970_v6 = vmax.f32 %v14587_v37, %v5100_v39  ;;  %v5102_v27 = vpop.f32.mrb[115].mxu1  ;;  %5505 = vmatmul.mubr.f32.gmra.mrb[176].mxu1 %v14961_v21  ;;  %v16356_v39 = vld [vmem:[#allocation13_spill] sm:$0xff] }
 0x72f   : > { %v14974_v17 = vmax.f32 %v14589_v10, %v5102_v27 }
 0x731   : > { %v5106_v24 = vpop.f32.mrb[116].mxu1  ;;  %9091 = vmatprep.mubr.msk.f32.mxu1 %vm5223_vm7, %v14974_v17 }
 0x732   : > { %v14979_v56 = vmax.f32 %v14595_v0, %v5106_v24  ;;  %v5108_v48 = vpop.f32.mrb[117].mxu1  ;;  %5510 = vmatmul.mubr.f32.gmra.mrb[178].mxu1 %v14970_v6  ;;  %v16358_v24 = vld [vmem:[#allocation14_spill] sm:$0xff] }
 0x733   : > { %v14983_v23 = vmax.f32 %v14597_v42, %v5108_v48 }
 0x734   : > { %16351 = vst [vmem:[#allocation10_spill] sm:$0xff] %v14979_v56 }
 0x735   : > { %v5112_v37 = vpop.f32.mrb[118].mxu1  ;;  %9092 = vmatprep.mubr.msk.f32.mxu1 %vm5223_vm7, %v14983_v23 }
 0x736   : > { %v14988_v10 = vmax.f32 %v16352_v29, %v5112_v37  ;;  %v5114_v61 = vpop.f32.mrb[119].mxu1  ;;  %5515 = vmatmul.mubr.f32.gmra.mrb[180].mxu1 %v14979_v56  ;;  %v16360_v29 = vld [vmem:[#allocation2_spill] sm:$0xff] }
 0x737   : > { %v14992_v3 = vmax.f32 %v16354_v8, %v5114_v61 }
 0x738   : > { %16353 = vst [vmem:[#allocation11_spill] sm:$0xff] %v14988_v10 }
 0x739   : > { %16355 = vst [vmem:[#allocation12_spill] sm:$0xff] %v14992_v3  ;;  %v5118_v0 = vpop.f32.mrb[120].mxu1  ;;  %9093 = vmatprep.mubr.msk.f32.mxu1 %vm5223_vm7, %v14992_v3  ;;  %v16361_v3 = vld [vmem:[#allocation3_spill] sm:$0xff] }
 0x73a   : > { %v14997_v42 = vmax.f32 %v16356_v39, %v5118_v0  ;;  %v5120_v27 = vpop.f32.mrb[121].mxu1  ;;  %5520 = vmatmul.mubr.f32.gmra.mrb[182].mxu1 %v14988_v10  ;;  %v16363_v39 = vld [vmem:[#allocation4_spill] sm:$0xff] }
 0x73b   : > { %v15001_v48 = vmax.f32 %v16358_v24, %v5120_v27 }
 0x73c   : > { %16357 = vst [vmem:[#allocation13_spill] sm:$0xff] %v14997_v42 }
 0x73d   : > { %16359 = vst [vmem:[#allocation14_spill] sm:$0xff] %v15001_v48  ;;  %v5124_v37 = vpop.f32.mrb[122].mxu1  ;;  %9094 = vmatprep.mubr.msk.f32.mxu1 %vm5223_vm7, %v15001_v48  ;;  %v16364_v48 = vld [vmem:[#allocation5_spill] sm:$0xff] }
 0x73e   : > { %v15006_v61 = vmax.f32 %v16360_v29, %v5124_v37  ;;  %v5126_v8 = vpop.f32.mrb[123].mxu1  ;;  %5525 = vmatmul.mubr.f32.gmra.mrb[184].mxu1 %v14997_v42  ;;  %v16365_v29 = vld [vmem:[#allocation6_spill] sm:$0xff] }
 0x73f   : > { %v15010_v56 = vmax.f32 %v16361_v3, %v5126_v8 }
 0x741   : > { %16362 = vst [vmem:[#allocation2_spill] sm:$0xff] %v15010_v56  ;;  %v5130_v0 = vpop.f32.mrb[124].mxu1  ;;  %9095 = vmatprep.mubr.msk.f32.mxu1 %vm5223_vm7, %v15010_v56  ;;  %v16366_v56 = vld [vmem:[#allocation7_spill] sm:$0xff] }
 0x742   : > { %v15015_v27 = vmax.f32 %v16363_v39, %v5130_v0  ;;  %v5132_v24 = vpop.f32.mrb[125].mxu1  ;;  %5530 = vmatmul.mubr.f32.gmra.mrb[186].mxu1 %v15006_v61 }
 0x743   : > { %v15019_v10 = vmax.f32 %v16364_v48, %v5132_v24  ;;  %v16367_v48 = vld [vmem:[#allocation8_spill] sm:$0xff] }
 0x745   : > { %v5136_v37 = vpop.f32.mrb[126].mxu1  ;;  %9096 = vmatprep.mubr.msk.f32.mxu1 %vm5223_vm7, %v15019_v10 }
 0x746   : > { %v15024_v3 = vmax.f32 %v16365_v29, %v5136_v37  ;;  %v5138_v8 = vpop.f32.mrb[127].mxu1  ;;  %5535 = vmatmul.mubr.f32.gmra.mrb[188].mxu1 %v15015_v27 }
 0x747   : > { %v15028_v42 = vmax.f32 %v16366_v56, %v5138_v8 }
 0x749   : > { %9097 = vmatprep.mubr.msk.f32.mxu1 %vm5223_vm7, %v15028_v42 }
 0x74a   : > { %5540 = vmatmul.mubr.f32.gmra.mrb[190].mxu1 %v15024_v3 }
 0x74b   : > { %9116 = vmatprep.mubr.msk.f32.mxu1 %vm5223_vm7, %v16367_v48 }
 0x74e   : > { %5629 = vmatmul.mubr.f32.vlgmr.msra.gmra.mrb[192].mxu1 %v14690_v59  ;;  %v16368_v59 = vld [vmem:[#allocation9_spill] sm:$0xff] }
 0x74f   : > { %9117 = vmatprep.mubr.msk.f32.mxu1 %vm5223_vm7, %v14708_v28  ;;  %v9149_v28 = vld [vmem:[%s16246_s5 + $0x50] sm:$0xff] }
 0x752   : > { %5634 = vmatmul.mubr.f32.gmra.mrb[194].mxu1 %v14704_v50  ;;  %v9148_v50 = vld [vmem:[%s16246_s5 + $0x48] sm:$0xff] }
 0x753   : > { %9118 = vmatprep.mubr.msk.f32.mxu1 %vm5223_vm7, %v14724_v58 }
 0x756   : > { %5639 = vmatmul.mubr.f32.gmra.mrb[196].mxu1 %v14720_v45  ;;  %v10771_v45 = vpack.c.bf16 %v9149_v28, %v9148_v50 }
 0x757   : > { %9119 = vmatprep.mubr.msk.f32.mxu1 %vm5223_vm7, %v14740_v7  ;;  %v9150_v7 = vld [vmem:[%s16246_s5 + $0x58] sm:$0xff] }
 0x758   : > { %10772 = vmatprep.subr.bf16.mxu1 %v10771_v45 }
 0x759   : > { %10774 = vmatpush3.bf16.msra.mxu1 %v10771_v45 }
 0x75a   : > { %5644 = vmatmul.mubr.f32.gmra.mrb[198].mxu1 %v14736_v34 }
 0x75b   : > { %9120 = vmatprep.mubr.msk.f32.mxu1 %vm5223_vm7, %v14756_v26 }
 0x75e   : > { %5649 = vmatmul.mubr.f32.gmra.mrb[200].mxu1 %v14752_v41  ;;  %v9151_v41 = vld [vmem:[%s16246_s5 + $0x60] sm:$0xff] }
 0x75f   : > { %9121 = vmatprep.mubr.msk.f32.mxu1 %vm5223_vm7, %v14772_v5  ;;  %v10775_v26 = vpack.c.bf16 %v9151_v41, %v9150_v7 }
 0x761   : > { %10776 = vmatprep.subr.bf16.mxu1 %v10775_v26 }
 0x762   : > { %5654 = vmatmul.mubr.f32.gmra.mrb[202].mxu1 %v14768_v63 }
 0x763   : > { %9122 = vmatprep.mubr.msk.f32.mxu1 %vm5223_vm7, %v14788_v47  ;;  %10778 = vmatpush3.bf16.msra.mxu1 %v10775_v26  ;;  %v9153_v47 = vld [vmem:[%s16246_s5 + $0x70] sm:$0xff] }
 0x766   : > { %5659 = vmatmul.mubr.f32.gmra.mrb[204].mxu1 %v14784_v15  ;;  %v9152_v15 = vld [vmem:[%s16246_s5 + $0x68] sm:$0xff] }
 0x767   : > { %9123 = vmatprep.mubr.msk.f32.mxu1 %vm5223_vm7, %v16368_v59 }
 0x76a   : > { %5664 = vmatmul.mubr.f32.gmra.mrb[206].mxu1 %v14800_v62  ;;  %v10779_v62 = vpack.c.bf16 %v9153_v47, %v9152_v15  ;;  %v5821_v47 = vld [vmem:[%s16246_s5] sm:$0xff] }
 0x76b   : > { %9124 = vmatprep.mubr.msk.f32.mxu1 %vm5223_vm7, %v14820_v36 }
 0x76c   : > { %10780 = vmatprep.subr.bf16.mxu1 %v10779_v62 }
 0x76d   : > { %10782 = vmatpush3.bf16.msra.mxu1 %v10779_v62  ;;  %v5822_v62 = vld [vmem:[%s16246_s5 + $0x8] sm:$0xff] }
 0x76e   : > { %5669 = vmatmul.mubr.f32.gmra.mrb[208].mxu1 %v14816_v22 }
 0x76f   : > { %9125 = vmatprep.mubr.msk.f32.mxu1 %vm5223_vm7, %v14830_v13  ;;  %v9155_v13 = vld [vmem:[%s16246_s5 + $0x80] sm:$0xff] }
 0x772   : > { %5674 = vmatmul.mubr.f32.gmra.mrb[210].mxu1 %v14826_v38  ;;  %v9154_v38 = vld [vmem:[%s16246_s5 + $0x78] sm:$0xff] }
 0x773   : > { %9126 = vmatprep.mubr.msk.f32.mxu1 %vm5223_vm7, %v14839_v52 }
 0x776   : > { %5679 = vmatmul.mubr.f32.gmra.mrb[212].mxu1 %v14835_v12  ;;  %v10783_v12 = vpack.c.bf16 %v9155_v13, %v9154_v38 }
 0x777   : > { %9127 = vmatprep.mubr.msk.f32.mxu1 %vm5223_vm7, %v14848_v60 }
 0x778   : > { %10784 = vmatprep.subr.bf16.mxu1 %v10783_v12 }
 0x779   : > { %10786 = vmatpush3.bf16.msra.mxu1 %v10783_v12 }
 0x77a   : > { %5684 = vmatmul.mubr.f32.gmra.mrb[214].mxu1 %v14844_v49 }
 0x77b   : > { %9128 = vmatprep.mubr.msk.f32.mxu1 %vm5223_vm7, %v14857_v40 }
 0x77e   : > { %5689 = vmatmul.mubr.f32.gmra.mrb[216].mxu1 %v14853_v2  ;;  %v9156_v2 = vld [vmem:[%s16246_s5 + $0x88] sm:$0xff] }
 0x77f   : > { %9129 = vmatprep.mubr.msk.f32.mxu1 %vm5223_vm7, %v14866_v18  ;;  %9755 = vmatprep.subr.mxu1 %v9156_v2 }
 0x780   : > { %9756 = vmatpush3.msra.mxu1 %v9156_v2 }
 0x782   : > { %5694 = vmatmul.mubr.f32.gmra.mrb[218].mxu1 %v14862_v35 }
 0x783   : > { %9130 = vmatprep.mubr.msk.f32.mxu1 %vm5223_vm7, %v14875_v55  ;;  %v16370_v55 = vld [vmem:[#allocation12_spill] sm:$0xff] }
 0x786   : > { %5699 = vmatmul.mubr.f32.gmra.mrb[220].mxu1 %v14871_v31  ;;  %v16369_v31 = vld [vmem:[#allocation10_spill] sm:$0xff] }
 0x787   : > { %9131 = vmatprep.mubr.msk.f32.mxu1 %vm5223_vm7, %v14884_v53 }
 0x78a   : > { %5704 = vmatmul.mubr.f32.gmra.mrb[222].mxu1 %v14880_v19 }
 0x78b   : > { %9132 = vmatprep.mubr.msk.f32.mxu1 %vm5223_vm7, %v14893_v4  ;;  %v16372_v4 = vld [vmem:[#allocation14_spill] sm:$0xff] }
 0x78e   : > { %5709 = vmatmul.mubr.f32.gmra.mrb[224].mxu1 %v14889_v44  ;;  %v16371_v44 = vld [vmem:[#allocation11_spill] sm:$0xff] }
 0x78f   : > { %9133 = vmatprep.mubr.msk.f32.mxu1 %vm5223_vm7, %v14902_v14 }
 0x792   : > { %5714 = vmatmul.mubr.f32.gmra.mrb[226].mxu1 %v14898_v16 }
 0x793   : > { %9134 = vmatprep.mubr.msk.f32.mxu1 %vm5223_vm7, %v14911_v43  ;;  %v16374_v43 = vld [vmem:[#allocation2_spill] sm:$0xff] }
 0x796   : > { %5719 = vmatmul.mubr.f32.gmra.mrb[228].mxu1 %v14907_v33  ;;  %v16373_v33 = vld [vmem:[#allocation13_spill] sm:$0xff] }
 0x797   : > { %9135 = vmatprep.mubr.msk.f32.mxu1 %vm5223_vm7, %v14920_v9 }
 0x79a   : > { %5724 = vmatmul.mubr.f32.gmra.mrb[230].mxu1 %v14916_v1 }
 0x79b   : > { %9136 = vmatprep.mubr.msk.f32.mxu1 %vm5223_vm7, %v14929_v11 }
 0x79e   : > { %5729 = vmatmul.mubr.f32.gmra.mrb[232].mxu1 %v14925_v46 }
 0x79f   : > { %9137 = vmatprep.mubr.msk.f32.mxu1 %vm5223_vm7, %v14938_v25 }
 0x7a1   : > { %v15104_v58 = vpop.f32.mrb[128].mxu1 }
 0x7a2   : > { %v5388_v34 = vpop.f32.mrb[129].mxu1  ;;  %5734 = vmatmul.mubr.f32.gmra.mrb[234].mxu1 %v14934_v57 }
 0x7a3   : > { %9138 = vmatprep.mubr.msk.f32.mxu1 %vm5223_vm7, %v14947_v32 }
 0x7a5   : > { %v15115_v63 = vpop.f32.mrb[130].mxu1 }
 0x7a6   : > { %v5393_v5 = vpop.f32.mrb[131].mxu1  ;;  %5739 = vmatmul.mubr.f32.gmra.mrb[236].mxu1 %v14943_v54 }
 0x7a7   : > { %9139 = vmatprep.mubr.msk.f32.mxu1 %vm5223_vm7, %v14956_v20 }
 0x7a9   : > { %v15126_v22 = vpop.f32.mrb[132].mxu1 }
 0x7aa   : > { %v5398_v36 = vpop.f32.mrb[133].mxu1  ;;  %5744 = vmatmul.mubr.f32.gmra.mrb[238].mxu1 %v14952_v30 }
 0x7ab   : > { %9140 = vmatprep.mubr.msk.f32.mxu1 %vm5223_vm7, %v14965_v51  ;;  %v10787_v36 = vpack.c.bf16 %v5822_v62, %v5821_v47 }
 0x7ad   : > { %v15137_v52 = vpop.f32.mrb[134].mxu1  ;;  %10788 = vmatprep.subr.bf16.mxu1 %v10787_v36 }
 0x7ae   : > { %v5403_v49 = vpop.f32.mrb[135].mxu1  ;;  %5749 = vmatmul.mubr.f32.gmra.mrb[240].mxu1 %v14961_v21 }
 0x7af   : > { %9141 = vmatprep.mubr.msk.f32.mxu1 %vm5223_vm7, %v14974_v17 }
 0x7b1   : > { %v15142_v60 = vpop.f32.mrb[136].mxu1 }
 0x7b2   : > { %v5408_v40 = vpop.f32.mrb[137].mxu1  ;;  %5754 = vmatmul.mubr.f32.gmra.mrb[242].mxu1 %v14970_v6 }
 0x7b3   : > { %9142 = vmatprep.mubr.msk.f32.mxu1 %vm5223_vm7, %v14983_v23 }
 0x7b5   : > { %v15150_v35 = vpop.f32.mrb[138].mxu1 }
 0x7b6   : > { %v5413_v18 = vpop.f32.mrb[139].mxu1  ;;  %5759 = vmatmul.mubr.f32.gmra.mrb[244].mxu1 %v16369_v31 }
 0x7b7   : > { %9143 = vmatprep.mubr.msk.f32.mxu1 %vm5223_vm7, %v16370_v55 }
 0x7b9   : > { %v15155_v19 = vpop.f32.mrb[140].mxu1 }
 0x7ba   : > { %v5418_v53 = vpop.f32.mrb[141].mxu1  ;;  %5764 = vmatmul.mubr.f32.gmra.mrb[246].mxu1 %v16371_v44 }
 0x7bb   : > { %9144 = vmatprep.mubr.msk.f32.mxu1 %vm5223_vm7, %v16372_v4 }
 0x7bd   : > { %v15160_v16 = vpop.f32.mrb[142].mxu1 }
 0x7be   : > { %v5423_v14 = vpop.f32.mrb[143].mxu1  ;;  %5769 = vmatmul.mubr.f32.gmra.mrb[248].mxu1 %v16373_v33 }
 0x7bf   : > { %9145 = vmatprep.mubr.msk.f32.mxu1 %vm5223_vm7, %v16374_v43 }
 0x7c1   : > { %v15165_v1 = vpop.f32.mrb[144].mxu1 }
 0x7c2   : > { %v5428_v9 = vpop.f32.mrb[145].mxu1  ;;  %5774 = vmatmul.mubr.f32.gmra.mrb[250].mxu1 %v15006_v61 }
 0x7c3   : > { %9146 = vmatprep.mubr.msk.f32.mxu1 %vm5223_vm7, %v15019_v10 }
 0x7c5   : > { %v15170_v46 = vpop.f32.mrb[146].mxu1 }
 0x7c6   : > { %v5433_v11 = vpop.f32.mrb[147].mxu1  ;;  %5779 = vmatmul.mubr.f32.gmra.mrb[252].mxu1 %v15015_v27 }
 0x7c7   : > { %9147 = vmatprep.mubr.msk.f32.mxu1 %vm5223_vm7, %v15028_v42 }
 0x7c9   : > { %v15175_v57 = vpop.f32.mrb[148].mxu1 }
 0x7ca   : > { %v5438_v25 = vpop.f32.mrb[149].mxu1  ;;  %5784 = vmatmul.mubr.f32.gmra.mrb[254].mxu1 %v15024_v3 }
 0x7cd   : > { %v15178_v54 = vpop.f32.mrb[150].mxu1 }
 0x7ce   : > { %v5443_v32 = vpop.f32.mrb[151].mxu1 }
 0x7d1   : > { %v15180_v30 = vpop.f32.mrb[152].mxu1 }
 0x7d2   : > { %v5448_v20 = vpop.f32.mrb[153].mxu1 }
 0x7d5   : > { %v15182_v21 = vpop.f32.mrb[154].mxu1 }
 0x7d6   : > { %v5453_v51 = vpop.f32.mrb[155].mxu1 }
 0x7d9   : > { %v15184_v6 = vpop.f32.mrb[156].mxu1 }
 0x7da   : > { %v5458_v17 = vpop.f32.mrb[157].mxu1 }
 0x7dd   : > { %v15186_v56 = vpop.f32.mrb[158].mxu1 }
 0x7de   : > { %v5463_v23 = vpop.f32.mrb[159].mxu1 }
 0x7e1   : > { %v15188_v10 = vpop.f32.mrb[160].mxu1 }
 0x7e2   : > { %v5468_v42 = vpop.f32.mrb[161].mxu1 }
 0x7e3   : > { %v5823_v42 = vld [vmem:[%s16246_s5 + $0x10] sm:$0xff] }
 0x7e5   : > { %v15190_v61 = vpop.f32.mrb[162].mxu1 }
 0x7e6   : > { %v5473_v0 = vpop.f32.mrb[163].mxu1 }
 0x7e7   : > { %v5824_v0 = vld [vmem:[%s16246_s5 + $0x18] sm:$0xff] }
 0x7e9   : > { %v15192_v39 = vpop.f32.mrb[164].mxu1 }
 0x7ea   : > { %v5478_v27 = vpop.f32.mrb[165].mxu1 }
 0x7ed   : > { %v15194_v24 = vpop.f32.mrb[166].mxu1 }
 0x7ee   : > { %v5483_v37 = vpop.f32.mrb[167].mxu1 }
 0x7f1   : > { %v15196_v29 = vpop.f32.mrb[168].mxu1 }
 0x7f2   : > { %v5488_v3 = vpop.f32.mrb[169].mxu1 }
 0x7f3   : > { %v10791_v3 = vpack.c.bf16 %v5824_v0, %v5823_v42 }
 0x7f5   : > { %v15198_v8 = vpop.f32.mrb[170].mxu1 }
 0x7f6   : > { %v5493_v48 = vpop.f32.mrb[171].mxu1 }
 0x7f9   : > { %v15200_v59 = vpop.f32.mrb[172].mxu1 }
 0x7fa   : > { %v5498_v50 = vpop.f32.mrb[173].mxu1 }
 0x7fd   : > { %v15202_v28 = vpop.f32.mrb[174].mxu1 }
 0x7fe   : > { %v5503_v45 = vpop.f32.mrb[175].mxu1 }
 0x7ff   : > { %v5826_v45 = vld [vmem:[%s16246_s5 + $0x28] sm:$0xff] }
 0x801   : > { %v15204_v34 = vpop.f32.mrb[176].mxu1 }
 0x802   : > { %v5508_v7 = vpop.f32.mrb[177].mxu1 }
 0x805   : > { %v15206_v41 = vpop.f32.mrb[178].mxu1 }
 0x806   : > { %v5513_v26 = vpop.f32.mrb[179].mxu1 }
 0x809   : > { %v15208_v5 = vpop.f32.mrb[180].mxu1 }
 0x80a   : > { %v5518_v15 = vpop.f32.mrb[181].mxu1 }
 0x80d   : > { %v15216_v38 = vpop.f32.mrb[182].mxu1 }
 0x80e   : > { %v5523_v13 = vpop.f32.mrb[183].mxu1 }
 0x80f   : > { %v5827_v13 = vld [vmem:[%s16246_s5 + $0x30] sm:$0xff] }
 0x811   : > { %v15218_v12 = vpop.f32.mrb[184].mxu1 }
 0x812   : > { %v5528_v49 = vpop.f32.mrb[185].mxu1 }
 0x813   : > { %v5828_v49 = vld [vmem:[%s16246_s5 + $0x38] sm:$0xff] }
 0x815   : > { %v15220_v2 = vpop.f32.mrb[186].mxu1 }
 0x816   : > { %v5533_v40 = vpop.f32.mrb[187].mxu1 }
 0x819   : > { %v15222_v18 = vpop.f32.mrb[188].mxu1 }
 0x81a   : > { %v5538_v31 = vpop.f32.mrb[189].mxu1 }
 0x81b   : > { %v10799_v31 = vpack.c.bf16 %v5828_v49, %v5827_v13 }
 0x81d   : > { %v15224_v55 = vpop.f32.mrb[190].mxu1 }
 0x81e   : > { %v5543_v53 = vpop.f32.mrb[191].mxu1 }
 0x821   : > { %v5630_v44 = vpop.f32.mrb[192].mxu1 }
 0x822   : > { %v15227_v4 = vmax.f32 %v15104_v58, %v5630_v44  ;;  %v5632_v14 = vpop.f32.mrb[193].mxu1 }
 0x824   : > { %v5862_v11 = vrot.slane %v15227_v4, 1 }
 0x825   : > { %v5635_v33 = vpop.f32.mrb[194].mxu1 }
 0x826   : > { %v15230_v43 = vmax.f32 %v15115_v63, %v5635_v33  ;;  %v5637_v9 = vpop.f32.mrb[195].mxu1 }
 0x828   : > { %v5863_v25 = vrot.slane %v15230_v43, 1 }
 0x829   : > { %v5640_v32 = vpop.f32.mrb[196].mxu1 }
 0x82a   : > { %v15235_v20 = vmax.f32 %v15126_v22, %v5640_v32  ;;  %v5642_v51 = vpop.f32.mrb[197].mxu1  ;;  %v5864_v17 = vsel %vm664_vm3, %v5862_v11, %v5863_v25  ;;  %v5829_v11 = vld [vmem:[%s16246_s5 + $0x40] sm:$0xff]  ;;  %v9190_v25 = vld [vmem:[%s16246_s5 + $0x98] sm:$0xff] }
 0x82b   : > { %9757 = vmatprep.mubr.msk.f32.mxu1 %vm5920_vm8, %v5864_v17 }
 0x82c   : > { %v5865_v22 = vrot.slane %v15235_v20, 1 }
 0x82d   : > { %v5645_v58 = vpop.f32.mrb[198].mxu1 }
 0x82e   : > { %v15240_v23 = vmax.f32 %v15137_v52, %v5645_v58  ;;  %v5647_v63 = vpop.f32.mrb[199].mxu1  ;;  %v5825_v52 = vld [vmem:[%s16246_s5 + $0x20] sm:$0xff] }
 0x82f   : > { %v10795_v15 = vpack.c.bf16 %v5826_v45, %v5825_v52 }
 0x830   : > { %v5866_v27 = vrot.slane %v15240_v23, 1 }
 0x831   : > { %v5650_v37 = vpop.f32.mrb[200].mxu1 }
 0x832   : > { %v5867_v48 = vsel %vm664_vm3, %v5865_v22, %v5866_v27  ;;  %v5652_v50 = vpop.f32.mrb[201].mxu1  ;;  %v15258_v7 = vmax.f32 %v15142_v60, %v5650_v37 }
 0x833   : > { %9758 = vmatmul.mubr.msk.f32.vlgmr.msra.gmra.mrb[0].mxu1 %vm5920_vm8, %v5867_v48 }
 0x834   : > { %10790 = vmatpush3.bf16.msra.mxu1 %v10787_v36  ;;  %v5868_v60 = vrot.slane %v15258_v7, 1 }
 0x835   : > { %v5655_v26 = vpop.f32.mrb[202].mxu1  ;;  %10792 = vmatprep.subr.bf16.mxu1 %v10791_v3 }
 0x836   : > { %v15262_v47 = vmax.f32 %v15150_v35, %v5655_v26  ;;  %v5657_v62 = vpop.f32.mrb[203].mxu1 }
 0x838   : > { %v5869_v40 = vrot.slane %v15262_v47, 1  ;;  %10794 = vmatpush3.bf16.msra.mxu1 %v10791_v3 }
 0x839   : > { %v5660_v36 = vpop.f32.mrb[204].mxu1  ;;  %10796 = vmatprep.subr.bf16.mxu1 %v10795_v15 }
 0x83a   : > { %v15273_v35 = vmax.f32 %v15155_v19, %v5660_v36  ;;  %v5662_v53 = vpop.f32.mrb[205].mxu1  ;;  %v5870_v44 = vsel %vm664_vm3, %v5868_v60, %v5869_v40  ;;  %v9189_v19 = vld [vmem:[%s16246_s5 + $0x90] sm:$0xff] }
 0x83b   : > { %9760 = vmatprep.mubr.msk.f32.mxu1 %vm5920_vm8, %v5870_v44  ;;  %v15291_v17 = vpack.c.bf16 %v9190_v25, %v9189_v19 }
 0x83c   : > { %10798 = vmatpush3.bf16.msra.mxu1 %v10795_v15  ;;  %v5871_v51 = vrot.slane %v15273_v35, 1 }
 0x83d   : > { %v5665_v14 = vpop.f32.mrb[206].mxu1  ;;  %10800 = vmatprep.subr.bf16.mxu1 %v10799_v31 }
 0x83e   : > { %v15278_v33 = vmax.f32 %v15160_v16, %v5665_v14  ;;  %v5667_v9 = vpop.f32.mrb[207].mxu1 }
 0x840   : > { %v5872_v32 = vrot.slane %v15278_v33, 1  ;;  %10802 = vmatpush3.bf16.msra.mxu1 %v10799_v31 }
 0x841   : > { %v5670_v16 = vpop.f32.mrb[208].mxu1  ;;  %9797 = vmatprep.subr.mxu1 %v5829_v11 }
 0x842   : > { %v15294_v58 = vmax.f32 %v15165_v1, %v5670_v16  ;;  %v5672_v63 = vpop.f32.mrb[209].mxu1  ;;  %v5873_v42 = vsel %vm664_vm3, %v5871_v51, %v5872_v32 }
 0x843   : > { %9761 = vmatmul.mubr.msk.f32.gmra.mrb[2].mxu1 %vm5920_vm8, %v5873_v42 }
 0x844   : > { %9798 = vmatpush3.msra.mxu1 %v5829_v11  ;;  %v5874_v37 = vrot.slane %v15294_v58, 1 }
 0x845   : > { %v5675_v0 = vpop.f32.mrb[210].mxu1  ;;  %10804 = vmatprep.subr.bf16.mxu1 %v15291_v17 }
 0x846   : > { %v15300_v22 = vmax.f32 %v15170_v46, %v5675_v0  ;;  %v5677_v27 = vpop.f32.mrb[211].mxu1 }
 0x848   : > { %v5875_v3 = vrot.slane %v15300_v22, 1 }
 0x849   : > { %v5680_v48 = vpop.f32.mrb[212].mxu1 }
 0x84a   : > { %v15305_v1 = vmax.f32 %v15175_v57, %v5680_v48  ;;  %v5682_v50 = vpop.f32.mrb[213].mxu1  ;;  %v5876_v52 = vsel %vm664_vm3, %v5874_v37, %v5875_v3 }
 0x84b   : > { %9763 = vmatprep.mubr.msk.f32.mxu1 %vm5920_vm8, %v5876_v52 }
 0x84c   : > { %v5877_v62 = vrot.slane %v15305_v1, 1 }
 0x84d   : > { %v5685_v45 = vpop.f32.mrb[214].mxu1 }
 0x84e   : > { %v15310_v26 = vmax.f32 %v15178_v54, %v5685_v45  ;;  %v5687_v46 = vpop.f32.mrb[215].mxu1 }
 0x850   : > { %v5878_v15 = vrot.slane %v15310_v26, 1 }
 0x851   : > { %v5690_v13 = vpop.f32.mrb[216].mxu1 }
 0x852   : > { %v15315_v49 = vmax.f32 %v15180_v30, %v5690_v13  ;;  %v5692_v57 = vpop.f32.mrb[217].mxu1  ;;  %v5879_v60 = vsel %vm664_vm3, %v5877_v62, %v5878_v15 }
 0x853   : > { %9764 = vmatmul.mubr.msk.f32.gmra.mrb[4].mxu1 %vm5920_vm8, %v5879_v60 }
 0x854   : > { %v5880_v31 = vrot.slane %v15315_v49, 1 }
 0x855   : > { %v5695_v40 = vpop.f32.mrb[218].mxu1 }
 0x856   : > { %v15320_v36 = vmax.f32 %v15182_v21, %v5695_v40  ;;  %v5697_v54 = vpop.f32.mrb[219].mxu1 }
 0x858   : > { %v5881_v53 = vrot.slane %v15320_v36, 1 }
 0x859   : > { %v5700_v44 = vpop.f32.mrb[220].mxu1 }
 0x85a   : > { %v15325_v14 = vmax.f32 %v15184_v6, %v5700_v44  ;;  %v5702_v30 = vpop.f32.mrb[221].mxu1  ;;  %v5882_v9 = vsel %vm664_vm3, %v5880_v31, %v5881_v53 }
 0x85b   : > { %9766 = vmatprep.mubr.msk.f32.mxu1 %vm5920_vm8, %v5882_v9 }
 0x85c   : > { %v5883_v32 = vrot.slane %v15325_v14, 1 }
 0x85d   : > { %v5705_v11 = vpop.f32.mrb[222].mxu1 }
 0x85e   : > { %v15330_v19 = vmax.f32 %v15186_v56, %v5705_v11  ;;  %v5707_v21 = vpop.f32.mrb[223].mxu1 }
 0x860   : > { %v5884_v25 = vrot.slane %v15330_v19, 1 }
 0x861   : > { %v5710_v51 = vpop.f32.mrb[224].mxu1 }
 0x862   : > { %v15335_v16 = vmax.f32 %v15188_v10, %v5710_v51  ;;  %v5712_v6 = vpop.f32.mrb[225].mxu1  ;;  %v5885_v63 = vsel %vm664_vm3, %v5883_v32, %v5884_v25 }
 0x863   : > { %9767 = vmatmul.mubr.msk.f32.gmra.mrb[6].mxu1 %vm5920_vm8, %v5885_v63 }
 0x864   : > { %v5886_v27 = vrot.slane %v15335_v16, 1 }
 0x865   : > { %v5715_v42 = vpop.f32.mrb[226].mxu1 }
 0x866   : > { %v15340_v0 = vmax.f32 %v15190_v61, %v5715_v42  ;;  %v5717_v56 = vpop.f32.mrb[227].mxu1 }
 0x868   : > { %v5887_v37 = vrot.slane %v15340_v0, 1 }
 0x869   : > { %v5720_v3 = vpop.f32.mrb[228].mxu1 }
 0x86a   : > { %v15345_v48 = vmax.f32 %v15192_v39, %v5720_v3  ;;  %v5722_v10 = vpop.f32.mrb[229].mxu1  ;;  %v5888_v50 = vsel %vm664_vm3, %v5886_v27, %v5887_v37 }
 0x86b   : > { %9769 = vmatprep.mubr.msk.f32.mxu1 %vm5920_vm8, %v5888_v50 }
 0x86c   : > { %v5889_v15 = vrot.slane %v15345_v48, 1 }
 0x86d   : > { %v5725_v52 = vpop.f32.mrb[230].mxu1 }
 0x86e   : > { %v15350_v45 = vmax.f32 %v15194_v24, %v5725_v52  ;;  %v5727_v61 = vpop.f32.mrb[231].mxu1 }
 0x870   : > { %v5890_v46 = vrot.slane %v15350_v45, 1 }
 0x871   : > { %v5730_v62 = vpop.f32.mrb[232].mxu1 }
 0x872   : > { %v15355_v13 = vmax.f32 %v15196_v29, %v5730_v62  ;;  %v5732_v39 = vpop.f32.mrb[233].mxu1  ;;  %v5891_v57 = vsel %vm664_vm3, %v5889_v15, %v5890_v46 }
 0x873   : > { %9770 = vmatmul.mubr.msk.f32.gmra.mrb[8].mxu1 %vm5920_vm8, %v5891_v57 }
 0x874   : > { %v5892_v54 = vrot.slane %v15355_v13, 1 }
 0x875   : > { %v5735_v60 = vpop.f32.mrb[234].mxu1 }
 0x876   : > { %v15360_v40 = vmax.f32 %v15198_v8, %v5735_v60  ;;  %v5737_v24 = vpop.f32.mrb[235].mxu1 }
 0x878   : > { %v5893_v31 = vrot.slane %v15360_v40, 1 }
 0x879   : > { %v5740_v53 = vpop.f32.mrb[236].mxu1 }
 0x87a   : > { %v15365_v44 = vmax.f32 %v15200_v59, %v5740_v53  ;;  %v5742_v29 = vpop.f32.mrb[237].mxu1  ;;  %v5894_v30 = vsel %vm664_vm3, %v5892_v54, %v5893_v31 }
 0x87b   : > { %9772 = vmatprep.mubr.msk.f32.mxu1 %vm5920_vm8, %v5894_v30 }
 0x87c   : > { %v5895_v8 = vrot.slane %v15365_v44, 1  ;;  %v6308_v25 = vrot.slane %v15365_v44, 2  ;;  %v6559_v32 = vrot.slane %v15365_v44, 3  ;;  %v6810_v56 = vrot.slane %v15365_v44, 4 }
 0x87d   : > { %v5745_v9 = vpop.f32.mrb[238].mxu1 }
 0x87e   : > { %v5812_v11 = vmax.f32 %v15202_v28, %v5745_v9  ;;  %v5747_v21 = vpop.f32.mrb[239].mxu1 }
 0x880   : > { %v5896_v51 = vrot.slane %v5812_v11, 1  ;;  %v6309_v6 = vrot.slane %v5812_v11, 2  ;;  %v6560_v63 = vrot.slane %v5812_v11, 3  ;;  %v6811_v59 = vrot.slane %v5812_v11, 4 }
 0x881   : > { %v5750_v42 = vpop.f32.mrb[240].mxu1 }
 0x882   : > { %v15375_v27 = vmax.f32 %v15204_v34, %v5750_v42  ;;  %v5752_v37 = vpop.f32.mrb[241].mxu1  ;;  %v5897_v28 = vsel %vm664_vm3, %v5895_v8, %v5896_v51  ;;  %v15379_v3 = vsel %vm1698_vm5, %v6308_v25, %v6309_v6  ;;  %v15382_v10 = vsel %vm2371_vm6, %v6559_v32, %v6560_v63 }
 0x883   : > { %9773 = vmatmul.mubr.msk.f32.gmra.mrb[10].mxu1 %vm5920_vm8, %v5897_v28  ;;  %v15386_v50 = vsel %vm883_vm0, %v6810_v56, %v6811_v59 }
 0x884   : > { %v5898_v34 = vrot.slane %v15375_v27, 1  ;;  %v6311_v15 = vrot.slane %v15375_v27, 2  ;;  %v6562_v62 = vrot.slane %v15375_v27, 3  ;;  %v6813_v31 = vrot.slane %v15375_v27, 4 }
 0x885   : > { %v5755_v52 = vpop.f32.mrb[242].mxu1 }
 0x886   : > { %v5814_v61 = vmax.f32 %v15206_v41, %v5755_v52  ;;  %v5757_v46 = vpop.f32.mrb[243].mxu1 }
 0x888   : > { %v5899_v39 = vrot.slane %v5814_v61, 1  ;;  %v6312_v57 = vrot.slane %v5814_v61, 2  ;;  %v6563_v60 = vrot.slane %v5814_v61, 3  ;;  %v6814_v24 = vrot.slane %v5814_v61, 4 }
 0x889   : > { %v5760_v54 = vpop.f32.mrb[244].mxu1 }
 0x88a   : > { %v15394_v53 = vmax.f32 %v15208_v5, %v5760_v54  ;;  %v5762_v29 = vpop.f32.mrb[245].mxu1  ;;  %v5900_v41 = vsel %vm664_vm3, %v5898_v34, %v5899_v39  ;;  %v15398_v30 = vsel %vm1698_vm5, %v6311_v15, %v6312_v57  ;;  %v15401_v9 = vsel %vm2371_vm6, %v6562_v62, %v6563_v60 }
 0x88b   : > { %9775 = vmatprep.mubr.msk.f32.mxu1 %vm5920_vm8, %v5900_v41  ;;  %v15405_v11 = vsel %vm883_vm0, %v6813_v31, %v6814_v24 }
 0x88c   : > { %v5901_v5 = vrot.slane %v15394_v53, 1  ;;  %v6314_v32 = vrot.slane %v15394_v53, 2  ;;  %v6565_v51 = vrot.slane %v15394_v53, 3  ;;  %v6816_v37 = vrot.slane %v15394_v53, 4 }
 0x88d   : > { %v5765_v21 = vpop.f32.mrb[246].mxu1 }
 0x88e   : > { %v5816_v8 = vmax.f32 %v15216_v38, %v5765_v21  ;;  %v5767_v25 = vpop.f32.mrb[247].mxu1 }
 0x890   : > { %v5902_v6 = vrot.slane %v5816_v8, 1  ;;  %v6315_v63 = vrot.slane %v5816_v8, 2  ;;  %v6566_v59 = vrot.slane %v5816_v8, 3  ;;  %v6817_v42 = vrot.slane %v5816_v8, 4 }
 0x891   : > { %v5770_v56 = vpop.f32.mrb[248].mxu1 }
 0x892   : > { %v15413_v28 = vmax.f32 %v15218_v12, %v5770_v56  ;;  %v5772_v52 = vpop.f32.mrb[249].mxu1  ;;  %v5903_v38 = vsel %vm664_vm3, %v5901_v5, %v5902_v6  ;;  %v15417_v61 = vsel %vm1698_vm5, %v6314_v32, %v6315_v63  ;;  %v15420_v46 = vsel %vm2371_vm6, %v6565_v51, %v6566_v59 }
 0x893   : > { %9776 = vmatmul.mubr.msk.f32.gmra.mrb[12].mxu1 %vm5920_vm8, %v5903_v38  ;;  %v15424_v34 = vsel %vm883_vm0, %v6816_v37, %v6817_v42 }
 0x894   : > { %v5904_v12 = vrot.slane %v15413_v28, 1  ;;  %v6317_v57 = vrot.slane %v15413_v28, 2  ;;  %v6568_v60 = vrot.slane %v15413_v28, 3  ;;  %v6819_v21 = vrot.slane %v15413_v28, 4 }
 0x895   : > { %v5775_v15 = vpop.f32.mrb[250].mxu1 }
 0x896   : > { %v5818_v62 = vmax.f32 %v15220_v2, %v5775_v15  ;;  %v5777_v39 = vpop.f32.mrb[251].mxu1 }
 0x898   : > { %v5905_v24 = vrot.slane %v5818_v62, 1  ;;  %v6318_v54 = vrot.slane %v5818_v62, 2  ;;  %v6569_v31 = vrot.slane %v5818_v62, 3  ;;  %v6820_v29 = vrot.slane %v5818_v62, 4 }
 0x899   : > { %v5780_v41 = vpop.f32.mrb[252].mxu1 }
 0x89a   : > { %v15432_v8 = vmax.f32 %v15222_v18, %v5780_v41  ;;  %v5782_v25 = vpop.f32.mrb[253].mxu1  ;;  %v5906_v2 = vsel %vm664_vm3, %v5904_v12, %v5905_v24  ;;  %v15436_v5 = vsel %vm1698_vm5, %v6317_v57, %v6318_v54  ;;  %v15439_v32 = vsel %vm2371_vm6, %v6568_v60, %v6569_v31  ;;  %v9191_v12 = vld [vmem:[%s16246_s5 + $0xa0] sm:$0xff]  ;;  %v7068_v31 = vld [vmem:[%s16250_s9 + $0x8] sm:$0xff] }
 0x89b   : > { %9778 = vmatprep.mubr.msk.f32.mxu1 %vm5920_vm8, %v5906_v2  ;;  %v15443_v51 = vsel %vm883_vm0, %v6819_v21, %v6820_v29  ;;  %v7067_v54 = vld [vmem:[%s16250_s9] sm:$0xff]  ;;  %v7069_v29 = vld [vmem:[%s16250_s9 + $0x10] sm:$0xff]  ;;  %v7070_v21 = vld [vmem:[%s16250_s9 + $0x18] sm:$0xff] }
 0x89c   : > { %v5907_v18 = vrot.slane %v15432_v8, 1  ;;  %v6320_v42 = vrot.slane %v15432_v8, 2  ;;  %v6571_v56 = vrot.slane %v15432_v8, 3  ;;  %v6822_v37 = vrot.slane %v15432_v8, 4  ;;  %v9193_v2 = vld [vmem:[%s16246_s5 + $0xb0] sm:$0xff] }
 0x89d   : > { %v5785_v6 = vpop.f32.mrb[254].mxu1  ;;  %v10851_v41 = vpack.c.bf16 %v7068_v31, %v7067_v54  ;;  %v9214_v54 = vld [vmem:[%s16246_s5 + $0xd8] sm:$0xff] }
 0x89e   : > { %v5820_v63 = vmax.f32 %v15224_v55, %v5785_v6  ;;  %v5787_v59 = vpop.f32.mrb[255].mxu1  ;;  %v9192_v55 = vld [vmem:[%s16246_s5 + $0xa8] sm:$0xff]  ;;  %v10855_v6 = vpack.c.bf16 %v7070_v21, %v7069_v29  ;;  %v9215_v29 = vld [vmem:[%s16246_s5 + $0xe0] sm:$0xff]  ;;  %v7078_v21 = vld [vmem:[%s16250_s9 + $0x58] sm:$0xff] }
 0x89f   : > { %v10807_v25 = vpack.c.bf16 %v9192_v55, %v9191_v12  ;;  %10852 = vmatprep.subr.bf16.mxu0 %v10851_v41  ;;  %v7071_v59 = vld [vmem:[%s16250_s9 + $0x20] sm:$0xff]  ;;  %v7076_v12 = vld [vmem:[%s16250_s9 + $0x48] sm:$0xff]  ;;  %v9197_v55 = vld [vmem:[%s16246_s5 + $0xd0] sm:$0xff] }
 0x8a0   : > { %v5908_v52 = vrot.slane %v5820_v63, 1  ;;  %v6321_v38 = vrot.slane %v5820_v63, 2  ;;  %v6572_v15 = vrot.slane %v5820_v63, 3  ;;  %v6823_v62 = vrot.slane %v5820_v63, 4  ;;  %v9194_v63 = vld [vmem:[%s16246_s5 + $0xb8] sm:$0xff]  ;;  %10854 = vmatpush3.bf16.msra.mxu0 %v10851_v41  ;;  %v7077_v41 = vld [vmem:[%s16250_s9 + $0x50] sm:$0xff] }
 0x8a1   : > { %10856 = vmatprep.subr.bf16.mxu0 %v10855_v6 }
 0x8a2   : > { %v5909_v39 = vsel %vm664_vm3, %v5907_v18, %v5908_v52  ;;  %v15458_v57 = vsel %vm1698_vm5, %v6320_v42, %v6321_v38  ;;  %v15461_v60 = vsel %vm2371_vm6, %v6571_v56, %v6572_v15  ;;  %v15464_v24 = vsel %vm883_vm0, %v6822_v37, %v6823_v62  ;;  %v7072_v18 = vld [vmem:[%s16250_s9 + $0x28] sm:$0xff]  ;;  %v9195_v56 = vld [vmem:[%s16246_s5 + $0xc0] sm:$0xff]  ;;  %v7073_v38 = vld [vmem:[%s16250_s9 + $0x30] sm:$0xff] }
 0x8a3   : > { %9779 = vmatmul.mubr.msk.f32.gmra.mrb[14].mxu1 %vm5920_vm8, %v5909_v39  ;;  %v10811_v42 = vpack.c.bf16 %v9194_v63, %v9193_v2  ;;  %v10859_v37 = vpack.c.bf16 %v7072_v18, %v7071_v59  ;;  %v9196_v52 = vld [vmem:[%s16246_s5 + $0xc8] sm:$0xff]  ;;  %v7075_v39 = vld [vmem:[%s16250_s9 + $0x40] sm:$0xff]  ;;  %v10871_v2 = vpack.c.bf16 %v7078_v21, %v7077_v41  ;;  %v7081_v18 = vld [vmem:[%s16250_s9 + $0x70] sm:$0xff]  ;;  %v6287_v41 = vrot.slane %v15294_v58, 2 }
 0x8a4   : > { %9799 = vmatprep.mubr.msk.f32.mxu1 %vm5920_vm8, %v15227_v4  ;;  %10858 = vmatpush3.bf16.msra.mxu0 %v10855_v6  ;;  %v10815_v15 = vpack.c.bf16 %v9196_v52, %v9195_v56  ;;  %v10867_v31 = vpack.c.bf16 %v7076_v12, %v7075_v39  ;;  %v7079_v6 = vld [vmem:[%s16250_s9 + $0x60] sm:$0xff]  ;;  %v7080_v63 = vld [vmem:[%s16250_s9 + $0x68] sm:$0xff]  ;;  %v6275_v52 = vrot.slane %v15227_v4, 2  ;;  %v6285_v12 = vrot.slane %v15278_v33, 2 }
 0x8a5   : > { %10860 = vmatprep.subr.bf16.mxu0 %v10859_v37  ;;  %v10875_v59 = vpack.c.bf16 %v7080_v63, %v7079_v6  ;;  %v9220_v63 = vld [vmem:[%s16246_s5 + $0x108] sm:$0xff] }
 0x8a7   : > { %9800 = vmatmul.mubr.msk.f32.vlgmr.msra.gmra.mrb[0].mxu1 %vm5920_vm8, %v15235_v20 }
 0x8a8   : > { %9802 = vmatprep.mubr.msk.f32.mxu1 %vm5920_vm8, %v15258_v7  ;;  %10806 = vmatpush3.bf16.msra.mxu1 %v15291_v17  ;;  %v7074_v17 = vld [vmem:[%s16250_s9 + $0x38] sm:$0xff] }
 0x8a9   : > { %10808 = vmatprep.subr.bf16.mxu1 %v10807_v25  ;;  %v10863_v62 = vpack.c.bf16 %v7074_v17, %v7073_v38  ;;  %10862 = vmatpush3.bf16.msra.mxu0 %v10859_v37  ;;  %v6276_v37 = vrot.slane %v15230_v43, 2  ;;  %v9217_v38 = vld [vmem:[%s16246_s5 + $0xf0] sm:$0xff]  ;;  %v6278_v17 = vrot.slane %v15235_v20, 2 }
 0x8ab   : > { %9803 = vmatmul.mubr.msk.f32.gmra.mrb[2].mxu1 %vm5920_vm8, %v15273_v35  ;;  %10864 = vmatprep.subr.bf16.mxu0 %v10863_v62 }
 0x8ac   : > { %9805 = vmatprep.mubr.msk.f32.mxu1 %vm5920_vm8, %v15294_v58  ;;  %10810 = vmatpush3.bf16.msra.mxu1 %v10807_v25  ;;  %v10819_v25 = vpack.c.bf16 %v9215_v29, %v9214_v54  ;;  %v6284_v29 = vrot.slane %v15273_v35, 2 }
 0x8ad   : > { %10812 = vmatprep.subr.bf16.mxu1 %v10811_v42  ;;  %10866 = vmatpush3.bf16.msra.mxu0 %v10863_v62 }
 0x8ae   : > { %10868 = vmatprep.subr.bf16.mxu0 %v10867_v31  ;;  %v6286_v6 = vsel %vm1698_vm5, %v6284_v29, %v6285_v12  ;;  %v9240_v12 = vld [vmem:[%s16246_s5 + $0x128] sm:$0xff] }
 0x8af   : > { %9806 = vmatmul.mubr.msk.f32.gmra.mrb[4].mxu1 %vm5920_vm8, %v15305_v1 }
 0x8b0   : > { %9808 = vmatprep.mubr.msk.f32.mxu1 %vm5920_vm8, %v15315_v49  ;;  %10814 = vmatpush3.bf16.msra.mxu1 %v10811_v42  ;;  %v7082_v42 = vld [vmem:[%s16250_s9 + $0x78] sm:$0xff] }
 0x8b1   : > { %10816 = vmatprep.subr.bf16.mxu1 %v10815_v15  ;;  %10870 = vmatpush3.bf16.msra.mxu0 %v10867_v31  ;;  %v10879_v56 = vpack.c.bf16 %v7082_v42, %v7081_v18  ;;  %v6288_v31 = vrot.slane %v15300_v22, 2  ;;  %v6294_v18 = vrot.slane %v15320_v36, 2  ;;  %v6290_v42 = vrot.slane %v15305_v1, 2 }
 0x8b2   : > { %10872 = vmatprep.subr.bf16.mxu0 %v10871_v2 }
 0x8b3   : > { %9809 = vmatmul.mubr.msk.f32.gmra.mrb[6].mxu1 %vm5920_vm8, %v15325_v14 }
 0x8b4   : > { %9811 = vmatprep.mubr.msk.f32.mxu1 %vm5920_vm8, %v15335_v16  ;;  %10818 = vmatpush3.bf16.msra.mxu1 %v10815_v15  ;;  %v6281_v15 = vrot.slane %v15258_v7, 2 }
 0x8b5   : > { %9839 = vmatprep.subr.mxu1 %v9197_v55  ;;  %10874 = vmatpush3.bf16.msra.mxu0 %v10871_v2  ;;  %v6291_v2 = vrot.slane %v15310_v26, 2 }
 0x8b6   : > { %10876 = vmatprep.subr.bf16.mxu0 %v10875_v59 }
 0x8b7   : > { %9812 = vmatmul.mubr.msk.f32.gmra.mrb[8].mxu1 %vm5920_vm8, %v15345_v48 }
 0x8b8   : > { %9814 = vmatprep.mubr.msk.f32.mxu1 %vm5920_vm8, %v15355_v13  ;;  %9840 = vmatpush3.msra.mxu1 %v9197_v55  ;;  %v9219_v55 = vld [vmem:[%s16246_s5 + $0x100] sm:$0xff] }
 0x8b9   : > { %10820 = vmatprep.subr.bf16.mxu1 %v10819_v25  ;;  %10878 = vmatpush3.bf16.msra.mxu0 %v10875_v59  ;;  %v9221_v59 = vld [vmem:[%s16246_s5 + $0x110] sm:$0xff] }
 0x8ba   : > { %10880 = vmatprep.subr.bf16.mxu0 %v10879_v56 }
 0x8bb   : > { %9815 = vmatmul.mubr.msk.f32.gmra.mrb[10].mxu1 %vm5920_vm8, %v15365_v44  ;;  %v6279_v44 = vrot.slane %v15240_v23, 2 }
 0x8bc   : > { %9817 = vmatprep.mubr.msk.f32.mxu1 %vm5920_vm8, %v15375_v27  ;;  %v9216_v27 = vld [vmem:[%s16246_s5 + $0xe8] sm:$0xff] }
 0x8bd   : > { %10882 = vmatpush3.bf16.msra.mxu0 %v10879_v56  ;;  %v10823_v62 = vpack.c.bf16 %v9217_v38, %v9216_v27  ;;  %v6280_v39 = vsel %vm1698_vm5, %v6278_v17, %v6279_v44  ;;  %v6293_v56 = vrot.slane %v15315_v49, 2  ;;  %v6292_v44 = vsel %vm1698_vm5, %v6290_v42, %v6291_v2 }
 0x8be   : > { %v6300_v38 = vrot.slane %v15340_v0, 2  ;;  %v6303_v17 = vrot.slane %v15350_v45, 2  ;;  %v6527_v2 = vrot.slane %v15230_v43, 3 }
 0x8bf   : > { %9818 = vmatmul.mubr.msk.f32.gmra.mrb[12].mxu1 %vm5920_vm8, %v15394_v53  ;;  %v6277_v53 = vsel %vm1698_vm5, %v6275_v52, %v6276_v37  ;;  %v10831_v37 = vpack.c.bf16 %v9221_v59, %v9220_v63  ;;  %v6297_v52 = vrot.slane %v15330_v19, 2  ;;  %v6295_v27 = vsel %vm1698_vm5, %v6293_v56, %v6294_v18  ;;  %v9241_v59 = vld [vmem:[%s16246_s5 + $0x130] sm:$0xff] }
 0x8c0   : > { %9820 = vmatprep.mubr.msk.f32.mxu1 %vm5920_vm8, %v15413_v28  ;;  %v6282_v28 = vrot.slane %v15262_v47, 2  ;;  %v6530_v63 = vrot.slane %v15240_v23, 3  ;;  %v6536_v56 = vrot.slane %v15278_v33, 3 }
 0x8c2   : > { %v6283_v54 = vsel %vm1698_vm5, %v6281_v15, %v6282_v28  ;;  %v6299_v28 = vrot.slane %v15335_v16, 2 }
 0x8c3   : > { %9821 = vmatmul.mubr.msk.f32.gmra.mrb[14].mxu1 %vm5920_vm8, %v15432_v8  ;;  %v9218_v8 = vld [vmem:[%s16246_s5 + $0xf8] sm:$0xff] }
 0x8c4   : > { %9841 = vmatprep.mubr.msk.f32.mxu1 %vm5920_vm8, %v6277_v53  ;;  %v10827_v21 = vpack.c.bf16 %v9219_v55, %v9218_v8  ;;  %v6296_v53 = vrot.slane %v15325_v14, 2  ;;  %v6301_v8 = vsel %vm1698_vm5, %v6299_v28, %v6300_v38  ;;  %v6306_v55 = vrot.slane %v15360_v40, 2 }
 0x8c5   : > { %v6538_v38 = vrot.slane %v15294_v58, 3  ;;  %v6542_v28 = vrot.slane %v15310_v26, 3 }
 0x8c6   : > { %v6298_v15 = vsel %vm1698_vm5, %v6296_v53, %v6297_v52 }
 0x8c7   : > { %9842 = vmatmul.mubr.msk.f32.vlgmr.msra.gmra.mrb[0].mxu1 %vm5920_vm8, %v6280_v39  ;;  %v9239_v39 = vld [vmem:[%s16246_s5 + $0x120] sm:$0xff] }
 0x8c8   : > { %9844 = vmatprep.mubr.msk.f32.mxu1 %vm5920_vm8, %v6283_v54  ;;  %10822 = vmatpush3.bf16.msra.mxu1 %v10819_v25  ;;  %v6289_v25 = vsel %vm1698_vm5, %v6287_v41, %v6288_v31  ;;  %v6302_v54 = vrot.slane %v15345_v48, 2  ;;  %v6305_v31 = vrot.slane %v15355_v13, 2  ;;  %v10835_v29 = vpack.c.bf16 %v9240_v12, %v9239_v39 }
 0x8c9   : > { %10824 = vmatprep.subr.bf16.mxu1 %v10823_v62  ;;  %v6545_v12 = vrot.slane %v15320_v36, 3 }
 0x8ca   : > { %v6304_v41 = vsel %vm1698_vm5, %v6302_v54, %v6303_v17 }
 0x8cb   : > { %9845 = vmatmul.mubr.msk.f32.gmra.mrb[2].mxu1 %vm5920_vm8, %v6286_v6  ;;  %v6526_v6 = vrot.slane %v15227_v4, 3 }
 0x8cc   : > { %9847 = vmatprep.mubr.msk.f32.mxu1 %vm5920_vm8, %v6289_v25  ;;  %10826 = vmatpush3.bf16.msra.mxu1 %v10823_v62  ;;  %v9222_v62 = vld [vmem:[%s16246_s5 + $0x118] sm:$0xff]  ;;  %v6532_v25 = vrot.slane %v15258_v7, 3 }
 0x8cd   : > { %10828 = vmatprep.subr.bf16.mxu1 %v10827_v21 }
 0x8cf   : > { %9848 = vmatmul.mubr.msk.f32.gmra.mrb[4].mxu1 %vm5920_vm8, %v6292_v44  ;;  %v6539_v44 = vrot.slane %v15300_v22, 3 }
 0x8d0   : > { %9850 = vmatprep.mubr.msk.f32.mxu1 %vm5920_vm8, %v6295_v27  ;;  %10830 = vmatpush3.bf16.msra.mxu1 %v10827_v21  ;;  %v6307_v21 = vsel %vm1698_vm5, %v6305_v31, %v6306_v55  ;;  %v6535_v27 = vrot.slane %v15273_v35, 3  ;;  %v6544_v55 = vrot.slane %v15315_v49, 3  ;;  %v6548_v31 = vrot.slane %v15330_v19, 3 }
 0x8d1   : > { %10832 = vmatprep.subr.bf16.mxu1 %v10831_v37  ;;  %v6540_v39 = vsel %vm2371_vm6, %v6538_v38, %v6539_v44  ;;  %v6777_v44 = vrot.slane %v15227_v4, 4  ;;  %v9267_v38 = vld [vmem:[%s16250_s9 + $0x90] sm:$0xff]  ;;  %v6783_v4 = vrot.slane %v15258_v7, 4  ;;  %v6786_v7 = vrot.slane %v15273_v35, 4 }
 0x8d2   : > { %v6537_v17 = vsel %vm2371_vm6, %v6535_v27, %v6536_v56  ;;  %v6781_v27 = vrot.slane %v15240_v23, 4 }
 0x8d3   : > { %9851 = vmatmul.mubr.msk.f32.gmra.mrb[6].mxu1 %vm5920_vm8, %v6298_v15  ;;  %v9245_v15 = vld [vmem:[%s16246_s5 + $0x150] sm:$0xff] }
 0x8d4   : > { %9853 = vmatprep.mubr.msk.f32.mxu1 %vm5920_vm8, %v6301_v8  ;;  %10834 = vmatpush3.bf16.msra.mxu1 %v10831_v37  ;;  %v9243_v37 = vld [vmem:[%s16246_s5 + $0x140] sm:$0xff]  ;;  %v6541_v8 = vrot.slane %v15305_v1, 3 }
 0x8d5   : > { %9881 = vmatprep.subr.mxu1 %v9222_v62 }
 0x8d7   : > { %9854 = vmatmul.mubr.msk.f32.gmra.mrb[8].mxu1 %vm5920_vm8, %v6304_v41  ;;  %v6546_v41 = vsel %vm2371_vm6, %v6544_v55, %v6545_v12  ;;  %v6795_v12 = vrot.slane %v15315_v49, 4  ;;  %v6799_v55 = vrot.slane %v15330_v19, 4  ;;  %v6802_v49 = vrot.slane %v15340_v0, 4 }
 0x8d8   : > { %9856 = vmatprep.mubr.msk.f32.mxu1 %vm5920_vm8, %v6307_v21  ;;  %9882 = vmatpush3.msra.mxu1 %v9222_v62  ;;  %v9246_v62 = vld [vmem:[%s16246_s5 + $0x158] sm:$0xff]  ;;  %v6551_v21 = vrot.slane %v15340_v0, 3  ;;  %v6798_v19 = vrot.slane %v15325_v14, 4 }
 0x8d9   : > { %10836 = vmatprep.subr.bf16.mxu1 %v10835_v29  ;;  %v10847_v54 = vpack.c.bf16 %v9246_v62, %v9245_v15  ;;  %v6793_v15 = vrot.slane %v15310_v26, 4  ;;  %v6792_v26 = vrot.slane %v15305_v1, 4  ;;  %v9276_v0 = vld [vmem:[%s16250_s9 + $0xd8] sm:$0xff] }
 0x8db   : > { %9857 = vmatmul.mubr.msk.f32.gmra.mrb[10].mxu1 %vm5920_vm8, %v15379_v3  ;;  %v9242_v3 = vld [vmem:[%s16246_s5 + $0x138] sm:$0xff] }
 0x8dc   : > { %9859 = vmatprep.mubr.msk.f32.mxu1 %vm5920_vm8, %v15398_v30  ;;  %v6528_v30 = vsel %vm2371_vm6, %v6526_v6, %v6527_v2  ;;  %v10839_v18 = vpack.c.bf16 %v9242_v3, %v9241_v59  ;;  %v6547_v2 = vrot.slane %v15325_v14, 3  ;;  %v6550_v6 = vrot.slane %v15335_v16, 3  ;;  %v9247_v3 = vld [vmem:[%s16246_s5 + $0x160] sm:$0xff] }
 0x8de   : > { %v6549_v59 = vsel %vm2371_vm6, %v6547_v2, %v6548_v31  ;;  %v9273_v31 = vld [vmem:[%s16250_s9 + $0xc0] sm:$0xff]  ;;  %v6800_v2 = vsel %vm883_vm0, %v6798_v19, %v6799_v55 }
 0x8df   : > { %9860 = vmatmul.mubr.msk.f32.gmra.mrb[12].mxu1 %vm5920_vm8, %v15417_v61  ;;  %v6533_v61 = vrot.slane %v15262_v47, 3 }
 0x8e0   : > { %9862 = vmatprep.mubr.msk.f32.mxu1 %vm5920_vm8, %v15436_v5  ;;  %v6529_v5 = vrot.slane %v15235_v20, 3 }
 0x8e1   : > { %v6534_v52 = vsel %vm2371_vm6, %v6532_v25, %v6533_v61  ;;  %v9266_v61 = vld [vmem:[%s16250_s9 + $0x88] sm:$0xff]  ;;  %v6557_v25 = vrot.slane %v15360_v40, 3 }
 0x8e2   : > { %v6531_v42 = vsel %vm2371_vm6, %v6529_v5, %v6530_v63  ;;  %v6554_v63 = vrot.slane %v15350_v45, 3  ;;  %v6552_v5 = vsel %vm2371_vm6, %v6550_v6, %v6551_v21  ;;  %v6805_v21 = vrot.slane %v15350_v45, 4  ;;  %v9275_v6 = vld [vmem:[%s16250_s9 + $0xd0] sm:$0xff] }
 0x8e3   : > { %9863 = vmatmul.mubr.msk.f32.gmra.mrb[14].mxu1 %vm5920_vm8, %v15458_v57  ;;  %v9244_v57 = vld [vmem:[%s16246_s5 + $0x148] sm:$0xff]  ;;  %v6804_v45 = vrot.slane %v15345_v48, 4 }
 0x8e4   : > { %9883 = vmatprep.mubr.msk.f32.mxu1 %vm5920_vm8, %v6528_v30  ;;  %v10843_v53 = vpack.c.bf16 %v9244_v57, %v9243_v37  ;;  %v9265_v30 = vld [vmem:[%s16250_s9 + $0x80] sm:$0xff] }
 0x8e5   : > { %v10883_v56 = vpack.c.bf16 %v9266_v61, %v9265_v30  ;;  %v9277_v30 = vld [vmem:[%s16250_s9 + $0xe0] sm:$0xff]  ;;  %v9278_v61 = vld [vmem:[%s16250_s9 + $0xe8] sm:$0xff] }
 0x8e7   : > { %9884 = vmatmul.mubr.msk.f32.vlgmr.msra.gmra.mrb[0].mxu1 %vm5920_vm8, %v6531_v42  ;;  %v6556_v42 = vrot.slane %v15355_v13, 3 }
 0x8e8   : > { %9886 = vmatprep.mubr.msk.f32.mxu1 %vm5920_vm8, %v6534_v52  ;;  %10838 = vmatpush3.bf16.msra.mxu1 %v10835_v29  ;;  %v6543_v29 = vsel %vm2371_vm6, %v6541_v8, %v6542_v28  ;;  %v6778_v52 = vrot.slane %v15230_v43, 4  ;;  %v9269_v28 = vld [vmem:[%s16250_s9 + $0xa0] sm:$0xff] }
 0x8e9   : > { %10840 = vmatprep.subr.bf16.mxu1 %v10839_v18  ;;  %v6558_v57 = vsel %vm2371_vm6, %v6556_v42, %v6557_v25 }
 0x8ea   : > { %v6779_v43 = vsel %vm883_vm0, %v6777_v44, %v6778_v52 }
 0x8eb   : > { %9887 = vmatmul.mubr.msk.f32.gmra.mrb[2].mxu1 %vm5920_vm8, %v6537_v17 }
 0x8ec   : > { %9889 = vmatprep.mubr.msk.f32.mxu1 %vm5920_vm8, %v6540_v39  ;;  %10842 = vmatpush3.bf16.msra.mxu1 %v10839_v18  ;;  %v6553_v18 = vrot.slane %v15345_v48, 3  ;;  %v9271_v39 = vld [vmem:[%s16250_s9 + $0xb0] sm:$0xff]  ;;  %v10907_v48 = vpack.c.bf16 %v9278_v61, %v9277_v30 }
 0x8ed   : > { %10844 = vmatprep.subr.bf16.mxu1 %v10843_v53 }
 0x8ee   : > { %v6555_v37 = vsel %vm2371_vm6, %v6553_v18, %v6554_v63  ;;  %v6807_v63 = vrot.slane %v15355_v13, 4  ;;  %v9279_v13 = vld [vmem:[%s16250_s9 + $0xf0] sm:$0xff] }
 0x8ef   : > { %9890 = vmatmul.mubr.msk.f32.gmra.mrb[4].mxu1 %vm5920_vm8, %v6543_v29  ;;  %v6801_v29 = vrot.slane %v15335_v16, 4  ;;  %v6808_v16 = vrot.slane %v15360_v40, 4 }
 0x8f0   : > { %9892 = vmatprep.mubr.msk.f32.mxu1 %vm5920_vm8, %v6546_v41  ;;  %10846 = vmatpush3.bf16.msra.mxu1 %v10843_v53  ;;  %v6787_v53 = vrot.slane %v15278_v33, 4  ;;  %v6789_v33 = vrot.slane %v15294_v58, 4  ;;  %v6796_v58 = vrot.slane %v15320_v36, 4  ;;  %v9274_v36 = vld [vmem:[%s16250_s9 + $0xc8] sm:$0xff] }
 0x8f1   : > { %10848 = vmatprep.subr.bf16.mxu1 %v10847_v54  ;;  %v10899_v41 = vpack.c.bf16 %v9274_v36, %v9273_v31  ;;  %v6803_v14 = vsel %vm883_vm0, %v6801_v29, %v6802_v49  ;;  %v6809_v40 = vsel %vm883_vm0, %v6807_v63, %v6808_v16 }
 0x8f2   : > { %v6788_v62 = vsel %vm883_vm0, %v6786_v7, %v6787_v53  ;;  %v6797_v1 = vsel %vm883_vm0, %v6795_v12, %v6796_v58 }
 0x8f3   : > { %9893 = vmatmul.mubr.msk.f32.gmra.mrb[6].mxu1 %vm5920_vm8, %v6549_v59  ;;  %v10903_v59 = vpack.c.bf16 %v9276_v0, %v9275_v6  ;;  %v7406_v6 = vld [vmem:[%s16248_s7] sm:$0xff] }
 0x8f4   : > { %9895 = vmatprep.mubr.msk.f32.mxu1 %vm5920_vm8, %v6552_v5  ;;  %10850 = vmatpush3.bf16.msra.mxu1 %v10847_v54  ;;  %v6794_v54 = vsel %vm883_vm0, %v6792_v26, %v6793_v15  ;;  %v7483_v0 = vld [vmem:[%s16249_s8] sm:$0xff] }
 0x8f5   : > { %9923 = vmatprep.subr.mxu1 %v9247_v3 }
 0x8f7   : > { %9896 = vmatmul.mubr.msk.f32.gmra.mrb[8].mxu1 %vm5920_vm8, %v6555_v37 }
 0x8f8   : > { %9898 = vmatprep.mubr.msk.f32.mxu1 %vm5920_vm8, %v6558_v57  ;;  %9924 = vmatpush3.msra.mxu1 %v9247_v3  ;;  %v6806_v3 = vsel %vm883_vm0, %v6804_v45, %v6805_v21 }
 0x8f9   : > { %10884 = vmatprep.subr.bf16.mxu1 %v10883_v56 }
 0x8fb   : > { %9899 = vmatmul.mubr.msk.f32.gmra.mrb[10].mxu1 %vm5920_vm8, %v15382_v10  ;;  %v9268_v10 = vld [vmem:[%s16250_s9 + $0x98] sm:$0xff] }
 0x8fc   : > { %9901 = vmatprep.mubr.msk.f32.mxu1 %vm5920_vm8, %v15401_v9  ;;  %v6784_v9 = vrot.slane %v15262_v47, 4  ;;  %v10887_v23 = vpack.c.bf16 %v9268_v10, %v9267_v38  ;;  %v6790_v47 = vrot.slane %v15300_v22, 4  ;;  %v9272_v22 = vld [vmem:[%s16250_s9 + $0xb8] sm:$0xff] }
 0x8fd   : > { %v10895_v8 = vpack.c.bf16 %v9272_v22, %v9271_v39 }
 0x8fe   : > { %v6791_v35 = vsel %vm883_vm0, %v6789_v33, %v6790_v47 }
 0x8ff   : > { %9902 = vmatmul.mubr.msk.f32.gmra.mrb[12].mxu1 %vm5920_vm8, %v15420_v46  ;;  %v6780_v46 = vrot.slane %v15235_v20, 4  ;;  %v6785_v20 = vsel %vm883_vm0, %v6783_v4, %v6784_v9 }
 0x900   : > { %9904 = vmatprep.mubr.msk.f32.mxu1 %vm5920_vm8, %v15439_v32 }
 0x901   : > { %v6782_v32 = vsel %vm883_vm0, %v6780_v46, %v6781_v27 }
 0x903   : > { %9905 = vmatmul.mubr.msk.f32.gmra.mrb[14].mxu1 %vm5920_vm8, %v15461_v60  ;;  %v9270_v60 = vld [vmem:[%s16250_s9 + $0xa8] sm:$0xff] }
 0x904   : > { %9925 = vmatprep.mubr.msk.f32.mxu1 %vm5920_vm8, %v6779_v43  ;;  %v10891_v17 = vpack.c.bf16 %v9270_v60, %v9269_v28 }
 0x907   : > { %9926 = vmatmul.mubr.msk.f32.vlgmr.msra.gmra.mrb[0].mxu1 %vm5920_vm8, %v6782_v32 }
 0x908   : > { %9928 = vmatprep.mubr.msk.f32.mxu1 %vm5920_vm8, %v6785_v20  ;;  %10886 = vmatpush3.bf16.msra.mxu1 %v10883_v56 }
 0x909   : > { %10888 = vmatprep.subr.bf16.mxu1 %v10887_v23 }
 0x90b   : > { %9929 = vmatmul.mubr.msk.f32.gmra.mrb[2].mxu1 %vm5920_vm8, %v6788_v62 }
 0x90c   : > { %9931 = vmatprep.mubr.msk.f32.mxu1 %vm5920_vm8, %v6791_v35  ;;  %10890 = vmatpush3.bf16.msra.mxu1 %v10887_v23 }
 0x90d   : > { %10892 = vmatprep.subr.bf16.mxu1 %v10891_v17 }
 0x90f   : > { %9932 = vmatmul.mubr.msk.f32.gmra.mrb[4].mxu1 %vm5920_vm8, %v6794_v54 }
 0x910   : > { %9934 = vmatprep.mubr.msk.f32.mxu1 %vm5920_vm8, %v6797_v1  ;;  %10894 = vmatpush3.bf16.msra.mxu1 %v10891_v17 }
 0x911   : > { %10896 = vmatprep.subr.bf16.mxu1 %v10895_v8 }
 0x913   : > { %9935 = vmatmul.mubr.msk.f32.gmra.mrb[6].mxu1 %vm5920_vm8, %v6800_v2 }
 0x914   : > { %9937 = vmatprep.mubr.msk.f32.mxu1 %vm5920_vm8, %v6803_v14  ;;  %10898 = vmatpush3.bf16.msra.mxu1 %v10895_v8 }
 0x915   : > { %10900 = vmatprep.subr.bf16.mxu1 %v10899_v41 }
 0x917   : > { %9938 = vmatmul.mubr.msk.f32.gmra.mrb[8].mxu1 %vm5920_vm8, %v6806_v3 }
 0x918   : > { %9940 = vmatprep.mubr.msk.f32.mxu1 %vm5920_vm8, %v6809_v40  ;;  %10902 = vmatpush3.bf16.msra.mxu1 %v10899_v41 }
 0x919   : > { %10904 = vmatprep.subr.bf16.mxu1 %v10903_v59 }
 0x91b   : > { %9941 = vmatmul.mubr.msk.f32.gmra.mrb[10].mxu1 %vm5920_vm8, %v15386_v50  ;;  %v9280_v50 = vld [vmem:[%s16250_s9 + $0xf8] sm:$0xff] }
 0x91c   : > { %9943 = vmatprep.mubr.msk.f32.mxu1 %vm5920_vm8, %v15405_v11  ;;  %10906 = vmatpush3.bf16.msra.mxu1 %v10903_v59  ;;  %v10911_v11 = vpack.c.bf16 %v9280_v50, %v9279_v13 }
 0x91d   : > { %10908 = vmatprep.subr.bf16.mxu1 %v10907_v48 }
 0x91f   : > { %9944 = vmatmul.mubr.msk.f32.gmra.mrb[12].mxu1 %vm5920_vm8, %v15424_v34  ;;  %v15830_v34 = vld [vmem:[%s16247_s6] ss:$0 sm:$0xff] }
 0x920   : > { %9946 = vmatprep.mubr.msk.f32.mxu1 %vm5920_vm8, %v15443_v51  ;;  %10910 = vmatpush3.bf16.msra.mxu1 %v10907_v48 }
 0x921   : > { %10912 = vmatprep.subr.bf16.mxu1 %v10911_v11 }
 0x923   : > { %9947 = vmatmul.mubr.msk.f32.gmra.mrb[14].mxu1 %vm5920_vm8, %v15464_v24 }
 0x924   : > { %10914 = vmatpush3.bf16.msra.mxu1 %v10911_v11 }
 0x9da   : > { %v9927_v51 = vpop.f32.mrb[0].mxu1 }
 0x9db   : > { %v7036_v5 = vadd.f32 %v9927_v51, %v15830_v34  ;;  %v6933_v24 = vpop.f32.mrb[1].mxu1 }
 0x9dc   : > { %v7035_v25 = vadd.f32 %v15830_v34, %v6933_v24 }
 0x9dd   : > { %v7052_v56 = vmax.f32 %v7036_v5, 0.0 }
 0x9de   : > { %v7051_v18 = vmax.f32 %v7035_v25, 0.0  ;;  %v9930_v42 = vpop.f32.mrb[2].mxu1 }
 0x9df   : > { %v7038_v37 = vadd.f32 %v9930_v42, %v15830_v34  ;;  %v6943_v57 = vpop.f32.mrb[3].mxu1 }
 0x9e0   : > { %v7037_v52 = vadd.f32 %v15830_v34, %v6943_v57  ;;  %9981 = vmatprep.mubr.f32.mxu0 %v7051_v18  ;;  %10037 = vmatprep.mubr.f32.mxu1 %v7051_v18 }
 0x9e1   : > { %9982 = vmatmul.mubr.f32.vlgmr.msra.gmra.mrb[96].mxu0 %v7052_v56  ;;  %10038 = vmatmul.mubr.f32.vlgmr.msra.gmra.mrb[16].mxu1 %v7052_v56  ;;  %v7054_v38 = vmax.f32 %v7038_v37, 0.0 }
 0x9e2   : > { %v7053_v44 = vmax.f32 %v7037_v52, 0.0  ;;  %v9933_v27 = vpop.f32.mrb[4].mxu1 }
 0x9e3   : > { %v7040_v10 = vadd.f32 %v9933_v27, %v15830_v34  ;;  %v6953_v43 = vpop.f32.mrb[5].mxu1 }
 0x9e4   : > { %v7039_v9 = vadd.f32 %v15830_v34, %v6953_v43  ;;  %9984 = vmatprep.mubr.f32.mxu0 %v7053_v44  ;;  %10040 = vmatprep.mubr.f32.mxu1 %v7053_v44 }
 0x9e5   : > { %9985 = vmatmul.mubr.f32.gmra.mrb[98].mxu0 %v7054_v38  ;;  %10041 = vmatmul.mubr.f32.gmra.mrb[18].mxu1 %v7054_v38  ;;  %v7056_v23 = vmax.f32 %v7040_v10, 0.0 }
 0x9e6   : > { %v7055_v46 = vmax.f32 %v7039_v9, 0.0  ;;  %v9936_v4 = vpop.f32.mrb[6].mxu1 }
 0x9e7   : > { %v7042_v32 = vadd.f32 %v9936_v4, %v15830_v34  ;;  %v6963_v53 = vpop.f32.mrb[7].mxu1 }
 0x9e8   : > { %v7041_v28 = vadd.f32 %v15830_v34, %v6963_v53  ;;  %9987 = vmatprep.mubr.f32.mxu0 %v7055_v46  ;;  %10043 = vmatprep.mubr.f32.mxu1 %v7055_v46 }
 0x9e9   : > { %9988 = vmatmul.mubr.f32.gmra.mrb[100].mxu0 %v7056_v23  ;;  %10044 = vmatmul.mubr.f32.gmra.mrb[20].mxu1 %v7056_v23  ;;  %v7058_v47 = vmax.f32 %v7042_v32, 0.0 }
 0x9ea   : > { %v7057_v60 = vmax.f32 %v7041_v28, 0.0  ;;  %v9939_v20 = vpop.f32.mrb[8].mxu1 }
 0x9eb   : > { %v7044_v7 = vadd.f32 %v9939_v20, %v15830_v34  ;;  %v6973_v33 = vpop.f32.mrb[9].mxu1 }
 0x9ec   : > { %v7043_v17 = vadd.f32 %v15830_v34, %v6973_v33  ;;  %9990 = vmatprep.mubr.f32.mxu0 %v7057_v60  ;;  %10046 = vmatprep.mubr.f32.mxu1 %v7057_v60 }
 0x9ed   : > { %9991 = vmatmul.mubr.f32.gmra.mrb[102].mxu0 %v7058_v47  ;;  %10047 = vmatmul.mubr.f32.gmra.mrb[22].mxu1 %v7058_v47  ;;  %v7060_v39 = vmax.f32 %v7044_v7, 0.0 }
 0x9ee   : > { %v7059_v15 = vmax.f32 %v7043_v17, 0.0  ;;  %v9942_v62 = vpop.f32.mrb[10].mxu1 }
 0x9ef   : > { %v7046_v22 = vadd.f32 %v9942_v62, %v15830_v34  ;;  %v6983_v35 = vpop.f32.mrb[11].mxu1 }
 0x9f0   : > { %v7045_v58 = vadd.f32 %v15830_v34, %v6983_v35  ;;  %9993 = vmatprep.mubr.f32.mxu0 %v7059_v15  ;;  %10049 = vmatprep.mubr.f32.mxu1 %v7059_v15 }
 0x9f1   : > { %9994 = vmatmul.mubr.f32.gmra.mrb[104].mxu0 %v7060_v39  ;;  %10050 = vmatmul.mubr.f32.gmra.mrb[24].mxu1 %v7060_v39  ;;  %v7062_v8 = vmax.f32 %v7046_v22, 0.0 }
 0x9f2   : > { %v7061_v26 = vmax.f32 %v7045_v58, 0.0  ;;  %v9945_v12 = vpop.f32.mrb[12].mxu1 }
 0x9f3   : > { %v7048_v55 = vadd.f32 %v9945_v12, %v15830_v34  ;;  %v6993_v54 = vpop.f32.mrb[13].mxu1 }
 0x9f4   : > { %v7047_v31 = vadd.f32 %v15830_v34, %v6993_v54  ;;  %9996 = vmatprep.mubr.f32.mxu0 %v7061_v26  ;;  %10052 = vmatprep.mubr.f32.mxu1 %v7061_v26 }
 0x9f5   : > { %9997 = vmatmul.mubr.f32.gmra.mrb[106].mxu0 %v7062_v8  ;;  %10053 = vmatmul.mubr.f32.gmra.mrb[26].mxu1 %v7062_v8  ;;  %v7064_v49 = vmax.f32 %v7048_v55, 0.0 }
 0x9f6   : > { %v7063_v36 = vmax.f32 %v7047_v31, 0.0  ;;  %v9948_v1 = vpop.f32.mrb[14].mxu1 }
 0x9f7   : > { %v7050_v19 = vadd.f32 %v9948_v1, %v15830_v34  ;;  %v7003_v29 = vpop.f32.mrb[15].mxu1 }
 0x9f8   : > { %v7049_v41 = vadd.f32 %v15830_v34, %v7003_v29  ;;  %9999 = vmatprep.mubr.f32.mxu0 %v7063_v36  ;;  %10055 = vmatprep.mubr.f32.mxu1 %v7063_v36  ;;  %v9281_v29 = vld [vmem:[%s16248_s7 + $0x10] sm:$0xff] }
 0x9f9   : > { %10000 = vmatmul.mubr.f32.gmra.mrb[108].mxu0 %v7064_v49  ;;  %10056 = vmatmul.mubr.f32.gmra.mrb[28].mxu1 %v7064_v49  ;;  %v7066_v2 = vmax.f32 %v7050_v19, 0.0  ;;  %v7407_v49 = vld [vmem:[%s16248_s7 + $0x8] sm:$0xff] }
 0x9fa   : > { %v7065_v21 = vmax.f32 %v7049_v41, 0.0  ;;  %v7484_v19 = vld [vmem:[%s16249_s8 + $0x8] sm:$0xff]  ;;  %v9283_v41 = vld [vmem:[%s16249_s8 + $0x10] sm:$0xff] }
 0x9fc   : > { %10002 = vmatprep.mubr.f32.mxu0 %v7065_v21  ;;  %10058 = vmatprep.mubr.f32.mxu1 %v7065_v21  ;;  %v9282_v21 = vld [vmem:[%s16248_s7 + $0x18] sm:$0xff] }
 0x9fd   : > { %10003 = vmatmul.mubr.f32.gmra.mrb[110].mxu0 %v7066_v2  ;;  %10059 = vmatmul.mubr.f32.gmra.mrb[30].mxu1 %v7066_v2  ;;  %v9284_v2 = vld [vmem:[%s16249_s8 + $0x18] sm:$0xff] }
 0x9fe   : > { %10093 = vmatprep.mubr.f32.mxu0 %v7406_v6  ;;  %10128 = vmatprep.mubr.f32.mxu1 %v7483_v0  ;;  %v9297_v6 = vld [vmem:[%s16248_s7 + $0x20] sm:$0xff]  ;;  %v9298_v0 = vld [vmem:[%s16248_s7 + $0x28] sm:$0xff] }
 0xab4   : > { %v9983_v14 = vpop.f32.mrb[96].mxu0  ;;  %v10039_v16 = vpop.f32.mrb[16].mxu1 }
 0xab5   : > { %v7391_v45 = vmax.f32 %v9983_v14, %v10039_v16  ;;  %v7149_v63 = vpop.f32.mrb[97].mxu0  ;;  %v7311_v59 = vpop.f32.mrb[17].mxu1  ;;  %v9285_v14 = vld [vmem:[%s16251_s10 + $0x40] sm:$0xff]  ;;  %v9286_v16 = vld [vmem:[%s16251_s10 + $0x48] sm:$0xff] }
 0xab6   : > { %v7390_v3 = vmax.f32 %v7149_v63, %v7311_v59  ;;  %v11043_v63 = vpack.c.bf16 %v9286_v16, %v9285_v14  ;;  %v9288_v59 = vld [vmem:[%s16251_s10 + $0x58] sm:$0xff] }
 0xab8   : > { %v15854_v30 = vpack.c.bf16 %v7391_v45, %v7390_v3  ;;  %v9986_v61 = vpop.f32.mrb[98].mxu0  ;;  %v10042_v40 = vpop.f32.mrb[18].mxu1  ;;  %v9287_v45 = vld [vmem:[%s16251_s10 + $0x50] sm:$0xff] }
 0xab9   : > { %v7393_v48 = vmax.f32 %v9986_v61, %v10042_v40  ;;  %v7159_v13 = vpop.f32.mrb[99].mxu0  ;;  %v7321_v50 = vpop.f32.mrb[19].mxu1  ;;  %v11047_v3 = vpack.c.bf16 %v9288_v59, %v9287_v45  ;;  %v9289_v61 = vld [vmem:[%s16251_s10 + $0x60] sm:$0xff]  ;;  %v9290_v40 = vld [vmem:[%s16251_s10 + $0x68] sm:$0xff]  ;;  %v9313_v45 = vld [vmem:[%s16249_s8 + $0x30] sm:$0xff] }
 0xaba   : > { %v7392_v11 = vmax.f32 %v7159_v13, %v7321_v50  ;;  %10916 = vmatprep.subr.bf16.mxu0 %v15854_v30  ;;  %10948 = vmatprep.subr.bf16.mxu1 %v15854_v30  ;;  %v9291_v13 = vld [vmem:[%s16251_s10 + $0x70] sm:$0xff]  ;;  %v9292_v50 = vld [vmem:[%s16251_s10 + $0x78] sm:$0xff]  ;;  %v9320_v59 = vld [vmem:[%s16251_s10 + $0xe8] sm:$0xff] }
 0xabb   : > { %10918 = vmatpush3.bf16.msra.mxu0 %v15854_v30  ;;  %10950 = vmatpush3.bf16.msra.mxu1 %v15854_v30 }
 0xabc   : > { %v15860_v34 = vpack.c.bf16 %v7393_v48, %v7392_v11  ;;  %v9989_v51 = vpop.f32.mrb[100].mxu0  ;;  %v10045_v5 = vpop.f32.mrb[20].mxu1  ;;  %v11051_v48 = vpack.c.bf16 %v9290_v40, %v9289_v61  ;;  %v11055_v11 = vpack.c.bf16 %v9292_v50, %v9291_v13  ;;  %v9322_v61 = vld [vmem:[%s16251_s10 + $0xf8] sm:$0xff]  ;;  %v8411_v50 = vld [vmem:[%s16253_s12] sm:$0xff] }
 0xabd   : > { %v7395_v24 = vmax.f32 %v9989_v51, %v10045_v5  ;;  %v7169_v25 = vpop.f32.mrb[101].mxu0  ;;  %v7331_v18 = vpop.f32.mrb[21].mxu1  ;;  %v7562_v51 = vld [vmem:[%s16251_s10] sm:$0xff]  ;;  %v7563_v5 = vld [vmem:[%s16251_s10 + $0x8] sm:$0xff] }
 0xabe   : > { %v7394_v42 = vmax.f32 %v7169_v25, %v7331_v18  ;;  %10920 = vmatprep.subr.bf16.mxu0 %v15860_v34  ;;  %10952 = vmatprep.subr.bf16.mxu1 %v15860_v34 }
 0xabf   : > { %10922 = vmatpush3.bf16.msra.mxu0 %v15860_v34  ;;  %10954 = vmatpush3.bf16.msra.mxu1 %v15860_v34 }
 0xac0   : > { %v15866_v56 = vpack.c.bf16 %v7395_v24, %v7394_v42  ;;  %v9992_v37 = vpop.f32.mrb[102].mxu0  ;;  %v10048_v57 = vpop.f32.mrb[22].mxu1  ;;  %v11059_v24 = vpack.c.bf16 %v7563_v5, %v7562_v51  ;;  %v8413_v51 = vld [vmem:[%s16253_s12 + $0x10] sm:$0xff] }
 0xac1   : > { %v7397_v52 = vmax.f32 %v9992_v37, %v10048_v57  ;;  %v7179_v44 = vpop.f32.mrb[103].mxu0  ;;  %v7341_v27 = vpop.f32.mrb[23].mxu1 }
 0xac2   : > { %v7396_v38 = vmax.f32 %v7179_v44, %v7341_v27  ;;  %10924 = vmatprep.subr.bf16.mxu0 %v15866_v56  ;;  %10956 = vmatprep.subr.bf16.mxu1 %v15866_v56 }
 0xac3   : > { %10926 = vmatpush3.bf16.msra.mxu0 %v15866_v56  ;;  %10958 = vmatpush3.bf16.msra.mxu1 %v15866_v56 }
 0xac4   : > { %v15872_v10 = vpack.c.bf16 %v7397_v52, %v7396_v38  ;;  %v9995_v43 = vpop.f32.mrb[104].mxu0  ;;  %v10051_v9 = vpop.f32.mrb[24].mxu1  ;;  %v7564_v38 = vld [vmem:[%s16251_s10 + $0x10] sm:$0xff] }
 0xac5   : > { %v7399_v46 = vmax.f32 %v9995_v43, %v10051_v9  ;;  %v7189_v4 = vpop.f32.mrb[105].mxu0  ;;  %v7351_v23 = vpop.f32.mrb[25].mxu1  ;;  %v7565_v43 = vld [vmem:[%s16251_s10 + $0x18] sm:$0xff] }
 0xac6   : > { %v7398_v32 = vmax.f32 %v7189_v4, %v7351_v23  ;;  %10928 = vmatprep.subr.bf16.mxu0 %v15872_v10  ;;  %10960 = vmatprep.subr.bf16.mxu1 %v15872_v10 }
 0xac7   : > { %10930 = vmatpush3.bf16.msra.mxu0 %v15872_v10  ;;  %10962 = vmatpush3.bf16.msra.mxu1 %v15872_v10 }
 0xac8   : > { %v15878_v53 = vpack.c.bf16 %v7399_v46, %v7398_v32  ;;  %v9998_v28 = vpop.f32.mrb[106].mxu0  ;;  %v10054_v60 = vpop.f32.mrb[26].mxu1  ;;  %v11063_v32 = vpack.c.bf16 %v7565_v43, %v7564_v38  ;;  %v8420_v38 = vld [vmem:[%s16253_s12 + $0x48] sm:$0xff] }
 0xac9   : > { %v7401_v20 = vmax.f32 %v9998_v28, %v10054_v60  ;;  %v7199_v47 = vpop.f32.mrb[107].mxu0  ;;  %v7361_v7 = vpop.f32.mrb[27].mxu1  ;;  %v7566_v28 = vld [vmem:[%s16251_s10 + $0x20] sm:$0xff]  ;;  %v7567_v60 = vld [vmem:[%s16251_s10 + $0x28] sm:$0xff] }
 0xaca   : > { %v7400_v33 = vmax.f32 %v7199_v47, %v7361_v7  ;;  %10932 = vmatprep.subr.bf16.mxu0 %v15878_v53  ;;  %10964 = vmatprep.subr.bf16.mxu1 %v15878_v53  ;;  %v7568_v47 = vld [vmem:[%s16251_s10 + $0x30] sm:$0xff]  ;;  %v7569_v7 = vld [vmem:[%s16251_s10 + $0x38] sm:$0xff] }
 0xacb   : > { %10934 = vmatpush3.bf16.msra.mxu0 %v15878_v53  ;;  %10966 = vmatpush3.bf16.msra.mxu1 %v15878_v53 }
 0xacc   : > { %v15884_v17 = vpack.c.bf16 %v7401_v20, %v7400_v33  ;;  %v10001_v15 = vpop.f32.mrb[108].mxu0  ;;  %v10057_v62 = vpop.f32.mrb[28].mxu1  ;;  %v11067_v20 = vpack.c.bf16 %v7567_v60, %v7566_v28  ;;  %v11071_v33 = vpack.c.bf16 %v7569_v7, %v7568_v47  ;;  %v8424_v47 = vld [vmem:[%s16253_s12 + $0x68] sm:$0xff] }
 0xacd   : > { %v7403_v39 = vmax.f32 %v10001_v15, %v10057_v62  ;;  %v7209_v22 = vpop.f32.mrb[109].mxu0  ;;  %v7371_v35 = vpop.f32.mrb[29].mxu1  ;;  %v9299_v15 = vld [vmem:[%s16249_s8 + $0x20] sm:$0xff] }
 0xace   : > { %v7402_v58 = vmax.f32 %v7209_v22, %v7371_v35  ;;  %10936 = vmatprep.subr.bf16.mxu0 %v15884_v17  ;;  %10968 = vmatprep.subr.bf16.mxu1 %v15884_v17  ;;  %v9302_v22 = vld [vmem:[%s16251_s10 + $0x88] sm:$0xff] }
 0xacf   : > { %10938 = vmatpush3.bf16.msra.mxu0 %v15884_v17  ;;  %10970 = vmatpush3.bf16.msra.mxu1 %v15884_v17 }
 0xad0   : > { %v15890_v26 = vpack.c.bf16 %v7403_v39, %v7402_v58  ;;  %v10004_v12 = vpop.f32.mrb[110].mxu0  ;;  %v10060_v8 = vpop.f32.mrb[30].mxu1  ;;  %v9301_v39 = vld [vmem:[%s16251_s10 + $0x80] sm:$0xff]  ;;  %v9303_v58 = vld [vmem:[%s16251_s10 + $0x90] sm:$0xff] }
 0xad1   : > { %v7405_v55 = vmax.f32 %v10004_v12, %v10060_v8  ;;  %v7219_v54 = vpop.f32.mrb[111].mxu0  ;;  %v7381_v31 = vpop.f32.mrb[31].mxu1  ;;  %v11139_v35 = vpack.c.bf16 %v9302_v22, %v9301_v39  ;;  %v9304_v12 = vld [vmem:[%s16251_s10 + $0x98] sm:$0xff]  ;;  %v9300_v8 = vld [vmem:[%s16249_s8 + $0x28] sm:$0xff]  ;;  %v9325_v22 = vld [vmem:[%s16252_s11] ss:$0 sm:$0xff] }
 0xad2   : > { %v7404_v36 = vmax.f32 %v7219_v54, %v7381_v31  ;;  %10940 = vmatprep.subr.bf16.mxu0 %v15890_v26  ;;  %10972 = vmatprep.subr.bf16.mxu1 %v15890_v26  ;;  %v9305_v54 = vld [vmem:[%s16251_s10 + $0xa0] sm:$0xff]  ;;  %v9306_v31 = vld [vmem:[%s16251_s10 + $0xa8] sm:$0xff] }
 0xad3   : > { %10942 = vmatpush3.bf16.msra.mxu0 %v15890_v26  ;;  %10974 = vmatpush3.bf16.msra.mxu1 %v15890_v26 }
 0xad4   : > { %v15896_v1 = vpack.c.bf16 %v7405_v55, %v7404_v36  ;;  %v11143_v55 = vpack.c.bf16 %v9304_v12, %v9303_v58  ;;  %v11147_v36 = vpack.c.bf16 %v9306_v31, %v9305_v54  ;;  %v8520_v54 = vld [vmem:[%s16255_s14 + $0x18] sm:$0xff] }
 0xad6   : > { %10944 = vmatprep.subr.bf16.mxu0 %v15896_v1  ;;  %10976 = vmatprep.subr.bf16.mxu1 %v15896_v1 }
 0xad7   : > { %10946 = vmatpush3.bf16.msra.mxu0 %v15896_v1  ;;  %10978 = vmatpush3.bf16.msra.mxu1 %v15896_v1 }
 0xad8   : > { %10980 = vmatprep.subr.bf16.mxu0 %v15854_v30  ;;  %11012 = vmatprep.subr.bf16.mxu1 %v15854_v30 }
 0xada   : > { %10094 = vmatmul.mubr.f32.vlgmr.msra.gmra.mrb[112].mxu0 %v7407_v49  ;;  %10129 = vmatmul.mubr.f32.vlgmr.msra.gmra.mrb[32].mxu1 %v7484_v19  ;;  %v9307_v49 = vld [vmem:[%s16251_s10 + $0xb0] sm:$0xff]  ;;  %v9308_v19 = vld [vmem:[%s16251_s10 + $0xb8] sm:$0xff] }
 0xadb   : > { %10982 = vmatpush3.bf16.msra.mxu0 %v15854_v30  ;;  %11014 = vmatpush3.bf16.msra.mxu1 %v15854_v30 }
 0xadc   : > { %10984 = vmatprep.subr.bf16.mxu0 %v15860_v34  ;;  %11016 = vmatprep.subr.bf16.mxu1 %v15860_v34 }
 0xadd   : > { %10163 = vmatprep.mubr.f32.mxu0 %v9281_v29  ;;  %10198 = vmatprep.mubr.f32.mxu1 %v9283_v41  ;;  %v11151_v29 = vpack.c.bf16 %v9308_v19, %v9307_v49  ;;  %v8521_v19 = vld [vmem:[%s16255_s14 + $0x20] sm:$0xff] }
 0xadf   : > { %10986 = vmatpush3.bf16.msra.mxu0 %v15860_v34  ;;  %11018 = vmatpush3.bf16.msra.mxu1 %v15860_v34 }
 0xae0   : > { %10988 = vmatprep.subr.bf16.mxu0 %v15866_v56  ;;  %11020 = vmatprep.subr.bf16.mxu1 %v15866_v56 }
 0xae3   : > { %10990 = vmatpush3.bf16.msra.mxu0 %v15866_v56  ;;  %11022 = vmatpush3.bf16.msra.mxu1 %v15866_v56 }
 0xae4   : > { %10992 = vmatprep.subr.bf16.mxu0 %v15872_v10  ;;  %11024 = vmatprep.subr.bf16.mxu1 %v15872_v10 }
 0xae7   : > { %10994 = vmatpush3.bf16.msra.mxu0 %v15872_v10  ;;  %11026 = vmatpush3.bf16.msra.mxu1 %v15872_v10 }
 0xae8   : > { %10996 = vmatprep.subr.bf16.mxu0 %v15878_v53  ;;  %11028 = vmatprep.subr.bf16.mxu1 %v15878_v53 }
 0xaeb   : > { %10998 = vmatpush3.bf16.msra.mxu0 %v15878_v53  ;;  %11030 = vmatpush3.bf16.msra.mxu1 %v15878_v53 }
 0xaec   : > { %11000 = vmatprep.subr.bf16.mxu0 %v15884_v17  ;;  %11032 = vmatprep.subr.bf16.mxu1 %v15884_v17 }
 0xaef   : > { %11002 = vmatpush3.bf16.msra.mxu0 %v15884_v17  ;;  %11034 = vmatpush3.bf16.msra.mxu1 %v15884_v17 }
 0xaf0   : > { %11004 = vmatprep.subr.bf16.mxu0 %v15890_v26  ;;  %11036 = vmatprep.subr.bf16.mxu1 %v15890_v26 }
 0xaf3   : > { %11006 = vmatpush3.bf16.msra.mxu0 %v15890_v26  ;;  %11038 = vmatpush3.bf16.msra.mxu1 %v15890_v26 }
 0xaf4   : > { %11008 = vmatprep.subr.bf16.mxu0 %v15896_v1  ;;  %11040 = vmatprep.subr.bf16.mxu1 %v15896_v1 }
 0xaf7   : > { %11010 = vmatpush3.bf16.msra.mxu0 %v15896_v1  ;;  %11042 = vmatpush3.bf16.msra.mxu1 %v15896_v1 }
 0xaf8   : > { %11076 = vmatprep.subr.bf16.mxu1 %v15854_v30  ;;  %11044 = vmatprep.subr.bf16.mxu0 %v11043_v63 }
 0xafa   : > { %10164 = vmatmul.mubr.f32.vlgmr.msra.gmra.mrb[114].mxu0 %v9282_v21  ;;  %10199 = vmatmul.mubr.f32.vlgmr.msra.gmra.mrb[34].mxu1 %v9284_v2  ;;  %v9311_v21 = vld [vmem:[%s16248_s7 + $0x30] sm:$0xff]  ;;  %v9312_v2 = vld [vmem:[%s16248_s7 + $0x38] sm:$0xff] }
 0xafb   : > { %11078 = vmatpush3.bf16.msra.mxu1 %v15854_v30  ;;  %10271 = vmatprep.mubr.f32.mxu1 %v9297_v6 }
 0xafc   : > { %11080 = vmatprep.subr.bf16.mxu1 %v15860_v34  ;;  %11046 = vmatpush3.bf16.msra.mxu0 %v11043_v63 }
 0xafd   : > { %11048 = vmatprep.subr.bf16.mxu0 %v11047_v3 }
 0xaff   : > { %11082 = vmatpush3.bf16.msra.mxu1 %v15860_v34 }
 0xb00   : > { %11084 = vmatprep.subr.bf16.mxu1 %v15866_v56  ;;  %11050 = vmatpush3.bf16.msra.mxu0 %v11047_v3 }
 0xb01   : > { %11052 = vmatprep.subr.bf16.mxu0 %v11051_v48 }
 0xb03   : > { %11086 = vmatpush3.bf16.msra.mxu1 %v15866_v56 }
 0xb04   : > { %11088 = vmatprep.subr.bf16.mxu1 %v15872_v10  ;;  %11054 = vmatpush3.bf16.msra.mxu0 %v11051_v48 }
 0xb05   : > { %11056 = vmatprep.subr.bf16.mxu0 %v11055_v11 }
 0xb07   : > { %11090 = vmatpush3.bf16.msra.mxu1 %v15872_v10 }
 0xb08   : > { %11092 = vmatprep.subr.bf16.mxu1 %v15878_v53  ;;  %11058 = vmatpush3.bf16.msra.mxu0 %v11055_v11  ;;  %v8412_v11 = vld [vmem:[%s16253_s12 + $0x8] sm:$0xff] }
 0xb09   : > { %11060 = vmatprep.subr.bf16.mxu0 %v11059_v24  ;;  %v11235_v5 = vpack.c.bf16 %v8412_v11, %v8411_v50 }
 0xb0b   : > { %11094 = vmatpush3.bf16.msra.mxu1 %v15878_v53 }
 0xb0c   : > { %11096 = vmatprep.subr.bf16.mxu1 %v15884_v17 }
 0xb0f   : > { %11098 = vmatpush3.bf16.msra.mxu1 %v15884_v17 }
 0xb10   : > { %11100 = vmatprep.subr.bf16.mxu1 %v15890_v26 }
 0xb13   : > { %11102 = vmatpush3.bf16.msra.mxu1 %v15890_v26 }
 0xb14   : > { %11104 = vmatprep.subr.bf16.mxu1 %v15896_v1 }
 0xb17   : > { %11106 = vmatpush3.bf16.msra.mxu1 %v15896_v1 }
 0xb18   : > { %11156 = vmatprep.subr.bf16.mxu1 %v15854_v30 }
 0xb1a   : > { %10272 = vmatmul.mubr.f32.vlgmr.msra.gmra.mrb[36].mxu1 %v9298_v0 }
 0xb1b   : > { %11158 = vmatpush3.bf16.msra.mxu1 %v15854_v30  ;;  %10360 = vmatprep.mubr.f32.mxu1 %v9311_v21  ;;  %v8523_v21 = vld [vmem:[%s16255_s14 + $0x30] sm:$0xff] }
 0xb1c   : > { %11160 = vmatprep.subr.bf16.mxu1 %v15860_v34 }
 0xb1f   : > { %11162 = vmatpush3.bf16.msra.mxu1 %v15860_v34 }
 0xb20   : > { %11164 = vmatprep.subr.bf16.mxu1 %v15866_v56 }
 0xb23   : > { %11166 = vmatpush3.bf16.msra.mxu1 %v15866_v56 }
 0xb24   : > { %11168 = vmatprep.subr.bf16.mxu1 %v15872_v10 }
 0xb27   : > { %11170 = vmatpush3.bf16.msra.mxu1 %v15872_v10 }
 0xb28   : > { %11172 = vmatprep.subr.bf16.mxu1 %v15878_v53 }
 0xb2b   : > { %11174 = vmatpush3.bf16.msra.mxu1 %v15878_v53 }
 0xb2c   : > { %11176 = vmatprep.subr.bf16.mxu1 %v15884_v17 }
 0xb2f   : > { %11178 = vmatpush3.bf16.msra.mxu1 %v15884_v17 }
 0xb30   : > { %11180 = vmatprep.subr.bf16.mxu1 %v15890_v26 }
 0xb33   : > { %11182 = vmatpush3.bf16.msra.mxu1 %v15890_v26 }
 0xb34   : > { %11184 = vmatprep.subr.bf16.mxu1 %v15896_v1 }
 0xb37   : > { %11186 = vmatpush3.bf16.msra.mxu1 %v15896_v1 }
 0xb38   : > { %11236 = vmatprep.subr.bf16.mxu1 %v11235_v5 }
 0xb3a   : > { %10361 = vmatmul.mubr.f32.vlgmr.msra.gmra.mrb[38].mxu1 %v9312_v2  ;;  %v8524_v2 = vld [vmem:[%s16255_s14 + $0x38] sm:$0xff] }
 0xb3b   : > { %11238 = vmatpush3.bf16.msra.mxu1 %v11235_v5 }
 0xbad   : > { %v10095_v25 = vpop.f32.mrb[112].mxu0  ;;  %v10130_v18 = vpop.f32.mrb[32].mxu1 }
 0xbae   : > { %v7561_v42 = vmax.f32 %v10095_v25, %v10130_v18  ;;  %v7474_v37 = vpop.f32.mrb[113].mxu0  ;;  %v7551_v57 = vpop.f32.mrb[33].mxu1  ;;  %v8415_v18 = vld [vmem:[%s16253_s12 + $0x20] sm:$0xff] }
 0xbaf   : > { %v7560_v52 = vmax.f32 %v7474_v37, %v7551_v57  ;;  %v8417_v57 = vld [vmem:[%s16253_s12 + $0x30] sm:$0xff] }
 0xbcd   : > { %v10165_v44 = vpop.f32.mrb[114].mxu0  ;;  %v10200_v27 = vpop.f32.mrb[34].mxu1 }
 0xbce   : > { %v7727_v9 = vmax.f32 %v10165_v44, %v10200_v27  ;;  %v7639_v46 = vpop.f32.mrb[115].mxu0  ;;  %v7717_v4 = vpop.f32.mrb[35].mxu1  ;;  %v8419_v27 = vld [vmem:[%s16253_s12 + $0x40] sm:$0xff] }
 0xbcf   : > { %v7726_v23 = vmax.f32 %v7639_v46, %v7717_v4  ;;  %v11251_v43 = vpack.c.bf16 %v8420_v38, %v8419_v27  ;;  %v8422_v46 = vld [vmem:[%s16253_s12 + $0x58] sm:$0xff] }
 0xbd1   : > { %10217 = vmatprep.mubr.msk.f32.mxu0 %vm7737_vm9, %v7726_v23 }
 0xbd2   : > { %10218 = vmatmul.mubr.msk.f32.vlgmr.msra.gmra.mrb[116].mxu0 %vm7737_vm9, %v7727_v9  ;;  %v8421_v9 = vld [vmem:[%s16253_s12 + $0x50] sm:$0xff] }
 0xbd3   : > { %11062 = vmatpush3.bf16.msra.mxu0 %v11059_v24  ;;  %10236 = vmatprep.mubr.msk.f32.mxu0 %vm7737_vm9, %v7560_v52  ;;  %v8414_v24 = vld [vmem:[%s16253_s12 + $0x18] sm:$0xff]  ;;  %v11255_v4 = vpack.c.bf16 %v8422_v46, %v8421_v9 }
 0xbd4   : > { %11064 = vmatprep.subr.bf16.mxu0 %v11063_v32  ;;  %v11239_v25 = vpack.c.bf16 %v8414_v24, %v8413_v51  ;;  %v8418_v52 = vld [vmem:[%s16253_s12 + $0x38] sm:$0xff] }
 0xbd5   : > { %v11247_v44 = vpack.c.bf16 %v8418_v52, %v8417_v57 }
 0xbd6   : > { %11240 = vmatprep.subr.bf16.mxu1 %v11239_v25 }
 0xbd7   : > { %11066 = vmatpush3.bf16.msra.mxu0 %v11063_v32  ;;  %11242 = vmatpush3.bf16.msra.mxu1 %v11239_v25 }
 0xbd8   : > { %11068 = vmatprep.subr.bf16.mxu0 %v11067_v20 }
 0xbdb   : > { %11070 = vmatpush3.bf16.msra.mxu0 %v11067_v20  ;;  %v8423_v20 = vld [vmem:[%s16253_s12 + $0x60] sm:$0xff] }
 0xbdc   : > { %11072 = vmatprep.subr.bf16.mxu0 %v11071_v33  ;;  %v11259_v7 = vpack.c.bf16 %v8424_v47, %v8423_v20 }
 0xbdf   : > { %11074 = vmatpush3.bf16.msra.mxu0 %v11071_v33  ;;  %v8425_v33 = vld [vmem:[%s16253_s12 + $0x70] sm:$0xff] }
 0xbe0   : > { %11108 = vmatprep.subr.bf16.mxu0 %v15854_v30 }
 0xbe2   : > { %10237 = vmatmul.mubr.msk.f32.vlgmr.msra.gmra.mrb[116].mxu0 %vm7737_vm9, %v7561_v42  ;;  %v8416_v42 = vld [vmem:[%s16253_s12 + $0x28] sm:$0xff] }
 0xbe3   : > { %11110 = vmatpush3.bf16.msra.mxu0 %v15854_v30  ;;  %10306 = vmatprep.mubr.f32.mxu0 %v9299_v15  ;;  %v11243_v37 = vpack.c.bf16 %v8416_v42, %v8415_v18  ;;  %v8517_v15 = vld [vmem:[%s16255_s14] sm:$0xff] }
 0xbe4   : > { %11112 = vmatprep.subr.bf16.mxu0 %v15860_v34 }
 0xbe5   : > { %11244 = vmatprep.subr.bf16.mxu1 %v11243_v37 }
 0xbe6   : > { %11246 = vmatpush3.bf16.msra.mxu1 %v11243_v37 }
 0xbe7   : > { %11114 = vmatpush3.bf16.msra.mxu0 %v15860_v34  ;;  %11248 = vmatprep.subr.bf16.mxu1 %v11247_v44 }
 0xbe8   : > { %11116 = vmatprep.subr.bf16.mxu0 %v15866_v56 }
 0xbea   : > { %11250 = vmatpush3.bf16.msra.mxu1 %v11247_v44 }
 0xbeb   : > { %11118 = vmatpush3.bf16.msra.mxu0 %v15866_v56  ;;  %11252 = vmatprep.subr.bf16.mxu1 %v11251_v43 }
 0xbec   : > { %11120 = vmatprep.subr.bf16.mxu0 %v15872_v10 }
 0xbed   : > { %v10273_v62 = vpop.f32.mrb[36].mxu1 }
 0xbee   : > { %v7969_v41 = vpop.f32.mrb[37].mxu1  ;;  %11254 = vmatpush3.bf16.msra.mxu1 %v11251_v43 }
 0xbef   : > { %11122 = vmatpush3.bf16.msra.mxu0 %v15872_v10  ;;  %11256 = vmatprep.subr.bf16.mxu1 %v11255_v4 }
 0xbf0   : > { %11124 = vmatprep.subr.bf16.mxu0 %v15878_v53 }
 0xbf2   : > { %11258 = vmatpush3.bf16.msra.mxu1 %v11255_v4 }
 0xbf3   : > { %11126 = vmatpush3.bf16.msra.mxu0 %v15878_v53  ;;  %11260 = vmatprep.subr.bf16.mxu1 %v11259_v7 }
 0xbf4   : > { %11128 = vmatprep.subr.bf16.mxu0 %v15884_v17 }
 0xbf6   : > { %11262 = vmatpush3.bf16.msra.mxu1 %v11259_v7 }
 0xbf7   : > { %11130 = vmatpush3.bf16.msra.mxu0 %v15884_v17  ;;  %10445 = vmatprep.subr.mxu1 %v8425_v33 }
 0xbf8   : > { %11132 = vmatprep.subr.bf16.mxu0 %v15890_v26 }
 0xbfa   : > { %10446 = vmatpush3.msra.mxu1 %v8425_v33 }
 0xbfb   : > { %11134 = vmatpush3.bf16.msra.mxu0 %v15890_v26 }
 0xbfc   : > { %11136 = vmatprep.subr.bf16.mxu0 %v15896_v1 }
 0xbff   : > { %11138 = vmatpush3.bf16.msra.mxu0 %v15896_v1 }
 0xc00   : > { %11140 = vmatprep.subr.bf16.mxu0 %v11139_v35 }
 0xc02   : > { %10307 = vmatmul.mubr.f32.vlgmr.msra.gmra.mrb[118].mxu0 %v9300_v8 }
 0xc03   : > { %11142 = vmatpush3.bf16.msra.mxu0 %v11139_v35 }
 0xc04   : > { %11144 = vmatprep.subr.bf16.mxu0 %v11143_v55 }
 0xc07   : > { %11146 = vmatpush3.bf16.msra.mxu0 %v11143_v55  ;;  %v8519_v55 = vld [vmem:[%s16255_s14 + $0x10] sm:$0xff] }
 0xc08   : > { %11148 = vmatprep.subr.bf16.mxu0 %v11147_v36  ;;  %v11267_v49 = vpack.c.bf16 %v8520_v54, %v8519_v55 }
 0xc0b   : > { %11150 = vmatpush3.bf16.msra.mxu0 %v11147_v36 }
 0xc0c   : > { %11152 = vmatprep.subr.bf16.mxu0 %v11151_v29 }
 0xc0d   : > { %v10362_v40 = vpop.f32.mrb[38].mxu1 }
 0xc0e   : > { %v8219_v13 = vpop.f32.mrb[39].mxu1 }
 0xc0f   : > { %11154 = vmatpush3.bf16.msra.mxu0 %v11151_v29  ;;  %v8522_v29 = vld [vmem:[%s16255_s14 + $0x28] sm:$0xff] }
 0xc10   : > { %11188 = vmatprep.subr.bf16.mxu0 %v15854_v30 }
 0xcd5   : > { %v10308_v6 = vpop.f32.mrb[118].mxu0 }
 0xcd6   : > { %v8057_v0 = vmax.f32 %v10273_v62, %v10308_v6  ;;  %v8047_v14 = vpop.f32.mrb[119].mxu0  ;;  %v8518_v62 = vld [vmem:[%s16255_s14 + $0x8] sm:$0xff]  ;;  %v11275_v6 = vpack.c.bf16 %v8524_v2, %v8523_v21 }
 0xcd7   : > { %v8056_v16 = vmax.f32 %v7969_v41, %v8047_v14  ;;  %v11263_v39 = vpack.c.bf16 %v8518_v62, %v8517_v15  ;;  %v11271_v41 = vpack.c.bf16 %v8522_v29, %v8521_v19  ;;  %v8526_v14 = vld [vmem:[%s16255_s14 + $0x48] sm:$0xff] }
 0xcd9   : > { %10325 = vmatprep.mubr.msk.f32.mxu0 %vm7737_vm9, %v8056_v16  ;;  %11264 = vmatprep.subr.bf16.mxu1 %v11263_v39 }
 0xcda   : > { %10326 = vmatmul.mubr.msk.f32.vlgmr.msra.gmra.mrb[116].mxu0 %vm7737_vm9, %v8057_v0  ;;  %v8525_v0 = vld [vmem:[%s16255_s14 + $0x40] sm:$0xff] }
 0xcdb   : > { %11190 = vmatpush3.bf16.msra.mxu0 %v15854_v30  ;;  %10395 = vmatprep.mubr.f32.mxu0 %v9313_v45  ;;  %v9315_v30 = vld [vmem:[%s16251_s10 + $0xc0] sm:$0xff]  ;;  %v11279_v16 = vpack.c.bf16 %v8526_v14, %v8525_v0  ;;  %v8527_v45 = vld [vmem:[%s16255_s14 + $0x50] sm:$0xf] }
 0xcdc   : > { %11192 = vmatprep.subr.bf16.mxu0 %v15860_v34 }
 0xcdf   : > { %11194 = vmatpush3.bf16.msra.mxu0 %v15860_v34  ;;  %v9316_v34 = vld [vmem:[%s16251_s10 + $0xc8] sm:$0xff] }
 0xce0   : > { %11196 = vmatprep.subr.bf16.mxu0 %v15866_v56 }
 0xce3   : > { %11198 = vmatpush3.bf16.msra.mxu0 %v15866_v56  ;;  %v11219_v56 = vpack.c.bf16 %v9316_v34, %v9315_v30  ;;  %v9326_v30 = vld [vmem:[%s16254_s13] ss:$0 sm:$0xff] }
 0xce4   : > { %11200 = vmatprep.subr.bf16.mxu0 %v15872_v10 }
 0xce7   : > { %11202 = vmatpush3.bf16.msra.mxu0 %v15872_v10  ;;  %v9317_v10 = vld [vmem:[%s16251_s10 + $0xd0] sm:$0xff] }
 0xce8   : > { %11204 = vmatprep.subr.bf16.mxu0 %v15878_v53 }
 0xceb   : > { %11206 = vmatpush3.bf16.msra.mxu0 %v15878_v53  ;;  %v9318_v53 = vld [vmem:[%s16251_s10 + $0xd8] sm:$0xff] }
 0xcec   : > { %11208 = vmatprep.subr.bf16.mxu0 %v15884_v17  ;;  %v11223_v63 = vpack.c.bf16 %v9318_v53, %v9317_v10 }
 0xcef   : > { %11210 = vmatpush3.bf16.msra.mxu0 %v15884_v17  ;;  %v9314_v17 = vld [vmem:[%s16249_s8 + $0x38] sm:$0xff] }
 0xcf0   : > { %11212 = vmatprep.subr.bf16.mxu0 %v15890_v26 }
 0xcf3   : > { %11214 = vmatpush3.bf16.msra.mxu0 %v15890_v26  ;;  %v9319_v26 = vld [vmem:[%s16251_s10 + $0xe0] sm:$0xff] }
 0xcf4   : > { %11216 = vmatprep.subr.bf16.mxu0 %v15896_v1  ;;  %v11227_v3 = vpack.c.bf16 %v9320_v59, %v9319_v26  ;;  %v9329_v26 = vld [vmem:[%s16256_s15] ss:$0 sm:$0xff] }
 0xcf7   : > { %11218 = vmatpush3.bf16.msra.mxu0 %v15896_v1  ;;  %v9321_v1 = vld [vmem:[%s16251_s10 + $0xf0] sm:$0xff] }
 0xcf8   : > { %11220 = vmatprep.subr.bf16.mxu0 %v11219_v56  ;;  %v11231_v48 = vpack.c.bf16 %v9322_v61, %v9321_v1 }
 0xcfa   : > { %10396 = vmatmul.mubr.f32.vlgmr.msra.gmra.mrb[120].mxu0 %v9314_v17 }
 0xcfb   : > { %11222 = vmatpush3.bf16.msra.mxu0 %v11219_v56 }
 0xcfc   : > { %11224 = vmatprep.subr.bf16.mxu0 %v11223_v63 }
 0xcff   : > { %11226 = vmatpush3.bf16.msra.mxu0 %v11223_v63 }
 0xd00   : > { %11228 = vmatprep.subr.bf16.mxu0 %v11227_v3 }
 0xd03   : > { %11230 = vmatpush3.bf16.msra.mxu0 %v11227_v3 }
 0xd04   : > { %11232 = vmatprep.subr.bf16.mxu0 %v11231_v48 }
 0xd07   : > { %11234 = vmatpush3.bf16.msra.mxu0 %v11231_v48 }
 0xdcd   : > { %v10397_v23 = vpop.f32.mrb[120].mxu0 }
 0xdce   : > { %v8307_v32 = vmax.f32 %v10362_v40, %v10397_v23  ;;  %v8297_v28 = vpop.f32.mrb[121].mxu0 }
 0xdcf   : > { %v8306_v60 = vmax.f32 %v8219_v13, %v8297_v28 }
 0xdd1   : > { %10414 = vmatprep.mubr.msk.f32.mxu0 %vm7737_vm9, %v8306_v60 }
 0xdd2   : > { %10415 = vmatmul.mubr.msk.f32.vlgmr.msra.gmra.mrb[116].mxu0 %vm7737_vm9, %v8307_v32 }
 0xea5   : > { %v10416_v35 = vpop.f32.mrb[116].mxu0 }
 0xea6   : > { %v8408_v58 = vadd.f32 %v10416_v35, %v9325_v22  ;;  %v8389_v12 = vpop.f32.mrb[117].mxu0 }
 0xea7   : > { %v8407_v8 = vadd.f32 %v9325_v22, %v8389_v12 }
 0xea8   : > { %v8410_v36 = vmax.f32 %v8408_v58, 0.0 }
 0xea9   : > { %v8409_v31 = vmax.f32 %v8407_v8, 0.0 }
 0xeab   : > { %10447 = vmatprep.mubr.msk.f32.mxu1 %vm8433_vm10, %v8409_v31 }
 0xeac   : > { %10448 = vmatmul.mubr.msk.f32.vlgmr.msra.gmra.mrb[40].mxu1 %vm8433_vm10, %v8410_v36 }
 0xead   : > { %11266 = vmatpush3.bf16.msra.mxu1 %v11263_v39 }
 0xeae   : > { %11268 = vmatprep.subr.bf16.mxu1 %v11267_v49 }
 0xeb1   : > { %11270 = vmatpush3.bf16.msra.mxu1 %v11267_v49 }
 0xeb2   : > { %11272 = vmatprep.subr.bf16.mxu1 %v11271_v41 }
 0xeb5   : > { %11274 = vmatpush3.bf16.msra.mxu1 %v11271_v41 }
 0xeb6   : > { %11276 = vmatprep.subr.bf16.mxu1 %v11275_v6 }
 0xeb9   : > { %11278 = vmatpush3.bf16.msra.mxu1 %v11275_v6 }
 0xeba   : > { %11280 = vmatprep.subr.bf16.mxu1 %v11279_v16 }
 0xebd   : > { %11282 = vmatpush3.bf16.msra.mxu1 %v11279_v16 }
 0xebe   : > { %10470 = vmatprep.subr.msk.mxu1 %vm883_vm0, %v8527_v45 }
 0xec1   : > { %10471 = vmatpush3.msk.msra.mxu1 %vm883_vm0, %v8527_v45 }
 0xf7f   : > { %v10449_v34 = vpop.f32.mrb[40].mxu1 }
 0xf80   : > { %v8512_v56 = vadd.f32 %v10449_v34, %v9326_v30  ;;  %v8506_v10 = vpop.f32.mrb[41].mxu1 }
 0xf81   : > { %v8507_v53 = vadd.f32 %v9326_v30, %v8506_v10 }
 0xf82   : > { %v8516_v63 = vmax.f32 %v8512_v56, 0.0 }
 0xf83   : > { %v8515_v17 = vmax.f32 %v8507_v53, 0.0 }
 0xf85   : > { %10472 = vmatprep.mubr.msk.f32.mxu1 %vm8535_vm11, %v8515_v17 }
 0xf86   : > { %10473 = vmatmul.mubr.msk.f32.vlgmr.msra.gmra.mrb[42].mxu1 %vm8535_vm11, %v8516_v63 }
0x1059   : > { %v10474_v59 = vpop.f32.mrb[42].mxu1 }
0x105a   : > { %v8611_v3 = vpop.f32.mrb[43].mxu1  ;;  %v8617_v61 = vadd.f32 %v10474_v59, %v9329_v26 }
0x105b   : > { %v8612_v1 = vadd.f32 %v9329_v26, %v8611_v3 }
0x105c   : > { %8621 = vst [vmem:[%s526_s28 + $0x8] sm:$0xff] %v8617_v61 }
0x105d   : > { %8620 = vst [vmem:[%s526_s28] sm:$0xff] %v8612_v1 }
0x105e PF: > { %s26_s21 = sadd.s32 1, %s11946_s21  }
0x105f   : > { %p23_p5 = scmp.ge.s32.totalorder %s26_s21, 5  }
0x1061   :  { %25 = sbr.rel (!%p23_p5) target bundleno = 2 (0x2), region = 134 }

</bundles_post_ra>
